<compile_context>
chip_gen: v6e
topology: v6e:2x2x1
jax: 0.10.0
libtpu: 0.0.40
codegen_flags: <defaults>
</compile_context>

<pallas_src>
import functools
import numpy as np
import jax
import jax.numpy as jnp
from jax.experimental import pallas as pl
from jax.experimental.pallas import tpu as pltpu

# ----------------------------- constants -----------------------------------
N_SCALES_SMALL = 5
N_SCALES_BIG = 3
N_SCALES = N_SCALES_SMALL + N_SCALES_BIG
SCALE_RATIO = 2.0 ** (1.0 / 3.0)
BN_EPS = 1e-5

# Scale factors used by ScaleConv(mode=1).  The scale-dependent angles of the
# (u, v) output cancel under Vector2Magnitude (|r*(cos,sin)| == |r|), so they
# are not needed anywhere in this forward pass.
SCALES = tuple(float(SCALE_RATIO ** e)
               for e in range(-(N_SCALES_SMALL - 1), N_SCALES_BIG + 1))


# --------------------------- Pallas kernels ---------------------------------
def _conv_scale_kernel(p_ref, w_ref, o_ref, *, cout, n_scales):
    # (tm, K) x (K, S*Cout) on the MXU, f32 accumulation, lanes stay dense at
    # S*Cout width until the final reduction.
    acc = jnp.dot(p_ref[...], w_ref[...], preferred_element_type=jnp.float32)
    # Max over the S per-scale column groups, then |.|:
    #   Vector2Magnitude(strength*cos a, strength*sin a) == |strength|
    #   == |max over scales|  ->  no cos/sin/sqrt, no angle tracking.
    best = acc[:, 0:cout]
    for k in range(1, n_scales):
        best = jnp.maximum(best, acc[:, k * cout:(k + 1) * cout])
    o_ref[...] = jnp.abs(best)


@functools.lru_cache(maxsize=1)
def _tile_m():
    # Per-generation M tile: v7x has 64 MiB VMEM per TC (and 2 TCs) -> smaller
    # tiles; v5e/v6e have 128 MiB -> bigger tiles amortize per-step overhead.
    try:
        kind = jax.devices()[0].device_kind.lower()
    except Exception:  # pragma: no cover - defensive fallback
        return 512
    return 512 if "v7" in kind else 1024


def conv_scale_v2m_matmul(patches, w_cat, cout):
    """Fused ScaleConv matmul + max-over-scales + |.| (Vector2Magnitude)."""
    M, K = patches.shape
    SC = w_cat.shape[1]
    tm = min(_tile_m(), M)
    grid = (pl.cdiv(M, tm),)
    return pl.pallas_call(
        functools.partial(_conv_scale_kernel, cout=cout, n_scales=N_SCALES),
        out_shape=jax.ShapeDtypeStruct((M, cout), jnp.float32),
        grid=grid,
        in_specs=[pl.BlockSpec((tm, K), lambda i: (i, 0)),
                  pl.BlockSpec((K, SC), lambda i: (0, 0))],
        out_specs=pl.BlockSpec((tm, cout), lambda i: (i, 0)),
        compiler_params=pltpu.CompilerParams(
            dimension_semantics=("parallel",)),
    )(patches, w_cat)


def _head_kernel(x_ref, w1_ref, b1_ref, w2_ref, b2_ref, wa_ref, ba_ref,
                 xm_ref, xa_ref):
    # fc1 (fc1bn already folded into w1/b1) -> relu -> (dropout=id) -> fc2
    # and scale branch: (dropout=id) -> afc2.
    x = x_ref[...]
    h = jnp.dot(x, w1_ref[...], preferred_element_type=jnp.float32) + b1_ref[...]
    h = jnp.maximum(h, 0.0)
    xm_ref[...] = (jnp.dot(h.astype(w2_ref.dtype), w2_ref[...],
                           preferred_element_type=jnp.float32) + b2_ref[...])
    xa_ref[...] = (jnp.dot(x, wa_ref[...],
                           preferred_element_type=jnp.float32) + ba_ref[...])


def pallas_head(x, head_params):
    w1, b1, w2, b2, wa, ba = head_params
    Nb = x.shape[0]
    args = (x, w1, b1, w2, b2, wa, ba)

    def full(a):
        nd = a.ndim
        return pl.BlockSpec(a.shape, lambda i, _nd=nd: (0,) * _nd)

    return pl.pallas_call(
        _head_kernel,
        out_shape=(jax.ShapeDtypeStruct((Nb, 10), jnp.float32),
                   jax.ShapeDtypeStruct((Nb, 1), jnp.float32)),
        grid=(1,),
        in_specs=[full(a) for a in args],
        out_specs=(pl.BlockSpec((Nb, 10), lambda i: (0, 0)),
                   pl.BlockSpec((Nb, 1), lambda i: (0, 0))),
    )(*args)


# ------------------- parameter preparation (once / checkpoint) --------------
def _resample_matrix(size, s):
    # bilinear resampling matrix (zero-padded outside support)
    c = (size - 1) / 2.0
    coords = c + (np.arange(size) - c) / s
    i0 = np.floor(coords).astype(np.int32)
    frac = coords - i0
    i1 = i0 + 1
    a = np.arange(size)
    m0 = (a[None, :] == i0[:, None]).astype(np.float32) * (1.0 - frac)[:, None]
    m1 = (a[None, :] == i1[:, None]).astype(np.float32) * frac[:, None]
    return jnp.asarray(m0 + m1)


def _resample_weight(w, s):
    kh, kw = w.shape[-2:]
    Ry = _resample_matrix(kh, s)
    Rx = _resample_matrix(kw, s)
    return jnp.einsum('ia,ocab,jb->ocij', Ry, w, Rx)


def _make_wcat(w):
    # (Cout, Cin, 7, 7) -> (Cin*49, S*Cout) bf16: per-scale resampled filters
    # concatenated along the lane dim (column index c*49 + i*7 + j matches the
    # im2col flattening).
    Cout, Cin, kh, kw = w.shape
    mats = []
    for s in SCALES:
        ws = _resample_weight(w, s)
        mats.append(jnp.transpose(ws, (1, 2, 3, 0)).reshape(Cin * kh * kw, Cout))
    return jnp.concatenate(mats, axis=1).astype(jnp.bfloat16)


def _bn_affine(bn):
    gamma, beta, mean, var = bn
    scale = gamma * jax.lax.rsqrt(var + BN_EPS)
    return scale, beta - mean * scale


def prepare_params(params):
    """Hoisted out of the traced forward: per-scale filter resampling, w_cat
    concatenation, BN -> affine reduction, fc1bn folding and bf16 casts."""
    prep = {
        'w1': _make_wcat(params['conv1_w']),   # (49,   96)
        'w2': _make_wcat(params['conv2_w']),   # (588, 256)
        'w3': _make_wcat(params['conv3_w']),   # (1568,384)
    }
    prep['bn1'] = _bn_affine(params['bn1'])
    prep['bn2'] = _bn_affine(params['bn2'])

    (fc1_w, fc1_b, g, beta, m, v, fc2_w, fc2_b, afc2_w, afc2_b) = params['head']
    s = g * jax.lax.rsqrt(v + BN_EPS)                 # (1, 256)
    fc1_wf = (fc1_w * s).astype(jnp.bfloat16)         # fold fc1bn into fc1 (exact)
    fc1_bf = (fc1_b - m) * s + beta
    prep['head'] = (fc1_wf, fc1_bf,
                    fc2_w.astype(jnp.bfloat16), fc2_b,
                    afc2_w.astype(jnp.bfloat16), afc2_b)
    return prep


# ------------------------- JAX glue (layout only) ---------------------------
def _im2col(x_nhwc, k, pad):
    # patches flattened so column index = c*k*k + i*k + j (matches weight flat)
    # TODO(synk): could be generated inside the conv kernel via shifted pl.ds
    #             loads of a padded NHWC VMEM tile to avoid the 49x HBM blow-up.
    N, H, W, C = x_nhwc.shape
    xp = jnp.pad(x_nhwc, ((0, 0), (pad, pad), (pad, pad), (0, 0)))
    cols = [xp[:, i:i + H, j:j + W, :] for i in range(k) for j in range(k)]
    p = jnp.stack(cols, axis=3)               # (N, H, W, k*k, C)
    p = jnp.transpose(p, (0, 1, 2, 4, 3))     # (N, H, W, C, k*k)
    return p.reshape(N * H * W, C * k * k)


def scale_conv_v2m(x_nhwc, w_cat, cout):
    """ScaleConv(mode=1) immediately followed by Vector2Magnitude."""
    N, H, W, _ = x_nhwc.shape
    patches = _im2col(x_nhwc.astype(jnp.bfloat16), 7, 3)   # (M, Cin*49) bf16
    mag = conv_scale_v2m_matmul(patches, w_cat, cout)      # (M, Cout) f32
    return mag.reshape(N, H, W, cout)


def maxpool_nhwc(x, p):
    # MaxPool2d(p) — trivial memory-bound reduction, kept as XLA glue (the
    # following BN affine fuses into the same XLA fusion).
    N, H, W, C = x.shape
    return jnp.max(x.reshape(N, H // p, p, W // p, p, C), axis=(2, 4))


def net_scalar_forward(x_nchw, prep):
    x = jnp.transpose(x_nchw, (0, 2, 3, 1)).astype(jnp.float32)  # NCHW -> NHWC

    x = scale_conv_v2m(x, prep['w1'], 12)            # conv1 + v2m (fused)
    x = maxpool_nhwc(x, 2)                           # pool1
    x = x * prep['bn1'][0] + prep['bn1'][1]          # bn1 (inference affine)

    x = scale_conv_v2m(x, prep['w2'], 32)            # conv2 + v2m (fused)
    x = maxpool_nhwc(x, 2)                           # pool2
    x = x * prep['bn2'][0] + prep['bn2'][1]          # bn2 (inference affine)

    x = scale_conv_v2m(x, prep['w3'], 48)            # conv3 + v2m (fused)
    x = maxpool_nhwc(x, 4)                           # pool3 -> spatial 1x1
    Nb = x.shape[0]
    xh = x.reshape(Nb, -1).astype(jnp.bfloat16)      # (N, 48)

    return pallas_head(xh, prep['head'])             # (N, 10), (N, 1)


# ----------------------------- parameters -----------------------------------
def init_params(key):
    ks = jax.random.split(key, 12)

    def w(k, shape, s=0.1):
        return jax.random.normal(k, shape, jnp.float32) * s

    def bn(k, c):
        k1, k2, k3, k4 = jax.random.split(k, 4)
        gamma = 1.0 + 0.1 * jax.random.normal(k1, (c,), jnp.float32)
        beta = 0.1 * jax.random.normal(k2, (c,), jnp.float32)
        mean = 0.1 * jax.random.normal(k3, (c,), jnp.float32)
        var = 1.0 + 0.1 * jnp.abs(jax.random.normal(k4, (c,), jnp.float32))
        return gamma, beta, mean, var

    params = {
        'conv1_w': w(ks[0], (12, 1, 7, 7)),
        'conv2_w': w(ks[1], (32, 12, 7, 7)),
        'conv3_w': w(ks[2], (48, 32, 7, 7)),
        'bn1': bn(ks[3], 12),
        'bn2': bn(ks[4], 32),
    }
    fc1_w, fc1_b = w(ks[5], (48, 256)), w(ks[6], (1, 256))
    g, beta, m, v = (p.reshape(1, -1) for p in bn(ks[7], 256))
    fc2_w, fc2_b = w(ks[8], (256, 10)), w(ks[9], (1, 10))
    afc2_w, afc2_b = w(ks[10], (48, 1)), w(ks[11], (1, 1))
    params['head'] = (fc1_w, fc1_b, g, beta, m, v, fc2_w, fc2_b, afc2_w, afc2_b)
    return params


# -------------------------------- main ---------------------------------------
if __name__ == "__main__":
    key = jax.random.PRNGKey(0)
    pkey, xkey = jax.random.split(key)
    params = init_params(pkey)
    prep = prepare_params(params)        # once per checkpoint, outside the jit

    # MNIST-like scalar input, small: batch=2, 1 channel, 16x16 (16->8->4->1)
    x = jax.random.normal(xkey, (2, 1, 16, 16), jnp.float32)

    fwd = jax.jit(net_scalar_forward)
    xm, xa = fwd(x, prep)
    jax.block_until_ready((xm, xa))

    assert xm.shape == (2, 10) and xa.shape == (2, 1)
    assert jnp.all(jnp.isfinite(xm)) and jnp.all(jnp.isfinite(xa))
    print("KERNEL_OK")
</pallas_src>

<mosaic_0001>
module attributes {stable_mosaic.version = 11 : i64} {
  func.func @_conv_scale_kernel(%arg0: i32, %arg1: memref<512x49xbf16, #tpu.memory_space<vmem>>, %arg2: memref<49x96xbf16, #tpu.memory_space<vmem>>, %arg3: memref<512x12xf32, #tpu.memory_space<vmem>>) attributes {dimension_semantics = [#tpu.dimension_semantics<parallel>], iteration_bounds = array<i64: 1>, scalar_prefetch = 0 : i64, scratch_operands = 0 : i64, tpu.core_type = #tpu.core_type<tc>, window_params = [{transform_indices = @transform_0, window_bounds = array<i64: 512, 49>}, {pipeline_mode = #tpu.pipeline_mode<synchronous>, transform_indices = @transform_1, window_bounds = array<i64: 49, 96>}, {transform_indices = @transform_2, window_bounds = array<i64: 512, 12>}]} {
    %c0 = arith.constant 0 : index
    %c0_0 = arith.constant 0 : index
    %0 = vector.load %arg1[%c0, %c0_0] : memref<512x49xbf16, #tpu.memory_space<vmem>>, vector<512x49xbf16>
    %c0_1 = arith.constant 0 : index
    %c0_2 = arith.constant 0 : index
    %1 = vector.load %arg2[%c0_1, %c0_2] : memref<49x96xbf16, #tpu.memory_space<vmem>>, vector<49x96xbf16>
    %cst = arith.constant dense<0.000000e+00> : vector<512x96xf32>
    %2 = tpu.matmul %0, %1, %cst {dimension_numbers = #tpu.dot_dimension_numbers<[1], [0], [0], [1], [0, 0, 1, 1], [], []>} : vector<512x49xbf16>, vector<49x96xbf16>, vector<512x96xf32> -> vector<512x96xf32>
    %3 = vector.extract_strided_slice %2 {offsets = [0, 0], sizes = [512, 12], strides = [1, 1]} : vector<512x96xf32> to vector<512x12xf32>
    %4 = vector.extract_strided_slice %2 {offsets = [0, 12], sizes = [512, 12], strides = [1, 1]} : vector<512x96xf32> to vector<512x12xf32>
    %5 = arith.maximumf %3, %4 : vector<512x12xf32>
    %6 = vector.extract_strided_slice %2 {offsets = [0, 24], sizes = [512, 12], strides = [1, 1]} : vector<512x96xf32> to vector<512x12xf32>
    %7 = arith.maximumf %5, %6 : vector<512x12xf32>
    %8 = vector.extract_strided_slice %2 {offsets = [0, 36], sizes = [512, 12], strides = [1, 1]} : vector<512x96xf32> to vector<512x12xf32>
    %9 = arith.maximumf %7, %8 : vector<512x12xf32>
    %10 = vector.extract_strided_slice %2 {offsets = [0, 48], sizes = [512, 12], strides = [1, 1]} : vector<512x96xf32> to vector<512x12xf32>
    %11 = arith.maximumf %9, %10 : vector<512x12xf32>
    %12 = vector.extract_strided_slice %2 {offsets = [0, 60], sizes = [512, 12], strides = [1, 1]} : vector<512x96xf32> to vector<512x12xf32>
    %13 = arith.maximumf %11, %12 : vector<512x12xf32>
    %14 = vector.extract_strided_slice %2 {offsets = [0, 72], sizes = [512, 12], strides = [1, 1]} : vector<512x96xf32> to vector<512x12xf32>
    %15 = arith.maximumf %13, %14 : vector<512x12xf32>
    %16 = vector.extract_strided_slice %2 {offsets = [0, 84], sizes = [512, 12], strides = [1, 1]} : vector<512x96xf32> to vector<512x12xf32>
    %17 = arith.maximumf %15, %16 : vector<512x12xf32>
    %18 = math.absf %17 : vector<512x12xf32>
    %c0_3 = arith.constant 0 : index
    %c0_4 = arith.constant 0 : index
    %19 = vector.load %arg3[%c0_3, %c0_4] : memref<512x12xf32, #tpu.memory_space<vmem>>, vector<512x12xf32>
    tpu.vector_store %arg3[%c0_3, %c0_4], %18 {strides = array<i32>} : memref<512x12xf32, #tpu.memory_space<vmem>>, vector<512x12xf32>,
    return
  }
  func.func @transform_0(%arg0: i32) -> (i32, i32) {
    %c0_i32 = arith.constant 0 : i32
    %c0_i32_0 = arith.constant 0 : i32
    return %arg0, %c0_i32 : i32, i32
  }
  func.func @transform_1(%arg0: i32) -> (i32, i32) {
    %c0_i32 = arith.constant 0 : i32
    %c0_i32_0 = arith.constant 0 : i32
    %c0_i32_1 = arith.constant 0 : i32
    return %c0_i32, %c0_i32_0 : i32, i32
  }
  func.func @transform_2(%arg0: i32) -> (i32, i32) {
    %c0_i32 = arith.constant 0 : i32
    %c0_i32_0 = arith.constant 0 : i32
    return %arg0, %c0_i32 : i32, i32
  }
}

module attributes {stable_mosaic.version = 11 : i64} {
  func.func @_conv_scale_kernel(%arg0: i32, %arg1: memref<128x588xbf16, #tpu.memory_space<vmem>>, %arg2: memref<588x256xbf16, #tpu.memory_space<vmem>>, %arg3: memref<128x32xf32, #tpu.memory_space<vmem>>) attributes {dimension_semantics = [#tpu.dimension_semantics<parallel>], iteration_bounds = array<i64: 1>, scalar_prefetch = 0 : i64, scratch_operands = 0 : i64, tpu.core_type = #tpu.core_type<tc>, window_params = [{transform_indices = @transform_0, window_bounds = array<i64: 128, 588>}, {pipeline_mode = #tpu.pipeline_mode<synchronous>, transform_indices = @transform_1, window_bounds = array<i64: 588, 256>}, {transform_indices = @transform_2, window_bounds = array<i64: 128, 32>}]} {
    %c0 = arith.constant 0 : index
    %c0_0 = arith.constant 0 : index
    %0 = vector.load %arg1[%c0, %c0_0] : memref<128x588xbf16, #tpu.memory_space<vmem>>, vector<128x588xbf16>
    %c0_1 = arith.constant 0 : index
    %c0_2 = arith.constant 0 : index
    %1 = vector.load %arg2[%c0_1, %c0_2] : memref<588x256xbf16, #tpu.memory_space<vmem>>, vector<588x256xbf16>
    %cst = arith.constant dense<0.000000e+00> : vector<128x256xf32>
    %2 = tpu.matmul %0, %1, %cst {dimension_numbers = #tpu.dot_dimension_numbers<[1], [0], [0], [1], [0, 0, 1, 1], [], []>} : vector<128x588xbf16>, vector<588x256xbf16>, vector<128x256xf32> -> vector<128x256xf32>
    %3 = vector.extract_strided_slice %2 {offsets = [0, 0], sizes = [128, 32], strides = [1, 1]} : vector<128x256xf32> to vector<128x32xf32>
    %4 = vector.extract_strided_slice %2 {offsets = [0, 32], sizes = [128, 32], strides = [1, 1]} : vector<128x256xf32> to vector<128x32xf32>
    %5 = arith.maximumf %3, %4 : vector<128x32xf32>
    %6 = vector.extract_strided_slice %2 {offsets = [0, 64], sizes = [128, 32], strides = [1, 1]} : vector<128x256xf32> to vector<128x32xf32>
    %7 = arith.maximumf %5, %6 : vector<128x32xf32>
    %8 = vector.extract_strided_slice %2 {offsets = [0, 96], sizes = [128, 32], strides = [1, 1]} : vector<128x256xf32> to vector<128x32xf32>
    %9 = arith.maximumf %7, %8 : vector<128x32xf32>
    %10 = vector.extract_strided_slice %2 {offsets = [0, 128], sizes = [128, 32], strides = [1, 1]} : vector<128x256xf32> to vector<128x32xf32>
    %11 = arith.maximumf %9, %10 : vector<128x32xf32>
    %12 = vector.extract_strided_slice %2 {offsets = [0, 160], sizes = [128, 32], strides = [1, 1]} : vector<128x256xf32> to vector<128x32xf32>
    %13 = arith.maximumf %11, %12 : vector<128x32xf32>
    %14 = vector.extract_strided_slice %2 {offsets = [0, 192], sizes = [128, 32], strides = [1, 1]} : vector<128x256xf32> to vector<128x32xf32>
    %15 = arith.maximumf %13, %14 : vector<128x32xf32>
    %16 = vector.extract_strided_slice %2 {offsets = [0, 224], sizes = [128, 32], strides = [1, 1]} : vector<128x256xf32> to vector<128x32xf32>
    %17 = arith.maximumf %15, %16 : vector<128x32xf32>
    %18 = math.absf %17 : vector<128x32xf32>
    %c0_3 = arith.constant 0 : index
    %c0_4 = arith.constant 0 : index
    %19 = vector.load %arg3[%c0_3, %c0_4] : memref<128x32xf32, #tpu.memory_space<vmem>>, vector<128x32xf32>
    tpu.vector_store %arg3[%c0_3, %c0_4], %18 {strides = array<i32>} : memref<128x32xf32, #tpu.memory_space<vmem>>, vector<128x32xf32>,
    return
  }
  func.func @transform_0(%arg0: i32) -> (i32, i32) {
    %c0_i32 = arith.constant 0 : i32
    %c0_i32_0 = arith.constant 0 : i32
    return %arg0, %c0_i32 : i32, i32
  }
  func.func @transform_1(%arg0: i32) -> (i32, i32) {
    %c0_i32 = arith.constant 0 : i32
    %c0_i32_0 = arith.constant 0 : i32
    %c0_i32_1 = arith.constant 0 : i32
    return %c0_i32, %c0_i32_0 : i32, i32
  }
  func.func @transform_2(%arg0: i32) -> (i32, i32) {
    %c0_i32 = arith.constant 0 : i32
    %c0_i32_0 = arith.constant 0 : i32
    return %arg0, %c0_i32 : i32, i32
  }
}

module attributes {stable_mosaic.version = 11 : i64} {
  func.func @_conv_scale_kernel(%arg0: i32, %arg1: memref<32x1568xbf16, #tpu.memory_space<vmem>>, %arg2: memref<1568x384xbf16, #tpu.memory_space<vmem>>, %arg3: memref<32x48xf32, #tpu.memory_space<vmem>>) attributes {dimension_semantics = [#tpu.dimension_semantics<parallel>], iteration_bounds = array<i64: 1>, scalar_prefetch = 0 : i64, scratch_operands = 0 : i64, tpu.core_type = #tpu.core_type<tc>, window_params = [{transform_indices = @transform_0, window_bounds = array<i64: 32, 1568>}, {pipeline_mode = #tpu.pipeline_mode<synchronous>, transform_indices = @transform_1, window_bounds = array<i64: 1568, 384>}, {transform_indices = @transform_2, window_bounds = array<i64: 32, 48>}]} {
    %c0 = arith.constant 0 : index
    %c0_0 = arith.constant 0 : index
    %0 = vector.load %arg1[%c0, %c0_0] : memref<32x1568xbf16, #tpu.memory_space<vmem>>, vector<32x1568xbf16>
    %c0_1 = arith.constant 0 : index
    %c0_2 = arith.constant 0 : index
    %1 = vector.load %arg2[%c0_1, %c0_2] : memref<1568x384xbf16, #tpu.memory_space<vmem>>, vector<1568x384xbf16>
    %cst = arith.constant dense<0.000000e+00> : vector<32x384xf32>
    %2 = tpu.matmul %0, %1, %cst {dimension_numbers = #tpu.dot_dimension_numbers<[1], [0], [0], [1], [0, 0, 1, 1], [], []>} : vector<32x1568xbf16>, vector<1568x384xbf16>, vector<32x384xf32> -> vector<32x384xf32>
    %3 = vector.extract_strided_slice %2 {offsets = [0, 0], sizes = [32, 48], strides = [1, 1]} : vector<32x384xf32> to vector<32x48xf32>
    %4 = vector.extract_strided_slice %2 {offsets = [0, 48], sizes = [32, 48], strides = [1, 1]} : vector<32x384xf32> to vector<32x48xf32>
    %5 = arith.maximumf %3, %4 : vector<32x48xf32>
    %6 = vector.extract_strided_slice %2 {offsets = [0, 96], sizes = [32, 48], strides = [1, 1]} : vector<32x384xf32> to vector<32x48xf32>
    %7 = arith.maximumf %5, %6 : vector<32x48xf32>
    %8 = vector.extract_strided_slice %2 {offsets = [0, 144], sizes = [32, 48], strides = [1, 1]} : vector<32x384xf32> to vector<32x48xf32>
    %9 = arith.maximumf %7, %8 : vector<32x48xf32>
    %10 = vector.extract_strided_slice %2 {offsets = [0, 192], sizes = [32, 48], strides = [1, 1]} : vector<32x384xf32> to vector<32x48xf32>
    %11 = arith.maximumf %9, %10 : vector<32x48xf32>
    %12 = vector.extract_strided_slice %2 {offsets = [0, 240], sizes = [32, 48], strides = [1, 1]} : vector<32x384xf32> to vector<32x48xf32>
    %13 = arith.maximumf %11, %12 : vector<32x48xf32>
    %14 = vector.extract_strided_slice %2 {offsets = [0, 288], sizes = [32, 48], strides = [1, 1]} : vector<32x384xf32> to vector<32x48xf32>
    %15 = arith.maximumf %13, %14 : vector<32x48xf32>
    %16 = vector.extract_strided_slice %2 {offsets = [0, 336], sizes = [32, 48], strides = [1, 1]} : vector<32x384xf32> to vector<32x48xf32>
    %17 = arith.maximumf %15, %16 : vector<32x48xf32>
    %18 = math.absf %17 : vector<32x48xf32>
    %c0_3 = arith.constant 0 : index
    %c0_4 = arith.constant 0 : index
    %19 = vector.load %arg3[%c0_3, %c0_4] : memref<32x48xf32, #tpu.memory_space<vmem>>, vector<32x48xf32>
    tpu.vector_store %arg3[%c0_3, %c0_4], %18 {strides = array<i32>} : memref<32x48xf32, #tpu.memory_space<vmem>>, vector<32x48xf32>,
    return
  }
  func.func @transform_0(%arg0: i32) -> (i32, i32) {
    %c0_i32 = arith.constant 0 : i32
    %c0_i32_0 = arith.constant 0 : i32
    return %arg0, %c0_i32 : i32, i32
  }
  func.func @transform_1(%arg0: i32) -> (i32, i32) {
    %c0_i32 = arith.constant 0 : i32
    %c0_i32_0 = arith.constant 0 : i32
    %c0_i32_1 = arith.constant 0 : i32
    return %c0_i32, %c0_i32_0 : i32, i32
  }
  func.func @transform_2(%arg0: i32) -> (i32, i32) {
    %c0_i32 = arith.constant 0 : i32
    %c0_i32_0 = arith.constant 0 : i32
    return %arg0, %c0_i32 : i32, i32
  }
}

module attributes {stable_mosaic.version = 11 : i64} {
  func.func @_head_kernel(%arg0: i32, %arg1: memref<2x48xbf16, #tpu.memory_space<vmem>>, %arg2: memref<48x256xbf16, #tpu.memory_space<vmem>>, %arg3: memref<1x256xf32, #tpu.memory_space<vmem>>, %arg4: memref<256x10xbf16, #tpu.memory_space<vmem>>, %arg5: memref<1x10xf32, #tpu.memory_space<vmem>>, %arg6: memref<48x1xbf16, #tpu.memory_space<vmem>>, %arg7: memref<1x1xf32, #tpu.memory_space<vmem>>, %arg8: memref<2x10xf32, #tpu.memory_space<vmem>>, %arg9: memref<2x1xf32, #tpu.memory_space<vmem>>) attributes {dimension_semantics = [#tpu.dimension_semantics<arbitrary>], iteration_bounds = array<i64: 1>, scalar_prefetch = 0 : i64, scratch_operands = 0 : i64, tpu.core_type = #tpu.core_type<tc>, window_params = [{pipeline_mode = #tpu.pipeline_mode<synchronous>, transform_indices = @transform_0, window_bounds = array<i64: 2, 48>}, {pipeline_mode = #tpu.pipeline_mode<synchronous>, transform_indices = @transform_1, window_bounds = array<i64: 48, 256>}, {pipeline_mode = #tpu.pipeline_mode<synchronous>, transform_indices = @transform_2, window_bounds = array<i64: 1, 256>}, {pipeline_mode = #tpu.pipeline_mode<synchronous>, transform_indices = @transform_3, window_bounds = array<i64: 256, 10>}, {pipeline_mode = #tpu.pipeline_mode<synchronous>, transform_indices = @transform_4, window_bounds = array<i64: 1, 10>}, {pipeline_mode = #tpu.pipeline_mode<synchronous>, transform_indices = @transform_5, window_bounds = array<i64: 48, 1>}, {pipeline_mode = #tpu.pipeline_mode<synchronous>, transform_indices = @transform_6, window_bounds = array<i64: 1, 1>}, {pipeline_mode = #tpu.pipeline_mode<synchronous>, transform_indices = @transform_7, window_bounds = array<i64: 2, 10>}, {pipeline_mode = #tpu.pipeline_mode<synchronous>, transform_indices = @transform_8, window_bounds = array<i64: 2, 1>}]} {
    %c0 = arith.constant 0 : index
    %c0_0 = arith.constant 0 : index
    %0 = vector.load %arg1[%c0, %c0_0] : memref<2x48xbf16, #tpu.memory_space<vmem>>, vector<2x48xbf16>
    %c0_1 = arith.constant 0 : index
    %c0_2 = arith.constant 0 : index
    %1 = vector.load %arg2[%c0_1, %c0_2] : memref<48x256xbf16, #tpu.memory_space<vmem>>, vector<48x256xbf16>
    %cst = arith.constant dense<0.000000e+00> : vector<2x256xf32>
    %2 = tpu.matmul %0, %1, %cst {dimension_numbers = #tpu.dot_dimension_numbers<[1], [0], [0], [1], [0, 0, 1, 1], [], []>} : vector<2x48xbf16>, vector<48x256xbf16>, vector<2x256xf32> -> vector<2x256xf32>
    %c0_3 = arith.constant 0 : index
    %c0_4 = arith.constant 0 : index
    %3 = vector.load %arg3[%c0_3, %c0_4] : memref<1x256xf32, #tpu.memory_space<vmem>>, vector<1x256xf32>
    %4 = vector.broadcast %3 : vector<1x256xf32> to vector<2x256xf32>
    %5 = arith.addf %2, %4 : vector<2x256xf32>
    %cst_5 = arith.constant 0.000000e+00 : f32
    %6 = vector.broadcast %cst_5 : f32 to vector<2x256xf32>
    %7 = arith.maximumf %5, %6 : vector<2x256xf32>
    %8 = arith.truncf %7 : vector<2x256xf32> to vector<2x256xbf16>
    %c0_6 = arith.constant 0 : index
    %c0_7 = arith.constant 0 : index
    %9 = vector.load %arg4[%c0_6, %c0_7] : memref<256x10xbf16, #tpu.memory_space<vmem>>, vector<256x10xbf16>
    %cst_8 = arith.constant dense<0.000000e+00> : vector<2x10xf32>
    %10 = tpu.matmul %8, %9, %cst_8 {dimension_numbers = #tpu.dot_dimension_numbers<[1], [0], [0], [1], [0, 0, 1, 1], [], []>} : vector<2x256xbf16>, vector<256x10xbf16>, vector<2x10xf32> -> vector<2x10xf32>
    %c0_9 = arith.constant 0 : index
    %c0_10 = arith.constant 0 : index
    %11 = vector.load %arg5[%c0_9, %c0_10] : memref<1x10xf32, #tpu.memory_space<vmem>>, vector<1x10xf32>
    %12 = vector.broadcast %11 : vector<1x10xf32> to vector<2x10xf32>
    %13 = arith.addf %10, %12 : vector<2x10xf32>
    %c0_11 = arith.constant 0 : index
    %c0_12 = arith.constant 0 : index
    %14 = vector.load %arg8[%c0_11, %c0_12] : memref<2x10xf32, #tpu.memory_space<vmem>>, vector<2x10xf32>
    tpu.vector_store %arg8[%c0_11, %c0_12], %13 {strides = array<i32>} : memref<2x10xf32, #tpu.memory_space<vmem>>, vector<2x10xf32>,
    %c0_13 = arith.constant 0 : index
    %c0_14 = arith.constant 0 : index
    %15 = vector.load %arg6[%c0_13, %c0_14] : memref<48x1xbf16, #tpu.memory_space<vmem>>, vector<48x1xbf16>
    %cst_15 = arith.constant dense<0.000000e+00> : vector<2x1xf32>
    %16 = tpu.matmul %0, %15, %cst_15 {dimension_numbers = #tpu.dot_dimension_numbers<[1], [0], [0], [1], [0, 0, 1, 1], [], []>} : vector<2x48xbf16>, vector<48x1xbf16>, vector<2x1xf32> -> vector<2x1xf32>
    %c0_16 = arith.constant 0 : index
    %c0_17 = arith.constant 0 : index
    %17 = vector.load %arg7[%c0_16, %c0_17] : memref<1x1xf32, #tpu.memory_space<vmem>>, vector<1x1xf32>
    %18 = vector.broadcast %17 : vector<1x1xf32> to vector<2x1xf32>
    %19 = arith.addf %16, %18 : vector<2x1xf32>
    %c0_18 = arith.constant 0 : index
    %c0_19 = arith.constant 0 : index
    %20 = vector.load %arg9[%c0_18, %c0_19] : memref<2x1xf32, #tpu.memory_space<vmem>>, vector<2x1xf32>
    tpu.vector_store %arg9[%c0_18, %c0_19], %19 {strides = array<i32>} : memref<2x1xf32, #tpu.memory_space<vmem>>, vector<2x1xf32>,
    return
  }
  func.func @transform_0(%arg0: i32) -> (i32, i32) {
    %c0_i32 = arith.constant 0 : i32
    %c0_i32_0 = arith.constant 0 : i32
    %c0_i32_1 = arith.constant 0 : i32
    return %c0_i32, %c0_i32_0 : i32, i32
  }
  func.func @transform_1(%arg0: i32) -> (i32, i32) {
    %c0_i32 = arith.constant 0 : i32
    %c0_i32_0 = arith.constant 0 : i32
    %c0_i32_1 = arith.constant 0 : i32
    return %c0_i32, %c0_i32_0 : i32, i32
  }
  func.func @transform_2(%arg0: i32) -> (i32, i32) {
    %c0_i32 = arith.constant 0 : i32
    %c0_i32_0 = arith.constant 0 : i32
    %c0_i32_1 = arith.constant 0 : i32
    return %c0_i32, %c0_i32_0 : i32, i32
  }
  func.func @transform_3(%arg0: i32) -> (i32, i32) {
    %c0_i32 = arith.constant 0 : i32
    %c0_i32_0 = arith.constant 0 : i32
    %c0_i32_1 = arith.constant 0 : i32
    return %c0_i32, %c0_i32_0 : i32, i32
  }
  func.func @transform_4(%arg0: i32) -> (i32, i32) {
    %c0_i32 = arith.constant 0 : i32
    %c0_i32_0 = arith.constant 0 : i32
    %c0_i32_1 = arith.constant 0 : i32
    return %c0_i32, %c0_i32_0 : i32, i32
  }
  func.func @transform_5(%arg0: i32) -> (i32, i32) {
    %c0_i32 = arith.constant 0 : i32
    %c0_i32_0 = arith.constant 0 : i32
    %c0_i32_1 = arith.constant 0 : i32
    return %c0_i32, %c0_i32_0 : i32, i32
  }
  func.func @transform_6(%arg0: i32) -> (i32, i32) {
    %c0_i32 = arith.constant 0 : i32
    %c0_i32_0 = arith.constant 0 : i32
    %c0_i32_1 = arith.constant 0 : i32
    return %c0_i32, %c0_i32_0 : i32, i32
  }
  func.func @transform_7(%arg0: i32) -> (i32, i32) {
    %c0_i32 = arith.constant 0 : i32
    %c0_i32_0 = arith.constant 0 : i32
    %c0_i32_1 = arith.constant 0 : i32
    return %c0_i32, %c0_i32_0 : i32, i32
  }
  func.func @transform_8(%arg0: i32) -> (i32, i32) {
    %c0_i32 = arith.constant 0 : i32
    %c0_i32_0 = arith.constant 0 : i32
    %c0_i32_1 = arith.constant 0 : i32
    return %c0_i32, %c0_i32_0 : i32, i32
  }
}

</mosaic_0001>

<bundles_post_ra>
// kernel: net_scalar_forward.4
= control target key start
LH: loop header
LB: loop body
LE: loop exit
PB: predicated region body
PF: predicated region fallthrough
CT: control target
= control target key end

     0   :  { %vm361_vm0 = vcmask 1040384   ;;  %v2873_v1 = vmov 0   ;;  %vm264_vm1 = vcmask 400384   ;;  %s2874_s23 = smov 116   ;;  %s2876_s24 = smov 92   ;;  %vm2576_vm2 = vcmask 97280   ;;  %s5532_s1 = inlined_call_operand.vmem [shape: bf16[49,96], index: 1, kind: input, shape index: {}]   ;;  %s5533_s0 = inlined_call_operand.vmem [shape: bf16[512,49], index: 0, kind: input, shape index: {}]   ;;  %s5534_s2 = inlined_call_operand.vmem [shape: f32[512,12], index: 2, kind: output, shape index: {}]  }
   0x1   :  { %v2837_v0 = vld [vmem:[%s5532_s1 + $0x18] ss:$0 sps:$4 sm:$0x11]   ;;  %v363_v2 = vsel %vm361_vm0, 65535, %v2873_v1  ;;  %v2838_v4 = vld [vmem:[%s5532_s1 + $0x10] sm:$0xff]   ;;  %v2841_v5 = vld [vmem:[%s5533_s0] sm:$0xff]  }
   0x2   :  { %v365_v3 = vand.u32 %v2837_v0, %v363_v2  ;;  %v2842_v6 = vld [vmem:[%s5533_s0 + $0x80] sm:$0xff]   ;;  %v2839_v7 = vld [vmem:[%s5532_s1 + $0x8] sm:$0xff]   ;;  %2757 = vmatprep.mubr.msk.bf16.mxu0 %vm264_vm1, %v2841_v5  ;;  %v2845_v11 = vld [vmem:[%s5533_s0 + $0x10] sm:$0xff]   ;;  %s2877_s25 = smov 80   ;;  %s2878_s26 = smov 68  }
   0x3   :  { %2789 = vmatprep.mubr.msk.bf16.mxu1 %vm264_vm1, %v2842_v6  ;;  %v2840_v8 = vld [vmem:[%s5532_s1] sm:$0xff]   ;;  %v2843_v9 = vld [vmem:[%s5533_s0 + $0x8] sm:$0xff]   ;;  %v2847_v12 = vld [vmem:[%s5533_s0 + $0x90] sm:$0xff]   ;;  %s2879_s27 = smov 56   ;;  %s2880_s1 = smov 44  }
   0x4   :  { %2749 = vmatprep.subr.bf16.mxu0 %v365_v3  ;;  %2821 = vmatprep.subr.bf16.mxu1 %v365_v3  ;;  %v2844_v10 = vld [vmem:[%s5533_s0 + $0x88] sm:$0xff]   ;;  %v2846_v13 = vld [vmem:[%s5533_s0 + $0x18] sm:$0xff]   ;;  %v2849_v15 = vld [vmem:[%s5533_s0 + $0x20] sm:$0xff]  }
   0x5   :  { %2750 = vmatpush3.bf16.msra.mxu0 %v365_v3  ;;  %2825 = vmatpush3.bf16.msra.mxu1 %v365_v3  ;;  %v2848_v14 = vld [vmem:[%s5533_s0 + $0x98] sm:$0xff]   ;;  %v2851_v16 = vld [vmem:[%s5533_s0 + $0xa0] sm:$0xff]   ;;  %v2850_v17 = vld [vmem:[%s5533_s0 + $0x28] sm:$0xff]  }
   0x6   :  { %2751 = vmatprep.subr.bf16.mxu0 %v2838_v4  ;;  %2822 = vmatprep.subr.bf16.mxu1 %v2838_v4  ;;  %v2852_v18 = vld [vmem:[%s5533_s0 + $0xa8] sm:$0xff]   ;;  %v2853_v19 = vld [vmem:[%s5533_s0 + $0x30] sm:$0xff]   ;;  %v2854_v21 = vld [vmem:[%s5533_s0 + $0x38] sm:$0xff]  }
   0x7   :  { %v2855_v20 = vld [vmem:[%s5533_s0 + $0xb0] sm:$0xff]   ;;  %v2856_v22 = vld [vmem:[%s5533_s0 + $0xb8] sm:$0xff]   ;;  %v2857_v23 = vld [vmem:[%s5533_s0 + $0x40] sm:$0xff]  }
   0x8   :  { %v2859_v24 = vld [vmem:[%s5533_s0 + $0xc0] sm:$0xff]   ;;  %v2858_v25 = vld [vmem:[%s5533_s0 + $0x48] sm:$0xff]   ;;  %v2861_v27 = vld [vmem:[%s5533_s0 + $0x50] sm:$0xff]  }
   0x9   :  { %2752 = vmatpush3.bf16.msra.mxu0 %v2838_v4  ;;  %2826 = vmatpush3.bf16.msra.mxu1 %v2838_v4  ;;  %v2860_v26 = vld [vmem:[%s5533_s0 + $0xc8] sm:$0xff]   ;;  %v2863_v28 = vld [vmem:[%s5533_s0 + $0xd0] sm:$0xff]   ;;  %v2862_v29 = vld [vmem:[%s5533_s0 + $0x58] sm:$0xff]  }
   0xa   :  { %2753 = vmatprep.subr.bf16.mxu0 %v2839_v7  ;;  %2823 = vmatprep.subr.bf16.mxu1 %v2839_v7  ;;  %v2864_v30 = vld [vmem:[%s5533_s0 + $0xd8] sm:$0xff]   ;;  %v2865_v31 = vld [vmem:[%s5533_s0 + $0x60] sm:$0xff]   ;;  %v2866_v32 = vld [vmem:[%s5533_s0 + $0x68] sm:$0xff]  }
   0xb   :  { %v2867_v33 = vld [vmem:[%s5533_s0 + $0xe0] sm:$0xff]   ;;  %v2868_v34 = vld [vmem:[%s5533_s0 + $0xe8] sm:$0xff]   ;;  %v2869_v35 = vld [vmem:[%s5533_s0 + $0x70] sm:$0xff]  }
   0xc   :  { %v2870_v36 = vld [vmem:[%s5533_s0 + $0x78] sm:$0xff]   ;;  %v2871_v37 = vld [vmem:[%s5533_s0 + $0xf0] sm:$0xff]  }
   0xd   :  { %2754 = vmatpush3.bf16.msra.mxu0 %v2839_v7  ;;  %2827 = vmatpush3.bf16.msra.mxu1 %v2839_v7  ;;  %v2872_v38 = vld [vmem:[%s5533_s0 + $0xf8] sm:$0xff]   ;;  %s2875_s0 = smov 104  }
   0xe   :  { %2755 = vmatprep.subr.bf16.mxu0 %v2840_v8  ;;  %2824 = vmatprep.subr.bf16.mxu1 %v2840_v8 }
  0x11   :  { %2756 = vmatpush3.bf16.msra.mxu0 %v2840_v8  ;;  %2828 = vmatpush3.bf16.msra.mxu1 %v2840_v8 }
  0x14   :  { %2758 = vmatmul.mubr.msk.bf16.vlgmr.msra.gmra.mxu0 %vm264_vm1, %v2843_v9  ;;  %2790 = vmatmul.mubr.msk.bf16.vlgmr.msra.gmra.mxu1 %vm264_vm1, %v2844_v10 }
  0x15   :  { %2761 = vmatprep.mubr.msk.bf16.mxu0 %vm264_vm1, %v2845_v11  ;;  %2793 = vmatprep.mubr.msk.bf16.mxu1 %vm264_vm1, %v2847_v12 }
  0x1c   :  { %2762 = vmatmul.mubr.msk.bf16.gmra.mxu0 %vm264_vm1, %v2846_v13  ;;  %2794 = vmatmul.mubr.msk.bf16.gmra.mxu1 %vm264_vm1, %v2848_v14 }
  0x1d   :  { %2765 = vmatprep.mubr.msk.bf16.mxu0 %vm264_vm1, %v2849_v15  ;;  %2797 = vmatprep.mubr.msk.bf16.mxu1 %vm264_vm1, %v2851_v16 }
  0x24   :  { %2766 = vmatmul.mubr.msk.bf16.gmra.mxu0 %vm264_vm1, %v2850_v17  ;;  %2798 = vmatmul.mubr.msk.bf16.gmra.mxu1 %vm264_vm1, %v2852_v18 }
  0x25   :  { %2769 = vmatprep.mubr.msk.bf16.mxu0 %vm264_vm1, %v2853_v19  ;;  %2801 = vmatprep.mubr.msk.bf16.mxu1 %vm264_vm1, %v2855_v20 }
  0x2c   :  { %2770 = vmatmul.mubr.msk.bf16.gmra.mxu0 %vm264_vm1, %v2854_v21  ;;  %2802 = vmatmul.mubr.msk.bf16.gmra.mxu1 %vm264_vm1, %v2856_v22 }
  0x2d   :  { %2773 = vmatprep.mubr.msk.bf16.mxu0 %vm264_vm1, %v2857_v23  ;;  %2805 = vmatprep.mubr.msk.bf16.mxu1 %vm264_vm1, %v2859_v24 }
  0x34   :  { %2774 = vmatmul.mubr.msk.bf16.gmra.mxu0 %vm264_vm1, %v2858_v25  ;;  %2806 = vmatmul.mubr.msk.bf16.gmra.mxu1 %vm264_vm1, %v2860_v26 }
  0x35   :  { %2777 = vmatprep.mubr.msk.bf16.mxu0 %vm264_vm1, %v2861_v27  ;;  %2809 = vmatprep.mubr.msk.bf16.mxu1 %vm264_vm1, %v2863_v28 }
  0x3c   :  { %2778 = vmatmul.mubr.msk.bf16.gmra.mxu0 %vm264_vm1, %v2862_v29  ;;  %2810 = vmatmul.mubr.msk.bf16.gmra.mxu1 %vm264_vm1, %v2864_v30 }
  0x3d   :  { %2781 = vmatprep.mubr.msk.bf16.mxu0 %vm264_vm1, %v2865_v31  ;;  %2813 = vmatprep.mubr.msk.bf16.mxu1 %vm264_vm1, %v2867_v33 }
  0x44   :  { %2782 = vmatmul.mubr.msk.bf16.gmra.mxu0 %vm264_vm1, %v2866_v32  ;;  %2814 = vmatmul.mubr.msk.bf16.gmra.mxu1 %vm264_vm1, %v2868_v34 }
  0x45   :  { %2785 = vmatprep.mubr.msk.bf16.mxu0 %vm264_vm1, %v2869_v35  ;;  %2817 = vmatprep.mubr.msk.bf16.mxu1 %vm264_vm1, %v2871_v37 }
  0x4c   :  { %2786 = vmatmul.mubr.msk.bf16.gmra.mxu0 %vm264_vm1, %v2870_v36  ;;  %2818 = vmatmul.mubr.msk.bf16.gmra.mxu1 %vm264_vm1, %v2872_v38 }
  0xd4   :  { %v3036_v39 = vpop.f32.mrf.mxu0  ;;  %v3038_v40 = vpop.f32.mrf.mxu1 }
  0xd5   :  { %5588 = vst [vmem:[#allocation2_spill] sm:$0xff] %v3036_v39  ;;  %788 = vrot.lane.b32.xlu0 %v3038_v40, %s2874_s23  ;;  %724 = vrot.lane.b32.xlu1 %v3036_v39, %s2874_s23 }
  0xd6   :  { %v3044_v41 = vpop.f32.mrf.mxu0  ;;  %v3046_v42 = vpop.f32.mrf.mxu1 }
  0xd7   :  { %5589 = vst [vmem:[#allocation3_spill] sm:$0xff] %v3044_v41 }
  0xd8   :  { %v3048_v43 = vpop.f32.mrf.mxu0  ;;  %v3054_v44 = vpop.f32.mrf.mxu1 }
  0xd9   :  { %5590 = vst [vmem:[#allocation4_spill] sm:$0xff] %v3048_v43  ;;  %980 = vrot.lane.b32.xlu0 %v3036_v39, %s2875_s0  ;;  %726 = vrot.lane.b32.xlu1 %v3048_v43, %s2874_s23 }
  0xda   :  { %v3072_v45 = vpop.f32.mrf.mxu1  ;;  %v3078_v46 = vpop.f32.mrf.mxu0 }
  0xdb   :  { %5591 = vst [vmem:[#allocation5_spill] sm:$0xff] %v3078_v46 }
  0xdc   :  { %v3084_v47 = vpop.f32.mrf.mxu0  ;;  %v3092_v49 = vpop.f32.mrf.mxu1 }
  0xdd   :  { %1044 = vrot.lane.b32.xlu0 %v3038_v40, %s2875_s0  ;;  %790 = vrot.lane.b32.xlu1 %v3054_v44, %s2874_s23  ;;  %5592 = vst [vmem:[#allocation6_spill] sm:$0xff] %v3084_v47 }
  0xde   :  { %v3090_v48 = vpop.f32.mrf.mxu0  ;;  %v3100_v51 = vpop.f32.mrf.mxu1 }
  0xdf   :  { %5593 = vst [vmem:[#allocation7_spill] sm:$0xff] %v3090_v48 }
  0xe0   :  { %v3098_v50 = vpop.f32.mrf.mxu0  ;;  %v3106_v52 = vpop.f32.mrf.mxu1 }
  0xe1   :  { %1236 = vrot.lane.b32.xlu0 %v3036_v39, %s2876_s24  ;;  %982 = vrot.lane.b32.xlu1 %v3048_v43, %s2875_s0  ;;  %5594 = vst [vmem:[#allocation8_spill] sm:$0xff] %v3098_v50 }
  0xe2   :  { %v3124_v53 = vpop.f32.mrf.mxu0  ;;  %v3130_v54 = vpop.f32.mrf.mxu1 }
  0xe3   :  { %5595 = vst [vmem:[#allocation9_spill] sm:$0xff] %v3124_v53 }
  0xe4   :  { %v3140_v55 = vpop.f32.mrf.mxu0  ;;  %v3148_v57 = vpop.f32.mrf.mxu1 }
  0xe5   :  { %720 = vrot.lane.b32.xlu0 %v3044_v41, %s2874_s23  ;;  %1046 = vrot.lane.b32.xlu1 %v3054_v44, %s2875_s0  ;;  %5597 = vst [vmem:[#allocation11_spill] sm:$0xff] %v3148_v57 }
  0xe6   :  { %v3146_v56 = vpop.f32.mrf.mxu0  ;;  %v3156_v59 = vpop.f32.mrf.mxu1 }
  0xe7   :  { %5596 = vst [vmem:[#allocation10_spill] sm:$0xff] %v3146_v56  ;;  %5599 = vst [vmem:[#allocation13_spill] sm:$0xff] %v3156_v59 }
  0xe8   :  { %v3154_v58 = vpop.f32.mrf.mxu0  ;;  %v3162_v60 = vpop.f32.mrf.mxu1 }
  0xe9   :  { %784 = vrot.lane.b32.xlu0 %v3046_v42, %s2874_s23  ;;  %1238 = vrot.lane.b32.xlu1 %v3048_v43, %s2876_s24  ;;  %5598 = vst [vmem:[#allocation12_spill] sm:$0xff] %v3154_v58  ;;  %5600 = vst [vmem:[#allocation14_spill] sm:$0xff] %v3162_v60 }
  0xea   :  { %v3176_v61 = vpop.f32.mrf.mxu0  ;;  %v3182_v62 = vpop.f32.mrf.mxu1 }
  0xeb   :  { %5601 = vst [vmem:[#allocation15_spill] sm:$0xff] %v3176_v61  ;;  %5602 = vst [vmem:[#allocation16_spill] sm:$0xff] %v3182_v62 }
  0xec   :  { %v3192_v63 = vpop.f32.mrf.mxu0  ;;  %v3200_v1 = vpop.f32.mrf.mxu1 }
  0xed   :  { %976 = vrot.lane.b32.xlu0 %v3044_v41, %s2875_s0  ;;  %786 = vrot.lane.b32.xlu1 %v3072_v45, %s2874_s23  ;;  %5603 = vst [vmem:[#allocation17_spill] sm:$0xff] %v3200_v1 }
  0xee   :  { %v3198_v0 = vpop.f32.mrf.mxu0  ;;  %v3212_v5 = vpop.f32.mrf.mxu1 }
  0xef   :  { %5606 = vst [vmem:[#allocation20_spill] sm:$0xff] %v3212_v5 }
  0xf0   :  { %v3210_v4 = vpop.f32.mrf.mxu0  ;;  %v3222_v8 = vpop.f32.mrf.mxu1 }
  0xf1   :  { %1040 = vrot.lane.b32.xlu0 %v3046_v42, %s2875_s0  ;;  %978 = vrot.lane.b32.xlu1 %v3078_v46, %s2875_s0  ;;  %5609 = vst [vmem:[#allocation23_spill] sm:$0xff] %v3222_v8 }
  0xf2   :  { %v3248_v15 = vpop.f32.mrf.mxu0  ;;  %v3258_v18 = vpop.f32.mrf.mxu1 }
  0xf3   :  { %5618 = vst [vmem:[#allocation32_spill] sm:$0xff] %v3258_v18 }
  0xf4   :  { %v3268_v21 = vpop.f32.mrf.mxu0  ;;  %v3280_v25 = vpop.f32.mrf.mxu1 }
  0xf5   :  { %1232 = vrot.lane.b32.xlu0 %v3044_v41, %s2876_s24  ;;  %1042 = vrot.lane.b32.xlu1 %v3072_v45, %s2875_s0  ;;  %5623 = vst [vmem:[#allocation37_spill] sm:$0xff] %v3280_v25 }
  0xf6   :  { %v3278_v24 = vpop.f32.mrf.mxu0  ;;  %v3292_v29 = vpop.f32.mrf.mxu1 }
  0xf7   :  { %5626 = vst [vmem:[#allocation40_spill] sm:$0xff] %v3292_v29 }
  0xf8   :  { %v3290_v28 = vpop.f32.mrf.mxu0  ;;  %v3302_v32 = vpop.f32.mrf.mxu1 }
  0xf9   :  { %1234 = vrot.lane.b32.xlu1 %v3078_v46, %s2876_s24  ;;  %722 = vrot.lane.b32.xlu0 %v3078_v46, %s2874_s23  ;;  %5629 = vst [vmem:[#allocation43_spill] sm:$0xff] %v3302_v32 }
  0xfd   :  { %732 = vrot.lane.b32.xlu0 %v3084_v47, %s2874_s23  ;;  %734 = vrot.lane.b32.xlu1 %v3098_v50, %s2874_s23 }
 0x101   :  { %796 = vrot.lane.b32.xlu0 %v3092_v49, %s2874_s23  ;;  %798 = vrot.lane.b32.xlu1 %v3106_v52, %s2874_s23 }
 0x105   :  { %988 = vrot.lane.b32.xlu0 %v3084_v47, %s2875_s0  ;;  %990 = vrot.lane.b32.xlu1 %v3098_v50, %s2875_s0 }
 0x109   :  { %1052 = vrot.lane.b32.xlu0 %v3092_v49, %s2875_s0  ;;  %1054 = vrot.lane.b32.xlu1 %v3106_v52, %s2875_s0 }
 0x10d   :  { %1244 = vrot.lane.b32.xlu0 %v3084_v47, %s2876_s24  ;;  %1246 = vrot.lane.b32.xlu1 %v3098_v50, %s2876_s24 }
 0x111   :  { %728 = vrot.lane.b32.xlu0 %v3090_v48, %s2874_s23  ;;  %730 = vrot.lane.b32.xlu1 %v3124_v53, %s2874_s23 }
 0x115   :  { %792 = vrot.lane.b32.xlu0 %v3100_v51, %s2874_s23  ;;  %794 = vrot.lane.b32.xlu1 %v3130_v54, %s2874_s23 }
 0x119   :  { %984 = vrot.lane.b32.xlu0 %v3090_v48, %s2875_s0  ;;  %986 = vrot.lane.b32.xlu1 %v3124_v53, %s2875_s0 }
 0x11d   :  { %1048 = vrot.lane.b32.xlu0 %v3100_v51, %s2875_s0  ;;  %1050 = vrot.lane.b32.xlu1 %v3130_v54, %s2875_s0 }
 0x121   :  { %1240 = vrot.lane.b32.xlu0 %v3090_v48, %s2876_s24  ;;  %1242 = vrot.lane.b32.xlu1 %v3124_v53, %s2876_s24 }
 0x125   :  { %740 = vrot.lane.b32.xlu0 %v3140_v55, %s2874_s23  ;;  %742 = vrot.lane.b32.xlu1 %v3154_v58, %s2874_s23 }
 0x129   :  { %804 = vrot.lane.b32.xlu0 %v3148_v57, %s2874_s23  ;;  %806 = vrot.lane.b32.xlu1 %v3162_v60, %s2874_s23 }
 0x12d   :  { %996 = vrot.lane.b32.xlu0 %v3140_v55, %s2875_s0  ;;  %998 = vrot.lane.b32.xlu1 %v3154_v58, %s2875_s0 }
 0x131   :  { %1060 = vrot.lane.b32.xlu0 %v3148_v57, %s2875_s0  ;;  %1062 = vrot.lane.b32.xlu1 %v3162_v60, %s2875_s0 }
 0x135   :  { %736 = vrot.lane.b32.xlu0 %v3146_v56, %s2874_s23  ;;  %738 = vrot.lane.b32.xlu1 %v3176_v61, %s2874_s23 }
 0x139   :  { %800 = vrot.lane.b32.xlu0 %v3156_v59, %s2874_s23  ;;  %802 = vrot.lane.b32.xlu1 %v3182_v62, %s2874_s23 }
 0x13d   :  { %992 = vrot.lane.b32.xlu0 %v3146_v56, %s2875_s0  ;;  %994 = vrot.lane.b32.xlu1 %v3176_v61, %s2875_s0 }
 0x141   :  { %1056 = vrot.lane.b32.xlu0 %v3156_v59, %s2875_s0  ;;  %1058 = vrot.lane.b32.xlu1 %v3182_v62, %s2875_s0 }
 0x145   :  { %1248 = vrot.lane.b32.xlu0 %v3146_v56, %s2876_s24  ;;  %1250 = vrot.lane.b32.xlu1 %v3176_v61, %s2876_s24 }
 0x147   :  { %v3206_v2 = vpop.permute.xlu0 %788  ;;  %v3208_v3 = vpop.permute.xlu1 %724 }
 0x148   :  { %5604 = vst [vmem:[#allocation18_spill] sm:$0xff] %v3206_v2  ;;  %5605 = vst [vmem:[#allocation19_spill] sm:$0xff] %v3208_v3 }
 0x149   :  { %748 = vrot.lane.b32.xlu0 %v3192_v63, %s2874_s23  ;;  %750 = vrot.lane.b32.xlu1 %v3210_v4, %s2874_s23 }
 0x14b   :  { %v3218_v6 = vpop.permute.xlu0 %980  ;;  %v3220_v7 = vpop.permute.xlu1 %726 }
 0x14c   :  { %5607 = vst [vmem:[#allocation21_spill] sm:$0xff] %v3218_v6  ;;  %5608 = vst [vmem:[#allocation22_spill] sm:$0xff] %v3220_v7 }
 0x14d   :  { %812 = vrot.lane.b32.xlu0 %v3200_v1, %s2874_s23  ;;  %814 = vrot.lane.b32.xlu1 %v3222_v8, %s2874_s23 }
 0x14f   :  { %v3228_v9 = vpop.permute.xlu0 %1044  ;;  %v3230_v10 = vpop.permute.xlu1 %790 }
 0x150   :  { %5610 = vst [vmem:[#allocation24_spill] sm:$0xff] %v3228_v9  ;;  %5611 = vst [vmem:[#allocation25_spill] sm:$0xff] %v3230_v10  ;;  %v3338_v9 = vpop.f32.mrf.mxu1 }
 0x151   :  { %1004 = vrot.lane.b32.xlu0 %v3192_v63, %s2875_s0  ;;  %1006 = vrot.lane.b32.xlu1 %v3210_v4, %s2875_s0  ;;  %5638 = vst [vmem:[#allocation52_spill] sm:$0xff] %v3338_v9 }
 0x153   :  { %v3236_v11 = vpop.permute.xlu0 %1236  ;;  %v3238_v12 = vpop.permute.xlu1 %982 }
 0x154   :  { %5612 = vst [vmem:[#allocation26_spill] sm:$0xff] %v3236_v11  ;;  %5613 = vst [vmem:[#allocation27_spill] sm:$0xff] %v3238_v12 }
 0x155   :  { %1068 = vrot.lane.b32.xlu0 %v3200_v1, %s2875_s0  ;;  %1070 = vrot.lane.b32.xlu1 %v3222_v8, %s2875_s0 }
 0x157   :  { %v3244_v13 = vpop.permute.xlu0 %720  ;;  %v3246_v14 = vpop.permute.xlu1 %1046 }
 0x158   :  { %5614 = vst [vmem:[#allocation28_spill] sm:$0xff] %v3244_v13  ;;  %5615 = vst [vmem:[#allocation29_spill] sm:$0xff] %v3246_v14  ;;  %v3328_v14 = vpop.f32.mrf.mxu0 }
 0x159   :  { %744 = vrot.lane.b32.xlu0 %v3198_v0, %s2874_s23  ;;  %746 = vrot.lane.b32.xlu1 %v3248_v15, %s2874_s23 }
 0x15b   :  { %v3254_v16 = vpop.permute.xlu0 %784  ;;  %v3256_v17 = vpop.permute.xlu1 %1238 }
 0x15c   :  { %5616 = vst [vmem:[#allocation30_spill] sm:$0xff] %v3254_v16  ;;  %5617 = vst [vmem:[#allocation31_spill] sm:$0xff] %v3256_v17 }
 0x15d   :  { %808 = vrot.lane.b32.xlu0 %v3212_v5, %s2874_s23  ;;  %810 = vrot.lane.b32.xlu1 %v3258_v18, %s2874_s23 }
 0x15f   :  { %v3264_v19 = vpop.permute.xlu0 %976  ;;  %v3266_v20 = vpop.permute.xlu1 %786 }
 0x160   :  { %5619 = vst [vmem:[#allocation33_spill] sm:$0xff] %v3264_v19  ;;  %5620 = vst [vmem:[#allocation34_spill] sm:$0xff] %v3266_v20  ;;  %v3360_v20 = vpop.f32.mrf.mxu1 }
 0x161   :  { %1000 = vrot.lane.b32.xlu0 %v3198_v0, %s2875_s0  ;;  %1002 = vrot.lane.b32.xlu1 %v3248_v15, %s2875_s0  ;;  %5643 = vst [vmem:[#allocation57_spill] sm:$0xff] %v3360_v20 }
 0x163   :  { %v3274_v22 = vpop.permute.xlu0 %1040  ;;  %v3276_v23 = vpop.permute.xlu1 %978 }
 0x164   :  { %5621 = vst [vmem:[#allocation35_spill] sm:$0xff] %v3274_v22  ;;  %5622 = vst [vmem:[#allocation36_spill] sm:$0xff] %v3276_v23 }
 0x165   :  { %1064 = vrot.lane.b32.xlu0 %v3212_v5, %s2875_s0  ;;  %1066 = vrot.lane.b32.xlu1 %v3258_v18, %s2875_s0 }
 0x167   :  { %v3286_v26 = vpop.permute.xlu0 %1232  ;;  %v3288_v27 = vpop.permute.xlu1 %1042 }
 0x168   :  { %5624 = vst [vmem:[#allocation38_spill] sm:$0xff] %v3286_v26  ;;  %5625 = vst [vmem:[#allocation39_spill] sm:$0xff] %v3288_v27  ;;  %v3348_v27 = vpop.f32.mrf.mxu0 }
 0x169   :  { %756 = vrot.lane.b32.xlu0 %v3268_v21, %s2874_s23  ;;  %758 = vrot.lane.b32.xlu1 %v3290_v28, %s2874_s23 }
 0x16a   :  { %v3358_v22 = vpop.f32.mrf.mxu0 }
 0x16b   :  { %v3298_v30 = vpop.permute.xlu1 %1234  ;;  %v3300_v31 = vpop.permute.xlu0 %722 }
 0x16c   :  { %5627 = vst [vmem:[#allocation41_spill] sm:$0xff] %v3298_v30  ;;  %5628 = vst [vmem:[#allocation42_spill] sm:$0xff] %v3300_v31 }
 0x16d   :  { %820 = vrot.lane.b32.xlu0 %v3280_v25, %s2874_s23  ;;  %822 = vrot.lane.b32.xlu1 %v3302_v32, %s2874_s23 }
 0x16f   :  { %v3308_v33 = vpop.permute.xlu0 %732  ;;  %v3310_v34 = vpop.permute.xlu1 %734 }
 0x170   :  { %5630 = vst [vmem:[#allocation44_spill] sm:$0xff] %v3308_v33  ;;  %5631 = vst [vmem:[#allocation45_spill] sm:$0xff] %v3310_v34 }
 0x171   :  { %1012 = vrot.lane.b32.xlu0 %v3268_v21, %s2875_s0  ;;  %1014 = vrot.lane.b32.xlu1 %v3290_v28, %s2875_s0 }
 0x173   :  { %v3316_v35 = vpop.permute.xlu0 %796  ;;  %v3318_v36 = vpop.permute.xlu1 %798 }
 0x174   :  { %5632 = vst [vmem:[#allocation46_spill] sm:$0xff] %v3316_v35  ;;  %5633 = vst [vmem:[#allocation47_spill] sm:$0xff] %v3318_v36 }
 0x175   :  { %1076 = vrot.lane.b32.xlu0 %v3280_v25, %s2875_s0  ;;  %1078 = vrot.lane.b32.xlu1 %v3302_v32, %s2875_s0 }
 0x177   :  { %v3324_v37 = vpop.permute.xlu0 %988  ;;  %v3326_v38 = vpop.permute.xlu1 %990 }
 0x178   :  { %5634 = vst [vmem:[#allocation48_spill] sm:$0xff] %v3324_v37  ;;  %5635 = vst [vmem:[#allocation49_spill] sm:$0xff] %v3326_v38  ;;  %v3372_v38 = vpop.f32.mrf.mxu1 }
 0x179   :  { %752 = vrot.lane.b32.xlu0 %v3278_v24, %s2874_s23  ;;  %754 = vrot.lane.b32.xlu1 %v3328_v14, %s2874_s23  ;;  %5646 = vst [vmem:[#allocation60_spill] sm:$0xff] %v3372_v38 }
 0x17a   :  { %v3382_v17 = vpop.f32.mrf.mxu1 }
 0x17b   :  { %v3334_v35 = vpop.permute.xlu0 %1052  ;;  %v3336_v36 = vpop.permute.xlu1 %1054  ;;  %5649 = vst [vmem:[#allocation63_spill] sm:$0xff] %v3382_v17 }
 0x17c   :  { %5636 = vst [vmem:[#allocation50_spill] sm:$0xff] %v3334_v35  ;;  %5637 = vst [vmem:[#allocation51_spill] sm:$0xff] %v3336_v36 }
 0x17d   :  { %816 = vrot.lane.b32.xlu0 %v3292_v29, %s2874_s23  ;;  %818 = vrot.lane.b32.xlu1 %v3338_v9, %s2874_s23 }
 0x17f   :  { %v3344_v10 = vpop.permute.xlu0 %1244  ;;  %v3346_v2 = vpop.permute.xlu1 %1246 }
 0x180   :  { %5639 = vst [vmem:[#allocation53_spill] sm:$0xff] %v3344_v10  ;;  %5640 = vst [vmem:[#allocation54_spill] sm:$0xff] %v3346_v2  ;;  %v3370_v10 = vpop.f32.mrf.mxu0 }
 0x181   :  { %1008 = vrot.lane.b32.xlu0 %v3278_v24, %s2875_s0  ;;  %1010 = vrot.lane.b32.xlu1 %v3328_v14, %s2875_s0 }
 0x183   :  { %v3354_v36 = vpop.permute.xlu0 %728  ;;  %v3356_v35 = vpop.permute.xlu1 %730 }
 0x184   :  { %5641 = vst [vmem:[#allocation55_spill] sm:$0xff] %v3354_v36  ;;  %5642 = vst [vmem:[#allocation56_spill] sm:$0xff] %v3356_v35  ;;  %v3418_v36 = vpop.f32.mrf.mxu1 }
 0x185   :  { %1072 = vrot.lane.b32.xlu0 %v3292_v29, %s2875_s0  ;;  %1074 = vrot.lane.b32.xlu1 %v3338_v9, %s2875_s0  ;;  %5658 = vst [vmem:[#allocation72_spill] sm:$0xff] %v3418_v36 }
 0x186   :  { %v3440_v12 = vpop.f32.mrf.mxu1 }
 0x187   :  { %v3366_v16 = vpop.permute.xlu0 %792  ;;  %v3368_v2 = vpop.permute.xlu1 %794  ;;  %5663 = vst [vmem:[#allocation77_spill] sm:$0xff] %v3440_v12 }
 0x188   :  { %5644 = vst [vmem:[#allocation58_spill] sm:$0xff] %v3366_v16  ;;  %5645 = vst [vmem:[#allocation59_spill] sm:$0xff] %v3368_v2  ;;  %v3452_v30 = vpop.f32.mrf.mxu1 }
 0x189   :  { %764 = vrot.lane.b32.xlu0 %v3348_v27, %s2874_s23  ;;  %766 = vrot.lane.b32.xlu1 %v3370_v10, %s2874_s23  ;;  %5666 = vst [vmem:[#allocation80_spill] sm:$0xff] %v3452_v30 }
 0x18a   :  { %v3462_v26 = vpop.f32.mrf.mxu1 }
 0x18b   :  { %v3378_v37 = vpop.permute.xlu0 %984  ;;  %v3380_v34 = vpop.permute.xlu1 %986  ;;  %5669 = vst [vmem:[#allocation83_spill] sm:$0xff] %v3462_v26 }
 0x18c   :  { %5647 = vst [vmem:[#allocation61_spill] sm:$0xff] %v3378_v37  ;;  %5648 = vst [vmem:[#allocation62_spill] sm:$0xff] %v3380_v34  ;;  %v3498_v3 = vpop.f32.mrf.mxu1 }
 0x18d   :  { %828 = vrot.lane.b32.xlu0 %v3360_v20, %s2874_s23  ;;  %830 = vrot.lane.b32.xlu1 %v3382_v17, %s2874_s23  ;;  %5678 = vst [vmem:[#allocation92_spill] sm:$0xff] %v3498_v3 }
 0x18e   :  { %v3528_v13 = vpop.f32.mrf.mxu1 }
 0x18f   :  { %v3388_v2 = vpop.permute.xlu0 %1048  ;;  %v3390_v16 = vpop.permute.xlu1 %1050  ;;  %5685 = vst [vmem:[#allocation99_spill] sm:$0xff] %v3528_v13 }
 0x190   :  { %5650 = vst [vmem:[#allocation64_spill] sm:$0xff] %v3388_v2  ;;  %5651 = vst [vmem:[#allocation65_spill] sm:$0xff] %v3390_v16  ;;  %v3408_v16 = vpop.f32.mrf.mxu0  ;;  %v3540_v61 = vpop.f32.mrf.mxu1 }
 0x191   :  { %1020 = vrot.lane.b32.xlu0 %v3348_v27, %s2875_s0  ;;  %1022 = vrot.lane.b32.xlu1 %v3370_v10, %s2875_s0 }
 0x192   :  { %v3428_v33 = vpop.f32.mrf.mxu0 }
 0x193   :  { %v3396_v37 = vpop.permute.xlu0 %1240  ;;  %v3398_v34 = vpop.permute.xlu1 %1242 }
 0x194   :  { %5652 = vst [vmem:[#allocation66_spill] sm:$0xff] %v3396_v37  ;;  %5653 = vst [vmem:[#allocation67_spill] sm:$0xff] %v3398_v34  ;;  %v3438_v11 = vpop.f32.mrf.mxu0 }
 0x195   :  { %1084 = vrot.lane.b32.xlu0 %v3360_v20, %s2875_s0  ;;  %1086 = vrot.lane.b32.xlu1 %v3382_v17, %s2875_s0 }
 0x196   :  { %v3450_v6 = vpop.f32.mrf.mxu0 }
 0x197   :  { %v3404_v35 = vpop.permute.xlu0 %740  ;;  %v3406_v2 = vpop.permute.xlu1 %742 }
 0x198   :  { %5654 = vst [vmem:[#allocation68_spill] sm:$0xff] %v3404_v35  ;;  %5655 = vst [vmem:[#allocation69_spill] sm:$0xff] %v3406_v2 }
 0x199   :  { %760 = vrot.lane.b32.xlu0 %v3358_v22, %s2874_s23  ;;  %762 = vrot.lane.b32.xlu1 %v3408_v16, %s2874_s23 }
 0x19b   :  { %v3414_v37 = vpop.permute.xlu0 %804  ;;  %v3416_v34 = vpop.permute.xlu1 %806 }
 0x19c   :  { %5656 = vst [vmem:[#allocation70_spill] sm:$0xff] %v3414_v37  ;;  %5657 = vst [vmem:[#allocation71_spill] sm:$0xff] %v3416_v34 }
 0x19d   :  { %824 = vrot.lane.b32.xlu0 %v3372_v38, %s2874_s23  ;;  %826 = vrot.lane.b32.xlu1 %v3418_v36, %s2874_s23 }
 0x19f   :  { %v3424_v2 = vpop.permute.xlu0 %996  ;;  %v3426_v35 = vpop.permute.xlu1 %998 }
 0x1a0   :  { %5659 = vst [vmem:[#allocation73_spill] sm:$0xff] %v3424_v2  ;;  %5660 = vst [vmem:[#allocation74_spill] sm:$0xff] %v3426_v35 }
 0x1a1   :  { %1016 = vrot.lane.b32.xlu0 %v3358_v22, %s2875_s0  ;;  %1018 = vrot.lane.b32.xlu1 %v3408_v16, %s2875_s0 }
 0x1a3   :  { %v3434_v34 = vpop.permute.xlu0 %1060  ;;  %v3436_v37 = vpop.permute.xlu1 %1062 }
 0x1a4   :  { %5661 = vst [vmem:[#allocation75_spill] sm:$0xff] %v3434_v34  ;;  %5662 = vst [vmem:[#allocation76_spill] sm:$0xff] %v3436_v37 }
 0x1a5   :  { %1080 = vrot.lane.b32.xlu0 %v3372_v38, %s2875_s0  ;;  %1082 = vrot.lane.b32.xlu1 %v3418_v36, %s2875_s0 }
 0x1a7   :  { %v3446_v35 = vpop.permute.xlu0 %736  ;;  %v3448_v2 = vpop.permute.xlu1 %738 }
 0x1a8   :  { %5664 = vst [vmem:[#allocation78_spill] sm:$0xff] %v3446_v35  ;;  %5665 = vst [vmem:[#allocation79_spill] sm:$0xff] %v3448_v2 }
 0x1a9   :  { %772 = vrot.lane.b32.xlu0 %v3428_v33, %s2874_s23  ;;  %774 = vrot.lane.b32.xlu1 %v3450_v6, %s2874_s23 }
 0x1ab   :  { %v3458_v37 = vpop.permute.xlu0 %800  ;;  %v3460_v34 = vpop.permute.xlu1 %802 }
 0x1ac   :  { %5667 = vst [vmem:[#allocation81_spill] sm:$0xff] %v3458_v37  ;;  %5668 = vst [vmem:[#allocation82_spill] sm:$0xff] %v3460_v34 }
 0x1ad   :  { %836 = vrot.lane.b32.xlu0 %v3440_v12, %s2874_s23  ;;  %838 = vrot.lane.b32.xlu1 %v3462_v26, %s2874_s23 }
 0x1af   :  { %v3468_v2 = vpop.permute.xlu0 %992  ;;  %v3470_v35 = vpop.permute.xlu1 %994 }
 0x1b0   :  { %5670 = vst [vmem:[#allocation84_spill] sm:$0xff] %v3468_v2  ;;  %5671 = vst [vmem:[#allocation85_spill] sm:$0xff] %v3470_v35  ;;  %v3488_v35 = vpop.f32.mrf.mxu0 }
 0x1b1   :  { %1028 = vrot.lane.b32.xlu0 %v3428_v33, %s2875_s0  ;;  %1030 = vrot.lane.b32.xlu1 %v3450_v6, %s2875_s0 }
 0x1b2   :  { %v3516_v19 = vpop.f32.mrf.mxu0 }
 0x1b3   :  { %v3476_v37 = vpop.permute.xlu0 %1056  ;;  %v3478_v34 = vpop.permute.xlu1 %1058 }
 0x1b4   :  { %5672 = vst [vmem:[#allocation86_spill] sm:$0xff] %v3476_v37  ;;  %5673 = vst [vmem:[#allocation87_spill] sm:$0xff] %v3478_v34  ;;  %v3526_v23 = vpop.f32.mrf.mxu0 }
 0x1b5   :  { %1092 = vrot.lane.b32.xlu0 %v3440_v12, %s2875_s0  ;;  %1094 = vrot.lane.b32.xlu1 %v3462_v26, %s2875_s0 }
 0x1b6   :  { %v3538_v31 = vpop.f32.mrf.mxu0 }
 0x1b7   :  { %v3484_v7 = vpop.permute.xlu0 %1248  ;;  %v3486_v2 = vpop.permute.xlu1 %1250 }
 0x1b8   :  { %5674 = vst [vmem:[#allocation88_spill] sm:$0xff] %v3484_v7  ;;  %5675 = vst [vmem:[#allocation89_spill] sm:$0xff] %v3486_v2 }
 0x1b9   :  { %768 = vrot.lane.b32.xlu0 %v3438_v11, %s2874_s23  ;;  %770 = vrot.lane.b32.xlu1 %v3488_v35, %s2874_s23 }
 0x1bb   :  { %v3494_v37 = vpop.permute.xlu0 %748  ;;  %v3496_v34 = vpop.permute.xlu1 %750 }
 0x1bc   :  { %5676 = vst [vmem:[#allocation90_spill] sm:$0xff] %v3494_v37  ;;  %5677 = vst [vmem:[#allocation91_spill] sm:$0xff] %v3496_v34 }
 0x1bd   :  { %832 = vrot.lane.b32.xlu0 %v3452_v30, %s2874_s23  ;;  %834 = vrot.lane.b32.xlu1 %v3498_v3, %s2874_s23 }
 0x1bf   :  { %v3504_v2 = vpop.permute.xlu0 %812  ;;  %v3506_v7 = vpop.permute.xlu1 %814 }
 0x1c0   :  { %5679 = vst [vmem:[#allocation93_spill] sm:$0xff] %v3504_v2  ;;  %5680 = vst [vmem:[#allocation94_spill] sm:$0xff] %v3506_v7 }
 0x1c1   :  { %1024 = vrot.lane.b32.xlu0 %v3438_v11, %s2875_s0  ;;  %1026 = vrot.lane.b32.xlu1 %v3488_v35, %s2875_s0 }
 0x1c3   :  { %v3512_v37 = vpop.permute.xlu0 %1004  ;;  %v3514_v34 = vpop.permute.xlu1 %1006 }
 0x1c4   :  { %5681 = vst [vmem:[#allocation95_spill] sm:$0xff] %v3512_v37  ;;  %5682 = vst [vmem:[#allocation96_spill] sm:$0xff] %v3514_v34 }
 0x1c5   :  { %1088 = vrot.lane.b32.xlu0 %v3452_v30, %s2875_s0  ;;  %1090 = vrot.lane.b32.xlu1 %v3498_v3, %s2875_s0 }
 0x1c7   :  { %v3522_v2 = vpop.permute.xlu0 %1068  ;;  %v3524_v7 = vpop.permute.xlu1 %1070 }
 0x1c8   :  { %5683 = vst [vmem:[#allocation97_spill] sm:$0xff] %v3522_v2  ;;  %5684 = vst [vmem:[#allocation98_spill] sm:$0xff] %v3524_v7 }
 0x1c9   :  { %1254 = vrot.lane.b32.xlu1 %v3154_v58, %s2876_s24  ;;  %780 = vrot.lane.b32.xlu0 %v3516_v19, %s2874_s23  ;;  %v3550_v58 = vpop.f32.mrf.mxu1 }
 0x1ca   :  { %5690 = vst [vmem:[#allocation104_spill] sm:$0xff] %v3550_v58 }
 0x1cb   :  { %v3534_v34 = vpop.permute.xlu0 %744  ;;  %v3536_v37 = vpop.permute.xlu1 %746 }
 0x1cc   :  { %5686 = vst [vmem:[#allocation100_spill] sm:$0xff] %v3534_v34  ;;  %5687 = vst [vmem:[#allocation101_spill] sm:$0xff] %v3536_v37  ;;  %v3586_v50 = vpop.f32.mrf.mxu1 }
 0x1cd   :  { %844 = vrot.lane.b32.xlu0 %v3528_v13, %s2874_s23  ;;  %782 = vrot.lane.b32.xlu1 %v3538_v31, %s2874_s23  ;;  %5699 = vst [vmem:[#allocation113_spill] sm:$0xff] %v3586_v50 }
 0x1cf   :  { %v3546_v7 = vpop.permute.xlu0 %808  ;;  %v3548_v2 = vpop.permute.xlu1 %810 }
 0x1d0   :  { %5688 = vst [vmem:[#allocation102_spill] sm:$0xff] %v3546_v7  ;;  %5689 = vst [vmem:[#allocation103_spill] sm:$0xff] %v3548_v2 }
 0x1d1   :  { %1036 = vrot.lane.b32.xlu0 %v3516_v19, %s2875_s0  ;;  %846 = vrot.lane.b32.xlu1 %v3550_v58, %s2874_s23 }
 0x1d3   :  { %v3556_v37 = vpop.permute.xlu0 %1000  ;;  %v3558_v34 = vpop.permute.xlu1 %1002 }
 0x1d4   :  { %5691 = vst [vmem:[#allocation105_spill] sm:$0xff] %v3556_v37  ;;  %5692 = vst [vmem:[#allocation106_spill] sm:$0xff] %v3558_v34  ;;  %v3576_v34 = vpop.f32.mrf.mxu0 }
 0x1d5   :  { %1100 = vrot.lane.b32.xlu0 %v3528_v13, %s2875_s0  ;;  %1038 = vrot.lane.b32.xlu1 %v3538_v31, %s2875_s0 }
 0x1d7   :  { %v3564_v7 = vpop.permute.xlu0 %1064  ;;  %v3566_v2 = vpop.permute.xlu1 %1066 }
 0x1d8   :  { %5693 = vst [vmem:[#allocation107_spill] sm:$0xff] %v3564_v7  ;;  %5694 = vst [vmem:[#allocation108_spill] sm:$0xff] %v3566_v2 }
 0x1d9   :  { %776 = vrot.lane.b32.xlu0 %v3526_v23, %s2874_s23  ;;  %1102 = vrot.lane.b32.xlu1 %v3550_v58, %s2875_s0 }
 0x1db   :  { %v3572_v56 = vpop.permute.xlu0 %756  ;;  %v3574_v37 = vpop.permute.xlu1 %758 }
 0x1dc   :  { %5695 = vst [vmem:[#allocation109_spill] sm:$0xff] %v3572_v56  ;;  %5696 = vst [vmem:[#allocation110_spill] sm:$0xff] %v3574_v37 }
 0x1dd   :  { %840 = vrot.lane.b32.xlu0 %v3540_v61, %s2874_s23  ;;  %778 = vrot.lane.b32.xlu1 %v3576_v34, %s2874_s23 }
 0x1df   :  { %v3582_v7 = vpop.permute.xlu0 %820  ;;  %v3584_v2 = vpop.permute.xlu1 %822 }
 0x1e0   :  { %5697 = vst [vmem:[#allocation111_spill] sm:$0xff] %v3582_v7  ;;  %5698 = vst [vmem:[#allocation112_spill] sm:$0xff] %v3584_v2 }
 0x1e1   :  { %1032 = vrot.lane.b32.xlu0 %v3526_v23, %s2875_s0  ;;  %842 = vrot.lane.b32.xlu1 %v3586_v50, %s2874_s23 }
 0x1e3   :  { %v3592_v37 = vpop.permute.xlu0 %1012  ;;  %v3594_v56 = vpop.permute.xlu1 %1014 }
 0x1e4   :  { %5700 = vst [vmem:[#allocation114_spill] sm:$0xff] %v3592_v37  ;;  %5701 = vst [vmem:[#allocation115_spill] sm:$0xff] %v3594_v56 }
 0x1e5   :  { %1096 = vrot.lane.b32.xlu0 %v3540_v61, %s2875_s0  ;;  %1034 = vrot.lane.b32.xlu1 %v3576_v34, %s2875_s0 }
 0x1e7   :  { %v3600_v7 = vpop.permute.xlu0 %1076  ;;  %v3602_v2 = vpop.permute.xlu1 %1078 }
 0x1e8   :  { %5702 = vst [vmem:[#allocation116_spill] sm:$0xff] %v3600_v7  ;;  %5703 = vst [vmem:[#allocation117_spill] sm:$0xff] %v3602_v2 }
 0x1e9   :  { %1252 = vrot.lane.b32.xlu0 %v3140_v55, %s2876_s24  ;;  %1098 = vrot.lane.b32.xlu1 %v3586_v50, %s2875_s0 }
 0x1eb   :  { %v3608_v47 = vpop.permute.xlu0 %752  ;;  %v3610_v37 = vpop.permute.xlu1 %754 }
 0x1ec   :  { %5704 = vst [vmem:[#allocation118_spill] sm:$0xff] %v3608_v47  ;;  %5705 = vst [vmem:[#allocation119_spill] sm:$0xff] %v3610_v37 }
 0x1ed   :  { %1256 = vrot.lane.b32.xlu0 %v3198_v0, %s2876_s24  ;;  %1258 = vrot.lane.b32.xlu1 %v3248_v15, %s2876_s24 }
 0x1ef   :  { %v3616_v56 = vpop.permute.xlu0 %816  ;;  %v3618_v7 = vpop.permute.xlu1 %818 }
 0x1f0   :  { %5706 = vst [vmem:[#allocation120_spill] sm:$0xff] %v3616_v56  ;;  %5707 = vst [vmem:[#allocation121_spill] sm:$0xff] %v3618_v7 }
 0x1f1   :  { %1260 = vrot.lane.b32.xlu0 %v3192_v63, %s2876_s24  ;;  %1262 = vrot.lane.b32.xlu1 %v3210_v4, %s2876_s24 }
 0x1f3   :  { %v3624_v2 = vpop.permute.xlu0 %1008  ;;  %v3626_v47 = vpop.permute.xlu1 %1010 }
 0x1f4   :  { %5708 = vst [vmem:[#allocation122_spill] sm:$0xff] %v3624_v2  ;;  %5709 = vst [vmem:[#allocation123_spill] sm:$0xff] %v3626_v47 }
 0x1f5   :  { %1264 = vrot.lane.b32.xlu0 %v3278_v24, %s2876_s24  ;;  %1266 = vrot.lane.b32.xlu1 %v3328_v14, %s2876_s24 }
 0x1f7   :  { %v3632_v37 = vpop.permute.xlu0 %1072  ;;  %v3634_v56 = vpop.permute.xlu1 %1074 }
 0x1f8   :  { %5710 = vst [vmem:[#allocation124_spill] sm:$0xff] %v3632_v37  ;;  %5711 = vst [vmem:[#allocation125_spill] sm:$0xff] %v3634_v56 }
 0x1f9   :  { %1268 = vrot.lane.b32.xlu0 %v3268_v21, %s2876_s24  ;;  %1270 = vrot.lane.b32.xlu1 %v3290_v28, %s2876_s24 }
 0x1fb   :  { %v3640_v7 = vpop.permute.xlu0 %764  ;;  %v3642_v2 = vpop.permute.xlu1 %766 }
 0x1fc   :  { %5712 = vst [vmem:[#allocation126_spill] sm:$0xff] %v3640_v7  ;;  %5713 = vst [vmem:[#allocation127_spill] sm:$0xff] %v3642_v2 }
 0x1fd   :  { %1272 = vrot.lane.b32.xlu0 %v3358_v22, %s2876_s24  ;;  %1274 = vrot.lane.b32.xlu1 %v3408_v16, %s2876_s24 }
 0x1ff   :  { %v3648_v47 = vpop.permute.xlu0 %828  ;;  %v3650_v37 = vpop.permute.xlu1 %830 }
 0x200   :  { %5714 = vst [vmem:[#allocation128_spill] sm:$0xff] %v3648_v47  ;;  %5715 = vst [vmem:[#allocation129_spill] sm:$0xff] %v3650_v37 }
 0x201   :  { %1276 = vrot.lane.b32.xlu0 %v3348_v27, %s2876_s24  ;;  %1278 = vrot.lane.b32.xlu1 %v3370_v10, %s2876_s24 }
 0x203   :  { %v3656_v56 = vpop.permute.xlu0 %1020  ;;  %v3658_v7 = vpop.permute.xlu1 %1022 }
 0x204   :  { %5716 = vst [vmem:[#allocation130_spill] sm:$0xff] %v3656_v56  ;;  %5717 = vst [vmem:[#allocation131_spill] sm:$0xff] %v3658_v7 }
 0x205   :  { %1280 = vrot.lane.b32.xlu0 %v3438_v11, %s2876_s24  ;;  %1282 = vrot.lane.b32.xlu1 %v3488_v35, %s2876_s24 }
 0x207   :  { %v3664_v2 = vpop.permute.xlu0 %1084  ;;  %v3666_v47 = vpop.permute.xlu1 %1086 }
 0x208   :  { %5718 = vst [vmem:[#allocation132_spill] sm:$0xff] %v3664_v2  ;;  %5719 = vst [vmem:[#allocation133_spill] sm:$0xff] %v3666_v47 }
 0x209   :  { %1284 = vrot.lane.b32.xlu0 %v3428_v33, %s2876_s24  ;;  %1286 = vrot.lane.b32.xlu1 %v3450_v6, %s2876_s24 }
 0x20b   :  { %v3672_v37 = vpop.permute.xlu0 %760  ;;  %v3674_v56 = vpop.permute.xlu1 %762 }
 0x20c   :  { %5720 = vst [vmem:[#allocation134_spill] sm:$0xff] %v3672_v37  ;;  %5721 = vst [vmem:[#allocation135_spill] sm:$0xff] %v3674_v56 }
 0x20d   :  { %1288 = vrot.lane.b32.xlu0 %v3526_v23, %s2876_s24  ;;  %1290 = vrot.lane.b32.xlu1 %v3576_v34, %s2876_s24 }
 0x20f   :  { %v3680_v7 = vpop.permute.xlu0 %824  ;;  %v3682_v2 = vpop.permute.xlu1 %826 }
 0x210   :  { %5722 = vst [vmem:[#allocation136_spill] sm:$0xff] %v3680_v7  ;;  %5723 = vst [vmem:[#allocation137_spill] sm:$0xff] %v3682_v2 }
 0x211   :  { %1292 = vrot.lane.b32.xlu0 %v3516_v19, %s2876_s24  ;;  %1294 = vrot.lane.b32.xlu1 %v3538_v31, %s2876_s24 }
 0x213   :  { %v3688_v47 = vpop.permute.xlu0 %1016  ;;  %v3690_v37 = vpop.permute.xlu1 %1018 }
 0x214   :  { %5724 = vst [vmem:[#allocation138_spill] sm:$0xff] %v3688_v47  ;;  %5725 = vst [vmem:[#allocation139_spill] sm:$0xff] %v3690_v37 }
 0x215   :  { %1296 = vrot.lane.b32.xlu0 %v3046_v42, %s2876_s24  ;;  %1298 = vrot.lane.b32.xlu1 %v3072_v45, %s2876_s24 }
 0x217   :  { %v3696_v56 = vpop.permute.xlu0 %1080  ;;  %v3698_v7 = vpop.permute.xlu1 %1082 }
 0x218   :  { %5726 = vst [vmem:[#allocation140_spill] sm:$0xff] %v3696_v56  ;;  %5727 = vst [vmem:[#allocation141_spill] sm:$0xff] %v3698_v7 }
 0x219   :  { %1300 = vrot.lane.b32.xlu0 %v3038_v40, %s2876_s24  ;;  %1302 = vrot.lane.b32.xlu1 %v3054_v44, %s2876_s24 }
 0x21b   :  { %v3704_v2 = vpop.permute.xlu0 %772  ;;  %v3706_v47 = vpop.permute.xlu1 %774 }
 0x21c   :  { %5728 = vst [vmem:[#allocation142_spill] sm:$0xff] %v3704_v2  ;;  %5729 = vst [vmem:[#allocation143_spill] sm:$0xff] %v3706_v47 }
 0x21d   :  { %1304 = vrot.lane.b32.xlu0 %v3100_v51, %s2876_s24  ;;  %1306 = vrot.lane.b32.xlu1 %v3130_v54, %s2876_s24 }
 0x21f   :  { %v3712_v37 = vpop.permute.xlu0 %836  ;;  %v3714_v56 = vpop.permute.xlu1 %838 }
 0x220   :  { %5730 = vst [vmem:[#allocation144_spill] sm:$0xff] %v3712_v37  ;;  %5731 = vst [vmem:[#allocation145_spill] sm:$0xff] %v3714_v56 }
 0x221   :  { %1308 = vrot.lane.b32.xlu0 %v3092_v49, %s2876_s24  ;;  %1310 = vrot.lane.b32.xlu1 %v3106_v52, %s2876_s24 }
 0x223   :  { %v3720_v7 = vpop.permute.xlu0 %1028  ;;  %v3722_v2 = vpop.permute.xlu1 %1030 }
 0x224   :  { %5732 = vst [vmem:[#allocation146_spill] sm:$0xff] %v3720_v7  ;;  %5733 = vst [vmem:[#allocation147_spill] sm:$0xff] %v3722_v2 }
 0x225   :  { %1312 = vrot.lane.b32.xlu0 %v3156_v59, %s2876_s24  ;;  %1314 = vrot.lane.b32.xlu1 %v3182_v62, %s2876_s24 }
 0x227   :  { %v3728_v47 = vpop.permute.xlu0 %1092  ;;  %v3730_v37 = vpop.permute.xlu1 %1094 }
 0x228   :  { %5734 = vst [vmem:[#allocation148_spill] sm:$0xff] %v3728_v47  ;;  %5735 = vst [vmem:[#allocation149_spill] sm:$0xff] %v3730_v37 }
 0x229   :  { %1316 = vrot.lane.b32.xlu0 %v3148_v57, %s2876_s24  ;;  %1318 = vrot.lane.b32.xlu1 %v3162_v60, %s2876_s24 }
 0x22b   :  { %v3736_v56 = vpop.permute.xlu0 %768  ;;  %v3738_v7 = vpop.permute.xlu1 %770 }
 0x22c   :  { %5736 = vst [vmem:[#allocation150_spill] sm:$0xff] %v3736_v56  ;;  %5737 = vst [vmem:[#allocation151_spill] sm:$0xff] %v3738_v7 }
 0x22d   :  { %1320 = vrot.lane.b32.xlu0 %v3212_v5, %s2876_s24  ;;  %1322 = vrot.lane.b32.xlu1 %v3258_v18, %s2876_s24 }
 0x22f   :  { %v3744_v2 = vpop.permute.xlu0 %832  ;;  %v3746_v47 = vpop.permute.xlu1 %834 }
 0x230   :  { %5738 = vst [vmem:[#allocation152_spill] sm:$0xff] %v3744_v2  ;;  %5739 = vst [vmem:[#allocation153_spill] sm:$0xff] %v3746_v47 }
 0x231   :  { %1324 = vrot.lane.b32.xlu0 %v3200_v1, %s2876_s24  ;;  %1326 = vrot.lane.b32.xlu1 %v3222_v8, %s2876_s24 }
 0x233   :  { %v3752_v37 = vpop.permute.xlu0 %1024  ;;  %v3754_v56 = vpop.permute.xlu1 %1026 }
 0x234   :  { %5740 = vst [vmem:[#allocation154_spill] sm:$0xff] %v3752_v37  ;;  %5741 = vst [vmem:[#allocation155_spill] sm:$0xff] %v3754_v56 }
 0x235   :  { %1328 = vrot.lane.b32.xlu0 %v3292_v29, %s2876_s24  ;;  %1330 = vrot.lane.b32.xlu1 %v3338_v9, %s2876_s24 }
 0x237   :  { %v3760_v7 = vpop.permute.xlu0 %1088  ;;  %v3762_v2 = vpop.permute.xlu1 %1090 }
 0x238   :  { %5742 = vst [vmem:[#allocation156_spill] sm:$0xff] %v3760_v7  ;;  %5743 = vst [vmem:[#allocation157_spill] sm:$0xff] %v3762_v2 }
 0x239   :  { %1332 = vrot.lane.b32.xlu0 %v3280_v25, %s2876_s24  ;;  %1334 = vrot.lane.b32.xlu1 %v3302_v32, %s2876_s24 }
 0x23b   :  { %v3768_v47 = vpop.permute.xlu1 %1254  ;;  %v3770_v37 = vpop.permute.xlu0 %780 }
 0x23c   :  { %5744 = vst [vmem:[#allocation158_spill] sm:$0xff] %v3768_v47  ;;  %5745 = vst [vmem:[#allocation159_spill] sm:$0xff] %v3770_v37 }
 0x23d   :  { %1336 = vrot.lane.b32.xlu0 %v3372_v38, %s2876_s24  ;;  %1338 = vrot.lane.b32.xlu1 %v3418_v36, %s2876_s24 }
 0x23f   :  { %v3776_v56 = vpop.permute.xlu0 %844  ;;  %v3778_v7 = vpop.permute.xlu1 %782 }
 0x240   :  { %5746 = vst [vmem:[#allocation160_spill] sm:$0xff] %v3776_v56  ;;  %5747 = vst [vmem:[#allocation161_spill] sm:$0xff] %v3778_v7 }
 0x241   :  { %1340 = vrot.lane.b32.xlu0 %v3360_v20, %s2876_s24  ;;  %1342 = vrot.lane.b32.xlu1 %v3382_v17, %s2876_s24 }
 0x243   :  { %v3784_v2 = vpop.permute.xlu0 %1036  ;;  %v3786_v47 = vpop.permute.xlu1 %846 }
 0x244   :  { %5748 = vst [vmem:[#allocation162_spill] sm:$0xff] %v3784_v2  ;;  %5749 = vst [vmem:[#allocation163_spill] sm:$0xff] %v3786_v47 }
 0x245   :  { %1344 = vrot.lane.b32.xlu0 %v3452_v30, %s2876_s24  ;;  %1346 = vrot.lane.b32.xlu1 %v3498_v3, %s2876_s24 }
 0x247   :  { %v3792_v37 = vpop.permute.xlu0 %1100  ;;  %v3794_v56 = vpop.permute.xlu1 %1038 }
 0x248   :  { %5750 = vst [vmem:[#allocation164_spill] sm:$0xff] %v3792_v37  ;;  %5751 = vst [vmem:[#allocation165_spill] sm:$0xff] %v3794_v56 }
 0x249   :  { %1348 = vrot.lane.b32.xlu0 %v3440_v12, %s2876_s24  ;;  %1350 = vrot.lane.b32.xlu1 %v3462_v26, %s2876_s24 }
 0x24b   :  { %v3800_v7 = vpop.permute.xlu0 %776  ;;  %v3802_v2 = vpop.permute.xlu1 %1102 }
 0x24c   :  { %5752 = vst [vmem:[#allocation166_spill] sm:$0xff] %v3800_v7  ;;  %5753 = vst [vmem:[#allocation167_spill] sm:$0xff] %v3802_v2 }
 0x24d   :  { %1352 = vrot.lane.b32.xlu0 %v3540_v61, %s2876_s24  ;;  %1354 = vrot.lane.b32.xlu1 %v3586_v50, %s2876_s24 }
 0x24f   :  { %v3808_v47 = vpop.permute.xlu0 %840  ;;  %v3810_v37 = vpop.permute.xlu1 %778 }
 0x250   :  { %5754 = vst [vmem:[#allocation168_spill] sm:$0xff] %v3808_v47  ;;  %5755 = vst [vmem:[#allocation169_spill] sm:$0xff] %v3810_v37 }
 0x251   :  { %1356 = vrot.lane.b32.xlu0 %v3528_v13, %s2876_s24  ;;  %1358 = vrot.lane.b32.xlu1 %v3550_v58, %s2876_s24 }
 0x253   :  { %v3816_v56 = vpop.permute.xlu0 %1032  ;;  %v3818_v7 = vpop.permute.xlu1 %842 }
 0x254   :  { %5756 = vst [vmem:[#allocation170_spill] sm:$0xff] %v3816_v56  ;;  %5757 = vst [vmem:[#allocation171_spill] sm:$0xff] %v3818_v7 }
 0x255   :  { %1488 = vrot.lane.b32.xlu0 %v3044_v41, %s2877_s25  ;;  %1490 = vrot.lane.b32.xlu1 %v3078_v46, %s2877_s25 }
 0x257   :  { %v3824_v2 = vpop.permute.xlu0 %1096  ;;  %v3826_v47 = vpop.permute.xlu1 %1034 }
 0x258   :  { %5758 = vst [vmem:[#allocation172_spill] sm:$0xff] %v3824_v2  ;;  %5759 = vst [vmem:[#allocation173_spill] sm:$0xff] %v3826_v47  ;;  %v5764_v47 = vld [vmem:[#allocation6_spill] sm:$0xff] }
 0x259   :  { %1492 = vrot.lane.b32.xlu0 %v3036_v39, %s2877_s25  ;;  %1494 = vrot.lane.b32.xlu1 %v3048_v43, %s2877_s25  ;;  %v5765_v39 = vld [vmem:[#allocation8_spill] sm:$0xff] }
 0x25b   :  { %v3832_v56 = vpop.permute.xlu0 %1252  ;;  %v3834_v7 = vpop.permute.xlu1 %1098 }
 0x25c   :  { %5760 = vst [vmem:[#allocation174_spill] sm:$0xff] %v3832_v56  ;;  %5761 = vst [vmem:[#allocation175_spill] sm:$0xff] %v3834_v7  ;;  %v5768_v7 = vld [vmem:[#allocation10_spill] sm:$0xff] }
 0x25d   :  { %1496 = vrot.lane.b32.xlu0 %v3090_v48, %s2877_s25  ;;  %1498 = vrot.lane.b32.xlu1 %v3124_v53, %s2877_s25  ;;  %v5769_v48 = vld [vmem:[#allocation15_spill] sm:$0xff] }
 0x25f   :  { %v3840_v37 = vpop.permute.xlu0 %1256  ;;  %v3842_v2 = vpop.permute.xlu1 %1258 }
 0x260   :  { %5762 = vst [vmem:[#allocation176_spill] sm:$0xff] %v3840_v37  ;;  %5763 = vst [vmem:[#allocation177_spill] sm:$0xff] %v3842_v2  ;;  %v5772_v2 = vld [vmem:[#allocation12_spill] sm:$0xff] }
 0x261   :  { %1500 = vrot.lane.b32.xlu0 %v5764_v47, %s2877_s25  ;;  %1502 = vrot.lane.b32.xlu1 %v5765_v39, %s2877_s25 }
 0x263   :  { %v3848_v43 = vpop.permute.xlu0 %1260  ;;  %v3850_v56 = vpop.permute.xlu1 %1262 }
 0x264   :  { %5766 = vst [vmem:[#allocation6_spill] sm:$0xff] %v3848_v43  ;;  %5767 = vst [vmem:[#allocation178_spill] sm:$0xff] %v3850_v56 }
 0x265   :  { %1504 = vrot.lane.b32.xlu0 %v5768_v7, %s2877_s25  ;;  %1506 = vrot.lane.b32.xlu1 %v5769_v48, %s2877_s25 }
 0x267   :  { %v3856_v53 = vpop.permute.xlu0 %1264  ;;  %v3858_v37 = vpop.permute.xlu1 %1266 }
 0x268   :  { %5770 = vst [vmem:[#allocation10_spill] sm:$0xff] %v3856_v53  ;;  %5771 = vst [vmem:[#allocation15_spill] sm:$0xff] %v3858_v37 }
 0x269   :  { %1508 = vrot.lane.b32.xlu0 %v3140_v55, %s2877_s25  ;;  %1510 = vrot.lane.b32.xlu1 %v5772_v2, %s2877_s25 }
 0x26b   :  { %v3864_v39 = vpop.permute.xlu0 %1268  ;;  %v3866_v43 = vpop.permute.xlu1 %1270 }
 0x26c   :  { %5773 = vst [vmem:[#allocation12_spill] sm:$0xff] %v3864_v39  ;;  %5774 = vst [vmem:[#allocation179_spill] sm:$0xff] %v3866_v43 }
 0x26d   :  { %1512 = vrot.lane.b32.xlu0 %v3198_v0, %s2877_s25  ;;  %1514 = vrot.lane.b32.xlu1 %v3248_v15, %s2877_s25 }
 0x26f   :  { %v3872_v56 = vpop.permute.xlu0 %1272  ;;  %v3874_v53 = vpop.permute.xlu1 %1274 }
 0x270   :  { %5775 = vst [vmem:[#allocation180_spill] sm:$0xff] %v3872_v56  ;;  %5776 = vst [vmem:[#allocation181_spill] sm:$0xff] %v3874_v53 }
 0x271   :  { %1516 = vrot.lane.b32.xlu0 %v3192_v63, %s2877_s25  ;;  %1518 = vrot.lane.b32.xlu1 %v3210_v4, %s2877_s25 }
 0x273   :  { %v3880_v37 = vpop.permute.xlu0 %1276  ;;  %v3882_v39 = vpop.permute.xlu1 %1278 }
 0x274   :  { %5777 = vst [vmem:[#allocation182_spill] sm:$0xff] %v3880_v37  ;;  %5778 = vst [vmem:[#allocation183_spill] sm:$0xff] %v3882_v39 }
 0x275   :  { %1520 = vrot.lane.b32.xlu0 %v3278_v24, %s2877_s25  ;;  %1522 = vrot.lane.b32.xlu1 %v3328_v14, %s2877_s25 }
 0x277   :  { %v3888_v43 = vpop.permute.xlu0 %1280  ;;  %v3890_v56 = vpop.permute.xlu1 %1282 }
 0x278   :  { %5779 = vst [vmem:[#allocation184_spill] sm:$0xff] %v3888_v43  ;;  %5780 = vst [vmem:[#allocation185_spill] sm:$0xff] %v3890_v56 }
 0x279   :  { %1524 = vrot.lane.b32.xlu0 %v3268_v21, %s2877_s25  ;;  %1526 = vrot.lane.b32.xlu1 %v3290_v28, %s2877_s25 }
 0x27b   :  { %v3896_v53 = vpop.permute.xlu0 %1284  ;;  %v3898_v37 = vpop.permute.xlu1 %1286 }
 0x27c   :  { %5781 = vst [vmem:[#allocation186_spill] sm:$0xff] %v3896_v53  ;;  %5782 = vst [vmem:[#allocation187_spill] sm:$0xff] %v3898_v37 }
 0x27d   :  { %1528 = vrot.lane.b32.xlu0 %v3358_v22, %s2877_s25  ;;  %1530 = vrot.lane.b32.xlu1 %v3408_v16, %s2877_s25 }
 0x27f   :  { %v3904_v39 = vpop.permute.xlu0 %1288  ;;  %v3906_v43 = vpop.permute.xlu1 %1290 }
 0x280   :  { %5783 = vst [vmem:[#allocation188_spill] sm:$0xff] %v3904_v39  ;;  %5784 = vst [vmem:[#allocation189_spill] sm:$0xff] %v3906_v43 }
 0x281   :  { %1532 = vrot.lane.b32.xlu0 %v3348_v27, %s2877_s25  ;;  %1534 = vrot.lane.b32.xlu1 %v3370_v10, %s2877_s25 }
 0x283   :  { %v3912_v56 = vpop.permute.xlu0 %1292  ;;  %v3914_v53 = vpop.permute.xlu1 %1294 }
 0x284   :  { %5785 = vst [vmem:[#allocation190_spill] sm:$0xff] %v3912_v56  ;;  %5786 = vst [vmem:[#allocation191_spill] sm:$0xff] %v3914_v53 }
 0x285   :  { %1536 = vrot.lane.b32.xlu0 %v3438_v11, %s2877_s25  ;;  %1538 = vrot.lane.b32.xlu1 %v3488_v35, %s2877_s25 }
 0x287   :  { %v3920_v37 = vpop.permute.xlu0 %1296  ;;  %v3922_v39 = vpop.permute.xlu1 %1298 }
 0x288   :  { %5787 = vst [vmem:[#allocation192_spill] sm:$0xff] %v3920_v37  ;;  %5788 = vst [vmem:[#allocation193_spill] sm:$0xff] %v3922_v39 }
 0x289   :  { %1540 = vrot.lane.b32.xlu0 %v3428_v33, %s2877_s25  ;;  %1542 = vrot.lane.b32.xlu1 %v3450_v6, %s2877_s25 }
 0x28b   :  { %v3928_v43 = vpop.permute.xlu0 %1300  ;;  %v3930_v56 = vpop.permute.xlu1 %1302 }
 0x28c   :  { %5789 = vst [vmem:[#allocation194_spill] sm:$0xff] %v3928_v43  ;;  %5790 = vst [vmem:[#allocation195_spill] sm:$0xff] %v3930_v56 }
 0x28d   :  { %1544 = vrot.lane.b32.xlu0 %v3526_v23, %s2877_s25  ;;  %1546 = vrot.lane.b32.xlu1 %v3576_v34, %s2877_s25 }
 0x28f   :  { %v3936_v53 = vpop.permute.xlu0 %1304  ;;  %v3938_v37 = vpop.permute.xlu1 %1306 }
 0x290   :  { %5791 = vst [vmem:[#allocation196_spill] sm:$0xff] %v3936_v53  ;;  %5792 = vst [vmem:[#allocation197_spill] sm:$0xff] %v3938_v37 }
 0x291   :  { %1548 = vrot.lane.b32.xlu0 %v3516_v19, %s2877_s25  ;;  %1550 = vrot.lane.b32.xlu1 %v3538_v31, %s2877_s25 }
 0x293   :  { %v3944_v39 = vpop.permute.xlu0 %1308  ;;  %v3946_v43 = vpop.permute.xlu1 %1310 }
 0x294   :  { %5793 = vst [vmem:[#allocation198_spill] sm:$0xff] %v3944_v39  ;;  %5794 = vst [vmem:[#allocation199_spill] sm:$0xff] %v3946_v43 }
 0x295   :  { %1552 = vrot.lane.b32.xlu0 %v3046_v42, %s2877_s25  ;;  %1554 = vrot.lane.b32.xlu1 %v3072_v45, %s2877_s25 }
 0x297   :  { %v3952_v56 = vpop.permute.xlu0 %1312  ;;  %v3954_v53 = vpop.permute.xlu1 %1314 }
 0x298   :  { %5795 = vst [vmem:[#allocation200_spill] sm:$0xff] %v3952_v56  ;;  %5796 = vst [vmem:[#allocation201_spill] sm:$0xff] %v3954_v53 }
 0x299   :  { %1556 = vrot.lane.b32.xlu0 %v3038_v40, %s2877_s25  ;;  %1558 = vrot.lane.b32.xlu1 %v3054_v44, %s2877_s25 }
 0x29b   :  { %v3960_v37 = vpop.permute.xlu0 %1316  ;;  %v3962_v39 = vpop.permute.xlu1 %1318 }
 0x29c   :  { %5797 = vst [vmem:[#allocation202_spill] sm:$0xff] %v3960_v37  ;;  %5798 = vst [vmem:[#allocation203_spill] sm:$0xff] %v3962_v39 }
 0x29d   :  { %1560 = vrot.lane.b32.xlu0 %v3100_v51, %s2877_s25  ;;  %1562 = vrot.lane.b32.xlu1 %v3130_v54, %s2877_s25 }
 0x29f   :  { %v3968_v43 = vpop.permute.xlu0 %1320  ;;  %v3970_v56 = vpop.permute.xlu1 %1322 }
 0x2a0   :  { %5799 = vst [vmem:[#allocation204_spill] sm:$0xff] %v3968_v43  ;;  %5800 = vst [vmem:[#allocation205_spill] sm:$0xff] %v3970_v56 }
 0x2a1   :  { %1564 = vrot.lane.b32.xlu0 %v3092_v49, %s2877_s25  ;;  %1566 = vrot.lane.b32.xlu1 %v3106_v52, %s2877_s25 }
 0x2a3   :  { %v3976_v53 = vpop.permute.xlu0 %1324  ;;  %v3978_v37 = vpop.permute.xlu1 %1326 }
 0x2a4   :  { %5801 = vst [vmem:[#allocation206_spill] sm:$0xff] %v3976_v53  ;;  %5802 = vst [vmem:[#allocation207_spill] sm:$0xff] %v3978_v37 }
 0x2a5   :  { %1568 = vrot.lane.b32.xlu0 %v3156_v59, %s2877_s25  ;;  %1570 = vrot.lane.b32.xlu1 %v3182_v62, %s2877_s25 }
 0x2a7   :  { %v3984_v39 = vpop.permute.xlu0 %1328  ;;  %v3986_v43 = vpop.permute.xlu1 %1330 }
 0x2a8   :  { %5803 = vst [vmem:[#allocation208_spill] sm:$0xff] %v3984_v39  ;;  %5804 = vst [vmem:[#allocation209_spill] sm:$0xff] %v3986_v43 }
 0x2a9   :  { %1572 = vrot.lane.b32.xlu0 %v3148_v57, %s2877_s25  ;;  %1574 = vrot.lane.b32.xlu1 %v3162_v60, %s2877_s25 }
 0x2ab   :  { %v3992_v56 = vpop.permute.xlu0 %1332  ;;  %v3994_v53 = vpop.permute.xlu1 %1334 }
 0x2ac   :  { %5805 = vst [vmem:[#allocation210_spill] sm:$0xff] %v3992_v56  ;;  %5806 = vst [vmem:[#allocation211_spill] sm:$0xff] %v3994_v53 }
 0x2ad   :  { %1576 = vrot.lane.b32.xlu0 %v3212_v5, %s2877_s25  ;;  %1578 = vrot.lane.b32.xlu1 %v3258_v18, %s2877_s25 }
 0x2af   :  { %v4000_v37 = vpop.permute.xlu0 %1336  ;;  %v4002_v39 = vpop.permute.xlu1 %1338 }
 0x2b0   :  { %5807 = vst [vmem:[#allocation212_spill] sm:$0xff] %v4000_v37  ;;  %5808 = vst [vmem:[#allocation213_spill] sm:$0xff] %v4002_v39 }
 0x2b1   :  { %1580 = vrot.lane.b32.xlu0 %v3200_v1, %s2877_s25  ;;  %1582 = vrot.lane.b32.xlu1 %v3222_v8, %s2877_s25 }
 0x2b3   :  { %v4008_v43 = vpop.permute.xlu0 %1340  ;;  %v4010_v56 = vpop.permute.xlu1 %1342 }
 0x2b4   :  { %5809 = vst [vmem:[#allocation214_spill] sm:$0xff] %v4008_v43  ;;  %5810 = vst [vmem:[#allocation215_spill] sm:$0xff] %v4010_v56 }
 0x2b5   :  { %1584 = vrot.lane.b32.xlu0 %v3292_v29, %s2877_s25  ;;  %1586 = vrot.lane.b32.xlu1 %v3338_v9, %s2877_s25 }
 0x2b7   :  { %v4016_v53 = vpop.permute.xlu0 %1344  ;;  %v4018_v37 = vpop.permute.xlu1 %1346 }
 0x2b8   :  { %5811 = vst [vmem:[#allocation216_spill] sm:$0xff] %v4016_v53  ;;  %5812 = vst [vmem:[#allocation217_spill] sm:$0xff] %v4018_v37 }
 0x2b9   :  { %1588 = vrot.lane.b32.xlu0 %v3280_v25, %s2877_s25  ;;  %1590 = vrot.lane.b32.xlu1 %v3302_v32, %s2877_s25 }
 0x2bb   :  { %v4024_v39 = vpop.permute.xlu0 %1348  ;;  %v4026_v43 = vpop.permute.xlu1 %1350 }
 0x2bc   :  { %5813 = vst [vmem:[#allocation218_spill] sm:$0xff] %v4024_v39  ;;  %5814 = vst [vmem:[#allocation219_spill] sm:$0xff] %v4026_v43 }
 0x2bd   :  { %1592 = vrot.lane.b32.xlu0 %v3372_v38, %s2877_s25  ;;  %1594 = vrot.lane.b32.xlu1 %v3418_v36, %s2877_s25 }
 0x2bf   :  { %v4032_v56 = vpop.permute.xlu0 %1352  ;;  %v4034_v53 = vpop.permute.xlu1 %1354 }
 0x2c0   :  { %5815 = vst [vmem:[#allocation220_spill] sm:$0xff] %v4032_v56  ;;  %5816 = vst [vmem:[#allocation221_spill] sm:$0xff] %v4034_v53 }
 0x2c1   :  { %1596 = vrot.lane.b32.xlu0 %v3360_v20, %s2877_s25  ;;  %1598 = vrot.lane.b32.xlu1 %v3382_v17, %s2877_s25 }
 0x2c3   :  { %v4040_v37 = vpop.permute.xlu0 %1356  ;;  %v4042_v39 = vpop.permute.xlu1 %1358 }
 0x2c4   :  { %5817 = vst [vmem:[#allocation222_spill] sm:$0xff] %v4040_v37  ;;  %5818 = vst [vmem:[#allocation223_spill] sm:$0xff] %v4042_v39 }
 0x2c5   :  { %1600 = vrot.lane.b32.xlu0 %v3452_v30, %s2877_s25  ;;  %1602 = vrot.lane.b32.xlu1 %v3498_v3, %s2877_s25 }
 0x2c7   :  { %v4048_v43 = vpop.permute.xlu0 %1488  ;;  %v4050_v56 = vpop.permute.xlu1 %1490 }
 0x2c8   :  { %5819 = vst [vmem:[#allocation224_spill] sm:$0xff] %v4048_v43  ;;  %5820 = vst [vmem:[#allocation225_spill] sm:$0xff] %v4050_v56 }
 0x2c9   :  { %1604 = vrot.lane.b32.xlu0 %v3440_v12, %s2877_s25  ;;  %1606 = vrot.lane.b32.xlu1 %v3462_v26, %s2877_s25 }
 0x2cb   :  { %v4056_v53 = vpop.permute.xlu0 %1492  ;;  %v4058_v37 = vpop.permute.xlu1 %1494 }
 0x2cc   :  { %5821 = vst [vmem:[#allocation226_spill] sm:$0xff] %v4056_v53  ;;  %5822 = vst [vmem:[#allocation227_spill] sm:$0xff] %v4058_v37  ;;  %v5829_v37 = vld [vmem:[#allocation2_spill] sm:$0xff] }
 0x2cd   :  { %1608 = vrot.lane.b32.xlu0 %v3540_v61, %s2877_s25  ;;  %1610 = vrot.lane.b32.xlu1 %v3586_v50, %s2877_s25 }
 0x2cf   :  { %v4064_v39 = vpop.permute.xlu0 %1496  ;;  %v4066_v43 = vpop.permute.xlu1 %1498 }
 0x2d0   :  { %5823 = vst [vmem:[#allocation228_spill] sm:$0xff] %v4064_v39  ;;  %5824 = vst [vmem:[#allocation229_spill] sm:$0xff] %v4066_v43 }
 0x2d1   :  { %1612 = vrot.lane.b32.xlu0 %v3528_v13, %s2877_s25  ;;  %1614 = vrot.lane.b32.xlu1 %v3550_v58, %s2877_s25  ;;  %v5830_v58 = vld [vmem:[#allocation4_spill] sm:$0xff]  ;;  %v5833_v13 = vld [vmem:[#allocation7_spill] sm:$0xff] }
 0x2d3   :  { %v4072_v56 = vpop.permute.xlu0 %1500  ;;  %v4074_v53 = vpop.permute.xlu1 %1502 }
 0x2d4   :  { %5825 = vst [vmem:[#allocation230_spill] sm:$0xff] %v4072_v56  ;;  %5826 = vst [vmem:[#allocation231_spill] sm:$0xff] %v4074_v53 }
 0x2d5   :  { %1744 = vrot.lane.b32.xlu0 %v3044_v41, %s2878_s26  ;;  %1746 = vrot.lane.b32.xlu1 %v3078_v46, %s2878_s26  ;;  %v5834_v41 = vld [vmem:[#allocation9_spill] sm:$0xff] }
 0x2d7   :  { %v4080_v39 = vpop.permute.xlu0 %1504  ;;  %v4082_v43 = vpop.permute.xlu1 %1506 }
 0x2d8   :  { %5827 = vst [vmem:[#allocation232_spill] sm:$0xff] %v4080_v39  ;;  %5828 = vst [vmem:[#allocation233_spill] sm:$0xff] %v4082_v43  ;;  %v5837_v43 = vld [vmem:[#allocation8_spill] sm:$0xff] }
 0x2d9   :  { %1748 = vrot.lane.b32.xlu0 %v5829_v37, %s2878_s26  ;;  %1750 = vrot.lane.b32.xlu1 %v5830_v58, %s2878_s26 }
 0x2db   :  { %v4088_v56 = vpop.permute.xlu0 %1508  ;;  %v4090_v53 = vpop.permute.xlu1 %1510 }
 0x2dc   :  { %5831 = vst [vmem:[#allocation2_spill] sm:$0xff] %v4088_v56  ;;  %5832 = vst [vmem:[#allocation234_spill] sm:$0xff] %v4090_v53 }
 0x2dd   :  { %1752 = vrot.lane.b32.xlu0 %v5833_v13, %s2878_s26  ;;  %1754 = vrot.lane.b32.xlu1 %v5834_v41, %s2878_s26 }
 0x2df   :  { %v4096_v46 = vpop.permute.xlu0 %1512  ;;  %v4098_v39 = vpop.permute.xlu1 %1514 }
 0x2e0   :  { %5835 = vst [vmem:[#allocation7_spill] sm:$0xff] %v4096_v46  ;;  %5836 = vst [vmem:[#allocation9_spill] sm:$0xff] %v4098_v39 }
 0x2e1   :  { %1756 = vrot.lane.b32.xlu0 %v5764_v47, %s2878_s26  ;;  %1758 = vrot.lane.b32.xlu1 %v5837_v43, %s2878_s26 }
 0x2e3   :  { %v4104_v58 = vpop.permute.xlu0 %1516  ;;  %v4106_v56 = vpop.permute.xlu1 %1518 }
 0x2e4   :  { %5838 = vst [vmem:[#allocation8_spill] sm:$0xff] %v4104_v58  ;;  %5839 = vst [vmem:[#allocation235_spill] sm:$0xff] %v4106_v56 }
 0x2e5   :  { %1760 = vrot.lane.b32.xlu0 %v5768_v7, %s2878_s26  ;;  %1762 = vrot.lane.b32.xlu1 %v5769_v48, %s2878_s26 }
 0x2e7   :  { %v4112_v53 = vpop.permute.xlu0 %1520  ;;  %v4114_v46 = vpop.permute.xlu1 %1522 }
 0x2e8   :  { %5840 = vst [vmem:[#allocation236_spill] sm:$0xff] %v4112_v53  ;;  %5841 = vst [vmem:[#allocation237_spill] sm:$0xff] %v4114_v46 }
 0x2e9   :  { %1764 = vrot.lane.b32.xlu0 %v3140_v55, %s2878_s26  ;;  %1766 = vrot.lane.b32.xlu1 %v5772_v2, %s2878_s26 }
 0x2eb   :  { %v4120_v39 = vpop.permute.xlu0 %1524  ;;  %v4122_v58 = vpop.permute.xlu1 %1526 }
 0x2ec   :  { %5842 = vst [vmem:[#allocation238_spill] sm:$0xff] %v4120_v39  ;;  %5843 = vst [vmem:[#allocation239_spill] sm:$0xff] %v4122_v58 }
 0x2ed   :  { %1768 = vrot.lane.b32.xlu0 %v3198_v0, %s2878_s26  ;;  %1770 = vrot.lane.b32.xlu1 %v3248_v15, %s2878_s26 }
 0x2ef   :  { %v4128_v56 = vpop.permute.xlu0 %1528  ;;  %v4130_v53 = vpop.permute.xlu1 %1530 }
 0x2f0   :  { %5844 = vst [vmem:[#allocation240_spill] sm:$0xff] %v4128_v56  ;;  %5845 = vst [vmem:[#allocation241_spill] sm:$0xff] %v4130_v53 }
 0x2f1   :  { %1772 = vrot.lane.b32.xlu0 %v3192_v63, %s2878_s26  ;;  %1774 = vrot.lane.b32.xlu1 %v3210_v4, %s2878_s26 }
 0x2f3   :  { %v4136_v46 = vpop.permute.xlu0 %1532  ;;  %v4138_v39 = vpop.permute.xlu1 %1534 }
 0x2f4   :  { %5846 = vst [vmem:[#allocation242_spill] sm:$0xff] %v4136_v46  ;;  %5847 = vst [vmem:[#allocation243_spill] sm:$0xff] %v4138_v39 }
 0x2f5   :  { %1776 = vrot.lane.b32.xlu0 %v3278_v24, %s2878_s26  ;;  %1778 = vrot.lane.b32.xlu1 %v3328_v14, %s2878_s26 }
 0x2f7   :  { %v4144_v58 = vpop.permute.xlu0 %1536  ;;  %v4146_v56 = vpop.permute.xlu1 %1538 }
 0x2f8   :  { %5848 = vst [vmem:[#allocation244_spill] sm:$0xff] %v4144_v58  ;;  %5849 = vst [vmem:[#allocation245_spill] sm:$0xff] %v4146_v56 }
 0x2f9   :  { %1780 = vrot.lane.b32.xlu0 %v3268_v21, %s2878_s26  ;;  %1782 = vrot.lane.b32.xlu1 %v3290_v28, %s2878_s26 }
 0x2fb   :  { %v4152_v53 = vpop.permute.xlu0 %1540  ;;  %v4154_v46 = vpop.permute.xlu1 %1542 }
 0x2fc   :  { %5850 = vst [vmem:[#allocation246_spill] sm:$0xff] %v4152_v53  ;;  %5851 = vst [vmem:[#allocation247_spill] sm:$0xff] %v4154_v46 }
 0x2fd   :  { %1784 = vrot.lane.b32.xlu0 %v3358_v22, %s2878_s26  ;;  %1786 = vrot.lane.b32.xlu1 %v3408_v16, %s2878_s26 }
 0x2ff   :  { %v4160_v39 = vpop.permute.xlu0 %1544  ;;  %v4162_v58 = vpop.permute.xlu1 %1546 }
 0x300   :  { %5852 = vst [vmem:[#allocation248_spill] sm:$0xff] %v4160_v39  ;;  %5853 = vst [vmem:[#allocation249_spill] sm:$0xff] %v4162_v58 }
 0x301   :  { %1788 = vrot.lane.b32.xlu0 %v3348_v27, %s2878_s26  ;;  %1790 = vrot.lane.b32.xlu1 %v3370_v10, %s2878_s26 }
 0x303   :  { %v4168_v56 = vpop.permute.xlu0 %1548  ;;  %v4170_v53 = vpop.permute.xlu1 %1550 }
 0x304   :  { %5854 = vst [vmem:[#allocation250_spill] sm:$0xff] %v4168_v56  ;;  %5855 = vst [vmem:[#allocation251_spill] sm:$0xff] %v4170_v53 }
 0x305   :  { %1792 = vrot.lane.b32.xlu0 %v3438_v11, %s2878_s26  ;;  %1794 = vrot.lane.b32.xlu1 %v3488_v35, %s2878_s26 }
 0x307   :  { %v4176_v46 = vpop.permute.xlu0 %1552  ;;  %v4178_v39 = vpop.permute.xlu1 %1554 }
 0x308   :  { %5856 = vst [vmem:[#allocation252_spill] sm:$0xff] %v4176_v46  ;;  %5857 = vst [vmem:[#allocation253_spill] sm:$0xff] %v4178_v39 }
 0x309   :  { %1796 = vrot.lane.b32.xlu0 %v3428_v33, %s2878_s26  ;;  %1798 = vrot.lane.b32.xlu1 %v3450_v6, %s2878_s26 }
 0x30b   :  { %v4184_v58 = vpop.permute.xlu0 %1556  ;;  %v4186_v56 = vpop.permute.xlu1 %1558 }
 0x30c   :  { %5858 = vst [vmem:[#allocation254_spill] sm:$0xff] %v4184_v58  ;;  %5859 = vst [vmem:[#allocation255_spill] sm:$0xff] %v4186_v56 }
 0x30d   :  { %1800 = vrot.lane.b32.xlu0 %v3526_v23, %s2878_s26  ;;  %1802 = vrot.lane.b32.xlu1 %v3576_v34, %s2878_s26 }
 0x30f   :  { %v4192_v53 = vpop.permute.xlu0 %1560  ;;  %v4194_v46 = vpop.permute.xlu1 %1562 }
 0x310   :  { %5860 = vst [vmem:[#allocation256_spill] sm:$0xff] %v4192_v53  ;;  %5861 = vst [vmem:[#allocation257_spill] sm:$0xff] %v4194_v46 }
 0x311   :  { %1804 = vrot.lane.b32.xlu0 %v3516_v19, %s2878_s26  ;;  %1806 = vrot.lane.b32.xlu1 %v3538_v31, %s2878_s26 }
 0x313   :  { %v4200_v39 = vpop.permute.xlu0 %1564  ;;  %v4202_v58 = vpop.permute.xlu1 %1566 }
 0x314   :  { %5862 = vst [vmem:[#allocation258_spill] sm:$0xff] %v4200_v39  ;;  %5863 = vst [vmem:[#allocation259_spill] sm:$0xff] %v4202_v58 }
 0x315   :  { %1808 = vrot.lane.b32.xlu0 %v3046_v42, %s2878_s26  ;;  %1810 = vrot.lane.b32.xlu1 %v3072_v45, %s2878_s26 }
 0x317   :  { %v4208_v56 = vpop.permute.xlu0 %1568  ;;  %v4210_v53 = vpop.permute.xlu1 %1570 }
 0x318   :  { %5864 = vst [vmem:[#allocation260_spill] sm:$0xff] %v4208_v56  ;;  %5865 = vst [vmem:[#allocation261_spill] sm:$0xff] %v4210_v53 }
 0x319   :  { %1812 = vrot.lane.b32.xlu0 %v3038_v40, %s2878_s26  ;;  %1814 = vrot.lane.b32.xlu1 %v3054_v44, %s2878_s26 }
 0x31b   :  { %v4216_v46 = vpop.permute.xlu0 %1572  ;;  %v4218_v39 = vpop.permute.xlu1 %1574 }
 0x31c   :  { %5866 = vst [vmem:[#allocation262_spill] sm:$0xff] %v4216_v46  ;;  %5867 = vst [vmem:[#allocation263_spill] sm:$0xff] %v4218_v39 }
 0x31d   :  { %1816 = vrot.lane.b32.xlu0 %v3100_v51, %s2878_s26  ;;  %1818 = vrot.lane.b32.xlu1 %v3130_v54, %s2878_s26 }
 0x31f   :  { %v4224_v58 = vpop.permute.xlu0 %1576  ;;  %v4226_v56 = vpop.permute.xlu1 %1578 }
 0x320   :  { %5868 = vst [vmem:[#allocation264_spill] sm:$0xff] %v4224_v58  ;;  %5869 = vst [vmem:[#allocation265_spill] sm:$0xff] %v4226_v56 }
 0x321   :  { %1820 = vrot.lane.b32.xlu0 %v3092_v49, %s2878_s26  ;;  %1822 = vrot.lane.b32.xlu1 %v3106_v52, %s2878_s26 }
 0x323   :  { %v4232_v53 = vpop.permute.xlu0 %1580  ;;  %v4234_v46 = vpop.permute.xlu1 %1582 }
 0x324   :  { %5870 = vst [vmem:[#allocation266_spill] sm:$0xff] %v4232_v53  ;;  %5871 = vst [vmem:[#allocation267_spill] sm:$0xff] %v4234_v46 }
 0x325   :  { %1824 = vrot.lane.b32.xlu0 %v3156_v59, %s2878_s26  ;;  %1826 = vrot.lane.b32.xlu1 %v3182_v62, %s2878_s26 }
 0x327   :  { %v4240_v39 = vpop.permute.xlu0 %1584  ;;  %v4242_v58 = vpop.permute.xlu1 %1586 }
 0x328   :  { %5872 = vst [vmem:[#allocation268_spill] sm:$0xff] %v4240_v39  ;;  %5873 = vst [vmem:[#allocation269_spill] sm:$0xff] %v4242_v58 }
 0x329   :  { %1828 = vrot.lane.b32.xlu0 %v3148_v57, %s2878_s26  ;;  %1830 = vrot.lane.b32.xlu1 %v3162_v60, %s2878_s26 }
 0x32b   :  { %v4248_v56 = vpop.permute.xlu0 %1588  ;;  %v4250_v53 = vpop.permute.xlu1 %1590 }
 0x32c   :  { %5874 = vst [vmem:[#allocation270_spill] sm:$0xff] %v4248_v56  ;;  %5875 = vst [vmem:[#allocation271_spill] sm:$0xff] %v4250_v53 }
 0x32d   :  { %1832 = vrot.lane.b32.xlu0 %v3212_v5, %s2878_s26  ;;  %1834 = vrot.lane.b32.xlu1 %v3258_v18, %s2878_s26 }
 0x32f   :  { %v4256_v46 = vpop.permute.xlu0 %1592  ;;  %v4258_v39 = vpop.permute.xlu1 %1594 }
 0x330   :  { %5876 = vst [vmem:[#allocation272_spill] sm:$0xff] %v4256_v46  ;;  %5877 = vst [vmem:[#allocation273_spill] sm:$0xff] %v4258_v39 }
 0x331   :  { %1836 = vrot.lane.b32.xlu0 %v3200_v1, %s2878_s26  ;;  %1838 = vrot.lane.b32.xlu1 %v3222_v8, %s2878_s26 }
 0x333   :  { %v4264_v58 = vpop.permute.xlu0 %1596  ;;  %v4266_v56 = vpop.permute.xlu1 %1598 }
 0x334   :  { %5878 = vst [vmem:[#allocation274_spill] sm:$0xff] %v4264_v58  ;;  %5879 = vst [vmem:[#allocation275_spill] sm:$0xff] %v4266_v56 }
 0x335   :  { %1840 = vrot.lane.b32.xlu0 %v3292_v29, %s2878_s26  ;;  %1842 = vrot.lane.b32.xlu1 %v3338_v9, %s2878_s26 }
 0x337   :  { %v4272_v53 = vpop.permute.xlu0 %1600  ;;  %v4274_v46 = vpop.permute.xlu1 %1602 }
 0x338   :  { %5880 = vst [vmem:[#allocation276_spill] sm:$0xff] %v4272_v53  ;;  %5881 = vst [vmem:[#allocation277_spill] sm:$0xff] %v4274_v46 }
 0x339   :  { %1844 = vrot.lane.b32.xlu0 %v3280_v25, %s2878_s26  ;;  %1846 = vrot.lane.b32.xlu1 %v3302_v32, %s2878_s26 }
 0x33b   :  { %v4280_v39 = vpop.permute.xlu0 %1604  ;;  %v4282_v58 = vpop.permute.xlu1 %1606 }
 0x33c   :  { %5882 = vst [vmem:[#allocation278_spill] sm:$0xff] %v4280_v39  ;;  %5883 = vst [vmem:[#allocation279_spill] sm:$0xff] %v4282_v58 }
 0x33d   :  { %1848 = vrot.lane.b32.xlu0 %v3372_v38, %s2878_s26  ;;  %1850 = vrot.lane.b32.xlu1 %v3418_v36, %s2878_s26 }
 0x33f   :  { %v4288_v56 = vpop.permute.xlu0 %1608  ;;  %v4290_v53 = vpop.permute.xlu1 %1610 }
 0x340   :  { %5884 = vst [vmem:[#allocation280_spill] sm:$0xff] %v4288_v56  ;;  %5885 = vst [vmem:[#allocation281_spill] sm:$0xff] %v4290_v53 }
 0x341   :  { %1852 = vrot.lane.b32.xlu0 %v3360_v20, %s2878_s26  ;;  %1854 = vrot.lane.b32.xlu1 %v3382_v17, %s2878_s26 }
 0x343   :  { %v4296_v46 = vpop.permute.xlu0 %1612  ;;  %v4298_v39 = vpop.permute.xlu1 %1614 }
 0x344   :  { %5886 = vst [vmem:[#allocation282_spill] sm:$0xff] %v4296_v46  ;;  %5887 = vst [vmem:[#allocation283_spill] sm:$0xff] %v4298_v39 }
 0x345   :  { %1856 = vrot.lane.b32.xlu0 %v3452_v30, %s2878_s26  ;;  %1858 = vrot.lane.b32.xlu1 %v3498_v3, %s2878_s26 }
 0x347   :  { %v4304_v58 = vpop.permute.xlu0 %1744  ;;  %v4306_v56 = vpop.permute.xlu1 %1746 }
 0x348   :  { %5888 = vst [vmem:[#allocation284_spill] sm:$0xff] %v4304_v58  ;;  %5889 = vst [vmem:[#allocation285_spill] sm:$0xff] %v4306_v56  ;;  %v5894_v56 = vld [vmem:[#allocation99_spill] sm:$0xff] }
 0x349   :  { %1860 = vrot.lane.b32.xlu0 %v3440_v12, %s2878_s26  ;;  %1862 = vrot.lane.b32.xlu1 %v3462_v26, %s2878_s26  ;;  %v5895_v12 = vld [vmem:[#allocation104_spill] sm:$0xff] }
 0x34b   :  { %v4312_v53 = vpop.permute.xlu0 %1748  ;;  %v4314_v46 = vpop.permute.xlu1 %1750 }
 0x34c   :  { %5890 = vst [vmem:[#allocation286_spill] sm:$0xff] %v4312_v53  ;;  %5891 = vst [vmem:[#allocation287_spill] sm:$0xff] %v4314_v46  ;;  %v5898_v46 = vld [vmem:[#allocation3_spill] sm:$0xff] }
 0x34d   :  { %1864 = vrot.lane.b32.xlu0 %v3540_v61, %s2878_s26  ;;  %1866 = vrot.lane.b32.xlu1 %v3586_v50, %s2878_s26  ;;  %v5899_v50 = vld [vmem:[#allocation5_spill] sm:$0xff] }
 0x34f   :  { %v4320_v39 = vpop.permute.xlu0 %1752  ;;  %v4322_v58 = vpop.permute.xlu1 %1754 }
 0x350   :  { %5892 = vst [vmem:[#allocation288_spill] sm:$0xff] %v4320_v39  ;;  %5893 = vst [vmem:[#allocation289_spill] sm:$0xff] %v4322_v58 }
 0x351   :  { %1868 = vrot.lane.b32.xlu0 %v5894_v56, %s2878_s26  ;;  %1870 = vrot.lane.b32.xlu1 %v5895_v12, %s2878_s26  ;;  %v5902_v12 = vld [vmem:[#allocation4_spill] sm:$0xff] }
 0x353   :  { %v4328_v26 = vpop.permute.xlu0 %1756  ;;  %v4330_v53 = vpop.permute.xlu1 %1758 }
 0x354   :  { %5896 = vst [vmem:[#allocation99_spill] sm:$0xff] %v4328_v26  ;;  %5897 = vst [vmem:[#allocation290_spill] sm:$0xff] %v4330_v53 }
 0x355   :  { %2000 = vrot.lane.b32.xlu0 %v5898_v46, %s2879_s27  ;;  %2002 = vrot.lane.b32.xlu1 %v5899_v50, %s2879_s27 }
 0x357   :  { %v4336_v39 = vpop.permute.xlu0 %1760  ;;  %v4338_v58 = vpop.permute.xlu1 %1762 }
 0x358   :  { %5900 = vst [vmem:[#allocation3_spill] sm:$0xff] %v4336_v39  ;;  %5901 = vst [vmem:[#allocation291_spill] sm:$0xff] %v4338_v58 }
 0x359   :  { %2004 = vrot.lane.b32.xlu0 %v5829_v37, %s2879_s27  ;;  %2006 = vrot.lane.b32.xlu1 %v5902_v12, %s2879_s27 }
 0x35b   :  { %v4344_v26 = vpop.permute.xlu0 %1764  ;;  %v4346_v53 = vpop.permute.xlu1 %1766 }
 0x35c   :  { %5903 = vst [vmem:[#allocation4_spill] sm:$0xff] %v4344_v26  ;;  %5904 = vst [vmem:[#allocation292_spill] sm:$0xff] %v4346_v53 }
 0x35d   :  { %2008 = vrot.lane.b32.xlu0 %v5833_v13, %s2879_s27  ;;  %2010 = vrot.lane.b32.xlu1 %v5834_v41, %s2879_s27 }
 0x35f   :  { %v4352_v50 = vpop.permute.xlu0 %1768  ;;  %v4354_v39 = vpop.permute.xlu1 %1770 }
 0x360   :  { %5905 = vst [vmem:[#allocation293_spill] sm:$0xff] %v4352_v50  ;;  %5906 = vst [vmem:[#allocation294_spill] sm:$0xff] %v4354_v39 }
 0x361   :  { %2012 = vrot.lane.b32.xlu0 %v5764_v47, %s2879_s27  ;;  %2014 = vrot.lane.b32.xlu1 %v5837_v43, %s2879_s27 }
 0x363   :  { %v4360_v58 = vpop.permute.xlu0 %1772  ;;  %v4362_v26 = vpop.permute.xlu1 %1774 }
 0x364   :  { %5907 = vst [vmem:[#allocation295_spill] sm:$0xff] %v4360_v58  ;;  %5908 = vst [vmem:[#allocation296_spill] sm:$0xff] %v4362_v26 }
 0x365   :  { %2016 = vrot.lane.b32.xlu0 %v5768_v7, %s2879_s27  ;;  %2018 = vrot.lane.b32.xlu1 %v5769_v48, %s2879_s27 }
 0x367   :  { %v4368_v53 = vpop.permute.xlu0 %1776  ;;  %v4370_v50 = vpop.permute.xlu1 %1778 }
 0x368   :  { %5909 = vst [vmem:[#allocation297_spill] sm:$0xff] %v4368_v53  ;;  %5910 = vst [vmem:[#allocation298_spill] sm:$0xff] %v4370_v50 }
 0x369   :  { %2020 = vrot.lane.b32.xlu0 %v3140_v55, %s2879_s27  ;;  %2022 = vrot.lane.b32.xlu1 %v5772_v2, %s2879_s27 }
 0x36b   :  { %v4376_v39 = vpop.permute.xlu0 %1780  ;;  %v4378_v58 = vpop.permute.xlu1 %1782 }
 0x36c   :  { %5911 = vst [vmem:[#allocation299_spill] sm:$0xff] %v4376_v39  ;;  %5912 = vst [vmem:[#allocation300_spill] sm:$0xff] %v4378_v58 }
 0x36d   :  { %2024 = vrot.lane.b32.xlu0 %v3198_v0, %s2879_s27  ;;  %2026 = vrot.lane.b32.xlu1 %v3248_v15, %s2879_s27 }
 0x36f   :  { %v4384_v26 = vpop.permute.xlu0 %1784  ;;  %v4386_v53 = vpop.permute.xlu1 %1786 }
 0x370   :  { %5913 = vst [vmem:[#allocation301_spill] sm:$0xff] %v4384_v26  ;;  %5914 = vst [vmem:[#allocation302_spill] sm:$0xff] %v4386_v53 }
 0x371   :  { %2028 = vrot.lane.b32.xlu0 %v3192_v63, %s2879_s27  ;;  %2030 = vrot.lane.b32.xlu1 %v3210_v4, %s2879_s27 }
 0x373   :  { %v4392_v50 = vpop.permute.xlu0 %1788  ;;  %v4394_v39 = vpop.permute.xlu1 %1790 }
 0x374   :  { %5915 = vst [vmem:[#allocation303_spill] sm:$0xff] %v4392_v50  ;;  %5916 = vst [vmem:[#allocation304_spill] sm:$0xff] %v4394_v39 }
 0x375   :  { %2032 = vrot.lane.b32.xlu0 %v3278_v24, %s2879_s27  ;;  %2034 = vrot.lane.b32.xlu1 %v3328_v14, %s2879_s27 }
 0x377   :  { %v4400_v58 = vpop.permute.xlu0 %1792  ;;  %v4402_v26 = vpop.permute.xlu1 %1794 }
 0x378   :  { %5917 = vst [vmem:[#allocation305_spill] sm:$0xff] %v4400_v58  ;;  %5918 = vst [vmem:[#allocation306_spill] sm:$0xff] %v4402_v26 }
 0x379   :  { %2036 = vrot.lane.b32.xlu0 %v3268_v21, %s2879_s27  ;;  %2038 = vrot.lane.b32.xlu1 %v3290_v28, %s2879_s27 }
 0x37b   :  { %v4408_v53 = vpop.permute.xlu0 %1796  ;;  %v4410_v50 = vpop.permute.xlu1 %1798 }
 0x37c   :  { %5919 = vst [vmem:[#allocation307_spill] sm:$0xff] %v4408_v53  ;;  %5920 = vst [vmem:[#allocation308_spill] sm:$0xff] %v4410_v50 }
 0x37d   :  { %2040 = vrot.lane.b32.xlu0 %v3358_v22, %s2879_s27  ;;  %2042 = vrot.lane.b32.xlu1 %v3408_v16, %s2879_s27 }
 0x37f   :  { %v4416_v39 = vpop.permute.xlu0 %1800  ;;  %v4418_v58 = vpop.permute.xlu1 %1802 }
 0x380   :  { %5921 = vst [vmem:[#allocation309_spill] sm:$0xff] %v4416_v39  ;;  %5922 = vst [vmem:[#allocation310_spill] sm:$0xff] %v4418_v58 }
 0x381   :  { %2044 = vrot.lane.b32.xlu0 %v3348_v27, %s2879_s27  ;;  %2046 = vrot.lane.b32.xlu1 %v3370_v10, %s2879_s27 }
 0x383   :  { %v4424_v26 = vpop.permute.xlu0 %1804  ;;  %v4426_v53 = vpop.permute.xlu1 %1806 }
 0x384   :  { %5923 = vst [vmem:[#allocation311_spill] sm:$0xff] %v4424_v26  ;;  %5924 = vst [vmem:[#allocation312_spill] sm:$0xff] %v4426_v53 }
 0x385   :  { %2048 = vrot.lane.b32.xlu0 %v3438_v11, %s2879_s27  ;;  %2050 = vrot.lane.b32.xlu1 %v3488_v35, %s2879_s27 }
 0x387   :  { %v4432_v50 = vpop.permute.xlu0 %1808  ;;  %v4434_v39 = vpop.permute.xlu1 %1810 }
 0x388   :  { %5925 = vst [vmem:[#allocation313_spill] sm:$0xff] %v4432_v50  ;;  %5926 = vst [vmem:[#allocation314_spill] sm:$0xff] %v4434_v39 }
 0x389   :  { %2052 = vrot.lane.b32.xlu0 %v3428_v33, %s2879_s27  ;;  %2054 = vrot.lane.b32.xlu1 %v3450_v6, %s2879_s27 }
 0x38b   :  { %v4440_v58 = vpop.permute.xlu0 %1812  ;;  %v4442_v26 = vpop.permute.xlu1 %1814 }
 0x38c   :  { %5927 = vst [vmem:[#allocation315_spill] sm:$0xff] %v4440_v58  ;;  %5928 = vst [vmem:[#allocation316_spill] sm:$0xff] %v4442_v26 }
 0x38d   :  { %2056 = vrot.lane.b32.xlu0 %v3526_v23, %s2879_s27  ;;  %2058 = vrot.lane.b32.xlu1 %v3576_v34, %s2879_s27 }
 0x38f   :  { %v4448_v53 = vpop.permute.xlu0 %1816  ;;  %v4450_v50 = vpop.permute.xlu1 %1818 }
 0x390   :  { %5929 = vst [vmem:[#allocation317_spill] sm:$0xff] %v4448_v53  ;;  %5930 = vst [vmem:[#allocation318_spill] sm:$0xff] %v4450_v50 }
 0x391   :  { %2060 = vrot.lane.b32.xlu0 %v3516_v19, %s2879_s27  ;;  %2062 = vrot.lane.b32.xlu1 %v3538_v31, %s2879_s27 }
 0x393   :  { %v4456_v39 = vpop.permute.xlu0 %1820  ;;  %v4458_v58 = vpop.permute.xlu1 %1822 }
 0x394   :  { %5931 = vst [vmem:[#allocation319_spill] sm:$0xff] %v4456_v39  ;;  %5932 = vst [vmem:[#allocation320_spill] sm:$0xff] %v4458_v58 }
 0x395   :  { %2064 = vrot.lane.b32.xlu0 %v3046_v42, %s2879_s27  ;;  %2066 = vrot.lane.b32.xlu1 %v3072_v45, %s2879_s27 }
 0x397   :  { %v4464_v26 = vpop.permute.xlu0 %1824  ;;  %v4466_v53 = vpop.permute.xlu1 %1826 }
 0x398   :  { %5933 = vst [vmem:[#allocation321_spill] sm:$0xff] %v4464_v26  ;;  %5934 = vst [vmem:[#allocation322_spill] sm:$0xff] %v4466_v53 }
 0x399   :  { %2068 = vrot.lane.b32.xlu0 %v3038_v40, %s2879_s27  ;;  %2070 = vrot.lane.b32.xlu1 %v3054_v44, %s2879_s27 }
 0x39b   :  { %v4472_v50 = vpop.permute.xlu0 %1828  ;;  %v4474_v39 = vpop.permute.xlu1 %1830 }
 0x39c   :  { %5935 = vst [vmem:[#allocation323_spill] sm:$0xff] %v4472_v50  ;;  %5936 = vst [vmem:[#allocation324_spill] sm:$0xff] %v4474_v39 }
 0x39d   :  { %2072 = vrot.lane.b32.xlu0 %v3100_v51, %s2879_s27  ;;  %2074 = vrot.lane.b32.xlu1 %v3130_v54, %s2879_s27 }
 0x39f   :  { %v4480_v58 = vpop.permute.xlu0 %1832  ;;  %v4482_v26 = vpop.permute.xlu1 %1834 }
 0x3a0   :  { %5937 = vst [vmem:[#allocation325_spill] sm:$0xff] %v4480_v58  ;;  %5938 = vst [vmem:[#allocation326_spill] sm:$0xff] %v4482_v26 }
 0x3a1   :  { %2076 = vrot.lane.b32.xlu0 %v3092_v49, %s2879_s27  ;;  %2078 = vrot.lane.b32.xlu1 %v3106_v52, %s2879_s27 }
 0x3a3   :  { %v4488_v53 = vpop.permute.xlu0 %1836  ;;  %v4490_v50 = vpop.permute.xlu1 %1838 }
 0x3a4   :  { %5939 = vst [vmem:[#allocation327_spill] sm:$0xff] %v4488_v53  ;;  %5940 = vst [vmem:[#allocation328_spill] sm:$0xff] %v4490_v50 }
 0x3a5   :  { %2080 = vrot.lane.b32.xlu0 %v3156_v59, %s2879_s27  ;;  %2082 = vrot.lane.b32.xlu1 %v3182_v62, %s2879_s27 }
 0x3a7   :  { %v4496_v39 = vpop.permute.xlu0 %1840  ;;  %v4498_v58 = vpop.permute.xlu1 %1842 }
 0x3a8   :  { %5941 = vst [vmem:[#allocation329_spill] sm:$0xff] %v4496_v39  ;;  %5942 = vst [vmem:[#allocation330_spill] sm:$0xff] %v4498_v58 }
 0x3a9   :  { %2084 = vrot.lane.b32.xlu0 %v3148_v57, %s2879_s27  ;;  %2086 = vrot.lane.b32.xlu1 %v3162_v60, %s2879_s27 }
 0x3ab   :  { %v4504_v26 = vpop.permute.xlu0 %1844  ;;  %v4506_v53 = vpop.permute.xlu1 %1846 }
 0x3ac   :  { %5943 = vst [vmem:[#allocation331_spill] sm:$0xff] %v4504_v26  ;;  %5944 = vst [vmem:[#allocation332_spill] sm:$0xff] %v4506_v53 }
 0x3ad   :  { %2088 = vrot.lane.b32.xlu0 %v3212_v5, %s2879_s27  ;;  %2090 = vrot.lane.b32.xlu1 %v3258_v18, %s2879_s27 }
 0x3af   :  { %v4512_v50 = vpop.permute.xlu0 %1848  ;;  %v4514_v39 = vpop.permute.xlu1 %1850 }
 0x3b0   :  { %5945 = vst [vmem:[#allocation333_spill] sm:$0xff] %v4512_v50  ;;  %5946 = vst [vmem:[#allocation334_spill] sm:$0xff] %v4514_v39 }
 0x3b1   :  { %2092 = vrot.lane.b32.xlu0 %v3200_v1, %s2879_s27  ;;  %2094 = vrot.lane.b32.xlu1 %v3222_v8, %s2879_s27 }
 0x3b3   :  { %v4520_v58 = vpop.permute.xlu0 %1852  ;;  %v4522_v26 = vpop.permute.xlu1 %1854 }
 0x3b4   :  { %5947 = vst [vmem:[#allocation335_spill] sm:$0xff] %v4520_v58  ;;  %5948 = vst [vmem:[#allocation336_spill] sm:$0xff] %v4522_v26 }
 0x3b5   :  { %2096 = vrot.lane.b32.xlu0 %v3292_v29, %s2879_s27  ;;  %2098 = vrot.lane.b32.xlu1 %v3338_v9, %s2879_s27 }
 0x3b7   :  { %v4528_v53 = vpop.permute.xlu0 %1856  ;;  %v4530_v50 = vpop.permute.xlu1 %1858 }
 0x3b8   :  { %5949 = vst [vmem:[#allocation337_spill] sm:$0xff] %v4528_v53  ;;  %5950 = vst [vmem:[#allocation338_spill] sm:$0xff] %v4530_v50 }
 0x3b9   :  { %2100 = vrot.lane.b32.xlu0 %v3280_v25, %s2879_s27  ;;  %2102 = vrot.lane.b32.xlu1 %v3302_v32, %s2879_s27 }
 0x3bb   :  { %v4536_v39 = vpop.permute.xlu0 %1860  ;;  %v4538_v58 = vpop.permute.xlu1 %1862 }
 0x3bc   :  { %5951 = vst [vmem:[#allocation339_spill] sm:$0xff] %v4536_v39  ;;  %5952 = vst [vmem:[#allocation340_spill] sm:$0xff] %v4538_v58 }
 0x3bd   :  { %2104 = vrot.lane.b32.xlu0 %v3372_v38, %s2879_s27  ;;  %2106 = vrot.lane.b32.xlu1 %v3418_v36, %s2879_s27 }
 0x3bf   :  { %v4544_v26 = vpop.permute.xlu0 %1864  ;;  %v4546_v53 = vpop.permute.xlu1 %1866 }
 0x3c0   :  { %5953 = vst [vmem:[#allocation341_spill] sm:$0xff] %v4544_v26  ;;  %5954 = vst [vmem:[#allocation342_spill] sm:$0xff] %v4546_v53  ;;  %v5958_v53 = vld [vmem:[#allocation77_spill] sm:$0xff] }
 0x3c1   :  { %2108 = vrot.lane.b32.xlu0 %v3360_v20, %s2879_s27  ;;  %2110 = vrot.lane.b32.xlu1 %v3382_v17, %s2879_s27  ;;  %v5959_v20 = vld [vmem:[#allocation83_spill] sm:$0xff] }
 0x3c3   :  { %v4552_v50 = vpop.permute.xlu0 %1868  ;;  %v4554_v39 = vpop.permute.xlu1 %1870 }
 0x3c4   :  { %5955 = vst [vmem:[#allocation343_spill] sm:$0xff] %v4552_v50  ;;  %5956 = vst [vmem:[#allocation344_spill] sm:$0xff] %v4554_v39  ;;  %v5961_v39 = vld [vmem:[#allocation113_spill] sm:$0xff] }
 0x3c5   :  { %2112 = vrot.lane.b32.xlu0 %v3452_v30, %s2879_s27  ;;  %2114 = vrot.lane.b32.xlu1 %v3498_v3, %s2879_s27 }
 0x3c7   :  { %v4560_v58 = vpop.permute.xlu0 %2000  ;;  %v4562_v26 = vpop.permute.xlu1 %2002 }
 0x3c8   :  { %5957 = vst [vmem:[#allocation345_spill] sm:$0xff] %v4560_v58 }
 0x3c9   :  { %2116 = vrot.lane.b32.xlu0 %v5958_v53, %s2879_s27  ;;  %2118 = vrot.lane.b32.xlu1 %v5959_v20, %s2879_s27  ;;  %v5964_v53 = vld [vmem:[#allocation104_spill] sm:$0xff] }
 0x3cb   :  { %v4568_v17 = vpop.permute.xlu0 %2004  ;;  %v4570_v50 = vpop.permute.xlu1 %2006 }
 0x3cc   :  { %5960 = vst [vmem:[#allocation346_spill] sm:$0xff] %v4568_v17 }
 0x3cd   :  { %2120 = vrot.lane.b32.xlu0 %v3540_v61, %s2879_s27  ;;  %2122 = vrot.lane.b32.xlu1 %v5961_v39, %s2879_s27  ;;  %v5967_v39 = vld [vmem:[#allocation5_spill] sm:$0xff] }
 0x3cf   :  { %v4576_v3 = vpop.permute.xlu0 %2008  ;;  %v4578_v58 = vpop.permute.xlu1 %2010 }
 0x3d0   :  { %5962 = vst [vmem:[#allocation347_spill] sm:$0xff] %v4576_v3  ;;  %5963 = vst [vmem:[#allocation348_spill] sm:$0xff] %v4578_v58 }
 0x3d1   :  { %2124 = vrot.lane.b32.xlu0 %v5894_v56, %s2879_s27  ;;  %2126 = vrot.lane.b32.xlu1 %v5964_v53, %s2879_s27 }
 0x3d3   :  { %v4584_v20 = vpop.permute.xlu0 %2012  ;;  %v4586_v17 = vpop.permute.xlu1 %2014 }
 0x3d4   :  { %5965 = vst [vmem:[#allocation349_spill] sm:$0xff] %v4584_v20  ;;  %5966 = vst [vmem:[#allocation350_spill] sm:$0xff] %v4586_v17 }
 0x3d5   :  { %2256 = vrot.lane.b32.xlu0 %v5898_v46, %s2880_s1  ;;  %2258 = vrot.lane.b32.xlu1 %v5967_v39, %s2880_s1 }
 0x3d7   :  { %v4592_v3 = vpop.permute.xlu0 %2016  ;;  %v4594_v58 = vpop.permute.xlu1 %2018 }
 0x3d8   :  { %5968 = vst [vmem:[#allocation5_spill] sm:$0xff] %v4592_v3  ;;  %5969 = vst [vmem:[#allocation351_spill] sm:$0xff] %v4594_v58 }
 0x3d9   :  { %2260 = vrot.lane.b32.xlu0 %v5829_v37, %s2880_s1  ;;  %2262 = vrot.lane.b32.xlu1 %v5902_v12, %s2880_s1 }
 0x3db   :  { %v4600_v20 = vpop.permute.xlu0 %2020  ;;  %v4602_v17 = vpop.permute.xlu1 %2022 }
 0x3dc   :  { %5970 = vst [vmem:[#allocation352_spill] sm:$0xff] %v4600_v20  ;;  %5971 = vst [vmem:[#allocation353_spill] sm:$0xff] %v4602_v17 }
 0x3dd   :  { %2264 = vrot.lane.b32.xlu0 %v5833_v13, %s2880_s1  ;;  %2266 = vrot.lane.b32.xlu1 %v5834_v41, %s2880_s1 }
 0x3df   :  { %v4608_v53 = vpop.permute.xlu0 %2024  ;;  %v4610_v3 = vpop.permute.xlu1 %2026 }
 0x3e0   :  { %5972 = vst [vmem:[#allocation354_spill] sm:$0xff] %v4608_v53  ;;  %5973 = vst [vmem:[#allocation355_spill] sm:$0xff] %v4610_v3 }
 0x3e1   :  { %2268 = vrot.lane.b32.xlu0 %v5764_v47, %s2880_s1  ;;  %2270 = vrot.lane.b32.xlu1 %v5837_v43, %s2880_s1 }
 0x3e3   :  { %v4616_v58 = vpop.permute.xlu0 %2028  ;;  %v4618_v20 = vpop.permute.xlu1 %2030 }
 0x3e4   :  { %5974 = vst [vmem:[#allocation356_spill] sm:$0xff] %v4616_v58  ;;  %5975 = vst [vmem:[#allocation357_spill] sm:$0xff] %v4618_v20 }
 0x3e5   :  { %2272 = vrot.lane.b32.xlu0 %v5768_v7, %s2880_s1  ;;  %2274 = vrot.lane.b32.xlu1 %v5769_v48, %s2880_s1 }
 0x3e7   :  { %v4624_v17 = vpop.permute.xlu0 %2032  ;;  %v4626_v53 = vpop.permute.xlu1 %2034 }
 0x3e8   :  { %5976 = vst [vmem:[#allocation358_spill] sm:$0xff] %v4624_v17  ;;  %5977 = vst [vmem:[#allocation359_spill] sm:$0xff] %v4626_v53 }
 0x3e9   :  { %2276 = vrot.lane.b32.xlu0 %v3140_v55, %s2880_s1  ;;  %2278 = vrot.lane.b32.xlu1 %v5772_v2, %s2880_s1 }
 0x3eb   :  { %v4632_v3 = vpop.permute.xlu0 %2036  ;;  %v4634_v58 = vpop.permute.xlu1 %2038 }
 0x3ec   :  { %5978 = vst [vmem:[#allocation360_spill] sm:$0xff] %v4632_v3  ;;  %5979 = vst [vmem:[#allocation361_spill] sm:$0xff] %v4634_v58 }
 0x3ed   :  { %2280 = vrot.lane.b32.xlu0 %v3198_v0, %s2880_s1  ;;  %2282 = vrot.lane.b32.xlu1 %v3248_v15, %s2880_s1 }
 0x3ef   :  { %v4640_v20 = vpop.permute.xlu0 %2040  ;;  %v4642_v17 = vpop.permute.xlu1 %2042 }
 0x3f0   :  { %5980 = vst [vmem:[#allocation362_spill] sm:$0xff] %v4640_v20  ;;  %5981 = vst [vmem:[#allocation363_spill] sm:$0xff] %v4642_v17 }
 0x3f1   :  { %2284 = vrot.lane.b32.xlu0 %v3192_v63, %s2880_s1  ;;  %2286 = vrot.lane.b32.xlu1 %v3210_v4, %s2880_s1 }
 0x3f3   :  { %v4648_v53 = vpop.permute.xlu0 %2044  ;;  %v4650_v3 = vpop.permute.xlu1 %2046 }
 0x3f4   :  { %5982 = vst [vmem:[#allocation364_spill] sm:$0xff] %v4648_v53  ;;  %5983 = vst [vmem:[#allocation365_spill] sm:$0xff] %v4650_v3 }
 0x3f5   :  { %2288 = vrot.lane.b32.xlu0 %v3278_v24, %s2880_s1  ;;  %2290 = vrot.lane.b32.xlu1 %v3328_v14, %s2880_s1 }
 0x3f7   :  { %v4656_v58 = vpop.permute.xlu0 %2048  ;;  %v4658_v20 = vpop.permute.xlu1 %2050 }
 0x3f8   :  { %5984 = vst [vmem:[#allocation366_spill] sm:$0xff] %v4656_v58  ;;  %5985 = vst [vmem:[#allocation367_spill] sm:$0xff] %v4658_v20 }
 0x3f9   :  { %2292 = vrot.lane.b32.xlu0 %v3268_v21, %s2880_s1  ;;  %2294 = vrot.lane.b32.xlu1 %v3290_v28, %s2880_s1 }
 0x3fb   :  { %v4664_v17 = vpop.permute.xlu0 %2052  ;;  %v4666_v53 = vpop.permute.xlu1 %2054 }
 0x3fc   :  { %5986 = vst [vmem:[#allocation368_spill] sm:$0xff] %v4664_v17  ;;  %5987 = vst [vmem:[#allocation369_spill] sm:$0xff] %v4666_v53 }
 0x3fd   :  { %2296 = vrot.lane.b32.xlu0 %v3358_v22, %s2880_s1  ;;  %2298 = vrot.lane.b32.xlu1 %v3408_v16, %s2880_s1 }
 0x3ff   :  { %v4672_v3 = vpop.permute.xlu0 %2056  ;;  %v4674_v58 = vpop.permute.xlu1 %2058 }
 0x400   :  { %5988 = vst [vmem:[#allocation370_spill] sm:$0xff] %v4672_v3  ;;  %5989 = vst [vmem:[#allocation371_spill] sm:$0xff] %v4674_v58 }
 0x401   :  { %2300 = vrot.lane.b32.xlu0 %v3348_v27, %s2880_s1  ;;  %2302 = vrot.lane.b32.xlu1 %v3370_v10, %s2880_s1 }
 0x403   :  { %v4680_v20 = vpop.permute.xlu0 %2060  ;;  %v4682_v17 = vpop.permute.xlu1 %2062 }
 0x404   :  { %5990 = vst [vmem:[#allocation372_spill] sm:$0xff] %v4680_v20  ;;  %5991 = vst [vmem:[#allocation373_spill] sm:$0xff] %v4682_v17 }
 0x405   :  { %2304 = vrot.lane.b32.xlu0 %v3438_v11, %s2880_s1  ;;  %2306 = vrot.lane.b32.xlu1 %v3488_v35, %s2880_s1 }
 0x407   :  { %v4688_v53 = vpop.permute.xlu0 %2064  ;;  %v4690_v3 = vpop.permute.xlu1 %2066 }
 0x408   :  { %5992 = vst [vmem:[#allocation374_spill] sm:$0xff] %v4688_v53  ;;  %5993 = vst [vmem:[#allocation375_spill] sm:$0xff] %v4690_v3 }
 0x409   :  { %2308 = vrot.lane.b32.xlu0 %v3428_v33, %s2880_s1  ;;  %2310 = vrot.lane.b32.xlu1 %v3450_v6, %s2880_s1 }
 0x40b   :  { %v4696_v58 = vpop.permute.xlu0 %2068  ;;  %v4698_v20 = vpop.permute.xlu1 %2070 }
 0x40c   :  { %5994 = vst [vmem:[#allocation376_spill] sm:$0xff] %v4696_v58  ;;  %5995 = vst [vmem:[#allocation377_spill] sm:$0xff] %v4698_v20 }
 0x40d   :  { %2312 = vrot.lane.b32.xlu0 %v3526_v23, %s2880_s1  ;;  %2314 = vrot.lane.b32.xlu1 %v3576_v34, %s2880_s1 }
 0x40f   :  { %v4704_v17 = vpop.permute.xlu0 %2072  ;;  %v4706_v53 = vpop.permute.xlu1 %2074 }
 0x410   :  { %5996 = vst [vmem:[#allocation378_spill] sm:$0xff] %v4704_v17  ;;  %5997 = vst [vmem:[#allocation379_spill] sm:$0xff] %v4706_v53 }
 0x411   :  { %2316 = vrot.lane.b32.xlu0 %v3516_v19, %s2880_s1  ;;  %2318 = vrot.lane.b32.xlu1 %v3538_v31, %s2880_s1 }
 0x413   :  { %v4712_v3 = vpop.permute.xlu0 %2076  ;;  %v4714_v58 = vpop.permute.xlu1 %2078 }
 0x414   :  { %5998 = vst [vmem:[#allocation380_spill] sm:$0xff] %v4712_v3  ;;  %5999 = vst [vmem:[#allocation381_spill] sm:$0xff] %v4714_v58 }
 0x415   :  { %2320 = vrot.lane.b32.xlu0 %v3046_v42, %s2880_s1  ;;  %2322 = vrot.lane.b32.xlu1 %v3072_v45, %s2880_s1 }
 0x417   :  { %v4720_v20 = vpop.permute.xlu0 %2080  ;;  %v4722_v17 = vpop.permute.xlu1 %2082 }
 0x418   :  { %6000 = vst [vmem:[#allocation382_spill] sm:$0xff] %v4720_v20  ;;  %6001 = vst [vmem:[#allocation383_spill] sm:$0xff] %v4722_v17 }
 0x419   :  { %2324 = vrot.lane.b32.xlu0 %v3038_v40, %s2880_s1  ;;  %2326 = vrot.lane.b32.xlu1 %v3054_v44, %s2880_s1 }
 0x41b   :  { %v4728_v53 = vpop.permute.xlu0 %2084  ;;  %v4730_v3 = vpop.permute.xlu1 %2086 }
 0x41c   :  { %6002 = vst [vmem:[#allocation384_spill] sm:$0xff] %v4728_v53  ;;  %6003 = vst [vmem:[#allocation385_spill] sm:$0xff] %v4730_v3 }
 0x41d   :  { %2328 = vrot.lane.b32.xlu0 %v3100_v51, %s2880_s1  ;;  %2330 = vrot.lane.b32.xlu1 %v3130_v54, %s2880_s1 }
 0x41f   :  { %v4736_v58 = vpop.permute.xlu0 %2088  ;;  %v4738_v20 = vpop.permute.xlu1 %2090 }
 0x420   :  { %6004 = vst [vmem:[#allocation386_spill] sm:$0xff] %v4736_v58  ;;  %6005 = vst [vmem:[#allocation387_spill] sm:$0xff] %v4738_v20 }
 0x421   :  { %2332 = vrot.lane.b32.xlu0 %v3092_v49, %s2880_s1  ;;  %2334 = vrot.lane.b32.xlu1 %v3106_v52, %s2880_s1 }
 0x423   :  { %v4744_v17 = vpop.permute.xlu0 %2092  ;;  %v4746_v53 = vpop.permute.xlu1 %2094 }
 0x424   :  { %6006 = vst [vmem:[#allocation388_spill] sm:$0xff] %v4744_v17  ;;  %6007 = vst [vmem:[#allocation389_spill] sm:$0xff] %v4746_v53 }
 0x425   :  { %2336 = vrot.lane.b32.xlu0 %v3156_v59, %s2880_s1  ;;  %2338 = vrot.lane.b32.xlu1 %v3182_v62, %s2880_s1  ;;  %v6058_v59 = vld [vmem:[#allocation287_spill] sm:$0xff] }
 0x427   :  { %v4752_v3 = vpop.permute.xlu0 %2096  ;;  %v4754_v58 = vpop.permute.xlu1 %2098 }
 0x428   :  { %6008 = vst [vmem:[#allocation390_spill] sm:$0xff] %v4752_v3  ;;  %6009 = vst [vmem:[#allocation391_spill] sm:$0xff] %v4754_v58 }
 0x429   :  { %2340 = vrot.lane.b32.xlu0 %v3148_v57, %s2880_s1  ;;  %2342 = vrot.lane.b32.xlu1 %v3162_v60, %s2880_s1  ;;  %v6036_v57 = vld [vmem:[#allocation26_spill] sm:$0xff] }
 0x42b   :  { %v4760_v20 = vpop.permute.xlu0 %2100  ;;  %v4762_v17 = vpop.permute.xlu1 %2102 }
 0x42c   :  { %6010 = vst [vmem:[#allocation392_spill] sm:$0xff] %v4760_v20  ;;  %6011 = vst [vmem:[#allocation393_spill] sm:$0xff] %v4762_v17 }
 0x42d   :  { %2344 = vrot.lane.b32.xlu0 %v3212_v5, %s2880_s1  ;;  %2346 = vrot.lane.b32.xlu1 %v3258_v18, %s2880_s1 }
 0x42f   :  { %v4768_v53 = vpop.permute.xlu0 %2104  ;;  %v4770_v3 = vpop.permute.xlu1 %2106 }
 0x430   :  { %6012 = vst [vmem:[#allocation394_spill] sm:$0xff] %v4768_v53  ;;  %6013 = vst [vmem:[#allocation395_spill] sm:$0xff] %v4770_v3  ;;  %v6018_v3 = vld [vmem:[#allocation42_spill] sm:$0xff] }
 0x431   :  { %2348 = vrot.lane.b32.xlu0 %v3200_v1, %s2880_s1  ;;  %2350 = vrot.lane.b32.xlu1 %v3222_v8, %s2880_s1  ;;  %v913_v1 = vmax.f32 %v5967_v39, %v6018_v3  ;;  %v6022_v8 = vld [vmem:[#allocation36_spill] sm:$0xff]  ;;  %v6023_v39 = vld [vmem:[#allocation33_spill] sm:$0xff] }
 0x433   :  { %v4776_v58 = vpop.permute.xlu0 %2108  ;;  %v4778_v20 = vpop.permute.xlu1 %2110 }
 0x434   :  { %6014 = vst [vmem:[#allocation396_spill] sm:$0xff] %v4776_v58  ;;  %6015 = vst [vmem:[#allocation397_spill] sm:$0xff] %v4778_v20 }
 0x435   :  { %2352 = vrot.lane.b32.xlu0 %v3292_v29, %s2880_s1  ;;  %2354 = vrot.lane.b32.xlu1 %v3338_v9, %s2880_s1  ;;  %v6021_v29 = vld [vmem:[#allocation28_spill] sm:$0xff] }
 0x436   :  { %v912_v9 = vmax.f32 %v5898_v46, %v6021_v29  ;;  %v6028_v29 = vld [vmem:[#allocation38_spill] sm:$0xff] }
 0x437   :  { %v4784_v17 = vpop.permute.xlu0 %2112  ;;  %v4786_v53 = vpop.permute.xlu1 %2114 }
 0x438   :  { %6016 = vst [vmem:[#allocation398_spill] sm:$0xff] %v4784_v17  ;;  %6017 = vst [vmem:[#allocation399_spill] sm:$0xff] %v4786_v53  ;;  %v1169_v17 = vmax.f32 %v913_v1, %v6022_v8  ;;  %v1168_v3 = vmax.f32 %v912_v9, %v6023_v39  ;;  %v6024_v53 = vld [vmem:[#allocation19_spill] sm:$0xff]  ;;  %v6029_v8 = vld [vmem:[#allocation41_spill] sm:$0xff] }
 0x439   :  { %2356 = vrot.lane.b32.xlu0 %v3280_v25, %s2880_s1  ;;  %2358 = vrot.lane.b32.xlu1 %v3302_v32, %s2880_s1  ;;  %v914_v32 = vmax.f32 %v5829_v37, %v6024_v53  ;;  %v6032_v9 = vld [vmem:[#allocation63_spill] sm:$0xff]  ;;  %v6034_v39 = vld [vmem:[#allocation224_spill] sm:$0xff] }
 0x43a   :  { %v1424_v1 = vmax.f32 %v1168_v3, %v6028_v29  ;;  %v1425_v18 = vmax.f32 %v1169_v17, %v6029_v8  ;;  %v6033_v53 = vld [vmem:[#allocation27_spill] sm:$0xff] }
 0x43b   :  { %v4794_v20 = vpop.permute.xlu0 %2116  ;;  %v4796_v58 = vpop.permute.xlu1 %2118  ;;  %v6038_v17 = vld [vmem:[#allocation55_spill] sm:$0xff] }
 0x43c   :  { %6019 = vst [vmem:[#allocation42_spill] sm:$0xff] %v4794_v20  ;;  %6020 = vst [vmem:[#allocation400_spill] sm:$0xff] %v4796_v58  ;;  %v6027_v58 = vld [vmem:[#allocation22_spill] sm:$0xff] }
 0x43d   :  { %2360 = vrot.lane.b32.xlu0 %v3372_v38, %s2880_s1  ;;  %2362 = vrot.lane.b32.xlu1 %v3418_v36, %s2880_s1  ;;  %v915_v46 = vmax.f32 %v5902_v12, %v6027_v58  ;;  %v6030_v38 = vld [vmem:[#allocation21_spill] sm:$0xff]  ;;  %v6037_v12 = vld [vmem:[#allocation44_spill] sm:$0xff] }
 0x43e   :  { %v1170_v5 = vmax.f32 %v914_v32, %v6030_v38  ;;  %v6031_v36 = vld [vmem:[#allocation57_spill] sm:$0xff]  ;;  %v918_v3 = vmax.f32 %v5764_v47, %v6037_v12  ;;  %v916_v32 = vmax.f32 %v5833_v13, %v6038_v17  ;;  %v6039_v38 = vld [vmem:[#allocation56_spill] sm:$0xff]  ;;  %v6048_v17 = vld [vmem:[#allocation62_spill] sm:$0xff] }
 0x43f   :  { %v4808_v25 = vpop.permute.xlu0 %2120  ;;  %v4810_v20 = vpop.permute.xlu1 %2122  ;;  %v1171_v37 = vmax.f32 %v915_v46, %v6033_v53  ;;  %v917_v29 = vmax.f32 %v5834_v41, %v6039_v38  ;;  %v6042_v46 = vld [vmem:[#allocation31_spill] sm:$0xff]  ;;  %v6046_v47 = vld [vmem:[#allocation48_spill] sm:$0xff] }
 0x440   :  { %6025 = vst [vmem:[#allocation28_spill] sm:$0xff] %v4808_v25  ;;  %6026 = vst [vmem:[#allocation36_spill] sm:$0xff] %v4810_v20  ;;  %v1680_v25 = vmax.f32 %v1424_v1, %v6034_v39  ;;  %v6035_v20 = vld [vmem:[#allocation225_spill] sm:$0xff]  ;;  %v1426_v58 = vmax.f32 %v1170_v5, %v6036_v57  ;;  %v1174_v12 = vmax.f32 %v918_v3, %v6046_v47  ;;  %v6049_v41 = vld [vmem:[#allocation92_spill] sm:$0xff] }
 0x441   :  { %2364 = vrot.lane.b32.xlu0 %v6031_v36, %s2880_s1  ;;  %2366 = vrot.lane.b32.xlu1 %v6032_v9, %s2880_s1  ;;  %v1681_v60 = vmax.f32 %v1425_v18, %v6035_v20  ;;  %v1427_v53 = vmax.f32 %v1171_v37, %v6042_v46  ;;  %v6043_v1 = vld [vmem:[#allocation45_spill] sm:$0xff]  ;;  %v6044_v20 = vld [vmem:[#allocation284_spill] sm:$0xff]  ;;  %v1173_v62 = vmax.f32 %v917_v29, %v6048_v17  ;;  %v6050_v37 = vld [vmem:[#allocation226_spill] sm:$0xff] }
 0x442   :  { %v919_v18 = vmax.f32 %v5837_v43, %v6043_v1  ;;  %v1936_v57 = vmax.f32 %v1680_v25, %v6044_v20  ;;  %v6045_v5 = vld [vmem:[#allocation285_spill] sm:$0xff]  ;;  %v1682_v38 = vmax.f32 %v1426_v58, %v6050_v37  ;;  %v6051_v46 = vld [vmem:[#allocation227_spill] sm:$0xff] }
 0x443   :  { %v4831_v8 = vpop.permute.xlu0 %2124  ;;  %v4833_v9 = vpop.permute.xlu1 %2126  ;;  %v1937_v39 = vmax.f32 %v1681_v60, %v6045_v5  ;;  %v6047_v36 = vld [vmem:[#allocation61_spill] sm:$0xff]  ;;  %v1683_v43 = vmax.f32 %v1427_v53, %v6051_v46  ;;  %v6056_v47 = vld [vmem:[#allocation67_spill] sm:$0xff]  ;;  %v6059_v46 = vld [vmem:[#allocation78_spill] sm:$0xff] }
 0x444   :  { %6040 = vst [vmem:[#allocation33_spill] sm:$0xff] %v4831_v8  ;;  %6041 = vst [vmem:[#allocation19_spill] sm:$0xff] %v4833_v9  ;;  %v1172_v13 = vmax.f32 %v916_v32, %v6047_v36  ;;  %v6052_v1 = vld [vmem:[#allocation345_spill] sm:$0xff]  ;;  %v6055_v32 = vld [vmem:[#allocation66_spill] sm:$0xff]  ;;  %v1429_v17 = vmax.f32 %v1173_v62, %v6056_v47 }
 0x445   :  { %2368 = vrot.lane.b32.xlu0 %v3452_v30, %s2880_s1  ;;  %2370 = vrot.lane.b32.xlu1 %v6049_v41, %s2880_s1  ;;  %v2192_v25 = vmax.f32 %v1936_v57, %v6052_v1  ;;  %v2193_v60 = vmax.f32 %v1937_v39, %v4562_v26  ;;  %v6053_v20 = vld [vmem:[#allocation49_spill] sm:$0xff]  ;;  %v6057_v30 = vld [vmem:[#allocation286_spill] sm:$0xff]  ;;  %v1939_v58 = vmax.f32 %v1683_v43, %v6058_v59  ;;  %v6060_v26 = vld [vmem:[#allocation228_spill] sm:$0xff] }
 0x446   :  { %v1175_v3 = vmax.f32 %v919_v18, %v6053_v20  ;;  %v6054_v5 = vld [vmem:[#allocation53_spill] sm:$0xff]  ;;  %v1428_v29 = vmax.f32 %v1172_v13, %v6055_v32  ;;  %v1938_v41 = vmax.f32 %v1682_v38, %v6057_v30  ;;  %v920_v57 = vmax.f32 %v5768_v7, %v6059_v46  ;;  %v6063_v62 = vld [vmem:[#allocation83_spill] sm:$0xff]  ;;  %v6064_v13 = vld [vmem:[#allocation346_spill] sm:$0xff] }
 0x447   :  { %v1430_v36 = vmax.f32 %v1174_v12, %v6054_v5  ;;  %v2257_v9 = vpop.permute.xlu0 %2256  ;;  %v2259_v8 = vpop.permute.xlu1 %2258  ;;  %v6061_v18 = vld [vmem:[#allocation229_spill] sm:$0xff]  ;;  %v2195_v59 = vmax.f32 %v1939_v58, %v4570_v50  ;;  %v6065_v38 = vld [vmem:[#allocation54_spill] sm:$0xff]  ;;  %v6066_v7 = vld [vmem:[#allocation68_spill] sm:$0xff] }
 0x448   :  { %v2448_v37 = vmax.f32 %v2192_v25, %v2257_v9  ;;  %v2449_v53 = vmax.f32 %v2193_v60, %v2259_v8  ;;  %v1684_v39 = vmax.f32 %v1428_v29, %v6060_v26  ;;  %v1685_v1 = vmax.f32 %v1429_v17, %v6061_v18  ;;  %v6062_v12 = vld [vmem:[#allocation77_spill] sm:$0xff]  ;;  %v6067_v60 = vld [vmem:[#allocation79_spill] sm:$0xff]  ;;  %v6068_v5 = vld [vmem:[#allocation84_spill] sm:$0xff] }
 0x449   :  { %2372 = vrot.lane.b32.xlu0 %v6062_v12, %s2880_s1  ;;  %2374 = vrot.lane.b32.xlu1 %v6063_v62, %s2880_s1  ;;  %v2194_v30 = vmax.f32 %v1938_v41, %v6064_v13  ;;  %v1431_v43 = vmax.f32 %v1175_v3, %v6065_v38  ;;  %v922_v25 = vmax.f32 %v3140_v55, %v6066_v7  ;;  %v6069_v17 = vld [vmem:[#allocation288_spill] sm:$0xff]  ;;  %v6070_v26 = vld [vmem:[#allocation289_spill] sm:$0xff]  ;;  %v6072_v58 = vld [vmem:[#allocation230_spill] sm:$0xff] }
 0x44a   :  { %v2512_v9 = vand.u32 2147483647, %v2448_v37  ;;  %v2513_v8 = vand.u32 2147483647, %v2449_v53  ;;  %v921_v20 = vmax.f32 %v5769_v48, %v6067_v60  ;;  %v1176_v32 = vmax.f32 %v920_v57, %v6068_v5  ;;  %v6071_v55 = vld [vmem:[#allocation85_spill] sm:$0xff]  ;;  %v6073_v53 = vld [vmem:[#allocation231_spill] sm:$0xff] }
 0x44b   :  { %v2261_v29 = vpop.permute.xlu0 %2260  ;;  %v2263_v47 = vpop.permute.xlu1 %2262  ;;  %v1940_v46 = vmax.f32 %v1684_v39, %v6069_v17  ;;  %v1941_v41 = vmax.f32 %v1685_v1, %v6070_v26  ;;  %v1686_v37 = vmax.f32 %v1430_v36, %v6072_v58  ;;  %v1687_v57 = vmax.f32 %v1431_v43, %v6073_v53  ;;  %v6074_v39 = vld [vmem:[#allocation113_spill] sm:$0xff]  ;;  %v6075_v18 = vld [vmem:[#allocation347_spill] sm:$0xff]  ;;  %v6076_v13 = vld [vmem:[#allocation348_spill] sm:$0xff] }
 0x44c   :  { %2577 = vst.msk [vmem:[%s5534_s2] sm:$0xff] %vm2576_vm2, %v2512_v9  ;;  %2578 = vst.msk [vmem:[%s5534_s2 + $0x8] sm:$0xff] %vm2576_vm2, %v2513_v8  ;;  %v2450_v50 = vmax.f32 %v2194_v30, %v2261_v29  ;;  %v2451_v48 = vmax.f32 %v2195_v59, %v2263_v47  ;;  %v1177_v3 = vmax.f32 %v921_v20, %v6071_v55  ;;  %v6077_v30 = vld [vmem:[#allocation69_spill] sm:$0xff]  ;;  %v6079_v36 = vld [vmem:[#allocation88_spill] sm:$0xff] }
 0x44d   :  { %2376 = vrot.lane.b32.xlu0 %v3540_v61, %s2880_s1  ;;  %2378 = vrot.lane.b32.xlu1 %v6074_v39, %s2880_s1  ;;  %v2196_v1 = vmax.f32 %v1940_v46, %v6075_v18  ;;  %v2197_v9 = vmax.f32 %v1941_v41, %v6076_v13  ;;  %v923_v59 = vmax.f32 %v5772_v2, %v6077_v30  ;;  %v6078_v7 = vld [vmem:[#allocation73_spill] sm:$0xff]  ;;  %v6081_v17 = vld [vmem:[#allocation99_spill] sm:$0xff]  ;;  %v6082_v55 = vld [vmem:[#allocation290_spill] sm:$0xff] }
 0x44e   :  { %v2514_v38 = vand.u32 2147483647, %v2450_v50  ;;  %v2515_v8 = vand.u32 2147483647, %v2451_v48  ;;  %v1178_v60 = vmax.f32 %v922_v25, %v6078_v7  ;;  %v1432_v20 = vmax.f32 %v1176_v32, %v6079_v36  ;;  %v6080_v43 = vld [vmem:[#allocation89_spill] sm:$0xff]  ;;  %v6083_v32 = vld [vmem:[#allocation74_spill] sm:$0xff] }
 0x44f   :  { %v1433_v5 = vmax.f32 %v1177_v3, %v6080_v43  ;;  %v2265_v29 = vpop.permute.xlu0 %2264  ;;  %v2267_v47 = vpop.permute.xlu1 %2266  ;;  %v1942_v26 = vmax.f32 %v1686_v37, %v6081_v17  ;;  %v1943_v58 = vmax.f32 %v1687_v57, %v6082_v55  ;;  %v1179_v46 = vmax.f32 %v923_v59, %v6083_v32  ;;  %v6084_v41 = vld [vmem:[#allocation232_spill] sm:$0xff]  ;;  %v6085_v48 = vld [vmem:[#allocation233_spill] sm:$0xff]  ;;  %v6088_v18 = vld [vmem:[#allocation350_spill] sm:$0xff] }
 0x450   :  { %2579 = vst.msk [vmem:[%s5534_s2 + $0x10] sm:$0xff] %vm2576_vm2, %v2514_v38  ;;  %2580 = vst.msk [vmem:[%s5534_s2 + $0x18] sm:$0xff] %vm2576_vm2, %v2515_v8  ;;  %v2452_v2 = vmax.f32 %v2196_v1, %v2265_v29  ;;  %v2453_v25 = vmax.f32 %v2197_v9, %v2267_v47  ;;  %v1688_v50 = vmax.f32 %v1432_v20, %v6084_v41  ;;  %v6086_v37 = vld [vmem:[#allocation104_spill] sm:$0xff]  ;;  %v6087_v53 = vld [vmem:[#allocation349_spill] sm:$0xff] }
 0x451   :  { %v1689_v3 = vmax.f32 %v1433_v5, %v6085_v48  ;;  %2380 = vrot.lane.b32.xlu0 %v5894_v56, %s2880_s1  ;;  %2382 = vrot.lane.b32.xlu1 %v6086_v37, %s2880_s1  ;;  %v2198_v57 = vmax.f32 %v1942_v26, %v6087_v53  ;;  %v2199_v13 = vmax.f32 %v1943_v58, %v6088_v18  ;;  %v6089_v1 = vld [vmem:[#allocation100_spill] sm:$0xff]  ;;  %v6090_v30 = vld [vmem:[#allocation101_spill] sm:$0xff]  ;;  %v6091_v7 = vld [vmem:[#allocation158_spill] sm:$0xff] }
 0x452   :  { %v2516_v38 = vand.u32 2147483647, %v2452_v2  ;;  %v2517_v8 = vand.u32 2147483647, %v2453_v25  ;;  %v924_v9 = vmax.f32 %v3198_v0, %v6089_v1  ;;  %v925_v59 = vmax.f32 %v3248_v15, %v6090_v30  ;;  %v6092_v20 = vld [vmem:[#allocation174_spill] sm:$0xff]  ;;  %v6093_v47 = vld [vmem:[#allocation3_spill] sm:$0xff] }
 0x453   :  { %v1435_v36 = vmax.f32 %v1179_v46, %v6091_v7  ;;  %v1434_v43 = vmax.f32 %v1178_v60, %v6092_v20  ;;  %v2269_v5 = vpop.permute.xlu0 %2268  ;;  %v2271_v29 = vpop.permute.xlu1 %2270  ;;  %v1944_v17 = vmax.f32 %v1688_v50, %v6093_v47  ;;  %v6094_v55 = vld [vmem:[#allocation291_spill] sm:$0xff]  ;;  %v6095_v58 = vld [vmem:[#allocation105_spill] sm:$0xff]  ;;  %v6096_v2 = vld [vmem:[#allocation106_spill] sm:$0xff] }
 0x454   :  { %v1945_v26 = vmax.f32 %v1689_v3, %v6094_v55  ;;  %2581 = vst.msk [vmem:[%s5534_s2 + $0x20] sm:$0xff] %vm2576_vm2, %v2516_v38  ;;  %2582 = vst.msk [vmem:[%s5534_s2 + $0x28] sm:$0xff] %vm2576_vm2, %v2517_v8  ;;  %v2454_v0 = vmax.f32 %v2198_v57, %v2269_v5  ;;  %v2455_v15 = vmax.f32 %v2199_v13, %v2271_v29  ;;  %v6097_v32 = vld [vmem:[#allocation2_spill] sm:$0xff]  ;;  %v6099_v48 = vld [vmem:[#allocation5_spill] sm:$0xff] }
 0x455   :  { %v1180_v60 = vmax.f32 %v924_v9, %v6095_v58  ;;  %v1181_v25 = vmax.f32 %v925_v59, %v6096_v2  ;;  %v1690_v46 = vmax.f32 %v1434_v43, %v6097_v32  ;;  %v6098_v41 = vld [vmem:[#allocation234_spill] sm:$0xff]  ;;  %v2200_v3 = vmax.f32 %v1944_v17, %v6099_v48  ;;  %v6100_v53 = vld [vmem:[#allocation351_spill] sm:$0xff]  ;;  %v6103_v13 = vld [vmem:[#allocation176_spill] sm:$0xff] }
 0x456   :  { %v1691_v50 = vmax.f32 %v1435_v36, %v6098_v41  ;;  %v2201_v18 = vmax.f32 %v1945_v26, %v6100_v53  ;;  %v2518_v38 = vand.u32 2147483647, %v2454_v0  ;;  %v2519_v1 = vand.u32 2147483647, %v2455_v15  ;;  %v6101_v30 = vld [vmem:[#allocation90_spill] sm:$0xff]  ;;  %v6102_v8 = vld [vmem:[#allocation91_spill] sm:$0xff] }
 0x457   :  { %v926_v7 = vmax.f32 %v3192_v63, %v6101_v30  ;;  %v927_v57 = vmax.f32 %v3210_v4, %v6102_v8  ;;  %v1436_v9 = vmax.f32 %v1180_v60, %v6103_v13  ;;  %v6104_v20 = vld [vmem:[#allocation177_spill] sm:$0xff]  ;;  %v2273_v5 = vpop.permute.xlu0 %2272  ;;  %v2275_v43 = vpop.permute.xlu1 %2274  ;;  %v6105_v29 = vld [vmem:[#allocation4_spill] sm:$0xff]  ;;  %v6107_v55 = vld [vmem:[#allocation95_spill] sm:$0xff] }
 0x458   :  { %v1437_v59 = vmax.f32 %v1181_v25, %v6104_v20  ;;  %v1946_v36 = vmax.f32 %v1690_v46, %v6105_v29  ;;  %v6106_v47 = vld [vmem:[#allocation292_spill] sm:$0xff]  ;;  %2583 = vst.msk [vmem:[%s5534_s2 + $0x30] sm:$0xff] %vm2576_vm2, %v2518_v38  ;;  %2584 = vst.msk [vmem:[%s5534_s2 + $0x38] sm:$0xff] %vm2576_vm2, %v2519_v1  ;;  %v2456_v63 = vmax.f32 %v2200_v3, %v2273_v5  ;;  %v6109_v58 = vld [vmem:[#allocation7_spill] sm:$0xff] }
 0x459   :  { %v1947_v17 = vmax.f32 %v1691_v50, %v6106_v47  ;;  %v2457_v4 = vmax.f32 %v2201_v18, %v2275_v43  ;;  %v1182_v26 = vmax.f32 %v926_v7, %v6107_v55  ;;  %v6108_v0 = vld [vmem:[#allocation96_spill] sm:$0xff]  ;;  %v1692_v60 = vmax.f32 %v1436_v9, %v6109_v58  ;;  %v6110_v2 = vld [vmem:[#allocation9_spill] sm:$0xff]  ;;  %v6113_v38 = vld [vmem:[#allocation118_spill] sm:$0xff] }
 0x45a   :  { %v1183_v15 = vmax.f32 %v927_v57, %v6108_v0  ;;  %v1693_v25 = vmax.f32 %v1437_v59, %v6110_v2  ;;  %v6111_v32 = vld [vmem:[#allocation352_spill] sm:$0xff]  ;;  %v6112_v41 = vld [vmem:[#allocation353_spill] sm:$0xff]  ;;  %v2520_v48 = vand.u32 2147483647, %v2456_v63  ;;  %v928_v30 = vmax.f32 %v3278_v24, %v6113_v38  ;;  %v6114_v1 = vld [vmem:[#allocation119_spill] sm:$0xff] }
 0x45b   :  { %v2202_v46 = vmax.f32 %v1946_v36, %v6111_v32  ;;  %v2203_v50 = vmax.f32 %v1947_v17, %v6112_v41  ;;  %v2521_v53 = vand.u32 2147483647, %v2457_v4  ;;  %v929_v3 = vmax.f32 %v3328_v14, %v6114_v1  ;;  %v6115_v18 = vld [vmem:[#allocation6_spill] sm:$0xff]  ;;  %v2277_v13 = vpop.permute.xlu0 %2276  ;;  %v2279_v9 = vpop.permute.xlu1 %2278  ;;  %v6117_v20 = vld [vmem:[#allocation293_spill] sm:$0xff]  ;;  %v6120_v47 = vld [vmem:[#allocation123_spill] sm:$0xff] }
 0x45c   :  { %v1438_v7 = vmax.f32 %v1182_v26, %v6115_v18  ;;  %v6116_v8 = vld [vmem:[#allocation178_spill] sm:$0xff]  ;;  %v1948_v59 = vmax.f32 %v1692_v60, %v6117_v20  ;;  %2585 = vst.msk [vmem:[%s5534_s2 + $0x40] sm:$0xff] %vm2576_vm2, %v2520_v48  ;;  %v6121_v63 = vld [vmem:[#allocation8_spill] sm:$0xff]  ;;  %v6122_v55 = vld [vmem:[#allocation235_spill] sm:$0xff] }
 0x45d   :  { %v1439_v57 = vmax.f32 %v1183_v15, %v6116_v8  ;;  %v6118_v5 = vld [vmem:[#allocation294_spill] sm:$0xff]  ;;  %2586 = vst.msk [vmem:[%s5534_s2 + $0x48] sm:$0xff] %vm2576_vm2, %v2521_v53  ;;  %v2458_v14 = vmax.f32 %v2202_v46, %v2277_v13  ;;  %v2459_v24 = vmax.f32 %v2203_v50, %v2279_v9  ;;  %v1185_v17 = vmax.f32 %v929_v3, %v6120_v47  ;;  %v6124_v58 = vld [vmem:[#allocation355_spill] sm:$0xff]  ;;  %v6125_v32 = vld [vmem:[#allocation109_spill] sm:$0xff] }
 0x45e   :  { %v1949_v43 = vmax.f32 %v1693_v25, %v6118_v5  ;;  %v6119_v29 = vld [vmem:[#allocation122_spill] sm:$0xff]  ;;  %v1694_v4 = vmax.f32 %v1438_v7, %v6121_v63  ;;  %v930_v41 = vmax.f32 %v3268_v21, %v6125_v32  ;;  %v6128_v38 = vld [vmem:[#allocation15_spill] sm:$0xff]  ;;  %v6130_v8 = vld [vmem:[#allocation296_spill] sm:$0xff] }
 0x45f   :  { %v1184_v36 = vmax.f32 %v928_v30, %v6119_v29  ;;  %v1695_v26 = vmax.f32 %v1439_v57, %v6122_v55  ;;  %v6123_v0 = vld [vmem:[#allocation354_spill] sm:$0xff]  ;;  %v2522_v2 = vand.u32 2147483647, %v2458_v14  ;;  %v2523_v25 = vand.u32 2147483647, %v2459_v24  ;;  %v2281_v1 = vpop.permute.xlu0 %2280  ;;  %v2283_v3 = vpop.permute.xlu1 %2282  ;;  %v6129_v18 = vld [vmem:[#allocation295_spill] sm:$0xff] }
 0x460   :  { %v2204_v15 = vmax.f32 %v1948_v59, %v6123_v0  ;;  %v2205_v60 = vmax.f32 %v1949_v43, %v6124_v58  ;;  %v6126_v48 = vld [vmem:[#allocation110_spill] sm:$0xff]  ;;  %v1441_v30 = vmax.f32 %v1185_v17, %v6128_v38  ;;  %v1950_v7 = vmax.f32 %v1694_v4, %v6129_v18  ;;  %v6132_v20 = vld [vmem:[#allocation115_spill] sm:$0xff]  ;;  %v6133_v5 = vld [vmem:[#allocation236_spill] sm:$0xff] }
 0x461   :  { %v931_v46 = vmax.f32 %v3290_v28, %v6126_v48  ;;  %v6127_v50 = vld [vmem:[#allocation10_spill] sm:$0xff]  ;;  %v1951_v57 = vmax.f32 %v1695_v26, %v6130_v8  ;;  %2587 = vst.msk [vmem:[%s5534_s2 + $0x50] sm:$0xff] %vm2576_vm2, %v2522_v2  ;;  %2588 = vst.msk [vmem:[%s5534_s2 + $0x58] sm:$0xff] %vm2576_vm2, %v2523_v25  ;;  %v6134_v14 = vld [vmem:[#allocation237_spill] sm:$0xff] }
 0x462   :  { %v1440_v53 = vmax.f32 %v1184_v36, %v6127_v50  ;;  %v2460_v21 = vmax.f32 %v2204_v15, %v2281_v1  ;;  %v2461_v28 = vmax.f32 %v2205_v60, %v2283_v3  ;;  %v6131_v13 = vld [vmem:[#allocation114_spill] sm:$0xff]  ;;  %v1697_v24 = vmax.f32 %v1441_v30, %v6134_v14  ;;  %v6135_v29 = vld [vmem:[#allocation356_spill] sm:$0xff]  ;;  %v6136_v47 = vld [vmem:[#allocation357_spill] sm:$0xff] }
 0x463   :  { %v1186_v9 = vmax.f32 %v930_v41, %v6131_v13  ;;  %v1187_v59 = vmax.f32 %v931_v46, %v6132_v20  ;;  %v2206_v36 = vmax.f32 %v1950_v7, %v6135_v29  ;;  %v2207_v17 = vmax.f32 %v1951_v57, %v6136_v47  ;;  %v6137_v55 = vld [vmem:[#allocation134_spill] sm:$0xff]  ;;  %v6138_v0 = vld [vmem:[#allocation135_spill] sm:$0xff]  ;;  %v6139_v58 = vld [vmem:[#allocation12_spill] sm:$0xff]  ;;  %v2285_v32 = vpop.permute.xlu0 %2284  ;;  %v2287_v41 = vpop.permute.xlu1 %2286 }
 0x464   :  { %v1696_v43 = vmax.f32 %v1440_v53, %v6133_v5  ;;  %v2524_v63 = vand.u32 2147483647, %v2460_v21  ;;  %v2525_v4 = vand.u32 2147483647, %v2461_v28  ;;  %v932_v26 = vmax.f32 %v3358_v22, %v6137_v55  ;;  %v6140_v2 = vld [vmem:[#allocation179_spill] sm:$0xff]  ;;  %v6141_v48 = vld [vmem:[#allocation297_spill] sm:$0xff] }
 0x465   :  { %v933_v15 = vmax.f32 %v3408_v16, %v6138_v0  ;;  %v1442_v60 = vmax.f32 %v1186_v9, %v6139_v58  ;;  %v1443_v25 = vmax.f32 %v1187_v59, %v6140_v2  ;;  %v6142_v50 = vld [vmem:[#allocation298_spill] sm:$0xff]  ;;  %v2462_v16 = vmax.f32 %v2206_v36, %v2285_v32  ;;  %v6144_v1 = vld [vmem:[#allocation139_spill] sm:$0xff]  ;;  %v6151_v29 = vld [vmem:[#allocation180_spill] sm:$0xff] }
 0x466   :  { %v1952_v46 = vmax.f32 %v1696_v43, %v6141_v48  ;;  %v1953_v53 = vmax.f32 %v1697_v24, %v6142_v50  ;;  %2589 = vst.msk [vmem:[%s5534_s2 + $0x60] sm:$0xff] %vm2576_vm2, %v2524_v63  ;;  %2590 = vst.msk [vmem:[%s5534_s2 + $0x68] sm:$0xff] %vm2576_vm2, %v2525_v4  ;;  %v2463_v22 = vmax.f32 %v2207_v17, %v2287_v41  ;;  %v6143_v38 = vld [vmem:[#allocation138_spill] sm:$0xff]  ;;  %v6146_v8 = vld [vmem:[#allocation239_spill] sm:$0xff] }
 0x467   :  { %v1188_v30 = vmax.f32 %v932_v26, %v6143_v38  ;;  %v1189_v3 = vmax.f32 %v933_v15, %v6144_v1  ;;  %v6145_v18 = vld [vmem:[#allocation238_spill] sm:$0xff]  ;;  %v1699_v57 = vmax.f32 %v1443_v25, %v6146_v8  ;;  %v6148_v13 = vld [vmem:[#allocation359_spill] sm:$0xff]  ;;  %v2526_v20 = vand.u32 2147483647, %v2462_v16  ;;  %v6152_v47 = vld [vmem:[#allocation181_spill] sm:$0xff]  ;;  %v2289_v63 = vpop.permute.xlu0 %2288  ;;  %v2291_v4 = vpop.permute.xlu1 %2290 }
 0x468   :  { %v1698_v7 = vmax.f32 %v1442_v60, %v6145_v18  ;;  %v6147_v21 = vld [vmem:[#allocation358_spill] sm:$0xff]  ;;  %v2209_v9 = vmax.f32 %v1953_v53, %v6148_v13  ;;  %v2527_v59 = vand.u32 2147483647, %v2463_v22  ;;  %v6150_v14 = vld [vmem:[#allocation127_spill] sm:$0xff]  ;;  %v6154_v0 = vld [vmem:[#allocation300_spill] sm:$0xff] }
 0x469   :  { %v2208_v28 = vmax.f32 %v1952_v46, %v6147_v21  ;;  %v6149_v5 = vld [vmem:[#allocation126_spill] sm:$0xff]  ;;  %v935_v24 = vmax.f32 %v3370_v10, %v6150_v14  ;;  %v1444_v36 = vmax.f32 %v1188_v30, %v6151_v29  ;;  %v1445_v17 = vmax.f32 %v1189_v3, %v6152_v47  ;;  %v6153_v55 = vld [vmem:[#allocation299_spill] sm:$0xff]  ;;  %2591 = vst.msk [vmem:[%s5534_s2 + $0x70] sm:$0xff] %vm2576_vm2, %v2526_v20  ;;  %v6157_v32 = vld [vmem:[#allocation240_spill] sm:$0xff] }
 0x46a   :  { %v934_v43 = vmax.f32 %v3348_v27, %v6149_v5  ;;  %v1954_v26 = vmax.f32 %v1698_v7, %v6153_v55  ;;  %v1955_v15 = vmax.f32 %v1699_v57, %v6154_v0  ;;  %2592 = vst.msk [vmem:[%s5534_s2 + $0x78] sm:$0xff] %vm2576_vm2, %v2527_v59  ;;  %v2465_v27 = vmax.f32 %v2209_v9, %v2291_v4  ;;  %v6155_v58 = vld [vmem:[#allocation130_spill] sm:$0xff]  ;;  %v6156_v2 = vld [vmem:[#allocation131_spill] sm:$0xff]  ;;  %v6158_v48 = vld [vmem:[#allocation241_spill] sm:$0xff] }
 0x46b   :  { %v2464_v10 = vmax.f32 %v2208_v28, %v2289_v63  ;;  %v1191_v25 = vmax.f32 %v935_v24, %v6156_v2  ;;  %v1700_v41 = vmax.f32 %v1444_v36, %v6157_v32  ;;  %v1701_v46 = vmax.f32 %v1445_v17, %v6158_v48  ;;  %v6159_v50 = vld [vmem:[#allocation360_spill] sm:$0xff]  ;;  %v6160_v16 = vld [vmem:[#allocation361_spill] sm:$0xff]  ;;  %v6161_v1 = vld [vmem:[#allocation150_spill] sm:$0xff]  ;;  %v2293_v13 = vpop.permute.xlu0 %2292  ;;  %v2295_v9 = vpop.permute.xlu1 %2294 }
 0x46c   :  { %v1190_v60 = vmax.f32 %v934_v43, %v6155_v58  ;;  %v2210_v53 = vmax.f32 %v1954_v26, %v6159_v50  ;;  %v2211_v22 = vmax.f32 %v1955_v15, %v6160_v16  ;;  %v2529_v30 = vand.u32 2147483647, %v2465_v27  ;;  %v6162_v18 = vld [vmem:[#allocation151_spill] sm:$0xff]  ;;  %v6163_v8 = vld [vmem:[#allocation182_spill] sm:$0xff]  ;;  %v6165_v20 = vld [vmem:[#allocation301_spill] sm:$0xff] }
 0x46d   :  { %v2528_v38 = vand.u32 2147483647, %v2464_v10  ;;  %v936_v3 = vmax.f32 %v3438_v11, %v6161_v1  ;;  %v937_v7 = vmax.f32 %v3488_v35, %v6162_v18  ;;  %v6164_v21 = vld [vmem:[#allocation183_spill] sm:$0xff]  ;;  %v1956_v59 = vmax.f32 %v1700_v41, %v6165_v20  ;;  %v6166_v5 = vld [vmem:[#allocation302_spill] sm:$0xff]  ;;  %v6175_v32 = vld [vmem:[#allocation184_spill] sm:$0xff] }
 0x46e   :  { %v1446_v57 = vmax.f32 %v1190_v60, %v6163_v8  ;;  %v1447_v28 = vmax.f32 %v1191_v25, %v6164_v21  ;;  %v1957_v43 = vmax.f32 %v1701_v46, %v6166_v5  ;;  %2594 = vst.msk [vmem:[%s5534_s2 + $0x88] sm:$0xff] %vm2576_vm2, %v2529_v30  ;;  %v2466_v11 = vmax.f32 %v2210_v53, %v2293_v13  ;;  %v6167_v14 = vld [vmem:[#allocation154_spill] sm:$0xff]  ;;  %v6168_v29 = vld [vmem:[#allocation155_spill] sm:$0xff]  ;;  %v6176_v48 = vld [vmem:[#allocation185_spill] sm:$0xff] }
 0x46f   :  { %2593 = vst.msk [vmem:[%s5534_s2 + $0x80] sm:$0xff] %vm2576_vm2, %v2528_v38  ;;  %v2467_v35 = vmax.f32 %v2211_v22, %v2295_v9  ;;  %v1192_v24 = vmax.f32 %v936_v3, %v6167_v14  ;;  %v1193_v36 = vmax.f32 %v937_v7, %v6168_v29  ;;  %v6169_v47 = vld [vmem:[#allocation242_spill] sm:$0xff]  ;;  %v6170_v63 = vld [vmem:[#allocation243_spill] sm:$0xff]  ;;  %v2297_v50 = vpop.permute.xlu0 %2296  ;;  %v2299_v53 = vpop.permute.xlu1 %2298  ;;  %v6178_v38 = vld [vmem:[#allocation304_spill] sm:$0xff] }
 0x470   :  { %v1702_v17 = vmax.f32 %v1446_v57, %v6169_v47  ;;  %v1703_v4 = vmax.f32 %v1447_v28, %v6170_v63  ;;  %v6171_v55 = vld [vmem:[#allocation362_spill] sm:$0xff]  ;;  %v6172_v0 = vld [vmem:[#allocation363_spill] sm:$0xff]  ;;  %v2530_v10 = vand.u32 2147483647, %v2466_v11  ;;  %v6181_v8 = vld [vmem:[#allocation244_spill] sm:$0xff] }
 0x471   :  { %v2212_v26 = vmax.f32 %v1956_v59, %v6171_v55  ;;  %v2213_v15 = vmax.f32 %v1957_v43, %v6172_v0  ;;  %v2531_v27 = vand.u32 2147483647, %v2467_v35  ;;  %v6173_v58 = vld [vmem:[#allocation142_spill] sm:$0xff]  ;;  %v6174_v2 = vld [vmem:[#allocation143_spill] sm:$0xff]  ;;  %v1448_v41 = vmax.f32 %v1192_v24, %v6175_v32  ;;  %v6182_v21 = vld [vmem:[#allocation245_spill] sm:$0xff] }
 0x472   :  { %v938_v60 = vmax.f32 %v3428_v33, %v6173_v58  ;;  %v939_v25 = vmax.f32 %v3450_v6, %v6174_v2  ;;  %v1449_v46 = vmax.f32 %v1193_v36, %v6176_v48  ;;  %v6177_v16 = vld [vmem:[#allocation303_spill] sm:$0xff]  ;;  %v1959_v30 = vmax.f32 %v1703_v4, %v6178_v38  ;;  %2595 = vst.msk [vmem:[%s5534_s2 + $0x90] sm:$0xff] %vm2576_vm2, %v2530_v10  ;;  %v6179_v1 = vld [vmem:[#allocation146_spill] sm:$0xff]  ;;  %v6183_v13 = vld [vmem:[#allocation364_spill] sm:$0xff] }
 0x473   :  { %v1958_v22 = vmax.f32 %v1702_v17, %v6177_v16  ;;  %2596 = vst.msk [vmem:[%s5534_s2 + $0x98] sm:$0xff] %vm2576_vm2, %v2531_v27  ;;  %v2468_v6 = vmax.f32 %v2212_v26, %v2297_v50  ;;  %v2469_v33 = vmax.f32 %v2213_v15, %v2299_v53  ;;  %v6180_v18 = vld [vmem:[#allocation147_spill] sm:$0xff]  ;;  %v1704_v57 = vmax.f32 %v1448_v41, %v6181_v8  ;;  %v6184_v20 = vld [vmem:[#allocation365_spill] sm:$0xff]  ;;  %v6185_v11 = vld [vmem:[#allocation166_spill] sm:$0xff]  ;;  %v2301_v63 = vpop.permute.xlu0 %2300  ;;  %v2303_v4 = vpop.permute.xlu1 %2302 }
 0x474   :  { %v1194_v3 = vmax.f32 %v938_v60, %v6179_v1  ;;  %v1195_v7 = vmax.f32 %v939_v25, %v6180_v18  ;;  %v1705_v28 = vmax.f32 %v1449_v46, %v6182_v21  ;;  %v2215_v59 = vmax.f32 %v1959_v30, %v6184_v20  ;;  %v6186_v14 = vld [vmem:[#allocation169_spill] sm:$0xff]  ;;  %v6187_v29 = vld [vmem:[#allocation186_spill] sm:$0xff]  ;;  %v6188_v47 = vld [vmem:[#allocation187_spill] sm:$0xff] }
 0x475   :  { %v2214_v9 = vmax.f32 %v1958_v22, %v6183_v13  ;;  %v2532_v5 = vand.u32 2147483647, %v2468_v6  ;;  %v2533_v43 = vand.u32 2147483647, %v2469_v33  ;;  %v940_v35 = vmax.f32 %v3526_v23, %v6185_v11  ;;  %v6189_v55 = vld [vmem:[#allocation305_spill] sm:$0xff]  ;;  %v6190_v0 = vld [vmem:[#allocation306_spill] sm:$0xff] }
 0x476   :  { %v941_v24 = vmax.f32 %v3576_v34, %v6186_v14  ;;  %v1450_v36 = vmax.f32 %v1194_v3, %v6187_v29  ;;  %v1451_v17 = vmax.f32 %v1195_v7, %v6188_v47  ;;  %v1960_v26 = vmax.f32 %v1704_v57, %v6189_v55  ;;  %v6191_v10 = vld [vmem:[#allocation170_spill] sm:$0xff]  ;;  %v6192_v58 = vld [vmem:[#allocation173_spill] sm:$0xff]  ;;  %v6194_v32 = vld [vmem:[#allocation247_spill] sm:$0xff] }
 0x477   :  { %v1961_v15 = vmax.f32 %v1705_v28, %v6190_v0  ;;  %2597 = vst.msk [vmem:[%s5534_s2 + $0xa0] sm:$0xff] %vm2576_vm2, %v2532_v5  ;;  %2598 = vst.msk [vmem:[%s5534_s2 + $0xa8] sm:$0xff] %vm2576_vm2, %v2533_v43  ;;  %v2470_v23 = vmax.f32 %v2214_v9, %v2301_v63  ;;  %v2471_v34 = vmax.f32 %v2215_v59, %v2303_v4  ;;  %v6193_v2 = vld [vmem:[#allocation246_spill] sm:$0xff]  ;;  %v6196_v50 = vld [vmem:[#allocation367_spill] sm:$0xff]  ;;  %v2305_v8 = vpop.permute.xlu0 %2304  ;;  %v2307_v57 = vpop.permute.xlu1 %2306 }
 0x478   :  { %v1196_v27 = vmax.f32 %v940_v35, %v6191_v10  ;;  %v1197_v60 = vmax.f32 %v941_v24, %v6192_v58  ;;  %v1706_v25 = vmax.f32 %v1450_v36, %v6193_v2  ;;  %v1707_v41 = vmax.f32 %v1451_v17, %v6194_v32  ;;  %v6195_v48 = vld [vmem:[#allocation366_spill] sm:$0xff]  ;;  %v6197_v38 = vld [vmem:[#allocation159_spill] sm:$0xff]  ;;  %v6198_v6 = vld [vmem:[#allocation161_spill] sm:$0xff] }
 0x479   :  { %v2216_v46 = vmax.f32 %v1960_v26, %v6195_v48  ;;  %v2217_v53 = vmax.f32 %v1961_v15, %v6196_v50  ;;  %v2534_v16 = vand.u32 2147483647, %v2470_v23  ;;  %v2535_v22 = vand.u32 2147483647, %v2471_v34  ;;  %v6199_v1 = vld [vmem:[#allocation188_spill] sm:$0xff]  ;;  %v6200_v18 = vld [vmem:[#allocation189_spill] sm:$0xff] }
 0x47a   :  { %v942_v30 = vmax.f32 %v3516_v19, %v6197_v38  ;;  %v943_v33 = vmax.f32 %v3538_v31, %v6198_v6  ;;  %v1452_v3 = vmax.f32 %v1196_v27, %v6199_v1  ;;  %v1453_v7 = vmax.f32 %v1197_v60, %v6200_v18  ;;  %v6201_v21 = vld [vmem:[#allocation307_spill] sm:$0xff]  ;;  %v6202_v13 = vld [vmem:[#allocation308_spill] sm:$0xff]  ;;  %v6203_v20 = vld [vmem:[#allocation162_spill] sm:$0xff] }
 0x47b   :  { %v1962_v28 = vmax.f32 %v1706_v25, %v6201_v21  ;;  %v1963_v9 = vmax.f32 %v1707_v41, %v6202_v13  ;;  %2599 = vst.msk [vmem:[%s5534_s2 + $0xb0] sm:$0xff] %vm2576_vm2, %v2534_v16  ;;  %2600 = vst.msk [vmem:[%s5534_s2 + $0xb8] sm:$0xff] %vm2576_vm2, %v2535_v22  ;;  %v2472_v19 = vmax.f32 %v2216_v46, %v2305_v8  ;;  %v6204_v5 = vld [vmem:[#allocation165_spill] sm:$0xff]  ;;  %v6205_v11 = vld [vmem:[#allocation248_spill] sm:$0xff]  ;;  %v2309_v58 = vpop.permute.xlu0 %2308  ;;  %v2311_v60 = vpop.permute.xlu1 %2310 }
 0x47c   :  { %v2473_v31 = vmax.f32 %v2217_v53, %v2307_v57  ;;  %v1198_v59 = vmax.f32 %v942_v30, %v6203_v20  ;;  %v1199_v43 = vmax.f32 %v943_v33, %v6204_v5  ;;  %v1708_v35 = vmax.f32 %v1452_v3, %v6205_v11  ;;  %v6206_v14 = vld [vmem:[#allocation249_spill] sm:$0xff]  ;;  %v6207_v29 = vld [vmem:[#allocation368_spill] sm:$0xff]  ;;  %v6209_v55 = vld [vmem:[#allocation30_spill] sm:$0xff] }
 0x47d   :  { %v1709_v24 = vmax.f32 %v1453_v7, %v6206_v14  ;;  %v2218_v36 = vmax.f32 %v1962_v28, %v6207_v29  ;;  %v6208_v47 = vld [vmem:[#allocation369_spill] sm:$0xff]  ;;  %v2536_v63 = vand.u32 2147483647, %v2472_v19  ;;  %v944_v26 = vmax.f32 %v3046_v42, %v6209_v55  ;;  %v6210_v0 = vld [vmem:[#allocation34_spill] sm:$0xff]  ;;  %v6212_v10 = vld [vmem:[#allocation191_spill] sm:$0xff] }
 0x47e   :  { %v2219_v17 = vmax.f32 %v1963_v9, %v6208_v47  ;;  %v2537_v4 = vand.u32 2147483647, %v2473_v31  ;;  %v945_v15 = vmax.f32 %v3072_v45, %v6210_v0  ;;  %v6211_v23 = vld [vmem:[#allocation190_spill] sm:$0xff]  ;;  %v1455_v27 = vmax.f32 %v1199_v43, %v6212_v10  ;;  %v6213_v2 = vld [vmem:[#allocation309_spill] sm:$0xff]  ;;  %v6215_v48 = vld [vmem:[#allocation35_spill] sm:$0xff] }
 0x47f   :  { %v1454_v34 = vmax.f32 %v1198_v59, %v6211_v23  ;;  %v1964_v25 = vmax.f32 %v1708_v35, %v6213_v2  ;;  %v6214_v32 = vld [vmem:[#allocation310_spill] sm:$0xff]  ;;  %2601 = vst.msk [vmem:[%s5534_s2 + $0xc0] sm:$0xff] %vm2576_vm2, %v2536_v63  ;;  %v2474_v42 = vmax.f32 %v2218_v36, %v2309_v58  ;;  %v1200_v46 = vmax.f32 %v944_v26, %v6215_v48  ;;  %v6216_v50 = vld [vmem:[#allocation39_spill] sm:$0xff]  ;;  %v6222_v21 = vld [vmem:[#allocation25_spill] sm:$0xff]  ;;  %v2313_v20 = vpop.permute.xlu0 %2312  ;;  %v2315_v59 = vpop.permute.xlu1 %2314 }
 0x480   :  { %v1965_v41 = vmax.f32 %v1709_v24, %v6214_v32  ;;  %2602 = vst.msk [vmem:[%s5534_s2 + $0xc8] sm:$0xff] %vm2576_vm2, %v2537_v4  ;;  %v2475_v45 = vmax.f32 %v2219_v17, %v2311_v60  ;;  %v1201_v53 = vmax.f32 %v945_v15, %v6216_v50  ;;  %v6217_v16 = vld [vmem:[#allocation250_spill] sm:$0xff]  ;;  %v6218_v38 = vld [vmem:[#allocation251_spill] sm:$0xff]  ;;  %v947_v28 = vmax.f32 %v3054_v44, %v6222_v21  ;;  %v6223_v13 = vld [vmem:[#allocation192_spill] sm:$0xff] }
 0x481   :  { %v1710_v22 = vmax.f32 %v1454_v34, %v6217_v16  ;;  %v1711_v30 = vmax.f32 %v1455_v27, %v6218_v38  ;;  %v6219_v6 = vld [vmem:[#allocation370_spill] sm:$0xff]  ;;  %v6220_v1 = vld [vmem:[#allocation371_spill] sm:$0xff]  ;;  %v2538_v18 = vand.u32 2147483647, %v2474_v42  ;;  %v1456_v9 = vmax.f32 %v1200_v46, %v6223_v13  ;;  %v6224_v19 = vld [vmem:[#allocation193_spill] sm:$0xff] }
 0x482   :  { %v2220_v33 = vmax.f32 %v1964_v25, %v6219_v6  ;;  %v2221_v3 = vmax.f32 %v1965_v41, %v6220_v1  ;;  %v2539_v7 = vand.u32 2147483647, %v2475_v45  ;;  %v6221_v8 = vld [vmem:[#allocation18_spill] sm:$0xff]  ;;  %v1457_v31 = vmax.f32 %v1201_v53, %v6224_v19  ;;  %v6225_v5 = vld [vmem:[#allocation311_spill] sm:$0xff]  ;;  %v6226_v11 = vld [vmem:[#allocation312_spill] sm:$0xff] }
 0x483   :  { %v946_v57 = vmax.f32 %v3038_v40, %v6221_v8  ;;  %v1966_v43 = vmax.f32 %v1710_v22, %v6225_v5  ;;  %v1967_v35 = vmax.f32 %v1711_v30, %v6226_v11  ;;  %2603 = vst.msk [vmem:[%s5534_s2 + $0xd0] sm:$0xff] %vm2576_vm2, %v2538_v18  ;;  %v6227_v14 = vld [vmem:[#allocation24_spill] sm:$0xff]  ;;  %v6228_v29 = vld [vmem:[#allocation29_spill] sm:$0xff]  ;;  %v6233_v10 = vld [vmem:[#allocation58_spill] sm:$0xff]  ;;  %v2317_v42 = vpop.permute.xlu0 %2316  ;;  %v2319_v45 = vpop.permute.xlu1 %2318 }
 0x484   :  { %2604 = vst.msk [vmem:[%s5534_s2 + $0xd8] sm:$0xff] %vm2576_vm2, %v2539_v7  ;;  %v2476_v40 = vmax.f32 %v2220_v33, %v2313_v20  ;;  %v2477_v44 = vmax.f32 %v2221_v3, %v2315_v59  ;;  %v1203_v36 = vmax.f32 %v947_v28, %v6228_v29  ;;  %v6229_v47 = vld [vmem:[#allocation252_spill] sm:$0xff]  ;;  %v6230_v63 = vld [vmem:[#allocation253_spill] sm:$0xff]  ;;  %v948_v27 = vmax.f32 %v3100_v51, %v6233_v10  ;;  %v6234_v58 = vld [vmem:[#allocation59_spill] sm:$0xff] }
 0x485   :  { %v1202_v24 = vmax.f32 %v946_v57, %v6227_v14  ;;  %v1712_v17 = vmax.f32 %v1456_v9, %v6229_v47  ;;  %v1713_v4 = vmax.f32 %v1457_v31, %v6230_v63  ;;  %v6231_v55 = vld [vmem:[#allocation372_spill] sm:$0xff]  ;;  %v6232_v0 = vld [vmem:[#allocation373_spill] sm:$0xff]  ;;  %v949_v60 = vmax.f32 %v3130_v54, %v6234_v58  ;;  %v6235_v2 = vld [vmem:[#allocation194_spill] sm:$0xff] }
 0x486   :  { %v2222_v26 = vmax.f32 %v1966_v43, %v6231_v55  ;;  %v2223_v15 = vmax.f32 %v1967_v35, %v6232_v0  ;;  %v2540_v23 = vand.u32 2147483647, %v2476_v40  ;;  %v2541_v34 = vand.u32 2147483647, %v2477_v44  ;;  %v6236_v32 = vld [vmem:[#allocation195_spill] sm:$0xff]  ;;  %v6237_v48 = vld [vmem:[#allocation313_spill] sm:$0xff] }
 0x487   :  { %v1458_v25 = vmax.f32 %v1202_v24, %v6235_v2  ;;  %v1459_v41 = vmax.f32 %v1203_v36, %v6236_v32  ;;  %v1968_v46 = vmax.f32 %v1712_v17, %v6237_v48  ;;  %v6238_v50 = vld [vmem:[#allocation314_spill] sm:$0xff]  ;;  %v6239_v16 = vld [vmem:[#allocation64_spill] sm:$0xff]  ;;  %v6240_v38 = vld [vmem:[#allocation65_spill] sm:$0xff]  ;;  %v2321_v11 = vpop.permute.xlu0 %2320  ;;  %v2323_v35 = vpop.permute.xlu1 %2322 }
 0x488   :  { %v1969_v53 = vmax.f32 %v1713_v4, %v6238_v50  ;;  %2605 = vst.msk [vmem:[%s5534_s2 + $0xe0] sm:$0xff] %vm2576_vm2, %v2540_v23  ;;  %2606 = vst.msk [vmem:[%s5534_s2 + $0xe8] sm:$0xff] %vm2576_vm2, %v2541_v34  ;;  %v2478_v51 = vmax.f32 %v2222_v26, %v2317_v42  ;;  %v2479_v54 = vmax.f32 %v2223_v15, %v2319_v45  ;;  %v6241_v6 = vld [vmem:[#allocation254_spill] sm:$0xff]  ;;  %v6242_v1 = vld [vmem:[#allocation255_spill] sm:$0xff] }
 0x489   :  { %v1204_v22 = vmax.f32 %v948_v27, %v6239_v16  ;;  %v1205_v30 = vmax.f32 %v949_v60, %v6240_v38  ;;  %v1714_v33 = vmax.f32 %v1458_v25, %v6241_v6  ;;  %v1715_v3 = vmax.f32 %v1459_v41, %v6242_v1  ;;  %v6243_v18 = vld [vmem:[#allocation374_spill] sm:$0xff]  ;;  %v6244_v8 = vld [vmem:[#allocation375_spill] sm:$0xff]  ;;  %v6247_v20 = vld [vmem:[#allocation196_spill] sm:$0xff] }
 0x48a   :  { %v2224_v7 = vmax.f32 %v1968_v46, %v6243_v18  ;;  %v2225_v57 = vmax.f32 %v1969_v53, %v6244_v8  ;;  %v2542_v21 = vand.u32 2147483647, %v2478_v51  ;;  %v2543_v28 = vand.u32 2147483647, %v2479_v54  ;;  %v6245_v13 = vld [vmem:[#allocation46_spill] sm:$0xff]  ;;  %v6246_v19 = vld [vmem:[#allocation47_spill] sm:$0xff] }
 0x48b   :  { %v950_v9 = vmax.f32 %v3092_v49, %v6245_v13  ;;  %v951_v31 = vmax.f32 %v3106_v52, %v6246_v19  ;;  %v1460_v59 = vmax.f32 %v1204_v22, %v6247_v20  ;;  %v6248_v5 = vld [vmem:[#allocation197_spill] sm:$0xff]  ;;  %v6249_v40 = vld [vmem:[#allocation315_spill] sm:$0xff]  ;;  %v6250_v14 = vld [vmem:[#allocation316_spill] sm:$0xff]  ;;  %v2325_v50 = vpop.permute.xlu0 %2324  ;;  %v2327_v53 = vpop.permute.xlu1 %2326 }
 0x48c   :  { %v1461_v43 = vmax.f32 %v1205_v30, %v6248_v5  ;;  %v1970_v44 = vmax.f32 %v1714_v33, %v6249_v40  ;;  %v1971_v24 = vmax.f32 %v1715_v3, %v6250_v14  ;;  %2607 = vst.msk [vmem:[%s5534_s2 + $0xf0] sm:$0xff] %vm2576_vm2, %v2542_v21  ;;  %2608 = vst.msk [vmem:[%s5534_s2 + $0xf8] sm:$0xff] %vm2576_vm2, %v2543_v28  ;;  %v6251_v29 = vld [vmem:[#allocation50_spill] sm:$0xff]  ;;  %v6252_v47 = vld [vmem:[#allocation51_spill] sm:$0xff] }
 0x48d   :  { %v2480_v49 = vmax.f32 %v2224_v7, %v2321_v11  ;;  %v2481_v52 = vmax.f32 %v2225_v57, %v2323_v35  ;;  %v1206_v36 = vmax.f32 %v950_v9, %v6251_v29  ;;  %v1207_v17 = vmax.f32 %v951_v31, %v6252_v47  ;;  %v6253_v63 = vld [vmem:[#allocation256_spill] sm:$0xff]  ;;  %v6254_v55 = vld [vmem:[#allocation257_spill] sm:$0xff]  ;;  %v6259_v25 = vld [vmem:[#allocation82_spill] sm:$0xff] }
 0x48e   :  { %v1716_v4 = vmax.f32 %v1460_v59, %v6253_v63  ;;  %v1717_v26 = vmax.f32 %v1461_v43, %v6254_v55  ;;  %v6255_v0 = vld [vmem:[#allocation376_spill] sm:$0xff]  ;;  %v6256_v23 = vld [vmem:[#allocation377_spill] sm:$0xff]  ;;  %v6261_v42 = vld [vmem:[#allocation198_spill] sm:$0xff] }
 0x48f   :  { %v2226_v15 = vmax.f32 %v1970_v44, %v6255_v0  ;;  %v2227_v34 = vmax.f32 %v1971_v24, %v6256_v23  ;;  %v2544_v10 = vand.u32 2147483647, %v2480_v49  ;;  %v2545_v27 = vand.u32 2147483647, %v2481_v52  ;;  %v6257_v58 = vld [vmem:[#allocation81_spill] sm:$0xff]  ;;  %v6260_v32 = vld [vmem:[#allocation16_spill] sm:$0xff]  ;;  %v2329_v49 = vpop.permute.xlu0 %2328  ;;  %v2331_v52 = vpop.permute.xlu1 %2330 }
 0x490   :  { %v6258_v60 = vld [vmem:[#allocation13_spill] sm:$0xff]  ;;  %v953_v41 = vmax.f32 %v6260_v32, %v6259_v25  ;;  %v1462_v45 = vmax.f32 %v1206_v36, %v6261_v42  ;;  %v6262_v48 = vld [vmem:[#allocation199_spill] sm:$0xff]  ;;  %v6264_v16 = vld [vmem:[#allocation318_spill] sm:$0xff] }
 0x491   :  { %v952_v2 = vmax.f32 %v6258_v60, %v6257_v58  ;;  %v1463_v46 = vmax.f32 %v1207_v17, %v6262_v48  ;;  %v6263_v51 = vld [vmem:[#allocation317_spill] sm:$0xff]  ;;  %v1973_v22 = vmax.f32 %v1717_v26, %v6264_v16  ;;  %2609 = vst.msk [vmem:[%s5534_s2 + $0x100] sm:$0xff] %vm2576_vm2, %v2544_v10  ;;  %2610 = vst.msk [vmem:[%s5534_s2 + $0x108] sm:$0xff] %vm2576_vm2, %v2545_v27  ;;  %v6265_v6 = vld [vmem:[#allocation86_spill] sm:$0xff] }
 0x492   :  { %v1972_v54 = vmax.f32 %v1716_v4, %v6263_v51  ;;  %v2482_v38 = vmax.f32 %v2226_v15, %v2325_v50  ;;  %v2483_v30 = vmax.f32 %v2227_v34, %v2327_v53  ;;  %v6266_v1 = vld [vmem:[#allocation87_spill] sm:$0xff]  ;;  %v6267_v18 = vld [vmem:[#allocation258_spill] sm:$0xff]  ;;  %v6275_v40 = vld [vmem:[#allocation200_spill] sm:$0xff] }
 0x493   :  { %v1208_v33 = vmax.f32 %v952_v2, %v6265_v6  ;;  %v1209_v3 = vmax.f32 %v953_v41, %v6266_v1  ;;  %v1718_v7 = vmax.f32 %v1462_v45, %v6267_v18  ;;  %v6268_v8 = vld [vmem:[#allocation259_spill] sm:$0xff]  ;;  %v6269_v21 = vld [vmem:[#allocation378_spill] sm:$0xff]  ;;  %v6276_v14 = vld [vmem:[#allocation201_spill] sm:$0xff] }
 0x494   :  { %v1719_v57 = vmax.f32 %v1463_v46, %v6268_v8  ;;  %v2228_v28 = vmax.f32 %v1972_v54, %v6269_v21  ;;  %v6270_v13 = vld [vmem:[#allocation379_spill] sm:$0xff]  ;;  %v2546_v19 = vand.u32 2147483647, %v2482_v38  ;;  %v2547_v31 = vand.u32 2147483647, %v2483_v30  ;;  %v6271_v20 = vld [vmem:[#allocation70_spill] sm:$0xff]  ;;  %v2333_v38 = vpop.permute.xlu0 %2332  ;;  %v2335_v30 = vpop.permute.xlu1 %2334 }
 0x495   :  { %v2229_v9 = vmax.f32 %v1973_v22, %v6270_v13  ;;  %v6272_v59 = vld [vmem:[#allocation11_spill] sm:$0xff]  ;;  %v6274_v11 = vld [vmem:[#allocation14_spill] sm:$0xff]  ;;  %v1464_v44 = vmax.f32 %v1208_v33, %v6275_v40  ;;  %v1465_v24 = vmax.f32 %v1209_v3, %v6276_v14  ;;  %v6278_v47 = vld [vmem:[#allocation320_spill] sm:$0xff] }
 0x496   :  { %v954_v5 = vmax.f32 %v6272_v59, %v6271_v20  ;;  %v6273_v43 = vld [vmem:[#allocation71_spill] sm:$0xff]  ;;  %v1975_v17 = vmax.f32 %v1719_v57, %v6278_v47  ;;  %2611 = vst.msk [vmem:[%s5534_s2 + $0x110] sm:$0xff] %vm2576_vm2, %v2546_v19  ;;  %2612 = vst.msk [vmem:[%s5534_s2 + $0x118] sm:$0xff] %vm2576_vm2, %v2547_v31  ;;  %v2484_v63 = vmax.f32 %v2228_v28, %v2329_v49  ;;  %v6280_v0 = vld [vmem:[#allocation76_spill] sm:$0xff] }
 0x497   :  { %v955_v35 = vmax.f32 %v6274_v11, %v6273_v43  ;;  %v6277_v29 = vld [vmem:[#allocation319_spill] sm:$0xff]  ;;  %v2485_v4 = vmax.f32 %v2229_v9, %v2331_v52  ;;  %v6281_v23 = vld [vmem:[#allocation260_spill] sm:$0xff]  ;;  %v6282_v10 = vld [vmem:[#allocation261_spill] sm:$0xff] }
 0x498   :  { %v1974_v36 = vmax.f32 %v1718_v7, %v6277_v29  ;;  %v6279_v55 = vld [vmem:[#allocation75_spill] sm:$0xff]  ;;  %v1720_v34 = vmax.f32 %v1464_v44, %v6281_v23  ;;  %v1721_v27 = vmax.f32 %v1465_v24, %v6282_v10  ;;  %v6283_v58 = vld [vmem:[#allocation380_spill] sm:$0xff]  ;;  %v6284_v2 = vld [vmem:[#allocation381_spill] sm:$0xff]  ;;  %v2548_v32 = vand.u32 2147483647, %v2484_v63  ;;  %v2337_v63 = vpop.permute.xlu0 %2336 }
 0x499   :  { %v1210_v26 = vmax.f32 %v954_v5, %v6279_v55  ;;  %v1211_v15 = vmax.f32 %v955_v35, %v6280_v0  ;;  %v2231_v25 = vmax.f32 %v1975_v17, %v6284_v2  ;;  %v2549_v41 = vand.u32 2147483647, %v2485_v4  ;;  %v6285_v42 = vld [vmem:[#allocation102_spill] sm:$0xff]  ;;  %v6286_v45 = vld [vmem:[#allocation20_spill] sm:$0xff]  ;;  %v6287_v46 = vld [vmem:[#allocation103_spill] sm:$0xff]  ;;  %v2339_v4 = vpop.permute.xlu1 %2338 }
 0x49a   :  { %v2230_v60 = vmax.f32 %v1974_v36, %v6283_v58  ;;  %v956_v48 = vmax.f32 %v6286_v45, %v6285_v42  ;;  %v6288_v50 = vld [vmem:[#allocation32_spill] sm:$0xff]  ;;  %v6289_v51 = vld [vmem:[#allocation202_spill] sm:$0xff]  ;;  %v6290_v16 = vld [vmem:[#allocation203_spill] sm:$0xff]  ;;  %2613 = vst.msk [vmem:[%s5534_s2 + $0x120] sm:$0xff] %vm2576_vm2, %v2548_v32 }
 0x49b   :  { %v957_v53 = vmax.f32 %v6288_v50, %v6287_v46  ;;  %v1466_v54 = vmax.f32 %v1210_v26, %v6289_v51  ;;  %v1467_v22 = vmax.f32 %v1211_v15, %v6290_v16  ;;  %v6291_v6 = vld [vmem:[#allocation321_spill] sm:$0xff]  ;;  %v6292_v1 = vld [vmem:[#allocation322_spill] sm:$0xff]  ;;  %2614 = vst.msk [vmem:[%s5534_s2 + $0x128] sm:$0xff] %vm2576_vm2, %v2549_v41  ;;  %v2487_v7 = vmax.f32 %v2231_v25, %v2335_v30  ;;  %v6293_v8 = vld [vmem:[#allocation107_spill] sm:$0xff] }
 0x49c   :  { %v1976_v33 = vmax.f32 %v1720_v34, %v6291_v6  ;;  %v1977_v3 = vmax.f32 %v1721_v27, %v6292_v1  ;;  %v2486_v18 = vmax.f32 %v2230_v60, %v2333_v38  ;;  %v1212_v57 = vmax.f32 %v956_v48, %v6293_v8  ;;  %v6294_v21 = vld [vmem:[#allocation108_spill] sm:$0xff]  ;;  %v6295_v13 = vld [vmem:[#allocation262_spill] sm:$0xff]  ;;  %v6296_v19 = vld [vmem:[#allocation263_spill] sm:$0xff] }
 0x49d   :  { %v1213_v28 = vmax.f32 %v957_v53, %v6294_v21  ;;  %v1722_v9 = vmax.f32 %v1466_v54, %v6295_v13  ;;  %v1723_v31 = vmax.f32 %v1467_v22, %v6296_v19  ;;  %v6297_v20 = vld [vmem:[#allocation382_spill] sm:$0xff]  ;;  %v6298_v5 = vld [vmem:[#allocation383_spill] sm:$0xff]  ;;  %v2551_v35 = vand.u32 2147483647, %v2487_v7  ;;  %v6299_v40 = vld [vmem:[#allocation93_spill] sm:$0xff]  ;;  %v2343_v7 = vpop.permute.xlu1 %2342 }
 0x49e   :  { %v2232_v59 = vmax.f32 %v1976_v33, %v6297_v20  ;;  %v2233_v43 = vmax.f32 %v1977_v3, %v6298_v5  ;;  %v2550_v11 = vand.u32 2147483647, %v2486_v18  ;;  %v6300_v44 = vld [vmem:[#allocation17_spill] sm:$0xff]  ;;  %v6301_v24 = vld [vmem:[#allocation94_spill] sm:$0xff]  ;;  %v6302_v49 = vld [vmem:[#allocation23_spill] sm:$0xff]  ;;  %v2341_v18 = vpop.permute.xlu0 %2340 }
 0x49f   :  { %v958_v14 = vmax.f32 %v6300_v44, %v6299_v40  ;;  %v959_v52 = vmax.f32 %v6302_v49, %v6301_v24  ;;  %v6303_v29 = vld [vmem:[#allocation204_spill] sm:$0xff]  ;;  %v6304_v47 = vld [vmem:[#allocation205_spill] sm:$0xff]  ;;  %v6305_v55 = vld [vmem:[#allocation323_spill] sm:$0xff]  ;;  %2616 = vst.msk [vmem:[%s5534_s2 + $0x138] sm:$0xff] %vm2576_vm2, %v2551_v35 }
 0x4a0   :  { %v1468_v36 = vmax.f32 %v1212_v57, %v6303_v29  ;;  %v1469_v17 = vmax.f32 %v1213_v28, %v6304_v47  ;;  %v1978_v26 = vmax.f32 %v1722_v9, %v6305_v55  ;;  %v6306_v0 = vld [vmem:[#allocation324_spill] sm:$0xff]  ;;  %2615 = vst.msk [vmem:[%s5534_s2 + $0x130] sm:$0xff] %vm2576_vm2, %v2550_v11  ;;  %v2488_v23 = vmax.f32 %v2232_v59, %v2337_v63  ;;  %v6307_v10 = vld [vmem:[#allocation97_spill] sm:$0xff]  ;;  %v6308_v58 = vld [vmem:[#allocation98_spill] sm:$0xff] }
 0x4a1   :  { %v1979_v15 = vmax.f32 %v1723_v31, %v6306_v0  ;;  %v2489_v34 = vmax.f32 %v2233_v43, %v2339_v4  ;;  %v1214_v27 = vmax.f32 %v958_v14, %v6307_v10  ;;  %v1215_v60 = vmax.f32 %v959_v52, %v6308_v58  ;;  %v6309_v2 = vld [vmem:[#allocation264_spill] sm:$0xff]  ;;  %v6310_v32 = vld [vmem:[#allocation265_spill] sm:$0xff]  ;;  %v6317_v6 = vld [vmem:[#allocation206_spill] sm:$0xff] }
 0x4a2   :  { %v1724_v25 = vmax.f32 %v1468_v36, %v6309_v2  ;;  %v1725_v41 = vmax.f32 %v1469_v17, %v6310_v32  ;;  %v6311_v42 = vld [vmem:[#allocation384_spill] sm:$0xff]  ;;  %v6312_v48 = vld [vmem:[#allocation385_spill] sm:$0xff]  ;;  %v2552_v50 = vand.u32 2147483647, %v2488_v23  ;;  %v6318_v1 = vld [vmem:[#allocation207_spill] sm:$0xff]  ;;  %v2345_v23 = vpop.permute.xlu0 %2344 }
 0x4a3   :  { %v2234_v45 = vmax.f32 %v1978_v26, %v6311_v42  ;;  %v2235_v46 = vmax.f32 %v1979_v15, %v6312_v48  ;;  %v2553_v53 = vand.u32 2147483647, %v2489_v34  ;;  %v6313_v51 = vld [vmem:[#allocation120_spill] sm:$0xff]  ;;  %v6315_v22 = vld [vmem:[#allocation121_spill] sm:$0xff]  ;;  %v1470_v33 = vmax.f32 %v1214_v27, %v6317_v6  ;;  %v6320_v21 = vld [vmem:[#allocation326_spill] sm:$0xff]  ;;  %v2347_v34 = vpop.permute.xlu1 %2346 }
 0x4a4   :  { %v6314_v54 = vld [vmem:[#allocation40_spill] sm:$0xff]  ;;  %v1471_v3 = vmax.f32 %v1215_v60, %v6318_v1  ;;  %v6319_v8 = vld [vmem:[#allocation325_spill] sm:$0xff]  ;;  %v1981_v28 = vmax.f32 %v1725_v41, %v6320_v21  ;;  %2617 = vst.msk [vmem:[%s5534_s2 + $0x140] sm:$0xff] %vm2576_vm2, %v2552_v50  ;;  %v6323_v5 = vld [vmem:[#allocation266_spill] sm:$0xff] }
 0x4a5   :  { %v960_v16 = vmax.f32 %v6314_v54, %v6313_v51  ;;  %v6316_v38 = vld [vmem:[#allocation52_spill] sm:$0xff]  ;;  %v1980_v57 = vmax.f32 %v1724_v25, %v6319_v8  ;;  %2618 = vst.msk [vmem:[%s5534_s2 + $0x148] sm:$0xff] %vm2576_vm2, %v2553_v53  ;;  %v2490_v13 = vmax.f32 %v2234_v45, %v2341_v18  ;;  %v2491_v9 = vmax.f32 %v2235_v46, %v2343_v7  ;;  %v6322_v20 = vld [vmem:[#allocation125_spill] sm:$0xff]  ;;  %v6324_v11 = vld [vmem:[#allocation267_spill] sm:$0xff] }
 0x4a6   :  { %v961_v30 = vmax.f32 %v6316_v38, %v6315_v22  ;;  %v6321_v19 = vld [vmem:[#allocation124_spill] sm:$0xff]  ;;  %v1726_v43 = vmax.f32 %v1470_v33, %v6323_v5  ;;  %v1727_v35 = vmax.f32 %v1471_v3, %v6324_v11  ;;  %v6325_v40 = vld [vmem:[#allocation386_spill] sm:$0xff]  ;;  %v6326_v14 = vld [vmem:[#allocation387_spill] sm:$0xff] }
 0x4a7   :  { %v1216_v31 = vmax.f32 %v960_v16, %v6321_v19  ;;  %v2236_v44 = vmax.f32 %v1980_v57, %v6325_v40  ;;  %v2237_v24 = vmax.f32 %v1981_v28, %v6326_v14  ;;  %v2554_v49 = vand.u32 2147483647, %v2490_v13  ;;  %v6327_v29 = vld [vmem:[#allocation111_spill] sm:$0xff]  ;;  %v6328_v36 = vld [vmem:[#allocation37_spill] sm:$0xff]  ;;  %v6329_v17 = vld [vmem:[#allocation112_spill] sm:$0xff]  ;;  %v2349_v13 = vpop.permute.xlu0 %2348 }
 0x4a8   :  { %v1217_v59 = vmax.f32 %v961_v30, %v6322_v20  ;;  %v2555_v52 = vand.u32 2147483647, %v2491_v9  ;;  %v962_v47 = vmax.f32 %v6328_v36, %v6327_v29  ;;  %v6330_v63 = vld [vmem:[#allocation43_spill] sm:$0xff]  ;;  %v6331_v55 = vld [vmem:[#allocation208_spill] sm:$0xff]  ;;  %v6332_v0 = vld [vmem:[#allocation209_spill] sm:$0xff]  ;;  %v2351_v9 = vpop.permute.xlu1 %2350 }
 0x4a9   :  { %v963_v4 = vmax.f32 %v6330_v63, %v6329_v17  ;;  %v1472_v26 = vmax.f32 %v1216_v31, %v6331_v55  ;;  %v6333_v10 = vld [vmem:[#allocation327_spill] sm:$0xff]  ;;  %v6334_v58 = vld [vmem:[#allocation328_spill] sm:$0xff]  ;;  %2619 = vst.msk [vmem:[%s5534_s2 + $0x150] sm:$0xff] %vm2576_vm2, %v2554_v49  ;;  %v2492_v2 = vmax.f32 %v2236_v44, %v2345_v23  ;;  %v2493_v25 = vmax.f32 %v2237_v24, %v2347_v34  ;;  %v6336_v42 = vld [vmem:[#allocation117_spill] sm:$0xff] }
 0x4aa   :  { %v1473_v15 = vmax.f32 %v1217_v59, %v6332_v0  ;;  %v1982_v27 = vmax.f32 %v1726_v43, %v6333_v10  ;;  %v1983_v60 = vmax.f32 %v1727_v35, %v6334_v58  ;;  %2620 = vst.msk [vmem:[%s5534_s2 + $0x158] sm:$0xff] %vm2576_vm2, %v2555_v52  ;;  %v6335_v32 = vld [vmem:[#allocation116_spill] sm:$0xff]  ;;  %v6338_v50 = vld [vmem:[#allocation269_spill] sm:$0xff]  ;;  %v6345_v8 = vld [vmem:[#allocation210_spill] sm:$0xff] }
 0x4ab   :  { %v1218_v41 = vmax.f32 %v962_v47, %v6335_v32  ;;  %v1219_v45 = vmax.f32 %v963_v4, %v6336_v42  ;;  %v6337_v48 = vld [vmem:[#allocation268_spill] sm:$0xff]  ;;  %v6340_v16 = vld [vmem:[#allocation389_spill] sm:$0xff]  ;;  %v2556_v38 = vand.u32 2147483647, %v2492_v2  ;;  %v2557_v30 = vand.u32 2147483647, %v2493_v25  ;;  %v2353_v2 = vpop.permute.xlu0 %2352 }
 0x4ac   :  { %v1728_v46 = vmax.f32 %v1472_v26, %v6337_v48  ;;  %v1729_v53 = vmax.f32 %v1473_v15, %v6338_v50  ;;  %v6339_v51 = vld [vmem:[#allocation388_spill] sm:$0xff]  ;;  %v2239_v22 = vmax.f32 %v1983_v60, %v6340_v16  ;;  %v6343_v3 = vld [vmem:[#allocation137_spill] sm:$0xff]  ;;  %v6346_v21 = vld [vmem:[#allocation211_spill] sm:$0xff]  ;;  %v2355_v25 = vpop.permute.xlu1 %2354 }
 0x4ad   :  { %v2238_v54 = vmax.f32 %v1982_v27, %v6339_v51  ;;  %v6341_v6 = vld [vmem:[#allocation136_spill] sm:$0xff]  ;;  %v1474_v57 = vmax.f32 %v1218_v41, %v6345_v8  ;;  %v1475_v28 = vmax.f32 %v1219_v45, %v6346_v21  ;;  %v6347_v19 = vld [vmem:[#allocation329_spill] sm:$0xff]  ;;  %v6348_v20 = vld [vmem:[#allocation330_spill] sm:$0xff]  ;;  %2621 = vst.msk [vmem:[%s5534_s2 + $0x160] sm:$0xff] %vm2576_vm2, %v2556_v38 }
 0x4ae   :  { %v6342_v33 = vld [vmem:[#allocation60_spill] sm:$0xff]  ;;  %v1984_v31 = vmax.f32 %v1728_v46, %v6347_v19  ;;  %v1985_v59 = vmax.f32 %v1729_v53, %v6348_v20  ;;  %2622 = vst.msk [vmem:[%s5534_s2 + $0x168] sm:$0xff] %vm2576_vm2, %v2557_v30  ;;  %v2495_v43 = vmax.f32 %v2239_v22, %v2351_v9  ;;  %v6350_v40 = vld [vmem:[#allocation141_spill] sm:$0xff]  ;;  %v6351_v14 = vld [vmem:[#allocation270_spill] sm:$0xff] }
 0x4af   :  { %v964_v1 = vmax.f32 %v6342_v33, %v6341_v6  ;;  %v6344_v18 = vld [vmem:[#allocation72_spill] sm:$0xff]  ;;  %v2494_v5 = vmax.f32 %v2238_v54, %v2349_v13  ;;  %v1730_v24 = vmax.f32 %v1474_v57, %v6351_v14  ;;  %v6352_v49 = vld [vmem:[#allocation271_spill] sm:$0xff]  ;;  %v6353_v29 = vld [vmem:[#allocation390_spill] sm:$0xff] }
 0x4b0   :  { %v965_v7 = vmax.f32 %v6344_v18, %v6343_v3  ;;  %v6349_v11 = vld [vmem:[#allocation140_spill] sm:$0xff]  ;;  %v1731_v52 = vmax.f32 %v1475_v28, %v6352_v49  ;;  %v2240_v36 = vmax.f32 %v1984_v31, %v6353_v29  ;;  %v6354_v47 = vld [vmem:[#allocation391_spill] sm:$0xff]  ;;  %v2559_v4 = vand.u32 2147483647, %v2495_v43  ;;  %v6356_v26 = vld [vmem:[#allocation57_spill] sm:$0xff]  ;;  %v2359_v43 = vpop.permute.xlu1 %2358 }
 0x4b1   :  { %v1220_v35 = vmax.f32 %v964_v1, %v6349_v11  ;;  %v2241_v17 = vmax.f32 %v1985_v59, %v6354_v47  ;;  %v2558_v63 = vand.u32 2147483647, %v2494_v5  ;;  %v6355_v55 = vld [vmem:[#allocation128_spill] sm:$0xff]  ;;  %v6357_v15 = vld [vmem:[#allocation129_spill] sm:$0xff]  ;;  %v6358_v23 = vld [vmem:[#allocation63_spill] sm:$0xff]  ;;  %v2357_v5 = vpop.permute.xlu0 %2356 }
 0x4b2   :  { %v1221_v44 = vmax.f32 %v965_v7, %v6350_v40  ;;  %v966_v0 = vmax.f32 %v6356_v26, %v6355_v55  ;;  %v967_v34 = vmax.f32 %v6358_v23, %v6357_v15  ;;  %v6359_v10 = vld [vmem:[#allocation212_spill] sm:$0xff]  ;;  %v6360_v58 = vld [vmem:[#allocation213_spill] sm:$0xff]  ;;  %v6361_v32 = vld [vmem:[#allocation331_spill] sm:$0xff]  ;;  %2624 = vst.msk [vmem:[%s5534_s2 + $0x178] sm:$0xff] %vm2576_vm2, %v2559_v4  ;;  %v2496_v48 = vmax.f32 %v2240_v36, %v2353_v2 }
 0x4b3   :  { %v1476_v27 = vmax.f32 %v1220_v35, %v6359_v10  ;;  %v1986_v41 = vmax.f32 %v1730_v24, %v6361_v32  ;;  %v6362_v42 = vld [vmem:[#allocation332_spill] sm:$0xff]  ;;  %2623 = vst.msk [vmem:[%s5534_s2 + $0x170] sm:$0xff] %vm2576_vm2, %v2558_v63  ;;  %v2497_v46 = vmax.f32 %v2241_v17, %v2355_v25  ;;  %v6364_v51 = vld [vmem:[#allocation133_spill] sm:$0xff]  ;;  %v6373_v19 = vld [vmem:[#allocation214_spill] sm:$0xff] }
 0x4b4   :  { %v1477_v60 = vmax.f32 %v1221_v44, %v6360_v58  ;;  %v1987_v45 = vmax.f32 %v1731_v52, %v6362_v42  ;;  %v6363_v50 = vld [vmem:[#allocation132_spill] sm:$0xff]  ;;  %v1223_v54 = vmax.f32 %v967_v34, %v6364_v51  ;;  %v6366_v38 = vld [vmem:[#allocation273_spill] sm:$0xff]  ;;  %v2560_v18 = vand.u32 2147483647, %v2496_v48  ;;  %v6374_v20 = vld [vmem:[#allocation215_spill] sm:$0xff] }
 0x4b5   :  { %v1222_v53 = vmax.f32 %v966_v0, %v6363_v50  ;;  %v6365_v16 = vld [vmem:[#allocation272_spill] sm:$0xff]  ;;  %v6368_v1 = vld [vmem:[#allocation393_spill] sm:$0xff]  ;;  %v2561_v7 = vand.u32 2147483647, %v2497_v46  ;;  %v6376_v40 = vld [vmem:[#allocation334_spill] sm:$0xff]  ;;  %v2361_v42 = vpop.permute.xlu0 %2360 }
 0x4b6   :  { %v1732_v22 = vmax.f32 %v1476_v27, %v6365_v16  ;;  %v1733_v30 = vmax.f32 %v1477_v60, %v6366_v38  ;;  %v6367_v6 = vld [vmem:[#allocation392_spill] sm:$0xff]  ;;  %v2243_v3 = vmax.f32 %v1987_v45, %v6368_v1  ;;  %v6371_v28 = vld [vmem:[#allocation153_spill] sm:$0xff]  ;;  %v1479_v59 = vmax.f32 %v1223_v54, %v6374_v20  ;;  %2625 = vst.msk [vmem:[%s5534_s2 + $0x180] sm:$0xff] %vm2576_vm2, %v2560_v18  ;;  %v6379_v47 = vld [vmem:[#allocation274_spill] sm:$0xff]  ;;  %v2363_v45 = vpop.permute.xlu1 %2362 }
 0x4b7   :  { %v2242_v33 = vmax.f32 %v1986_v41, %v6367_v6  ;;  %v6369_v8 = vld [vmem:[#allocation152_spill] sm:$0xff]  ;;  %v1478_v31 = vmax.f32 %v1222_v53, %v6373_v19  ;;  %v6375_v11 = vld [vmem:[#allocation333_spill] sm:$0xff]  ;;  %2626 = vst.msk [vmem:[%s5534_s2 + $0x188] sm:$0xff] %vm2576_vm2, %v2561_v7  ;;  %v6380_v63 = vld [vmem:[#allocation275_spill] sm:$0xff] }
 0x4b8   :  { %v6370_v57 = vld [vmem:[#allocation80_spill] sm:$0xff]  ;;  %v1988_v35 = vmax.f32 %v1732_v22, %v6375_v11  ;;  %v1989_v44 = vmax.f32 %v1733_v30, %v6376_v40  ;;  %v2499_v24 = vmax.f32 %v2243_v3, %v2359_v43  ;;  %v6378_v29 = vld [vmem:[#allocation157_spill] sm:$0xff]  ;;  %v1735_v4 = vmax.f32 %v1479_v59, %v6380_v63  ;;  %v6381_v55 = vld [vmem:[#allocation394_spill] sm:$0xff] }
 0x4b9   :  { %v968_v21 = vmax.f32 %v6370_v57, %v6369_v8  ;;  %v6372_v13 = vld [vmem:[#allocation92_spill] sm:$0xff]  ;;  %v2498_v14 = vmax.f32 %v2242_v33, %v2357_v5  ;;  %v1734_v17 = vmax.f32 %v1478_v31, %v6379_v47  ;;  %v6382_v0 = vld [vmem:[#allocation395_spill] sm:$0xff]  ;;  %v6384_v58 = vld [vmem:[#allocation145_spill] sm:$0xff]  ;;  %v2365_v5 = vpop.permute.xlu0 %2364 }
 0x4ba   :  { %v969_v9 = vmax.f32 %v6372_v13, %v6371_v28  ;;  %v6377_v49 = vld [vmem:[#allocation156_spill] sm:$0xff]  ;;  %v2244_v26 = vmax.f32 %v1988_v35, %v6381_v55  ;;  %v2245_v15 = vmax.f32 %v1989_v44, %v6382_v0  ;;  %v2563_v34 = vand.u32 2147483647, %v2499_v24  ;;  %v6386_v32 = vld [vmem:[#allocation217_spill] sm:$0xff]  ;;  %v6387_v48 = vld [vmem:[#allocation335_spill] sm:$0xff]  ;;  %v2367_v43 = vpop.permute.xlu1 %2366 }
 0x4bb   :  { %v1224_v52 = vmax.f32 %v968_v21, %v6377_v49  ;;  %v2562_v23 = vand.u32 2147483647, %v2498_v14  ;;  %v6383_v10 = vld [vmem:[#allocation144_spill] sm:$0xff]  ;;  %v971_v60 = vmax.f32 %v6063_v62, %v6384_v58  ;;  %v1990_v46 = vmax.f32 %v1734_v17, %v6387_v48  ;;  %v6390_v16 = vld [vmem:[#allocation149_spill] sm:$0xff]  ;;  %v6396_v13 = vld [vmem:[#allocation171_spill] sm:$0xff] }
 0x4bc   :  { %v1225_v36 = vmax.f32 %v969_v9, %v6378_v29  ;;  %v970_v27 = vmax.f32 %v6062_v12, %v6383_v10  ;;  %v6385_v2 = vld [vmem:[#allocation216_spill] sm:$0xff]  ;;  %2628 = vst.msk [vmem:[%s5534_s2 + $0x198] sm:$0xff] %vm2576_vm2, %v2563_v34  ;;  %v2500_v12 = vmax.f32 %v2244_v26, %v2361_v42  ;;  %v2501_v62 = vmax.f32 %v2245_v15, %v2363_v45  ;;  %v6392_v6 = vld [vmem:[#allocation277_spill] sm:$0xff]  ;;  %v6397_v19 = vld [vmem:[#allocation218_spill] sm:$0xff] }
 0x4bd   :  { %v1480_v25 = vmax.f32 %v1224_v52, %v6385_v2  ;;  %v6388_v50 = vld [vmem:[#allocation336_spill] sm:$0xff]  ;;  %2627 = vst.msk [vmem:[%s5534_s2 + $0x190] sm:$0xff] %vm2576_vm2, %v2562_v23  ;;  %v1227_v22 = vmax.f32 %v971_v60, %v6390_v16  ;;  %v6394_v18 = vld [vmem:[#allocation397_spill] sm:$0xff]  ;;  %v973_v9 = vmax.f32 %v6074_v39, %v6396_v13  ;;  %v6398_v20 = vld [vmem:[#allocation219_spill] sm:$0xff] }
 0x4be   :  { %v1481_v41 = vmax.f32 %v1225_v36, %v6386_v32  ;;  %v1991_v53 = vmax.f32 %v1735_v4, %v6388_v50  ;;  %v6389_v51 = vld [vmem:[#allocation148_spill] sm:$0xff]  ;;  %v2564_v8 = vand.u32 2147483647, %v2500_v12  ;;  %v2565_v57 = vand.u32 2147483647, %v2501_v62  ;;  %v6399_v11 = vld [vmem:[#allocation337_spill] sm:$0xff]  ;;  %v2369_v32 = vpop.permute.xlu0 %2368 }
 0x4bf   :  { %v1226_v54 = vmax.f32 %v970_v27, %v6389_v51  ;;  %v6391_v38 = vld [vmem:[#allocation276_spill] sm:$0xff]  ;;  %v1483_v59 = vmax.f32 %v1227_v22, %v6398_v20  ;;  %v6400_v40 = vld [vmem:[#allocation338_spill] sm:$0xff]  ;;  %v6402_v49 = vld [vmem:[#allocation175_spill] sm:$0xff] }
 0x4c0   :  { %v1736_v30 = vmax.f32 %v1480_v25, %v6391_v38  ;;  %v1737_v33 = vmax.f32 %v1481_v41, %v6392_v6  ;;  %v6393_v1 = vld [vmem:[#allocation396_spill] sm:$0xff]  ;;  %v2247_v7 = vmax.f32 %v1991_v53, %v6394_v18  ;;  %2629 = vst.msk [vmem:[%s5534_s2 + $0x1a0] sm:$0xff] %vm2576_vm2, %v2564_v8  ;;  %2630 = vst.msk [vmem:[%s5534_s2 + $0x1a8] sm:$0xff] %vm2576_vm2, %v2565_v57  ;;  %v6403_v29 = vld [vmem:[#allocation278_spill] sm:$0xff]  ;;  %v2371_v41 = vpop.permute.xlu1 %2370 }
 0x4c1   :  { %v2246_v3 = vmax.f32 %v1990_v46, %v6393_v1  ;;  %v6395_v21 = vld [vmem:[#allocation168_spill] sm:$0xff]  ;;  %v1482_v31 = vmax.f32 %v1226_v54, %v6397_v19  ;;  %v1229_v52 = vmax.f32 %v973_v9, %v6402_v49  ;;  %v6404_v47 = vld [vmem:[#allocation279_spill] sm:$0xff]  ;;  %v6405_v63 = vld [vmem:[#allocation398_spill] sm:$0xff] }
 0x4c2   :  { %v972_v28 = vmax.f32 %v3540_v61, %v6395_v21  ;;  %v1992_v35 = vmax.f32 %v1736_v30, %v6399_v11  ;;  %v1993_v44 = vmax.f32 %v1737_v33, %v6400_v40  ;;  %v2503_v39 = vmax.f32 %v2247_v7, %v2367_v43  ;;  %v6401_v14 = vld [vmem:[#allocation172_spill] sm:$0xff]  ;;  %v6406_v55 = vld [vmem:[#allocation399_spill] sm:$0xff]  ;;  %v6410_v2 = vld [vmem:[#allocation221_spill] sm:$0xff]  ;;  %v2373_v21 = vpop.permute.xlu0 %2372 }
 0x4c3   :  { %v2502_v61 = vmax.f32 %v2246_v3, %v2365_v5  ;;  %v1738_v36 = vmax.f32 %v1482_v31, %v6403_v29  ;;  %v1739_v17 = vmax.f32 %v1483_v59, %v6404_v47  ;;  %v6407_v23 = vld [vmem:[#allocation160_spill] sm:$0xff]  ;;  %v6408_v10 = vld [vmem:[#allocation163_spill] sm:$0xff]  ;;  %v1485_v25 = vmax.f32 %v1229_v52, %v6410_v2  ;;  %v6416_v16 = vld [vmem:[#allocation281_spill] sm:$0xff] }
 0x4c4   :  { %v1228_v24 = vmax.f32 %v972_v28, %v6401_v14  ;;  %v2248_v4 = vmax.f32 %v1992_v35, %v6405_v63  ;;  %v2249_v26 = vmax.f32 %v1993_v44, %v6406_v55  ;;  %v2567_v15 = vand.u32 2147483647, %v2503_v39  ;;  %v6409_v58 = vld [vmem:[#allocation220_spill] sm:$0xff]  ;;  %v6411_v42 = vld [vmem:[#allocation339_spill] sm:$0xff]  ;;  %v6417_v38 = vld [vmem:[#allocation42_spill] sm:$0xff]  ;;  %v2375_v28 = vpop.permute.xlu1 %2374 }
 0x4c5   :  { %v2566_v0 = vand.u32 2147483647, %v2502_v61  ;;  %v974_v34 = vmax.f32 %v5894_v56, %v6407_v23  ;;  %v975_v27 = vmax.f32 %v6086_v37, %v6408_v10  ;;  %v1994_v45 = vmax.f32 %v1738_v36, %v6411_v42  ;;  %v6412_v48 = vld [vmem:[#allocation340_spill] sm:$0xff]  ;;  %v6414_v12 = vld [vmem:[#allocation167_spill] sm:$0xff]  ;;  %v6419_v18 = vld [vmem:[#allocation222_spill] sm:$0xff] }
 0x4c6   :  { %v1484_v60 = vmax.f32 %v1228_v24, %v6409_v58  ;;  %v1995_v46 = vmax.f32 %v1739_v17, %v6412_v48  ;;  %2632 = vst.msk [vmem:[%s5534_s2 + $0x1b8] sm:$0xff] %vm2576_vm2, %v2567_v15  ;;  %v2504_v56 = vmax.f32 %v2248_v4, %v2369_v32  ;;  %v2505_v37 = vmax.f32 %v2249_v26, %v2371_v41  ;;  %v6413_v50 = vld [vmem:[#allocation164_spill] sm:$0xff]  ;;  %v6420_v8 = vld [vmem:[#allocation223_spill] sm:$0xff]  ;;  %v6421_v13 = vld [vmem:[#allocation341_spill] sm:$0xff]  ;;  %v2377_v49 = vpop.permute.xlu0 %2376 }
 0x4c7   :  { %2631 = vst.msk [vmem:[%s5534_s2 + $0x1b0] sm:$0xff] %vm2576_vm2, %v2566_v0  ;;  %v1230_v53 = vmax.f32 %v974_v34, %v6413_v50  ;;  %v1231_v62 = vmax.f32 %v975_v27, %v6414_v12  ;;  %v6415_v51 = vld [vmem:[#allocation280_spill] sm:$0xff]  ;;  %v1741_v22 = vmax.f32 %v1485_v25, %v6416_v16  ;;  %v2250_v30 = vmax.f32 %v1994_v45, %v6417_v38  ;;  %v6422_v19 = vld [vmem:[#allocation342_spill] sm:$0xff]  ;;  %v6424_v11 = vld [vmem:[#allocation283_spill] sm:$0xff] }
 0x4c8   :  { %v1740_v54 = vmax.f32 %v1484_v60, %v6415_v51  ;;  %v6418_v6 = vld [vmem:[#allocation400_spill] sm:$0xff]  ;;  %v2568_v1 = vand.u32 2147483647, %v2504_v56  ;;  %v2569_v3 = vand.u32 2147483647, %v2505_v37  ;;  %v6423_v5 = vld [vmem:[#allocation282_spill] sm:$0xff]  ;;  %v2379_v52 = vpop.permute.xlu1 %2378 }
 0x4c9   :  { %v2251_v33 = vmax.f32 %v1995_v46, %v6418_v6  ;;  %v1486_v7 = vmax.f32 %v1230_v53, %v6419_v18  ;;  %v1487_v57 = vmax.f32 %v1231_v62, %v6420_v8  ;;  %v1997_v31 = vmax.f32 %v1741_v22, %v6422_v19  ;;  %v6425_v40 = vld [vmem:[#allocation28_spill] sm:$0xff]  ;;  %v6427_v29 = vld [vmem:[#allocation343_spill] sm:$0xff]  ;;  %v6429_v55 = vld [vmem:[#allocation33_spill] sm:$0xff] }
 0x4ca   :  { %v1996_v9 = vmax.f32 %v1740_v54, %v6421_v13  ;;  %2633 = vst.msk [vmem:[%s5534_s2 + $0x1c0] sm:$0xff] %vm2576_vm2, %v2568_v1  ;;  %2634 = vst.msk [vmem:[%s5534_s2 + $0x1c8] sm:$0xff] %vm2576_vm2, %v2569_v3  ;;  %v2506_v20 = vmax.f32 %v2250_v30, %v2373_v21  ;;  %v6426_v61 = vld [vmem:[#allocation36_spill] sm:$0xff]  ;;  %v6430_v0 = vld [vmem:[#allocation19_spill] sm:$0xff]  ;;  %v2381_v10 = vpop.permute.xlu0 %2380 }
 0x4cb   :  { %v2507_v59 = vmax.f32 %v2251_v33, %v2375_v28  ;;  %v1742_v43 = vmax.f32 %v1486_v7, %v6423_v5  ;;  %v1743_v35 = vmax.f32 %v1487_v57, %v6424_v11  ;;  %v2253_v39 = vmax.f32 %v1997_v31, %v6426_v61  ;;  %v6428_v47 = vld [vmem:[#allocation344_spill] sm:$0xff] }
 0x4cc   :  { %v2252_v44 = vmax.f32 %v1996_v9, %v6425_v40  ;;  %v2570_v14 = vand.u32 2147483647, %v2506_v20  ;;  %v2383_v27 = vpop.permute.xlu1 %2382 }
 0x4cd   :  { %v2571_v24 = vand.u32 2147483647, %v2507_v59  ;;  %v1998_v36 = vmax.f32 %v1742_v43, %v6427_v29  ;;  %v1999_v17 = vmax.f32 %v1743_v35, %v6428_v47  ;;  %v2509_v4 = vmax.f32 %v2253_v39, %v2379_v52 }
 0x4ce   :  { %2635 = vst.msk [vmem:[%s5534_s2 + $0x1d0] sm:$0xff] %vm2576_vm2, %v2570_v14  ;;  %v2508_v63 = vmax.f32 %v2252_v44, %v2377_v49 }
 0x4cf   :  { %2636 = vst.msk [vmem:[%s5534_s2 + $0x1d8] sm:$0xff] %vm2576_vm2, %v2571_v24  ;;  %v2254_v26 = vmax.f32 %v1998_v36, %v6429_v55  ;;  %v2255_v15 = vmax.f32 %v1999_v17, %v6430_v0  ;;  %v2573_v34 = vand.u32 2147483647, %v2509_v4 }
 0x4d0   :  { %v2572_v23 = vand.u32 2147483647, %v2508_v63 }
 0x4d1   :  { %2638 = vst.msk [vmem:[%s5534_s2 + $0x1e8] sm:$0xff] %vm2576_vm2, %v2573_v34  ;;  %v2510_v58 = vmax.f32 %v2254_v26, %v2381_v10  ;;  %v2511_v60 = vmax.f32 %v2255_v15, %v2383_v27 }
 0x4d2   :  { %2637 = vst.msk [vmem:[%s5534_s2 + $0x1e0] sm:$0xff] %vm2576_vm2, %v2572_v23 }
 0x4d3   :  { %v2574_v2 = vand.u32 2147483647, %v2510_v58  ;;  %v2575_v25 = vand.u32 2147483647, %v2511_v60 }
 0x4d5   :  { %2639 = vst.msk [vmem:[%s5534_s2 + $0x1f0] sm:$0xff] %vm2576_vm2, %v2574_v2  ;;  %2640 = vst.msk [vmem:[%s5534_s2 + $0x1f8] sm:$0xff] %vm2576_vm2, %v2575_v25 }

// kernel: net_scalar_forward.5
= control target key start
LH: loop header
LB: loop body
LE: loop exit
PB: predicated region body
PF: predicated region fallthrough
CT: control target
= control target key end

     0   :  { %vm727_vm0 = vcmask 1045504   ;;  %vm702_vm1 = vcmask 621568   ;;  %s1848_s11 = smov 64   ;;  %s1849_s12 = smov 32   ;;  %vm1521_vm2 = vcmask 261120   ;;  %s2684_s1 = inlined_call_operand.vmem [shape: bf16[588,256], index: 1, kind: input, shape index: {}]   ;;  %s2685_s0 = inlined_call_operand.vmem [shape: bf16[128,588], index: 0, kind: input, shape index: {}]   ;;  %s2686_s2 = inlined_call_operand.vmem [shape: f32[128,32], index: 2, kind: output, shape index: {}]  }
   0x1   :  { %v1679_v0 = vld [vmem:[%s2684_s1 + $0x74] ss:$8 sps:$4 sm:$0xff]   ;;  %v1683_v2 = vld [vmem:[%s2684_s1 + $0x70] ss:$8 sps:$4 sm:$0xff]   ;;  %v1685_v4 = vld [vmem:[%s2684_s1 + $0x64] ss:$8 sps:$4 sm:$0xff]  }
   0x2   :  { %v1681_v1 = vld [vmem:[%s2684_s1 + $0x174] ss:$8 sps:$4 sm:$0xff]   ;;  %734 = vmatprep.subr.bf16.mxu0 %v1679_v0  ;;  %v1684_v3 = vld [vmem:[%s2684_s1 + $0x170] ss:$8 sps:$4 sm:$0xff]   ;;  %v1687_v5 = vld [vmem:[%s2684_s1 + $0x164] ss:$8 sps:$4 sm:$0xff]  }
   0x3   :  { %847 = vmatprep.subr.bf16.mxu1 %v1681_v1  ;;  %735 = vmatpush1.bf16.msra.mxu0 %v1683_v2  ;;  %v1689_v6 = vld [vmem:[%s2684_s1 + $0x60] ss:$8 sps:$4 sm:$0xff]   ;;  %v1691_v8 = vld [vmem:[%s2684_s1 + $0x54] ss:$8 sps:$4 sm:$0xff]   ;;  %v1695_v10 = vld [vmem:[%s2684_s1 + $0x50] ss:$8 sps:$4 sm:$0xff]  }
   0x4   :  { %848 = vmatpush1.bf16.msra.mxu1 %v1684_v3  ;;  %736 = vmatprep.subr.bf16.mxu0 %v1685_v4  ;;  %v1690_v7 = vld [vmem:[%s2684_s1 + $0x160] ss:$8 sps:$4 sm:$0xff]   ;;  %v1693_v9 = vld [vmem:[%s2684_s1 + $0x154] ss:$8 sps:$4 sm:$0xff]   ;;  %v1696_v11 = vld [vmem:[%s2684_s1 + $0x150] ss:$8 sps:$4 sm:$0xff]  }
   0x5   :  { %849 = vmatprep.subr.bf16.mxu1 %v1687_v5  ;;  %v1697_v12 = vld [vmem:[%s2684_s1 + $0x44] ss:$8 sps:$4 sm:$0xff]   ;;  %v1701_v14 = vld [vmem:[%s2684_s1 + $0x40] ss:$8 sps:$4 sm:$0xff]   ;;  %v1703_v16 = vld [vmem:[%s2684_s1 + $0x34] ss:$8 sps:$4 sm:$0xff]  }
   0x6   :  { %v1699_v13 = vld [vmem:[%s2684_s1 + $0x144] ss:$8 sps:$4 sm:$0xff]   ;;  %v1702_v15 = vld [vmem:[%s2684_s1 + $0x140] ss:$8 sps:$4 sm:$0xff]   ;;  %v1705_v17 = vld [vmem:[%s2684_s1 + $0x134] ss:$8 sps:$4 sm:$0xff]  }
   0x7   :  { %737 = vmatpush1.bf16.msra.mxu0 %v1689_v6  ;;  %v1707_v18 = vld [vmem:[%s2684_s1 + $0x30] ss:$8 sps:$4 sm:$0xff]   ;;  %v1709_v20 = vld [vmem:[%s2684_s1 + $0x24] ss:$8 sps:$4 sm:$0xff]   ;;  %v1713_v22 = vld [vmem:[%s2684_s1 + $0x20] ss:$8 sps:$4 sm:$0xff]  }
   0x8   :  { %850 = vmatpush1.bf16.msra.mxu1 %v1690_v7  ;;  %738 = vmatprep.subr.bf16.mxu0 %v1691_v8  ;;  %v1708_v19 = vld [vmem:[%s2684_s1 + $0x130] ss:$8 sps:$4 sm:$0xff]   ;;  %v1711_v21 = vld [vmem:[%s2684_s1 + $0x124] ss:$8 sps:$4 sm:$0xff]   ;;  %v1714_v23 = vld [vmem:[%s2684_s1 + $0x120] ss:$8 sps:$4 sm:$0xff]  }
   0x9   :  { %851 = vmatprep.subr.bf16.mxu1 %v1693_v9  ;;  %v1715_v24 = vld [vmem:[%s2684_s1 + $0x14] ss:$8 sps:$4 sm:$0xff]   ;;  %v1719_v26 = vld [vmem:[%s2684_s1 + $0x10] ss:$8 sps:$4 sm:$0xff]   ;;  %v1721_v28 = vld [vmem:[%s2684_s1 + $0x4] ss:$8 sps:$4 sm:$0xff]  }
   0xa   :  { %v1717_v25 = vld [vmem:[%s2684_s1 + $0x114] ss:$8 sps:$4 sm:$0xff]   ;;  %v1720_v27 = vld [vmem:[%s2684_s1 + $0x110] ss:$8 sps:$4 sm:$0xff]   ;;  %v1723_v29 = vld [vmem:[%s2684_s1 + $0x104] ss:$8 sps:$4 sm:$0xff]  }
   0xb   :  { %739 = vmatpush1.bf16.msra.mxu0 %v1695_v10  ;;  %v1725_v30 = vld [vmem:[%s2684_s1] ss:$8 sps:$4 sm:$0xff]   ;;  %v1727_v32 = vld [vmem:[%s2684_s1 + $0xf4] ss:$8 sps:$4 sm:$0xff]   ;;  %v1731_v34 = vld [vmem:[%s2684_s1 + $0xf0] ss:$8 sps:$4 sm:$0xff]  }
   0xc   :  { %852 = vmatpush1.bf16.msra.mxu1 %v1696_v11  ;;  %740 = vmatprep.subr.bf16.mxu0 %v1697_v12  ;;  %v1726_v31 = vld [vmem:[%s2684_s1 + $0x100] ss:$8 sps:$4 sm:$0xff]   ;;  %v1729_v33 = vld [vmem:[%s2684_s1 + $0x1f4] ss:$8 sps:$4 sm:$0xff]   ;;  %v1732_v35 = vld [vmem:[%s2684_s1 + $0x1f0] ss:$8 sps:$4 sm:$0xff]  }
   0xd   :  { %853 = vmatprep.subr.bf16.mxu1 %v1699_v13  ;;  %v1733_v36 = vld [vmem:[%s2684_s1 + $0xe4] ss:$8 sps:$4 sm:$0xff]   ;;  %v1737_v38 = vld [vmem:[%s2684_s1 + $0xe0] ss:$8 sps:$4 sm:$0xff]   ;;  %v1739_v40 = vld [vmem:[%s2684_s1 + $0xd4] ss:$8 sps:$4 sm:$0xff]  }
   0xe   :  { %v1735_v37 = vld [vmem:[%s2684_s1 + $0x1e4] ss:$8 sps:$4 sm:$0xff]   ;;  %v1738_v39 = vld [vmem:[%s2684_s1 + $0x1e0] ss:$8 sps:$4 sm:$0xff]   ;;  %v1741_v41 = vld [vmem:[%s2684_s1 + $0x1d4] ss:$8 sps:$4 sm:$0xff]  }
   0xf   :  { %741 = vmatpush1.bf16.msra.mxu0 %v1701_v14  ;;  %v1743_v42 = vld [vmem:[%s2684_s1 + $0xd0] ss:$8 sps:$4 sm:$0xff]   ;;  %v1745_v44 = vld [vmem:[%s2684_s1 + $0xc4] ss:$8 sps:$4 sm:$0xff]   ;;  %v1749_v46 = vld [vmem:[%s2684_s1 + $0xc0] ss:$8 sps:$4 sm:$0xff]  }
  0x10   :  { %854 = vmatpush1.bf16.msra.mxu1 %v1702_v15  ;;  %742 = vmatprep.subr.bf16.mxu0 %v1703_v16  ;;  %v1744_v43 = vld [vmem:[%s2684_s1 + $0x1d0] ss:$8 sps:$4 sm:$0xff]   ;;  %v1747_v45 = vld [vmem:[%s2684_s1 + $0x1c4] ss:$8 sps:$4 sm:$0xff]   ;;  %v1750_v47 = vld [vmem:[%s2684_s1 + $0x1c0] ss:$8 sps:$4 sm:$0xff]  }
  0x11   :  { %855 = vmatprep.subr.bf16.mxu1 %v1705_v17  ;;  %v1751_v48 = vld [vmem:[%s2684_s1 + $0xb4] ss:$8 sps:$4 sm:$0xff]   ;;  %v1777_v49 = vld [vmem:[%s2685_s0 + $0x4] ss:$20 sps:$4 sm:$0xff]   ;;  %v1780_v51 = vld [vmem:[%s2685_s0 + $0xc] ss:$20 sps:$4 sm:$0xff]  }
  0x12   :  { %v1753_v50 = vld [vmem:[%s2684_s1 + $0x1b4] ss:$8 sps:$4 sm:$0xff]   ;;  %766 = vmatprep.mubr.bf16.mxu0 %v1777_v49  ;;  %v1755_v52 = vld [vmem:[%s2684_s1 + $0xb0] ss:$8 sps:$4 sm:$0xff]   ;;  %879 = vmatprep.mubr.bf16.mxu1 %v1780_v51  ;;  %v1757_v54 = vld [vmem:[%s2684_s1 + $0xa4] ss:$8 sps:$4 sm:$0xff]  }
  0x13   :  { %743 = vmatpush1.bf16.msra.mxu0 %v1707_v18  ;;  %v1756_v53 = vld [vmem:[%s2684_s1 + $0x1b0] ss:$8 sps:$4 sm:$0xff]   ;;  %v1759_v55 = vld [vmem:[%s2684_s1 + $0x1a4] ss:$8 sps:$4 sm:$0xff]   ;;  %v1761_v56 = vld [vmem:[%s2684_s1 + $0xa0] ss:$8 sps:$4 sm:$0xff]  }
  0x14   :  { %856 = vmatpush1.bf16.msra.mxu1 %v1708_v19  ;;  %744 = vmatprep.subr.bf16.mxu0 %v1709_v20  ;;  %v1762_v57 = vld [vmem:[%s2684_s1 + $0x1a0] ss:$8 sps:$4 sm:$0xff]   ;;  %v1763_v58 = vld [vmem:[%s2684_s1 + $0x94] ss:$8 sps:$4 sm:$0xff]   ;;  %v1767_v60 = vld [vmem:[%s2684_s1 + $0x90] ss:$8 sps:$4 sm:$0xff]  }
  0x15   :  { %857 = vmatprep.subr.bf16.mxu1 %v1711_v21  ;;  %v1765_v59 = vld [vmem:[%s2684_s1 + $0x194] ss:$8 sps:$4 sm:$0xff]   ;;  %v1768_v61 = vld [vmem:[%s2684_s1 + $0x190] ss:$8 sps:$4 sm:$0xff]   ;;  %v1769_v62 = vld [vmem:[%s2684_s1 + $0x84] ss:$8 sps:$4 sm:$0xff]  }
  0x16   :  { %v1771_v63 = vld [vmem:[%s2684_s1 + $0x184] ss:$8 sps:$4 sm:$0xff]   ;;  %v1773_v0 = vld [vmem:[%s2684_s1 + $0x80] ss:$8 sps:$4 sm:$0xff]   ;;  %v1792_v9 = vld [vmem:[%s2684_s1 + $0x234] ss:$8 sps:$4 sm:$0xff]  }
  0x17   :  { %745 = vmatpush1.bf16.msra.mxu0 %v1713_v22  ;;  %v1774_v1 = vld [vmem:[%s2684_s1 + $0x180] ss:$8 sps:$4 sm:$0xff]   ;;  %v1781_v2 = vld [vmem:[%s2684_s1 + $0x244] ss:$8 sps:$4 sm:$0x3f]  }
  0x18   :  { %858 = vmatpush1.bf16.msra.mxu1 %v1714_v23  ;;  %746 = vmatprep.subr.bf16.mxu0 %v1715_v24  ;;  %v1783_v3 = vld [vmem:[%s2684_s1 + $0x240] ss:$8 sps:$4 sm:$0x3f]   ;;  %v1790_v10 = vld [vmem:[%s2684_s1 + $0x230] ss:$8 sps:$4 sm:$0xff]  }
  0x19   :  { %859 = vmatprep.subr.bf16.mxu1 %v1717_v25  ;;  %v1775_v4 = vld [vmem:[%s2685_s0] ss:$20 sps:$4 sm:$0xff]   ;;  %v1778_v5 = vld [vmem:[%s2685_s0 + $0x8] ss:$20 sps:$4 sm:$0xff]   ;;  %v729_v7 = vsel %vm727_vm0, %v1783_v3, 0 }
  0x1a   :  { %v1784_v6 = vld [vmem:[%s2685_s0 + $0x2c] ss:$20 sps:$4 sm:$0xff]   ;;  %v1786_v8 = vld [vmem:[%s2685_s0 + $0x34] ss:$20 sps:$4 sm:$0xff]   ;;  %v1789_v13 = vld [vmem:[%s2685_s0 + $0x30] ss:$20 sps:$4 sm:$0xff]  }
  0x1b   :  { %747 = vmatpush1.bf16.msra.mxu0 %v1719_v26  ;;  %v1807_v11 = vld [vmem:[%s2684_s1 + $0x224] ss:$8 sps:$4 sm:$0xff]   ;;  %v1788_v12 = vld [vmem:[%s2685_s0 + $0x28] ss:$20 sps:$4 sm:$0xff]   ;;  %v1818_v18 = vld [vmem:[%s2684_s1 + $0x210] ss:$8 sps:$4 sm:$0xff]  }
  0x1c   :  { %860 = vmatpush1.bf16.msra.mxu1 %v1720_v27  ;;  %748 = vmatprep.subr.bf16.mxu0 %v1721_v28  ;;  %v1793_v14 = vld [vmem:[%s2685_s0 + $0x54] ss:$20 sps:$4 sm:$0xff]   ;;  %v1795_v15 = vld [vmem:[%s2685_s0 + $0x5c] ss:$20 sps:$4 sm:$0xff]   ;;  %v1831_v19 = vld [vmem:[%s2684_s1 + $0x204] ss:$8 sps:$4 sm:$0xff]  }
  0x1d   :  { %861 = vmatprep.subr.bf16.mxu1 %v1723_v29  ;;  %v1805_v16 = vld [vmem:[%s2684_s1 + $0x220] ss:$8 sps:$4 sm:$0xff]   ;;  %v1820_v17 = vld [vmem:[%s2684_s1 + $0x214] ss:$8 sps:$4 sm:$0xff]   ;;  %v1797_v20 = vld [vmem:[%s2685_s0 + $0x50] ss:$20 sps:$4 sm:$0xff]  }
  0x1e   :  { %v1798_v21 = vld [vmem:[%s2685_s0 + $0x58] ss:$20 sps:$4 sm:$0xff]   ;;  %v1799_v22 = vld [vmem:[%s2685_s0 + $0x7c] ss:$20 sps:$4 sm:$0xff]   ;;  %v1829_v24 = vld [vmem:[%s2684_s1 + $0x200] ss:$8 sps:$4 sm:$0xff]  }
  0x1f   :  { %749 = vmatpush1.bf16.msra.mxu0 %v1725_v30  ;;  %v1801_v23 = vld [vmem:[%s2685_s0 + $0x84] ss:$20 sps:$4 sm:$0xff]   ;;  %v1804_v26 = vld [vmem:[%s2685_s0 + $0x80] ss:$20 sps:$4 sm:$0xff]   ;;  %v1813_v30 = vld [vmem:[%s2685_s0 + $0xa8] ss:$20 sps:$4 sm:$0xff]  }
  0x20   :  { %862 = vmatpush1.bf16.msra.mxu1 %v1726_v31  ;;  %750 = vmatprep.subr.bf16.mxu0 %v1727_v32  ;;  %v1803_v25 = vld [vmem:[%s2685_s0 + $0x78] ss:$20 sps:$4 sm:$0xff]   ;;  %v1812_v29 = vld [vmem:[%s2685_s0 + $0xa0] ss:$20 sps:$4 sm:$0xff]   ;;  %v1845_v51 = vld [vmem:[%s2685_s0 + $0x128] ss:$20 sps:$4 sm:$0xff]  }
  0x21   :  { %863 = vmatprep.subr.bf16.mxu1 %v1729_v33  ;;  %v1808_v27 = vld [vmem:[%s2685_s0 + $0xa4] ss:$20 sps:$4 sm:$0xff]   ;;  %v1810_v28 = vld [vmem:[%s2685_s0 + $0xac] ss:$20 sps:$4 sm:$0xff]   ;;  %v1816_v32 = vld [vmem:[%s2685_s0 + $0xd4] ss:$20 sps:$4 sm:$0xff]  }
  0x22   :  { %v1814_v31 = vld [vmem:[%s2685_s0 + $0xcc] ss:$20 sps:$4 sm:$0xff]   ;;  %v1821_v33 = vld [vmem:[%s2685_s0 + $0xc8] ss:$20 sps:$4 sm:$0xff]  }
  0x23   :  { %751 = vmatpush2.bf16.msra.mxu0 %v1731_v34  ;;  %v1822_v34 = vld [vmem:[%s2685_s0 + $0xd0] ss:$20 sps:$4 sm:$0xff]   ;;  %v1843_v49 = vld [vmem:[%s2685_s0 + $0x100] ss:$20 sps:$4 sm:$0xff]  }
  0x24   :  { %864 = vmatpush2.bf16.msra.mxu1 %v1732_v35  ;;  %752 = vmatprep.subr.bf16.mxu0 %v1733_v36  ;;  %v1823_v35 = vld [vmem:[%s2685_s0 + $0xf4] ss:$20 sps:$4 sm:$0xff]   ;;  %v1825_v36 = vld [vmem:[%s2685_s0 + $0xfc] ss:$20 sps:$4 sm:$0xff]  }
  0x25   :  { %865 = vmatprep.subr.bf16.mxu1 %v1735_v37  ;;  %v1827_v37 = vld [vmem:[%s2685_s0 + $0xf0] ss:$20 sps:$4 sm:$0xff]  }
  0x27   :  { %753 = vmatpush2.bf16.msra.mxu0 %v1737_v38  ;;  %v1828_v38 = vld [vmem:[%s2685_s0 + $0xf8] ss:$20 sps:$4 sm:$0xff]  }
  0x28   :  { %866 = vmatpush2.bf16.msra.mxu1 %v1738_v39  ;;  %754 = vmatprep.subr.bf16.mxu0 %v1739_v40  ;;  %v1832_v39 = vld [vmem:[%s2685_s0 + $0x11c] ss:$20 sps:$4 sm:$0xff]   ;;  %v1834_v40 = vld [vmem:[%s2685_s0 + $0x124] ss:$20 sps:$4 sm:$0xff]  }
  0x29   :  { %867 = vmatprep.subr.bf16.mxu1 %v1741_v41  ;;  %v1836_v41 = vld [vmem:[%s2685_s0 + $0x118] ss:$20 sps:$4 sm:$0xff]  }
  0x2b   :  { %755 = vmatpush2.bf16.msra.mxu0 %v1743_v42  ;;  %v1837_v42 = vld [vmem:[%s2685_s0 + $0x120] ss:$20 sps:$4 sm:$0xff]  }
  0x2c   :  { %868 = vmatpush2.bf16.msra.mxu1 %v1744_v43  ;;  %756 = vmatprep.subr.bf16.mxu0 %v1745_v44  ;;  %v1846_v43 = vmov 0   ;;  %v1838_v44 = vld [vmem:[%s2685_s0 + $0x10] ss:$20 sps:$4 sm:$0xff]  }
  0x2d   :  { %869 = vmatprep.subr.bf16.mxu1 %v1747_v45  ;;  %v1839_v45 = vld [vmem:[%s2685_s0 + $0xb0] ss:$20 sps:$4 sm:$0xff]  }
  0x2f   :  { %757 = vmatpush2.bf16.msra.mxu0 %v1749_v46  ;;  %v1840_v46 = vld [vmem:[%s2685_s0 + $0x38] ss:$20 sps:$4 sm:$0xff]  }
  0x30   :  { %870 = vmatpush2.bf16.msra.mxu1 %v1750_v47  ;;  %758 = vmatprep.subr.bf16.mxu0 %v1751_v48  ;;  %v1841_v47 = vld [vmem:[%s2685_s0 + $0xd8] ss:$20 sps:$4 sm:$0xff]   ;;  %v1842_v48 = vld [vmem:[%s2685_s0 + $0x60] ss:$20 sps:$4 sm:$0xff]  }
  0x31   :  { %871 = vmatprep.subr.bf16.mxu1 %v1753_v50  ;;  %v1844_v50 = vld [vmem:[%s2685_s0 + $0x88] ss:$20 sps:$4 sm:$0xff]   ;;  %s1847_s0 = smov 96  }
  0x33   :  { %759 = vmatpush2.bf16.msra.mxu0 %v1755_v52 }
  0x34   :  { %872 = vmatpush2.bf16.msra.mxu1 %v1756_v53  ;;  %760 = vmatprep.subr.bf16.mxu0 %v1757_v54 }
  0x35   :  { %873 = vmatprep.subr.bf16.mxu1 %v1759_v55 }
  0x37   :  { %761 = vmatpush2.bf16.msra.mxu0 %v1761_v56 }
  0x38   :  { %874 = vmatpush2.bf16.msra.mxu1 %v1762_v57  ;;  %762 = vmatprep.subr.bf16.mxu0 %v1763_v58 }
  0x39   :  { %875 = vmatprep.subr.bf16.mxu1 %v1765_v59 }
  0x3b   :  { %763 = vmatpush2.bf16.msra.mxu0 %v1767_v60 }
  0x3c   :  { %876 = vmatpush2.bf16.msra.mxu1 %v1768_v61  ;;  %764 = vmatprep.subr.bf16.mxu0 %v1769_v62 }
  0x3d   :  { %877 = vmatprep.subr.bf16.mxu1 %v1771_v63 }
  0x3f   :  { %765 = vmatpush2.bf16.msra.mxu0 %v1773_v0 }
  0x40   :  { %878 = vmatpush2.bf16.msra.mxu1 %v1774_v1  ;;  %1656 = vmatprep.subr.msk.bf16.mxu0 %vm727_vm0, %v1781_v2 }
  0x41   :  { %1665 = vmatprep.subr.msk.bf16.mxu1 %vm727_vm0, %v1781_v2 }
  0x42   :  { %767 = vmatmul.mubr.bf16.vlgmr.msra.gmra.mxu0 %v1775_v4 }
  0x43   :  { %880 = vmatmul.mubr.bf16.vlgmr.msra.gmra.mxu1 %v1778_v5  ;;  %967 = vmatpush1.bf16.msra.mxu0 %v729_v7 }
  0x44   :  { %1670 = vmatpush1.bf16.msra.mxu1 %v729_v7  ;;  %776 = vmatprep.mubr.bf16.mxu0 %v1784_v6 }
  0x45   :  { %889 = vmatprep.mubr.bf16.mxu1 %v1786_v8  ;;  %1666 = vmatprep.subr.bf16.mxu1 %v1792_v9 }
  0x46   :  { %968 = vmatprep.subr.bf16.mxu0 %v1792_v9 }
  0x47   :  { %969 = vmatpush1.bf16.msra.mxu0 %v1790_v10 }
  0x48   :  { %1671 = vmatpush1.bf16.msra.mxu1 %v1790_v10  ;;  %970 = vmatprep.subr.bf16.mxu0 %v1807_v11 }
  0x49   :  { %1667 = vmatprep.subr.bf16.mxu1 %v1807_v11 }
  0x4a   :  { %777 = vmatmul.mubr.bf16.gmra.mxu0 %v1788_v12 }
  0x4b   :  { %890 = vmatmul.mubr.bf16.gmra.mxu1 %v1789_v13  ;;  %786 = vmatprep.mubr.bf16.mxu0 %v1793_v14 }
  0x4c   :  { %899 = vmatprep.mubr.bf16.mxu1 %v1795_v15  ;;  %1672 = vmatpush1.bf16.msra.mxu1 %v1805_v16 }
  0x4d   :  { %971 = vmatpush1.bf16.msra.mxu0 %v1805_v16  ;;  %1668 = vmatprep.subr.bf16.mxu1 %v1820_v17 }
  0x4e   :  { %972 = vmatprep.subr.bf16.mxu0 %v1820_v17 }
  0x50   :  { %1673 = vmatpush1.bf16.msra.mxu1 %v1818_v18 }
  0x51   :  { %973 = vmatpush1.bf16.msra.mxu0 %v1818_v18  ;;  %1669 = vmatprep.subr.bf16.mxu1 %v1831_v19 }
  0x52   :  { %974 = vmatprep.subr.bf16.mxu0 %v1831_v19  ;;  %787 = vmatmul.mubr.bf16.gmra.mxu0 %v1797_v20 }
  0x53   :  { %900 = vmatmul.mubr.bf16.gmra.mxu1 %v1798_v21  ;;  %796 = vmatprep.mubr.bf16.mxu0 %v1799_v22 }
  0x54   :  { %909 = vmatprep.mubr.bf16.mxu1 %v1801_v23  ;;  %1674 = vmatpush1.bf16.msra.mxu1 %v1829_v24 }
  0x55   :  { %975 = vmatpush1.bf16.msra.mxu0 %v1829_v24 }
  0x5a   :  { %797 = vmatmul.mubr.bf16.gmra.mxu0 %v1803_v25 }
  0x5b   :  { %910 = vmatmul.mubr.bf16.gmra.mxu1 %v1804_v26  ;;  %806 = vmatprep.mubr.bf16.mxu0 %v1808_v27 }
  0x5c   :  { %919 = vmatprep.mubr.bf16.mxu1 %v1810_v28 }
  0x62   :  { %807 = vmatmul.mubr.bf16.gmra.mxu0 %v1812_v29 }
  0x63   :  { %920 = vmatmul.mubr.bf16.gmra.mxu1 %v1813_v30  ;;  %816 = vmatprep.mubr.bf16.mxu0 %v1814_v31 }
  0x64   :  { %929 = vmatprep.mubr.bf16.mxu1 %v1816_v32 }
  0x6a   :  { %817 = vmatmul.mubr.bf16.gmra.mxu0 %v1821_v33 }
  0x6b   :  { %930 = vmatmul.mubr.bf16.gmra.mxu1 %v1822_v34  ;;  %826 = vmatprep.mubr.bf16.mxu0 %v1823_v35 }
  0x6c   :  { %939 = vmatprep.mubr.bf16.mxu1 %v1825_v36 }
  0x72   :  { %827 = vmatmul.mubr.bf16.gmra.mxu0 %v1827_v37 }
  0x73   :  { %940 = vmatmul.mubr.bf16.gmra.mxu1 %v1828_v38  ;;  %836 = vmatprep.mubr.bf16.mxu0 %v1832_v39 }
  0x74   :  { %949 = vmatprep.mubr.bf16.mxu1 %v1834_v40 }
  0x7a   :  { %837 = vmatmul.mubr.bf16.gmra.mxu0 %v1836_v41 }
  0x7b   :  { %950 = vmatmul.mubr.bf16.gmra.mxu1 %v1837_v42  ;;  %992 = vmatprep.mubr.bf16.mxu0 %v1846_v43 }
  0x7c   :  { %1032 = vmatprep.mubr.bf16.mxu1 %v1846_v43 }
  0x82   :  { %1657 = vmatmul.mubr.msk.bf16.vlgmr.msra.gmra.mxu0 %vm702_vm1, %v1838_v44 }
  0x83   :  { %1661 = vmatmul.mubr.msk.bf16.vlgmr.msra.gmra.mxu1 %vm702_vm1, %v1839_v45  ;;  %1002 = vmatprep.mubr.bf16.mxu0 %v1846_v43 }
  0x84   :  { %1042 = vmatprep.mubr.bf16.mxu1 %v1846_v43 }
  0x8a   :  { %1658 = vmatmul.mubr.msk.bf16.gmra.mxu0 %vm702_vm1, %v1840_v46 }
  0x8b   :  { %1662 = vmatmul.mubr.msk.bf16.gmra.mxu1 %vm702_vm1, %v1841_v47  ;;  %1012 = vmatprep.mubr.bf16.mxu0 %v1846_v43 }
  0x8c   :  { %1052 = vmatprep.mubr.bf16.mxu1 %v1846_v43 }
  0x92   :  { %1659 = vmatmul.mubr.msk.bf16.gmra.mxu0 %vm702_vm1, %v1842_v48 }
  0x93   :  { %1663 = vmatmul.mubr.msk.bf16.gmra.mxu1 %vm702_vm1, %v1843_v49  ;;  %1022 = vmatprep.mubr.bf16.mxu0 %v1846_v43 }
  0x94   :  { %1062 = vmatprep.mubr.bf16.mxu1 %v1846_v43 }
  0x9a   :  { %1660 = vmatmul.mubr.msk.bf16.gmra.mxu0 %vm702_vm1, %v1844_v50 }
  0x9b   :  { %1664 = vmatmul.mubr.msk.bf16.gmra.mxu1 %vm702_vm1, %v1845_v51 }
 0x102   :  { %v2215_v52 = vpop.f32.mrf.mxu0 }
 0x103   :  { %v2217_v53 = vpop.f32.mrf.mxu1 }
 0x104   :  { %v770_v54 = vpop.f32.mrf.mxu0 }
 0x105   :  { %v883_v55 = vpop.f32.mrf.mxu1 }
 0x106   :  { %v2219_v56 = vadd.f32 %v883_v55, %v770_v54  ;;  %v772_v57 = vpop.f32.mrf.mxu0 }
 0x107   :  { %v885_v58 = vpop.f32.mrf.mxu1 }
 0x108   :  { %v2221_v59 = vadd.f32 %v885_v58, %v772_v57  ;;  %v774_v60 = vpop.f32.mrf.mxu0 }
 0x109   :  { %v887_v61 = vpop.f32.mrf.mxu1 }
 0x10a   :  { %v2223_v62 = vadd.f32 %v887_v61, %v774_v60  ;;  %v778_v63 = vpop.f32.mrf.mxu0 }
 0x10b   :  { %v891_v0 = vpop.f32.mrf.mxu1 }
 0x10c   :  { %v2225_v1 = vadd.f32 %v891_v0, %v778_v63  ;;  %v780_v2 = vpop.f32.mrf.mxu0 }
 0x10d   :  { %v893_v3 = vpop.f32.mrf.mxu1 }
 0x10e   :  { %v2227_v4 = vadd.f32 %v893_v3, %v780_v2  ;;  %v782_v5 = vpop.f32.mrf.mxu0 }
 0x10f   :  { %v895_v6 = vpop.f32.mrf.mxu1 }
 0x110   :  { %v2229_v7 = vadd.f32 %v895_v6, %v782_v5  ;;  %v784_v8 = vpop.f32.mrf.mxu0 }
 0x111   :  { %v897_v9 = vpop.f32.mrf.mxu1 }
 0x112   :  { %v2231_v10 = vadd.f32 %v897_v9, %v784_v8  ;;  %v788_v11 = vpop.f32.mrf.mxu0 }
 0x113   :  { %v901_v12 = vpop.f32.mrf.mxu1 }
 0x114   :  { %v2233_v13 = vadd.f32 %v901_v12, %v788_v11  ;;  %v790_v14 = vpop.f32.mrf.mxu0 }
 0x115   :  { %v903_v15 = vpop.f32.mrf.mxu1 }
 0x116   :  { %v2235_v16 = vadd.f32 %v903_v15, %v790_v14  ;;  %v792_v17 = vpop.f32.mrf.mxu0 }
 0x117   :  { %v905_v18 = vpop.f32.mrf.mxu1 }
 0x118   :  { %v2237_v19 = vadd.f32 %v905_v18, %v792_v17  ;;  %v794_v20 = vpop.f32.mrf.mxu0 }
 0x119   :  { %v907_v21 = vpop.f32.mrf.mxu1 }
 0x11a   :  { %v2239_v22 = vadd.f32 %v907_v21, %v794_v20  ;;  %v798_v23 = vpop.f32.mrf.mxu0 }
 0x11b   :  { %v911_v24 = vpop.f32.mrf.mxu1 }
 0x11c   :  { %v2241_v25 = vadd.f32 %v911_v24, %v798_v23  ;;  %v800_v26 = vpop.f32.mrf.mxu0 }
 0x11d   :  { %v913_v27 = vpop.f32.mrf.mxu1 }
 0x11e   :  { %v2243_v28 = vadd.f32 %v913_v27, %v800_v26  ;;  %v802_v29 = vpop.f32.mrf.mxu0 }
 0x11f   :  { %v915_v30 = vpop.f32.mrf.mxu1 }
 0x120   :  { %v2245_v31 = vadd.f32 %v915_v30, %v802_v29  ;;  %v804_v32 = vpop.f32.mrf.mxu0  ;;  %v882_v29 = vadd.f32 %v2217_v53, %v2215_v52 }
 0x121   :  { %v917_v33 = vpop.f32.mrf.mxu1 }
 0x122   :  { %v2247_v34 = vadd.f32 %v917_v33, %v804_v32  ;;  %v808_v35 = vpop.f32.mrf.mxu0 }
 0x123   :  { %v921_v36 = vpop.f32.mrf.mxu1 }
 0x124   :  { %v2249_v37 = vpop.f32.mrf.mxu0 }
 0x125   :  { %v2251_v38 = vpop.f32.mrf.mxu1 }
 0x126   :  { %v812_v39 = vpop.f32.mrf.mxu0 }
 0x127   :  { %v925_v40 = vpop.f32.mrf.mxu1 }
 0x128   :  { %v2253_v41 = vpop.f32.mrf.mxu0 }
 0x129   :  { %v2255_v42 = vpop.f32.mrf.mxu1 }
 0x12a   :  { %v818_v43 = vpop.f32.mrf.mxu0 }
 0x12b   :  { %v931_v44 = vpop.f32.mrf.mxu1 }
 0x12c   :  { %v2257_v45 = vadd.f32 %v931_v44, %v818_v43  ;;  %v820_v46 = vpop.f32.mrf.mxu0 }
 0x12d   :  { %v933_v47 = vpop.f32.mrf.mxu1 }
 0x12e   :  { %v2259_v48 = vadd.f32 %v933_v47, %v820_v46  ;;  %v822_v49 = vpop.f32.mrf.mxu0  ;;  %v922_v47 = vadd.f32 %v921_v36, %v808_v35 }
 0x12f   :  { %v935_v50 = vpop.f32.mrf.mxu1 }
 0x130   :  { %v2261_v51 = vadd.f32 %v935_v50, %v822_v49  ;;  %v824_v54 = vpop.f32.mrf.mxu0  ;;  %v926_v49 = vadd.f32 %v925_v40, %v812_v39  ;;  %v924_v40 = vadd.f32 %v2251_v38, %v2249_v37 }
 0x131   :  { %v937_v55 = vpop.f32.mrf.mxu1 }
 0x132   :  { %v2263_v57 = vadd.f32 %v937_v55, %v824_v54  ;;  %v828_v58 = vpop.f32.mrf.mxu0 }
 0x133   :  { %v941_v60 = vpop.f32.mrf.mxu1 }
 0x134   :  { %v2265_v61 = vadd.f32 %v941_v60, %v828_v58  ;;  %v830_v63 = vpop.f32.mrf.mxu0  ;;  %v928_v58 = vadd.f32 %v2255_v42, %v2253_v41 }
 0x135   :  { %v943_v0 = vpop.f32.mrf.mxu1 }
 0x136   :  { %v2267_v2 = vadd.f32 %v943_v0, %v830_v63  ;;  %v832_v3 = vpop.f32.mrf.mxu0 }
 0x137   :  { %v945_v5 = vpop.f32.mrf.mxu1 }
 0x138   :  { %v2269_v6 = vadd.f32 %v945_v5, %v832_v3  ;;  %v834_v8 = vpop.f32.mrf.mxu0 }
 0x139   :  { %v947_v9 = vpop.f32.mrf.mxu1 }
 0x13a   :  { %v2271_v11 = vadd.f32 %v947_v9, %v834_v8  ;;  %v838_v12 = vpop.f32.mrf.mxu0 }
 0x13b   :  { %v951_v14 = vpop.f32.mrf.mxu1 }
 0x13c   :  { %v2273_v15 = vadd.f32 %v951_v14, %v838_v12  ;;  %v840_v17 = vpop.f32.mrf.mxu0 }
 0x13d   :  { %v953_v18 = vpop.f32.mrf.mxu1 }
 0x13e   :  { %v2275_v20 = vadd.f32 %v953_v18, %v840_v17  ;;  %v842_v21 = vpop.f32.mrf.mxu0 }
 0x13f   :  { %v955_v23 = vpop.f32.mrf.mxu1 }
 0x140   :  { %v2277_v24 = vadd.f32 %v955_v23, %v842_v21  ;;  %v844_v26 = vpop.f32.mrf.mxu0 }
 0x141   :  { %v957_v27 = vpop.f32.mrf.mxu1 }
 0x142   :  { %v2281_v30 = vadd.f32 %v957_v27, %v844_v26  ;;  %v994_v32 = vpop.f32.mrf.mxu0 }
 0x143   :  { %v1034_v33 = vpop.f32.mrf.mxu1  ;;  %v2283_v43 = vadd.f32 %v994_v32, %v882_v29 }
 0x144   :  { %v996_v44 = vpop.f32.mrf.mxu0  ;;  %v2287_v54 = vadd.f32 %v1034_v33, %v922_v47 }
 0x145   :  { %v1036_v46 = vpop.f32.mrf.mxu1  ;;  %1089 = vrot.lane.b32.xlu0 %v2283_v43, %s1847_s0  ;;  %v2315_v35 = vadd.f32 %v996_v44, %v2219_v56 }
 0x146   :  { %v998_v52 = vpop.f32.mrf.mxu0  ;;  %v2328_v60 = vadd.f32 %v1036_v46, %v924_v40 }
 0x147   :  { %v1038_v50 = vpop.f32.mrf.mxu1  ;;  %v2296_v53 = vadd.f32 %v998_v52, %v2221_v59 }
 0x148   :  { %v2289_v55 = vadd.f32 %v1038_v50, %v926_v49  ;;  %v1000_v59 = vpop.f32.mrf.mxu0 }
 0x149   :  { %1105 = vrot.lane.b32.xlu0 %v2287_v54, %s1847_s0  ;;  %v2318_v36 = vadd.f32 %v1000_v59, %v2223_v62  ;;  %v1040_v39 = vpop.f32.mrf.mxu1 }
 0x14a   :  { %1107 = vrot.lane.b32.xlu1 %v2289_v55, %s1847_s0  ;;  %v2330_v56 = vadd.f32 %v1040_v39, %v928_v58  ;;  %v1004_v62 = vpop.f32.mrf.mxu0 }
 0x14b   :  { %v1044_v37 = vpop.f32.mrf.mxu1  ;;  %v2353_v41 = vadd.f32 %v1004_v62, %v2225_v1 }
 0x14c   :  { %v1006_v38 = vpop.f32.mrf.mxu0  ;;  %v2360_v0 = vadd.f32 %v1044_v37, %v2257_v45 }
 0x14d   :  { %1153 = vrot.lane.b32.xlu0 %v2283_v43, %s1848_s11  ;;  %v1046_v42 = vpop.f32.mrf.mxu1 }
 0x14e   :  { %1155 = vrot.lane.b32.xlu1 %v2296_v53, %s1848_s11  ;;  %v1008_v63 = vpop.f32.mrf.mxu0 }
 0x14f   :  { %v2363_v3 = vadd.f32 %v1008_v63, %v2229_v7  ;;  %v1048_v5 = vpop.f32.mrf.mxu1  ;;  %v2389_v7 = vadd.f32 %v1006_v38, %v2227_v4 }
 0x150   :  { %v2370_v1 = vadd.f32 %v1048_v5, %v2261_v51  ;;  %v1010_v45 = vpop.f32.mrf.mxu0  ;;  %v2396_v51 = vadd.f32 %v1046_v42, %v2259_v48 }
 0x151   :  { %1169 = vrot.lane.b32.xlu0 %v2287_v54, %s1848_s11  ;;  %v2399_v8 = vadd.f32 %v1010_v45, %v2231_v10  ;;  %v1050_v9 = vpop.f32.mrf.mxu1 }
 0x152   :  { %1171 = vrot.lane.b32.xlu1 %v2289_v55, %s1848_s11  ;;  %v2406_v4 = vadd.f32 %v1050_v9, %v2263_v57  ;;  %v1014_v10 = vpop.f32.mrf.mxu0 }
 0x153   :  { %v1054_v48 = vpop.f32.mrf.mxu1  ;;  %v2425_v12 = vadd.f32 %v1014_v10, %v2233_v13 }
 0x154   :  { %v1016_v57 = vpop.f32.mrf.mxu0  ;;  %v2432_v18 = vadd.f32 %v1054_v48, %v2265_v61 }
 0x155   :  { %1217 = vrot.lane.b32.xlu0 %v2283_v43, %s1849_s12  ;;  %v1056_v14 = vpop.f32.mrf.mxu1  ;;  %v2461_v61 = vadd.f32 %v1016_v57, %v2235_v16 }
 0x156   :  { %1219 = vrot.lane.b32.xlu1 %v2296_v53, %s1849_s12  ;;  %v1018_v17 = vpop.f32.mrf.mxu0  ;;  %v2468_v29 = vadd.f32 %v1056_v14, %v2267_v2 }
 0x157   :  { %v2435_v21 = vadd.f32 %v1018_v17, %v2237_v19  ;;  %v1058_v23 = vpop.f32.mrf.mxu1 }
 0x158   :  { %v2442_v13 = vadd.f32 %v1058_v23, %v2269_v6  ;;  %v1020_v27 = vpop.f32.mrf.mxu0 }
 0x159   :  { %1233 = vrot.lane.b32.xlu0 %v2287_v54, %s1849_s12  ;;  %v2471_v32 = vadd.f32 %v1020_v27, %v2239_v22  ;;  %v1060_v16 = vpop.f32.mrf.mxu1 }
 0x15a   :  { %1235 = vrot.lane.b32.xlu1 %v2289_v55, %s1849_s12  ;;  %v2480_v46 = vadd.f32 %v1060_v16, %v2271_v11  ;;  %v1024_v52 = vpop.f32.mrf.mxu0 }
 0x15b   :  { %v1064_v40 = vpop.f32.mrf.mxu1  ;;  %v2506_v37 = vadd.f32 %v1024_v52, %v2241_v25 }
 0x15c   :  { %v2498_v58 = vpop.f32.mrf.mxu0  ;;  %v2517_v25 = vadd.f32 %v1064_v40, %v2273_v15 }
 0x15d   :  { %1313 = vrot.lane.b32.xlu0 %v2315_v35, %s1847_s0  ;;  %v2508_v63 = vpop.f32.mrf.mxu1 }
 0x15e   :  { %1315 = vrot.lane.b32.xlu1 %v2318_v36, %s1847_s0  ;;  %v1028_v5 = vpop.f32.mrf.mxu0 }
 0x15f   :  { %v2520_v48 = vadd.f32 %v1028_v5, %v2245_v31  ;;  %v1068_v17 = vpop.f32.mrf.mxu1 }
 0x161   :  { %1329 = vrot.lane.b32.xlu0 %v2328_v60, %s1847_s0 }
 0x162   :  { %1331 = vrot.lane.b32.xlu1 %v2330_v56, %s1847_s0 }
 0x165   :  { %1377 = vrot.lane.b32.xlu0 %v2315_v35, %s1848_s11 }
 0x166   :  { %1379 = vrot.lane.b32.xlu1 %v2318_v36, %s1848_s11 }
 0x169   :  { %1393 = vrot.lane.b32.xlu0 %v2328_v60, %s1848_s11 }
 0x16a   :  { %1395 = vrot.lane.b32.xlu1 %v2330_v56, %s1848_s11 }
 0x16d   :  { %1441 = vrot.lane.b32.xlu0 %v2315_v35, %s1849_s12 }
 0x16e   :  { %1443 = vrot.lane.b32.xlu1 %v2318_v36, %s1849_s12 }
 0x171   :  { %1457 = vrot.lane.b32.xlu0 %v2328_v60, %s1849_s12 }
 0x172   :  { %1459 = vrot.lane.b32.xlu1 %v2330_v56, %s1849_s12 }
 0x175   :  { %1091 = vrot.lane.b32.xlu0 %v2296_v53, %s1847_s0 }
 0x176   :  { %1093 = vrot.lane.b32.xlu1 %v2353_v41, %s1847_s0 }
 0x179   :  { %1109 = vrot.lane.b32.xlu0 %v2360_v0, %s1847_s0 }
 0x17a   :  { %1095 = vrot.lane.b32.xlu1 %v2363_v3, %s1847_s0 }
 0x17d   :  { %1157 = vrot.lane.b32.xlu0 %v2353_v41, %s1848_s11 }
 0x17e   :  { %1111 = vrot.lane.b32.xlu1 %v2370_v1, %s1847_s0 }
 0x181   :  { %1173 = vrot.lane.b32.xlu0 %v2360_v0, %s1848_s11 }
 0x182   :  { %1159 = vrot.lane.b32.xlu1 %v2363_v3, %s1848_s11 }
 0x185   :  { %1221 = vrot.lane.b32.xlu0 %v2353_v41, %s1849_s12 }
 0x186   :  { %1175 = vrot.lane.b32.xlu1 %v2370_v1, %s1848_s11 }
 0x189   :  { %1237 = vrot.lane.b32.xlu0 %v2360_v0, %s1849_s12 }
 0x18a   :  { %1223 = vrot.lane.b32.xlu1 %v2363_v3, %s1849_s12 }
 0x18d   :  { %1317 = vrot.lane.b32.xlu0 %v2389_v7, %s1847_s0 }
 0x18e   :  { %1239 = vrot.lane.b32.xlu1 %v2370_v1, %s1849_s12 }
 0x191   :  { %1333 = vrot.lane.b32.xlu0 %v2396_v51, %s1847_s0 }
 0x192   :  { %1319 = vrot.lane.b32.xlu1 %v2399_v8, %s1847_s0 }
 0x195   :  { %1381 = vrot.lane.b32.xlu0 %v2389_v7, %s1848_s11 }
 0x196   :  { %1335 = vrot.lane.b32.xlu1 %v2406_v4, %s1847_s0 }
 0x199   :  { %1397 = vrot.lane.b32.xlu0 %v2396_v51, %s1848_s11 }
 0x19a   :  { %1383 = vrot.lane.b32.xlu1 %v2399_v8, %s1848_s11 }
 0x19d   :  { %1445 = vrot.lane.b32.xlu0 %v2389_v7, %s1849_s12 }
 0x19e   :  { %1399 = vrot.lane.b32.xlu1 %v2406_v4, %s1848_s11 }
 0x1a1   :  { %1461 = vrot.lane.b32.xlu0 %v2396_v51, %s1849_s12 }
 0x1a2   :  { %1447 = vrot.lane.b32.xlu1 %v2399_v8, %s1849_s12 }
 0x1a5   :  { %1097 = vrot.lane.b32.xlu0 %v2425_v12, %s1847_s0 }
 0x1a6   :  { %1463 = vrot.lane.b32.xlu1 %v2406_v4, %s1849_s12 }
 0x1a9   :  { %1113 = vrot.lane.b32.xlu0 %v2432_v18, %s1847_s0 }
 0x1aa   :  { %1099 = vrot.lane.b32.xlu1 %v2435_v21, %s1847_s0 }
 0x1ad   :  { %1161 = vrot.lane.b32.xlu0 %v2425_v12, %s1848_s11 }
 0x1ae   :  { %1115 = vrot.lane.b32.xlu1 %v2442_v13, %s1847_s0 }
 0x1b1   :  { %1177 = vrot.lane.b32.xlu0 %v2432_v18, %s1848_s11 }
 0x1b2   :  { %1163 = vrot.lane.b32.xlu1 %v2435_v21, %s1848_s11 }
 0x1b5   :  { %1225 = vrot.lane.b32.xlu0 %v2425_v12, %s1849_s12 }
 0x1b6   :  { %1179 = vrot.lane.b32.xlu1 %v2442_v13, %s1848_s11 }
 0x1b7   :  { %v1090_v19 = vpop.permute.xlu0 %1089 }
 0x1b8   :  { %v1137_v62 = vmax.f32 %v2283_v43, %v1090_v19 }
 0x1b9   :  { %1241 = vrot.lane.b32.xlu0 %v2432_v18, %s1849_s12 }
 0x1ba   :  { %1227 = vrot.lane.b32.xlu1 %v2435_v21, %s1849_s12 }
 0x1bb   :  { %v1106_v26 = vpop.permute.xlu0 %1105 }
 0x1bc   :  { %v1108_v6 = vpop.permute.xlu1 %1107  ;;  %v1145_v10 = vmax.f32 %v2287_v54, %v1106_v26 }
 0x1bd   :  { %1321 = vrot.lane.b32.xlu0 %v2461_v61, %s1847_s0  ;;  %v1146_v9 = vmax.f32 %v2289_v55, %v1108_v6  ;;  %v2530_v6 = vadd.f32 %v1068_v17, %v2277_v24 }
 0x1be   :  { %1243 = vrot.lane.b32.xlu1 %v2442_v13, %s1849_s12 }
 0x1bf   :  { %v1154_v44 = vpop.permute.xlu0 %1153 }
 0x1c0   :  { %v2473_v33 = vpop.permute.xlu1 %1155  ;;  %v1201_v45 = vmax.f32 %v1137_v62, %v1154_v44 }
 0x1c1   :  { %1337 = vrot.lane.b32.xlu0 %v2468_v29, %s1847_s0 }
 0x1c2   :  { %1323 = vrot.lane.b32.xlu1 %v2471_v32, %s1847_s0 }
 0x1c3   :  { %v1170_v49 = vpop.permute.xlu0 %1169 }
 0x1c4   :  { %v1172_v47 = vpop.permute.xlu1 %1171  ;;  %v1209_v19 = vmax.f32 %v1145_v10, %v1170_v49 }
 0x1c5   :  { %1385 = vrot.lane.b32.xlu0 %v2461_v61, %s1848_s11  ;;  %v1210_v23 = vmax.f32 %v1146_v9, %v1172_v47 }
 0x1c6   :  { %1339 = vrot.lane.b32.xlu1 %v2480_v46, %s1847_s0 }
 0x1c7   :  { %v1218_v2 = vpop.permute.xlu0 %1217 }
 0x1c8   :  { %v2486_v22 = vpop.permute.xlu1 %1219  ;;  %v1265_v43 = vmax.f32 %v1201_v45, %v1218_v2 }
 0x1c9   :  { %1401 = vrot.lane.b32.xlu0 %v2468_v29, %s1848_s11 }
 0x1ca   :  { %1387 = vrot.lane.b32.xlu1 %v2471_v32, %s1848_s11  ;;  %v1281_v15 = vmax.f32 %v1265_v43, %v2315_v35  ;;  %v2566_v43 = vadd.f32 %v2498_v58, %v2243_v28 }
 0x1cb   :  { %v1234_v11 = vpop.permute.xlu0 %1233 }
 0x1cc   :  { %v1236_v50 = vpop.permute.xlu1 %1235  ;;  %v1273_v55 = vmax.f32 %v1209_v19, %v1234_v11 }
 0x1cd   :  { %1449 = vrot.lane.b32.xlu0 %v2461_v61, %s1849_s12  ;;  %v1274_v54 = vmax.f32 %v1210_v23, %v1236_v50  ;;  %v1030_v23 = vpop.f32.mrf.mxu0 }
 0x1ce   :  { %1403 = vrot.lane.b32.xlu1 %v2480_v46, %s1848_s11  ;;  %v1289_v16 = vmax.f32 %v1273_v55, %v2328_v60  ;;  %v2579_v28 = vadd.f32 %v1030_v23, %v2247_v34  ;;  %v1070_v55 = vpop.f32.mrf.mxu1 }
 0x1cf   :  { %v1314_v39 = vpop.permute.xlu0 %1313  ;;  %v1290_v44 = vmax.f32 %v1274_v54, %v2330_v56 }
 0x1d0   :  { %v2496_v59 = vpop.permute.xlu1 %1315  ;;  %v1361_v27 = vmax.f32 %v1281_v15, %v1314_v39  ;;  %v2588_v15 = vadd.f32 %v1070_v55, %v2281_v30 }
 0x1d1   :  { %1465 = vrot.lane.b32.xlu0 %v2468_v29, %s1849_s12 }
 0x1d2   :  { %1451 = vrot.lane.b32.xlu1 %v2471_v32, %s1849_s12 }
 0x1d3   :  { %v1330_v42 = vpop.permute.xlu0 %1329 }
 0x1d4   :  { %v1332_v38 = vpop.permute.xlu1 %1331  ;;  %v1369_v50 = vmax.f32 %v1289_v16, %v1330_v42 }
 0x1d5   :  { %1101 = vrot.lane.b32.xlu0 %v2506_v37, %s1847_s0  ;;  %v1370_v35 = vmax.f32 %v1290_v44, %v1332_v38 }
 0x1d6   :  { %1467 = vrot.lane.b32.xlu1 %v2480_v46, %s1849_s12 }
 0x1d7   :  { %v1378_v14 = vpop.permute.xlu0 %1377 }
 0x1d8   :  { %v2522_v57 = vpop.permute.xlu1 %1379  ;;  %v1425_v47 = vmax.f32 %v1361_v27, %v1378_v14 }
 0x1d9   :  { %1117 = vrot.lane.b32.xlu0 %v2517_v25, %s1847_s0 }
 0x1da   :  { %1103 = vrot.lane.b32.xlu1 %v2520_v48, %s1847_s0 }
 0x1db   :  { %v1394_v26 = vpop.permute.xlu0 %1393 }
 0x1dc   :  { %v1396_v31 = vpop.permute.xlu1 %1395  ;;  %v1433_v52 = vmax.f32 %v1369_v50, %v1394_v26 }
 0x1dd   :  { %1165 = vrot.lane.b32.xlu0 %v2506_v37, %s1848_s11  ;;  %v1434_v11 = vmax.f32 %v1370_v35, %v1396_v31 }
 0x1de   :  { %1119 = vrot.lane.b32.xlu1 %v2530_v6, %s1847_s0 }
 0x1df   :  { %v1442_v2 = vpop.permute.xlu0 %1441 }
 0x1e0   :  { %v1444_v49 = vpop.permute.xlu1 %1443  ;;  %v1489_v24 = vmax.f32 %v1425_v47, %v1442_v2 }
 0x1e1   :  { %1181 = vrot.lane.b32.xlu0 %v2517_v25, %s1848_s11 }
 0x1e2   :  { %1167 = vrot.lane.b32.xlu1 %v2520_v48, %s1848_s11  ;;  %v1505_v39 = vand.u32 2147483647, %v1489_v24 }
 0x1e3   :  { %v1458_v56 = vpop.permute.xlu0 %1457 }
 0x1e4   :  { %v1460_v40 = vpop.permute.xlu1 %1459  ;;  %1522 = vst.msk [vmem:[%s2686_s2] sm:$0xff] %vm1521_vm2, %v1505_v39  ;;  %v1497_v62 = vmax.f32 %v1433_v52, %v1458_v56 }
 0x1e5   :  { %v1498_v60 = vmax.f32 %v1434_v11, %v1460_v40  ;;  %1229 = vrot.lane.b32.xlu0 %v2506_v37, %s1849_s12 }
 0x1e6   :  { %1183 = vrot.lane.b32.xlu1 %v2530_v6, %s1848_s11  ;;  %v1513_v42 = vand.u32 2147483647, %v1497_v62 }
 0x1e7   :  { %v1514_v38 = vand.u32 2147483647, %v1498_v60  ;;  %v1092_v45 = vpop.permute.xlu0 %1091 }
 0x1e8   :  { %v1094_v5 = vpop.permute.xlu1 %1093  ;;  %1530 = vst.msk [vmem:[%s2686_s2 + $0x40] sm:$0xff] %vm1521_vm2, %v1513_v42  ;;  %v1138_v9 = vmax.f32 %v2296_v53, %v1092_v45 }
 0x1e9   :  { %1531 = vst.msk [vmem:[%s2686_s2 + $0x48] sm:$0xff] %vm1521_vm2, %v1514_v38  ;;  %1245 = vrot.lane.b32.xlu0 %v2517_v25, %s1849_s12  ;;  %v1139_v16 = vmax.f32 %v2353_v41, %v1094_v5 }
 0x1ea   :  { %1231 = vrot.lane.b32.xlu1 %v2520_v48, %s1849_s12  ;;  %v1202_v10 = vmax.f32 %v1138_v9, %v2473_v33  ;;  %v2576_v33 = vadd.f32 %v2508_v63, %v2275_v20 }
 0x1eb   :  { %v1110_v17 = vpop.permute.xlu0 %1109 }
 0x1ec   :  { %v1096_v14 = vpop.permute.xlu1 %1095  ;;  %v1266_v19 = vmax.f32 %v1202_v10, %v2486_v22  ;;  %v1147_v50 = vmax.f32 %v2360_v0, %v1110_v17 }
 0x1ed   :  { %1325 = vrot.lane.b32.xlu0 %v2566_v43, %s1847_s0  ;;  %v1140_v35 = vmax.f32 %v2363_v3, %v1096_v14 }
 0x1ee   :  { %1247 = vrot.lane.b32.xlu1 %v2530_v6, %s1849_s12  ;;  %v1282_v53 = vmax.f32 %v1266_v19, %v2318_v36 }
 0x1ef   :  { %v1158_v54 = vpop.permute.xlu0 %1157 }
 0x1f0   :  { %v1112_v58 = vpop.permute.xlu1 %1111  ;;  %v1362_v22 = vmax.f32 %v1282_v53, %v2496_v59  ;;  %v1203_v2 = vmax.f32 %v1139_v16, %v1158_v54 }
 0x1f1   :  { %1341 = vrot.lane.b32.xlu0 %v2576_v33, %s1847_s0  ;;  %v1148_v56 = vmax.f32 %v2370_v1, %v1112_v58 }
 0x1f2   :  { %1327 = vrot.lane.b32.xlu1 %v2579_v28, %s1847_s0  ;;  %v1426_v36 = vmax.f32 %v1362_v22, %v2522_v57 }
 0x1f3   :  { %v1174_v63 = vpop.permute.xlu0 %1173 }
 0x1f4   :  { %v1160_v20 = vpop.permute.xlu1 %1159  ;;  %v1490_v34 = vmax.f32 %v1426_v36, %v1444_v49  ;;  %v1211_v40 = vmax.f32 %v1147_v50, %v1174_v63 }
 0x1f5   :  { %1389 = vrot.lane.b32.xlu0 %v2566_v43, %s1848_s11  ;;  %v1204_v39 = vmax.f32 %v1140_v35, %v1160_v20 }
 0x1f6   :  { %1343 = vrot.lane.b32.xlu1 %v2588_v15, %s1847_s0  ;;  %v1506_v59 = vand.u32 2147483647, %v1490_v34 }
 0x1f7   :  { %v1222_v26 = vpop.permute.xlu0 %1221 }
 0x1f8   :  { %v1176_v31 = vpop.permute.xlu1 %1175  ;;  %1523 = vst.msk [vmem:[%s2686_s2 + $0x8] sm:$0xff] %vm1521_vm2, %v1506_v59  ;;  %v1267_v24 = vmax.f32 %v1203_v2, %v1222_v26 }
 0x1f9   :  { %1405 = vrot.lane.b32.xlu0 %v2576_v33, %s1848_s11  ;;  %v1212_v5 = vmax.f32 %v1148_v56, %v1176_v31 }
 0x1fa   :  { %1391 = vrot.lane.b32.xlu1 %v2579_v28, %s1848_s11  ;;  %v1283_v41 = vmax.f32 %v1267_v24, %v2389_v7 }
 0x1fb   :  { %v1238_v57 = vpop.permute.xlu0 %1237 }
 0x1fc   :  { %v1224_v30 = vpop.permute.xlu1 %1223  ;;  %v1275_v62 = vmax.f32 %v1211_v40, %v1238_v57 }
 0x1fd   :  { %1453 = vrot.lane.b32.xlu0 %v2566_v43, %s1849_s12  ;;  %v1268_v60 = vmax.f32 %v1204_v39, %v1224_v30 }
 0x1fe   :  { %1407 = vrot.lane.b32.xlu1 %v2588_v15, %s1848_s11  ;;  %v1291_v0 = vmax.f32 %v1275_v62, %v2396_v51 }
 0x1ff   :  { %v1318_v44 = vpop.permute.xlu0 %1317  ;;  %v1284_v3 = vmax.f32 %v1268_v60, %v2399_v8 }
 0x200   :  { %v1240_v27 = vpop.permute.xlu1 %1239  ;;  %v1363_v45 = vmax.f32 %v1283_v41, %v1318_v44 }
 0x201   :  { %1469 = vrot.lane.b32.xlu0 %v2576_v33, %s1849_s12  ;;  %v1276_v9 = vmax.f32 %v1212_v5, %v1240_v27 }
 0x202   :  { %1455 = vrot.lane.b32.xlu1 %v2579_v28, %s1849_s12 }
 0x203   :  { %v1334_v49 = vpop.permute.xlu0 %1333  ;;  %v1292_v1 = vmax.f32 %v1276_v9, %v2406_v4 }
 0x204   :  { %v1320_v47 = vpop.permute.xlu1 %1319  ;;  %v1371_v19 = vmax.f32 %v1291_v0, %v1334_v49 }
 0x205   :  { %v1364_v23 = vmax.f32 %v1284_v3, %v1320_v47 }
 0x206   :  { %1471 = vrot.lane.b32.xlu1 %v2588_v15, %s1849_s12 }
 0x207   :  { %v1382_v52 = vpop.permute.xlu0 %1381 }
 0x208   :  { %v1336_v11 = vpop.permute.xlu1 %1335  ;;  %v1427_v10 = vmax.f32 %v1363_v45, %v1382_v52 }
 0x209   :  { %v1372_v36 = vmax.f32 %v1292_v1, %v1336_v11 }
 0x20b   :  { %v1398_v42 = vpop.permute.xlu0 %1397 }
 0x20c   :  { %v1384_v38 = vpop.permute.xlu1 %1383  ;;  %v1435_v54 = vmax.f32 %v1371_v19, %v1398_v42 }
 0x20d   :  { %v1428_v58 = vmax.f32 %v1364_v23, %v1384_v38 }
 0x20f   :  { %v1446_v17 = vpop.permute.xlu0 %1445 }
 0x210   :  { %v1400_v14 = vpop.permute.xlu1 %1399  ;;  %v1491_v53 = vmax.f32 %v1427_v10, %v1446_v17 }
 0x211   :  { %v1436_v20 = vmax.f32 %v1372_v36, %v1400_v14 }
 0x212   :  { %v1507_v7 = vand.u32 2147483647, %v1491_v53 }
 0x213   :  { %v1462_v22 = vpop.permute.xlu0 %1461 }
 0x214   :  { %v1448_v55 = vpop.permute.xlu1 %1447  ;;  %1524 = vst.msk [vmem:[%s2686_s2 + $0x10] sm:$0xff] %vm1521_vm2, %v1507_v7  ;;  %v1499_v8 = vmax.f32 %v1435_v54, %v1462_v22 }
 0x215   :  { %v1492_v51 = vmax.f32 %v1428_v58, %v1448_v55 }
 0x216   :  { %v1515_v34 = vand.u32 2147483647, %v1499_v8 }
 0x217   :  { %v1508_v63 = vand.u32 2147483647, %v1492_v51  ;;  %v1098_v31 = vpop.permute.xlu0 %1097 }
 0x218   :  { %v1464_v59 = vpop.permute.xlu1 %1463  ;;  %1532 = vst.msk [vmem:[%s2686_s2 + $0x50] sm:$0xff] %vm1521_vm2, %v1515_v34  ;;  %v1141_v52 = vmax.f32 %v2425_v12, %v1098_v31 }
 0x219   :  { %1525 = vst.msk [vmem:[%s2686_s2 + $0x18] sm:$0xff] %vm1521_vm2, %v1508_v63  ;;  %v1500_v4 = vmax.f32 %v1436_v20, %v1464_v59 }
 0x21b   :  { %v1516_v26 = vand.u32 2147483647, %v1500_v4  ;;  %v1114_v57 = vpop.permute.xlu0 %1113 }
 0x21c   :  { %v1100_v30 = vpop.permute.xlu1 %1099  ;;  %v1149_v62 = vmax.f32 %v2432_v18, %v1114_v57 }
 0x21d   :  { %1533 = vst.msk [vmem:[%s2686_s2 + $0x58] sm:$0xff] %vm1521_vm2, %v1516_v26  ;;  %v1142_v60 = vmax.f32 %v2435_v21, %v1100_v30 }
 0x21f   :  { %v1162_v44 = vpop.permute.xlu0 %1161 }
 0x220   :  { %v1116_v27 = vpop.permute.xlu1 %1115  ;;  %v1205_v56 = vmax.f32 %v1141_v52, %v1162_v44 }
 0x221   :  { %v1150_v9 = vmax.f32 %v2442_v13, %v1116_v27 }
 0x223   :  { %v1178_v47 = vpop.permute.xlu0 %1177 }
 0x224   :  { %v1164_v16 = vpop.permute.xlu1 %1163  ;;  %v1213_v45 = vmax.f32 %v1149_v62, %v1178_v47 }
 0x225   :  { %v1206_v5 = vmax.f32 %v1142_v60, %v1164_v16 }
 0x227   :  { %v1226_v2 = vpop.permute.xlu0 %1225 }
 0x228   :  { %v1180_v49 = vpop.permute.xlu1 %1179  ;;  %v1269_v41 = vmax.f32 %v1205_v56, %v1226_v2 }
 0x229   :  { %v1214_v17 = vmax.f32 %v1150_v9, %v1180_v49 }
 0x22a   :  { %v1285_v10 = vmax.f32 %v1269_v41, %v2461_v61 }
 0x22b   :  { %v1242_v50 = vpop.permute.xlu0 %1241 }
 0x22c   :  { %v1228_v35 = vpop.permute.xlu1 %1227  ;;  %v1277_v0 = vmax.f32 %v1213_v45, %v1242_v50 }
 0x22d   :  { %v1270_v3 = vmax.f32 %v1206_v5, %v1228_v35 }
 0x22e   :  { %v1293_v18 = vmax.f32 %v1277_v0, %v2468_v29 }
 0x22f   :  { %v1322_v11 = vpop.permute.xlu0 %1321  ;;  %v1286_v21 = vmax.f32 %v1270_v3, %v2471_v32 }
 0x230   :  { %v1244_v24 = vpop.permute.xlu1 %1243  ;;  %v1365_v23 = vmax.f32 %v1285_v10, %v1322_v11 }
 0x231   :  { %v1278_v19 = vmax.f32 %v1214_v17, %v1244_v24 }
 0x233   :  { %v1338_v40 = vpop.permute.xlu0 %1337  ;;  %v1294_v13 = vmax.f32 %v1278_v19, %v2480_v46 }
 0x234   :  { %v1324_v39 = vpop.permute.xlu1 %1323  ;;  %v1373_v7 = vmax.f32 %v1293_v18, %v1338_v40 }
 0x235   :  { %v1366_v54 = vmax.f32 %v1286_v21, %v1324_v39 }
 0x237   :  { %v1386_v42 = vpop.permute.xlu0 %1385 }
 0x238   :  { %v1340_v38 = vpop.permute.xlu1 %1339  ;;  %v1429_v53 = vmax.f32 %v1365_v23, %v1386_v42 }
 0x239   :  { %v1374_v20 = vmax.f32 %v1294_v13, %v1340_v38 }
 0x23b   :  { %v1402_v12 = vpop.permute.xlu0 %1401 }
 0x23c   :  { %v1388_v14 = vpop.permute.xlu1 %1387  ;;  %v1437_v36 = vmax.f32 %v1373_v7, %v1402_v12 }
 0x23d   :  { %v1430_v22 = vmax.f32 %v1366_v54, %v1388_v14 }
 0x23f   :  { %v1450_v58 = vpop.permute.xlu0 %1449 }
 0x240   :  { %v1404_v1 = vpop.permute.xlu1 %1403  ;;  %v1493_v55 = vmax.f32 %v1429_v53, %v1450_v58 }
 0x241   :  { %v1438_v63 = vmax.f32 %v1374_v20, %v1404_v1 }
 0x242   :  { %v1509_v61 = vand.u32 2147483647, %v1493_v55 }
 0x243   :  { %v1466_v8 = vpop.permute.xlu0 %1465 }
 0x244   :  { %v1452_v51 = vpop.permute.xlu1 %1451  ;;  %1526 = vst.msk [vmem:[%s2686_s2 + $0x20] sm:$0xff] %vm1521_vm2, %v1509_v61  ;;  %v1501_v32 = vmax.f32 %v1437_v36, %v1466_v8 }
 0x245   :  { %v1494_v29 = vmax.f32 %v1430_v22, %v1452_v51 }
 0x246   :  { %v1517_v59 = vand.u32 2147483647, %v1501_v32 }
 0x247   :  { %v1510_v34 = vand.u32 2147483647, %v1494_v29  ;;  %v1102_v4 = vpop.permute.xlu0 %1101 }
 0x248   :  { %v1468_v31 = vpop.permute.xlu1 %1467  ;;  %1534 = vst.msk [vmem:[%s2686_s2 + $0x60] sm:$0xff] %vm1521_vm2, %v1517_v59  ;;  %v1143_v52 = vmax.f32 %v2506_v37, %v1102_v4 }
 0x249   :  { %1527 = vst.msk [vmem:[%s2686_s2 + $0x28] sm:$0xff] %vm1521_vm2, %v1510_v34  ;;  %v1502_v46 = vmax.f32 %v1438_v63, %v1468_v31 }
 0x24b   :  { %v1518_v26 = vand.u32 2147483647, %v1502_v46  ;;  %v1118_v57 = vpop.permute.xlu0 %1117 }
 0x24c   :  { %v1104_v30 = vpop.permute.xlu1 %1103  ;;  %v1151_v62 = vmax.f32 %v2517_v25, %v1118_v57 }
 0x24d   :  { %1535 = vst.msk [vmem:[%s2686_s2 + $0x68] sm:$0xff] %vm1521_vm2, %v1518_v26  ;;  %v1144_v60 = vmax.f32 %v2520_v48, %v1104_v30 }
 0x24f   :  { %v1166_v44 = vpop.permute.xlu0 %1165 }
 0x250   :  { %v1120_v27 = vpop.permute.xlu1 %1119  ;;  %v1207_v56 = vmax.f32 %v1143_v52, %v1166_v44 }
 0x251   :  { %v1152_v9 = vmax.f32 %v2530_v6, %v1120_v27 }
 0x253   :  { %v1182_v47 = vpop.permute.xlu0 %1181 }
 0x254   :  { %v1168_v16 = vpop.permute.xlu1 %1167  ;;  %v1215_v45 = vmax.f32 %v1151_v62, %v1182_v47 }
 0x255   :  { %v1208_v5 = vmax.f32 %v1144_v60, %v1168_v16 }
 0x257   :  { %v1230_v2 = vpop.permute.xlu0 %1229 }
 0x258   :  { %v1184_v49 = vpop.permute.xlu1 %1183  ;;  %v1271_v41 = vmax.f32 %v1207_v56, %v1230_v2 }
 0x259   :  { %v1216_v12 = vmax.f32 %v1152_v9, %v1184_v49 }
 0x25a   :  { %v1287_v10 = vmax.f32 %v1271_v41, %v2566_v43 }
 0x25b   :  { %v1246_v50 = vpop.permute.xlu0 %1245 }
 0x25c   :  { %v1232_v35 = vpop.permute.xlu1 %1231  ;;  %v1279_v0 = vmax.f32 %v1215_v45, %v1246_v50 }
 0x25d   :  { %v1272_v3 = vmax.f32 %v1208_v5, %v1232_v35 }
 0x25e   :  { %v1295_v25 = vmax.f32 %v1279_v0, %v2576_v33 }
 0x25f   :  { %v1326_v11 = vpop.permute.xlu0 %1325  ;;  %v1288_v48 = vmax.f32 %v1272_v3, %v2579_v28 }
 0x260   :  { %v1248_v24 = vpop.permute.xlu1 %1247  ;;  %v1367_v17 = vmax.f32 %v1287_v10, %v1326_v11 }
 0x261   :  { %v1280_v23 = vmax.f32 %v1216_v12, %v1248_v24 }
 0x263   :  { %v1342_v40 = vpop.permute.xlu0 %1341  ;;  %v1296_v6 = vmax.f32 %v1280_v23, %v2588_v15 }
 0x264   :  { %v1328_v39 = vpop.permute.xlu1 %1327  ;;  %v1375_v1 = vmax.f32 %v1295_v25, %v1342_v40 }
 0x265   :  { %v1368_v53 = vmax.f32 %v1288_v48, %v1328_v39 }
 0x267   :  { %v1390_v38 = vpop.permute.xlu0 %1389 }
 0x268   :  { %v1344_v42 = vpop.permute.xlu1 %1343  ;;  %v1431_v19 = vmax.f32 %v1367_v17, %v1390_v38 }
 0x269   :  { %v1376_v22 = vmax.f32 %v1296_v6, %v1344_v42 }
 0x26b   :  { %v1406_v14 = vpop.permute.xlu0 %1405 }
 0x26c   :  { %v1392_v37 = vpop.permute.xlu1 %1391  ;;  %v1439_v54 = vmax.f32 %v1375_v1, %v1406_v14 }
 0x26d   :  { %v1432_v7 = vmax.f32 %v1368_v53, %v1392_v37 }
 0x26f   :  { %v1454_v21 = vpop.permute.xlu0 %1453 }
 0x270   :  { %v1408_v18 = vpop.permute.xlu1 %1407  ;;  %v1495_v58 = vmax.f32 %v1431_v19, %v1454_v21 }
 0x271   :  { %v1440_v36 = vmax.f32 %v1376_v22, %v1408_v18 }
 0x272   :  { %v1511_v43 = vand.u32 2147483647, %v1495_v58 }
 0x273   :  { %v1470_v55 = vpop.permute.xlu0 %1469 }
 0x274   :  { %v1456_v13 = vpop.permute.xlu1 %1455  ;;  %1528 = vst.msk [vmem:[%s2686_s2 + $0x30] sm:$0xff] %vm1521_vm2, %v1511_v43  ;;  %v1503_v33 = vmax.f32 %v1439_v54, %v1470_v55 }
 0x275   :  { %v1496_v28 = vmax.f32 %v1432_v7, %v1456_v13 }
 0x276   :  { %v1519_v61 = vand.u32 2147483647, %v1503_v33 }
 0x277   :  { %v1512_v51 = vand.u32 2147483647, %v1496_v28 }
 0x278   :  { %v1472_v8 = vpop.permute.xlu1 %1471  ;;  %1536 = vst.msk [vmem:[%s2686_s2 + $0x70] sm:$0xff] %vm1521_vm2, %v1519_v61 }
 0x279   :  { %1529 = vst.msk [vmem:[%s2686_s2 + $0x38] sm:$0xff] %vm1521_vm2, %v1512_v51  ;;  %v1504_v15 = vmax.f32 %v1440_v36, %v1472_v8 }
 0x27b   :  { %v1520_v20 = vand.u32 2147483647, %v1504_v15 }
 0x27d   :  { %1537 = vst.msk [vmem:[%s2686_s2 + $0x78] sm:$0xff] %vm1521_vm2, %v1520_v20 }

// kernel: net_scalar_forward.6
= control target key start
LH: loop header
LB: loop body
LE: loop exit
PB: predicated region body
PF: predicated region fallthrough
CT: control target
= control target key end

     0   :  { %vm2130_vm0 = vcmask 261120   ;;  %s3974_s10 = smov 32   ;;  %s3975_s11 = smov 112   ;;  %vm2955_vm1 = vcmask 130048   ;;  %vm3004_vm2 = vcmask 392192   ;;  %s5173_s1 = inlined_call_operand.vmem [shape: bf16[1568,384], index: 1, kind: input, shape index: {}]   ;;  %s5174_s0 = inlined_call_operand.vmem [shape: bf16[32,1568], index: 0, kind: input, shape index: {}]   ;;  %s5175_s2 = inlined_call_operand.vmem [shape: f32[32,48], index: 2, kind: output, shape index: {}]  }
   0x1   :  { %v3525_v0 = vld [vmem:[%s5173_s1 + $0xac] ss:$12 sps:$4 sm:$0xff]   ;;  %v3529_v2 = vld [vmem:[%s5173_s1 + $0xa8] ss:$12 sps:$4 sm:$0xff]   ;;  %v3535_v6 = vld [vmem:[%s5173_s1 + $0x90] ss:$12 sps:$4 sm:$0xff]  }
   0x2   :  { %v3527_v1 = vld [vmem:[%s5173_s1 + $0x22c] ss:$12 sps:$4 sm:$0xff]   ;;  %2137 = vmatprep.subr.bf16.mxu0 %v3525_v0  ;;  %v3530_v3 = vld [vmem:[%s5173_s1 + $0x228] ss:$12 sps:$4 sm:$0xff]   ;;  %v3536_v7 = vld [vmem:[%s5173_s1 + $0x210] ss:$12 sps:$4 sm:$0xff]  }
   0x3   :  { %2190 = vmatprep.subr.bf16.mxu1 %v3527_v1  ;;  %v3531_v4 = vld [vmem:[%s5173_s1 + $0x94] ss:$12 sps:$4 sm:$0xff]   ;;  %2138 = vmatpush1.bf16.msra.mxu0 %v3529_v2  ;;  %v3537_v8 = vld [vmem:[%s5173_s1 + $0x7c] ss:$12 sps:$4 sm:$0xff]   ;;  %v3541_v10 = vld [vmem:[%s5173_s1 + $0x78] ss:$12 sps:$4 sm:$0xff]  }
   0x4   :  { %2191 = vmatpush1.bf16.msra.mxu1 %v3530_v3  ;;  %v3533_v5 = vld [vmem:[%s5173_s1 + $0x214] ss:$12 sps:$4 sm:$0xff]   ;;  %2139 = vmatprep.subr.bf16.mxu0 %v3531_v4  ;;  %v3539_v9 = vld [vmem:[%s5173_s1 + $0x1fc] ss:$12 sps:$4 sm:$0xff]   ;;  %v3542_v11 = vld [vmem:[%s5173_s1 + $0x1f8] ss:$12 sps:$4 sm:$0xff]  }
   0x5   :  { %2192 = vmatprep.subr.bf16.mxu1 %v3533_v5  ;;  %v3543_v12 = vld [vmem:[%s5173_s1 + $0x64] ss:$12 sps:$4 sm:$0xff]   ;;  %v3547_v14 = vld [vmem:[%s5173_s1 + $0x60] ss:$12 sps:$4 sm:$0xff]   ;;  %v3553_v18 = vld [vmem:[%s5173_s1 + $0x48] ss:$12 sps:$4 sm:$0xff]  }
   0x6   :  { %v3545_v13 = vld [vmem:[%s5173_s1 + $0x1e4] ss:$12 sps:$4 sm:$0xff]   ;;  %v3548_v15 = vld [vmem:[%s5173_s1 + $0x1e0] ss:$12 sps:$4 sm:$0xff]   ;;  %v3554_v19 = vld [vmem:[%s5173_s1 + $0x1c8] ss:$12 sps:$4 sm:$0xff]  }
   0x7   :  { %2140 = vmatpush1.bf16.msra.mxu0 %v3535_v6  ;;  %v3549_v16 = vld [vmem:[%s5173_s1 + $0x4c] ss:$12 sps:$4 sm:$0xff]   ;;  %v3555_v20 = vld [vmem:[%s5173_s1 + $0x34] ss:$12 sps:$4 sm:$0xff]   ;;  %v3559_v22 = vld [vmem:[%s5173_s1 + $0x30] ss:$12 sps:$4 sm:$0xff]  }
   0x8   :  { %2193 = vmatpush1.bf16.msra.mxu1 %v3536_v7  ;;  %2141 = vmatprep.subr.bf16.mxu0 %v3537_v8  ;;  %v3551_v17 = vld [vmem:[%s5173_s1 + $0x1cc] ss:$12 sps:$4 sm:$0xff]   ;;  %v3557_v21 = vld [vmem:[%s5173_s1 + $0x1b4] ss:$12 sps:$4 sm:$0xff]   ;;  %v3560_v23 = vld [vmem:[%s5173_s1 + $0x1b0] ss:$12 sps:$4 sm:$0xff]  }
   0x9   :  { %2194 = vmatprep.subr.bf16.mxu1 %v3539_v9  ;;  %v3561_v24 = vld [vmem:[%s5173_s1 + $0x1c] ss:$12 sps:$4 sm:$0xff]   ;;  %v3565_v26 = vld [vmem:[%s5173_s1 + $0x18] ss:$12 sps:$4 sm:$0xff]   ;;  %v3571_v30 = vld [vmem:[%s5173_s1] ss:$12 sps:$4 sm:$0xff]  }
   0xa   :  { %v3563_v25 = vld [vmem:[%s5173_s1 + $0x19c] ss:$12 sps:$4 sm:$0xff]   ;;  %v3566_v27 = vld [vmem:[%s5173_s1 + $0x198] ss:$12 sps:$4 sm:$0xff]   ;;  %v3572_v31 = vld [vmem:[%s5173_s1 + $0x180] ss:$12 sps:$4 sm:$0xff]  }
   0xb   :  { %2142 = vmatpush1.bf16.msra.mxu0 %v3541_v10  ;;  %v3567_v28 = vld [vmem:[%s5173_s1 + $0x4] ss:$12 sps:$4 sm:$0xff]   ;;  %v3573_v32 = vld [vmem:[%s5173_s1 + $0x16c] ss:$12 sps:$4 sm:$0xff]   ;;  %v3577_v34 = vld [vmem:[%s5173_s1 + $0x168] ss:$12 sps:$4 sm:$0xff]  }
   0xc   :  { %2195 = vmatpush1.bf16.msra.mxu1 %v3542_v11  ;;  %2143 = vmatprep.subr.bf16.mxu0 %v3543_v12  ;;  %v3569_v29 = vld [vmem:[%s5173_s1 + $0x184] ss:$12 sps:$4 sm:$0xff]   ;;  %v3575_v33 = vld [vmem:[%s5173_s1 + $0x2ec] ss:$12 sps:$4 sm:$0xff]   ;;  %v3578_v35 = vld [vmem:[%s5173_s1 + $0x2e8] ss:$12 sps:$4 sm:$0xff]  }
   0xd   :  { %2196 = vmatprep.subr.bf16.mxu1 %v3545_v13  ;;  %v3579_v36 = vld [vmem:[%s5173_s1 + $0x154] ss:$12 sps:$4 sm:$0xff]   ;;  %v3583_v38 = vld [vmem:[%s5173_s1 + $0x150] ss:$12 sps:$4 sm:$0xff]   ;;  %v3589_v42 = vld [vmem:[%s5173_s1 + $0x138] ss:$12 sps:$4 sm:$0xff]  }
   0xe   :  { %v3581_v37 = vld [vmem:[%s5173_s1 + $0x2d4] ss:$12 sps:$4 sm:$0xff]   ;;  %v3584_v39 = vld [vmem:[%s5173_s1 + $0x2d0] ss:$12 sps:$4 sm:$0xff]   ;;  %v3590_v43 = vld [vmem:[%s5173_s1 + $0x2b8] ss:$12 sps:$4 sm:$0xff]  }
   0xf   :  { %2144 = vmatpush1.bf16.msra.mxu0 %v3547_v14  ;;  %v3585_v40 = vld [vmem:[%s5173_s1 + $0x13c] ss:$12 sps:$4 sm:$0xff]   ;;  %v3591_v44 = vld [vmem:[%s5173_s1 + $0x124] ss:$12 sps:$4 sm:$0xff]   ;;  %v3595_v46 = vld [vmem:[%s5173_s1 + $0x120] ss:$12 sps:$4 sm:$0xff]  }
  0x10   :  { %2197 = vmatpush1.bf16.msra.mxu1 %v3548_v15  ;;  %2145 = vmatprep.subr.bf16.mxu0 %v3549_v16  ;;  %v3587_v41 = vld [vmem:[%s5173_s1 + $0x2bc] ss:$12 sps:$4 sm:$0xff]   ;;  %v3593_v45 = vld [vmem:[%s5173_s1 + $0x2a4] ss:$12 sps:$4 sm:$0xff]   ;;  %v3596_v47 = vld [vmem:[%s5173_s1 + $0x2a0] ss:$12 sps:$4 sm:$0xff]  }
  0x11   :  { %2198 = vmatprep.subr.bf16.mxu1 %v3551_v17  ;;  %v3597_v48 = vld [vmem:[%s5173_s1 + $0x10c] ss:$12 sps:$4 sm:$0xff]   ;;  %v3601_v52 = vld [vmem:[%s5173_s1 + $0x108] ss:$12 sps:$4 sm:$0xff]   ;;  %v3607_v56 = vld [vmem:[%s5173_s1 + $0xf0] ss:$12 sps:$4 sm:$0xff]  }
  0x12   :  { %v3623_v49 = vld [vmem:[%s5174_s0 + $0x4] ss:$52 sps:$4 sm:$0xff]   ;;  %v3626_v51 = vld [vmem:[%s5174_s0 + $0xc] ss:$52 sps:$4 sm:$0xff]   ;;  %v3602_v53 = vld [vmem:[%s5173_s1 + $0x288] ss:$12 sps:$4 sm:$0xff]  }
  0x13   :  { %2146 = vmatpush1.bf16.msra.mxu0 %v3553_v18  ;;  %v3599_v50 = vld [vmem:[%s5173_s1 + $0x28c] ss:$12 sps:$4 sm:$0xff]   ;;  %2169 = vmatprep.mubr.bf16.mxu0 %v3623_v49  ;;  %v3603_v54 = vld [vmem:[%s5173_s1 + $0xf4] ss:$12 sps:$4 sm:$0xff]   ;;  %v3608_v57 = vld [vmem:[%s5173_s1 + $0x270] ss:$12 sps:$4 sm:$0xff]  }
  0x14   :  { %2199 = vmatpush1.bf16.msra.mxu1 %v3554_v19  ;;  %2147 = vmatprep.subr.bf16.mxu0 %v3555_v20  ;;  %v3605_v55 = vld [vmem:[%s5173_s1 + $0x274] ss:$12 sps:$4 sm:$0xff]   ;;  %v3609_v58 = vld [vmem:[%s5173_s1 + $0xdc] ss:$12 sps:$4 sm:$0xff]   ;;  %v3613_v60 = vld [vmem:[%s5173_s1 + $0xd8] ss:$12 sps:$4 sm:$0xff]  }
  0x15   :  { %2200 = vmatprep.subr.bf16.mxu1 %v3557_v21  ;;  %2222 = vmatprep.mubr.bf16.mxu1 %v3626_v51  ;;  %v3611_v59 = vld [vmem:[%s5173_s1 + $0x25c] ss:$12 sps:$4 sm:$0xff]   ;;  %v3614_v61 = vld [vmem:[%s5173_s1 + $0x258] ss:$12 sps:$4 sm:$0xff]   ;;  %v3619_v0 = vld [vmem:[%s5173_s1 + $0xc0] ss:$12 sps:$4 sm:$0xff]  }
  0x16   :  { %v3615_v62 = vld [vmem:[%s5173_s1 + $0xc4] ss:$12 sps:$4 sm:$0xff]   ;;  %v3620_v1 = vld [vmem:[%s5173_s1 + $0x240] ss:$12 sps:$4 sm:$0xff]   ;;  %v3624_v5 = vld [vmem:[%s5174_s0 + $0x8] ss:$52 sps:$4 sm:$0xff]  }
  0x17   :  { %2148 = vmatpush1.bf16.msra.mxu0 %v3559_v22  ;;  %v3617_v63 = vld [vmem:[%s5173_s1 + $0x244] ss:$12 sps:$4 sm:$0xff]   ;;  %v3629_v2 = vld [vmem:[%s5173_s1 + $0x3ac] ss:$12 sps:$4 sm:$0xff]   ;;  %v3621_v4 = vld [vmem:[%s5174_s0] ss:$52 sps:$4 sm:$0xff]  }
  0x18   :  { %2201 = vmatpush1.bf16.msra.mxu1 %v3560_v23  ;;  %2149 = vmatprep.subr.bf16.mxu0 %v3561_v24  ;;  %v3632_v3 = vld [vmem:[%s5173_s1 + $0x52c] ss:$12 sps:$4 sm:$0xff]   ;;  %v3627_v6 = vld [vmem:[%s5173_s1 + $0x3a8] ss:$12 sps:$4 sm:$0xff]   ;;  %v3633_v10 = vld [vmem:[%s5173_s1 + $0x390] ss:$12 sps:$4 sm:$0xff]  }
  0x19   :  { %2202 = vmatprep.subr.bf16.mxu1 %v3563_v25  ;;  %v3630_v7 = vld [vmem:[%s5173_s1 + $0x528] ss:$12 sps:$4 sm:$0xff]   ;;  %v3636_v11 = vld [vmem:[%s5173_s1 + $0x510] ss:$12 sps:$4 sm:$0xff]   ;;  %v3639_v14 = vld [vmem:[%s5173_s1 + $0x378] ss:$12 sps:$4 sm:$0xff]  }
  0x1a   :  { %v3635_v8 = vld [vmem:[%s5173_s1 + $0x394] ss:$12 sps:$4 sm:$0xff]   ;;  %v3641_v12 = vld [vmem:[%s5173_s1 + $0x37c] ss:$12 sps:$4 sm:$0xff]   ;;  %v3642_v15 = vld [vmem:[%s5173_s1 + $0x4f8] ss:$12 sps:$4 sm:$0xff]  }
  0x1b   :  { %2150 = vmatpush1.bf16.msra.mxu0 %v3565_v26  ;;  %v3638_v9 = vld [vmem:[%s5173_s1 + $0x514] ss:$12 sps:$4 sm:$0xff]   ;;  %v3644_v13 = vld [vmem:[%s5173_s1 + $0x4fc] ss:$12 sps:$4 sm:$0xff]   ;;  %v3647_v16 = vld [vmem:[%s5173_s1 + $0x364] ss:$12 sps:$4 sm:$0xff]  }
  0x1c   :  { %2203 = vmatpush1.bf16.msra.mxu1 %v3566_v27  ;;  %2151 = vmatprep.subr.bf16.mxu0 %v3567_v28  ;;  %v3650_v17 = vld [vmem:[%s5173_s1 + $0x4e4] ss:$12 sps:$4 sm:$0xff]   ;;  %v3645_v18 = vld [vmem:[%s5173_s1 + $0x360] ss:$12 sps:$4 sm:$0xff]   ;;  %v3651_v22 = vld [vmem:[%s5173_s1 + $0x348] ss:$12 sps:$4 sm:$0xff]  }
  0x1d   :  { %2204 = vmatprep.subr.bf16.mxu1 %v3569_v29  ;;  %v3648_v19 = vld [vmem:[%s5173_s1 + $0x4e0] ss:$12 sps:$4 sm:$0xff]   ;;  %v3654_v23 = vld [vmem:[%s5173_s1 + $0x4c8] ss:$12 sps:$4 sm:$0xff]   ;;  %v3710_v29 = vld [vmem:[%s5174_s0 + $0x70] ss:$52 sps:$4 sm:$0xff]  }
  0x1e   :  { %v3653_v20 = vld [vmem:[%s5173_s1 + $0x34c] ss:$12 sps:$4 sm:$0xff]   ;;  %v3659_v24 = vld [vmem:[%s5173_s1 + $0x334] ss:$12 sps:$4 sm:$0xff]   ;;  %v3709_v28 = vld [vmem:[%s5174_s0 + $0x68] ss:$52 sps:$4 sm:$0xff]  }
  0x1f   :  { %2152 = vmatpush1.bf16.msra.mxu0 %v3571_v30  ;;  %v3656_v21 = vld [vmem:[%s5173_s1 + $0x4cc] ss:$12 sps:$4 sm:$0xff]   ;;  %v3662_v25 = vld [vmem:[%s5173_s1 + $0x4b4] ss:$12 sps:$4 sm:$0xff]   ;;  %v3657_v30 = vld [vmem:[%s5173_s1 + $0x330] ss:$12 sps:$4 sm:$0xff]  }
  0x20   :  { %2205 = vmatpush1.bf16.msra.mxu1 %v3572_v31  ;;  %2153 = vmatprep.subr.bf16.mxu0 %v3573_v32  ;;  %v3705_v26 = vld [vmem:[%s5174_s0 + $0x6c] ss:$52 sps:$4 sm:$0xff]   ;;  %v3707_v27 = vld [vmem:[%s5174_s0 + $0x74] ss:$52 sps:$4 sm:$0xff]   ;;  %v3660_v31 = vld [vmem:[%s5173_s1 + $0x4b0] ss:$12 sps:$4 sm:$0xff]  }
  0x21   :  { %2206 = vmatprep.subr.bf16.mxu1 %v3575_v33  ;;  %v3665_v32 = vld [vmem:[%s5173_s1 + $0x31c] ss:$12 sps:$4 sm:$0xff]   ;;  %s3976_s12 = smov 64   ;;  %s3977_s13 = smov 16  }
  0x22   :  { %v3668_v33 = vld [vmem:[%s5173_s1 + $0x49c] ss:$12 sps:$4 sm:$0xff]   ;;  %s3978_s14 = smov 96   ;;  %s3979_s15 = smov 48  }
  0x23   :  { %2154 = vmatpush2.bf16.msra.mxu0 %v3577_v34  ;;  %v3663_v34 = vld [vmem:[%s5173_s1 + $0x318] ss:$12 sps:$4 sm:$0xff]   ;;  %v3684_v49 = vld [vmem:[%s5173_s1 + $0x5d0] ss:$12 sps:$4 sm:$0xff]  }
  0x24   :  { %2207 = vmatpush2.bf16.msra.mxu1 %v3578_v35  ;;  %2155 = vmatprep.subr.bf16.mxu0 %v3579_v36  ;;  %v3666_v35 = vld [vmem:[%s5173_s1 + $0x498] ss:$12 sps:$4 sm:$0xff]   ;;  %v3692_v51 = vld [vmem:[%s5173_s1 + $0x5bc] ss:$12 sps:$4 sm:$0xff]  }
  0x25   :  { %2208 = vmatprep.subr.bf16.mxu1 %v3581_v37  ;;  %v3671_v36 = vld [vmem:[%s5173_s1 + $0x304] ss:$12 sps:$4 sm:$0xff]  }
  0x26   :  { %v3674_v37 = vld [vmem:[%s5173_s1 + $0x484] ss:$12 sps:$4 sm:$0xff]  }
  0x27   :  { %2156 = vmatpush2.bf16.msra.mxu0 %v3583_v38  ;;  %v3669_v38 = vld [vmem:[%s5173_s1 + $0x300] ss:$12 sps:$4 sm:$0xff]  }
  0x28   :  { %2209 = vmatpush2.bf16.msra.mxu1 %v3584_v39  ;;  %2157 = vmatprep.subr.bf16.mxu0 %v3585_v40  ;;  %v3672_v39 = vld [vmem:[%s5173_s1 + $0x480] ss:$12 sps:$4 sm:$0xff]  }
  0x29   :  { %2210 = vmatprep.subr.bf16.mxu1 %v3587_v41  ;;  %v3677_v40 = vld [vmem:[%s5173_s1 + $0x46c] ss:$12 sps:$4 sm:$0xff]   ;;  %v3731_v41 = vld [vmem:[%s5174_s0 + $0x14] ss:$52 sps:$4 sm:$0xff]  }
  0x2b   :  { %2158 = vmatpush2.bf16.msra.mxu0 %v3589_v42  ;;  %v3680_v42 = vld [vmem:[%s5173_s1 + $0x5ec] ss:$12 sps:$4 sm:$0xff]  }
  0x2c   :  { %2211 = vmatpush2.bf16.msra.mxu1 %v3590_v43  ;;  %2159 = vmatprep.subr.bf16.mxu0 %v3591_v44  ;;  %v3734_v43 = vld [vmem:[%s5174_s0 + $0x1c] ss:$52 sps:$4 sm:$0xff]   ;;  %v3675_v44 = vld [vmem:[%s5173_s1 + $0x468] ss:$12 sps:$4 sm:$0xff]  }
  0x2d   :  { %2212 = vmatprep.subr.bf16.mxu1 %v3593_v45  ;;  %v3678_v45 = vld [vmem:[%s5173_s1 + $0x5e8] ss:$12 sps:$4 sm:$0xff]  }
  0x2f   :  { %2160 = vmatpush2.bf16.msra.mxu0 %v3595_v46  ;;  %v3683_v46 = vld [vmem:[%s5173_s1 + $0x454] ss:$12 sps:$4 sm:$0xff]  }
  0x30   :  { %2213 = vmatpush2.bf16.msra.mxu1 %v3596_v47  ;;  %2161 = vmatprep.subr.bf16.mxu0 %v3597_v48  ;;  %v3686_v47 = vld [vmem:[%s5173_s1 + $0x5d4] ss:$12 sps:$4 sm:$0xff]   ;;  %v3681_v48 = vld [vmem:[%s5173_s1 + $0x450] ss:$12 sps:$4 sm:$0xff]  }
  0x31   :  { %2214 = vmatprep.subr.bf16.mxu1 %v3599_v50  ;;  %v3689_v50 = vld [vmem:[%s5173_s1 + $0x43c] ss:$12 sps:$4 sm:$0xff]  }
  0x33   :  { %2162 = vmatpush2.bf16.msra.mxu0 %v3601_v52  ;;  %v3687_v52 = vld [vmem:[%s5173_s1 + $0x438] ss:$12 sps:$4 sm:$0xff]  }
  0x34   :  { %2215 = vmatpush2.bf16.msra.mxu1 %v3602_v53  ;;  %2163 = vmatprep.subr.bf16.mxu0 %v3603_v54  ;;  %v3690_v53 = vld [vmem:[%s5173_s1 + $0x5b8] ss:$12 sps:$4 sm:$0xff]  }
  0x35   :  { %2216 = vmatprep.subr.bf16.mxu1 %v3605_v55  ;;  %v3695_v54 = vld [vmem:[%s5173_s1 + $0x424] ss:$12 sps:$4 sm:$0xff]  }
  0x36   :  { %v3698_v55 = vld [vmem:[%s5173_s1 + $0x5a4] ss:$12 sps:$4 sm:$0xff]  }
  0x37   :  { %2164 = vmatpush2.bf16.msra.mxu0 %v3607_v56  ;;  %v3693_v56 = vld [vmem:[%s5173_s1 + $0x420] ss:$12 sps:$4 sm:$0xff]  }
  0x38   :  { %2217 = vmatpush2.bf16.msra.mxu1 %v3608_v57  ;;  %2165 = vmatprep.subr.bf16.mxu0 %v3609_v58  ;;  %v3696_v57 = vld [vmem:[%s5173_s1 + $0x5a0] ss:$12 sps:$4 sm:$0xff]  }
  0x39   :  { %2218 = vmatprep.subr.bf16.mxu1 %v3611_v59  ;;  %v3701_v58 = vld [vmem:[%s5173_s1 + $0x40c] ss:$12 sps:$4 sm:$0xff]  }
  0x3a   :  { %v3704_v59 = vld [vmem:[%s5173_s1 + $0x58c] ss:$12 sps:$4 sm:$0xff]  }
  0x3b   :  { %2166 = vmatpush2.bf16.msra.mxu0 %v3613_v60  ;;  %v3699_v60 = vld [vmem:[%s5173_s1 + $0x408] ss:$12 sps:$4 sm:$0xff]  }
  0x3c   :  { %2219 = vmatpush2.bf16.msra.mxu1 %v3614_v61  ;;  %2167 = vmatprep.subr.bf16.mxu0 %v3615_v62  ;;  %v3702_v61 = vld [vmem:[%s5173_s1 + $0x588] ss:$12 sps:$4 sm:$0xff]  }
  0x3d   :  { %2220 = vmatprep.subr.bf16.mxu1 %v3617_v63  ;;  %v3713_v62 = vld [vmem:[%s5173_s1 + $0x3f4] ss:$12 sps:$4 sm:$0xff]  }
  0x3e   :  { %v3716_v63 = vld [vmem:[%s5173_s1 + $0x574] ss:$12 sps:$4 sm:$0xff]  }
  0x3f   :  { %2168 = vmatpush2.bf16.msra.mxu0 %v3619_v0  ;;  %v3711_v0 = vld [vmem:[%s5173_s1 + $0x3f0] ss:$12 sps:$4 sm:$0xff]  }
  0x40   :  { %2221 = vmatpush2.bf16.msra.mxu1 %v3620_v1  ;;  %2243 = vmatprep.subr.bf16.mxu0 %v3629_v2  ;;  %v3714_v1 = vld [vmem:[%s5173_s1 + $0x570] ss:$12 sps:$4 sm:$0xff]  }
  0x41   :  { %2296 = vmatprep.subr.bf16.mxu1 %v3632_v3  ;;  %v3719_v2 = vld [vmem:[%s5173_s1 + $0x3dc] ss:$12 sps:$4 sm:$0xff]  }
  0x42   :  { %2170 = vmatmul.mubr.bf16.vlgmr.msra.gmra.mxu0 %v3621_v4  ;;  %v3722_v3 = vld [vmem:[%s5173_s1 + $0x55c] ss:$12 sps:$4 sm:$0xff]   ;;  %v3717_v4 = vld [vmem:[%s5173_s1 + $0x3d8] ss:$12 sps:$4 sm:$0xff]  }
  0x43   :  { %2223 = vmatmul.mubr.bf16.vlgmr.msra.gmra.mxu1 %v3624_v5  ;;  %2244 = vmatpush1.bf16.msra.mxu0 %v3627_v6  ;;  %v3720_v5 = vld [vmem:[%s5173_s1 + $0x558] ss:$12 sps:$4 sm:$0xff]  }
  0x44   :  { %2297 = vmatpush1.bf16.msra.mxu1 %v3630_v7  ;;  %2245 = vmatprep.subr.bf16.mxu0 %v3635_v8  ;;  %v3725_v6 = vld [vmem:[%s5173_s1 + $0x3c4] ss:$12 sps:$4 sm:$0xff]   ;;  %v3723_v8 = vld [vmem:[%s5173_s1 + $0x3c0] ss:$12 sps:$4 sm:$0xff]  }
  0x45   :  { %2298 = vmatprep.subr.bf16.mxu1 %v3638_v9  ;;  %2179 = vmatprep.mubr.bf16.mxu0 %v3705_v26  ;;  %v3728_v7 = vld [vmem:[%s5173_s1 + $0x544] ss:$12 sps:$4 sm:$0xff]   ;;  %v3726_v9 = vld [vmem:[%s5173_s1 + $0x540] ss:$12 sps:$4 sm:$0xff]  }
  0x46   :  { %2232 = vmatprep.mubr.bf16.mxu1 %v3707_v27  ;;  %v3753_v26 = vld [vmem:[%s5173_s1 + $0x7f8] ss:$12 sps:$4 sm:$0xff]   ;;  %v3758_v27 = vld [vmem:[%s5174_s0 + $0x80] ss:$52 sps:$4 sm:$0xff]  }
  0x47   :  { %2246 = vmatpush1.bf16.msra.mxu0 %v3633_v10  ;;  %v3737_v10 = vld [vmem:[%s5173_s1 + $0x6ac] ss:$12 sps:$4 sm:$0xff]  }
  0x48   :  { %2299 = vmatpush1.bf16.msra.mxu1 %v3636_v11  ;;  %2247 = vmatprep.subr.bf16.mxu0 %v3641_v12  ;;  %v3740_v11 = vld [vmem:[%s5173_s1 + $0x82c] ss:$12 sps:$4 sm:$0xff]   ;;  %v3729_v12 = vld [vmem:[%s5174_s0 + $0x10] ss:$52 sps:$4 sm:$0xff]  }
  0x49   :  { %2300 = vmatprep.subr.bf16.mxu1 %v3644_v13  ;;  %v3732_v13 = vld [vmem:[%s5174_s0 + $0x18] ss:$52 sps:$4 sm:$0xff]  }
  0x4a   :  { %2180 = vmatmul.mubr.bf16.gmra.mxu0 %v3709_v28  ;;  %v3761_v28 = vld [vmem:[%s5173_s1 + $0x664] ss:$12 sps:$4 sm:$0xff]  }
  0x4b   :  { %2248 = vmatpush1.bf16.msra.mxu0 %v3639_v14  ;;  %2233 = vmatmul.mubr.bf16.gmra.mxu1 %v3710_v29  ;;  %v3735_v14 = vld [vmem:[%s5173_s1 + $0x6a8] ss:$12 sps:$4 sm:$0xff]   ;;  %v3764_v29 = vld [vmem:[%s5173_s1 + $0x7e4] ss:$12 sps:$4 sm:$0xff]  }
  0x4c   :  { %2301 = vmatpush1.bf16.msra.mxu1 %v3642_v15  ;;  %2249 = vmatprep.subr.bf16.mxu0 %v3647_v16  ;;  %v3738_v15 = vld [vmem:[%s5173_s1 + $0x828] ss:$12 sps:$4 sm:$0xff]  }
  0x4d   :  { %2302 = vmatprep.subr.bf16.mxu1 %v3650_v17  ;;  %2275 = vmatprep.mubr.bf16.mxu0 %v3731_v41  ;;  %v3743_v16 = vld [vmem:[%s5173_s1 + $0x694] ss:$12 sps:$4 sm:$0xff]   ;;  %v3774_v41 = vld [vmem:[%s5173_s1 + $0x7b0] ss:$12 sps:$4 sm:$0xff]  }
  0x4e   :  { %2328 = vmatprep.mubr.bf16.mxu1 %v3734_v43  ;;  %v3746_v17 = vld [vmem:[%s5173_s1 + $0x814] ss:$12 sps:$4 sm:$0xff]   ;;  %v3782_v43 = vld [vmem:[%s5173_s1 + $0x79c] ss:$12 sps:$4 sm:$0xff]  }
  0x4f   :  { %2250 = vmatpush1.bf16.msra.mxu0 %v3645_v18  ;;  %v3747_v18 = vld [vmem:[%s5174_s0 + $0x7c] ss:$52 sps:$4 sm:$0xff]  }
  0x50   :  { %2303 = vmatpush1.bf16.msra.mxu1 %v3648_v19  ;;  %2251 = vmatprep.subr.bf16.mxu0 %v3653_v20  ;;  %v3756_v19 = vld [vmem:[%s5174_s0 + $0x84] ss:$52 sps:$4 sm:$0xff]   ;;  %v3741_v20 = vld [vmem:[%s5173_s1 + $0x690] ss:$12 sps:$4 sm:$0xff]  }
  0x51   :  { %2304 = vmatprep.subr.bf16.mxu1 %v3656_v21  ;;  %v3744_v21 = vld [vmem:[%s5173_s1 + $0x810] ss:$12 sps:$4 sm:$0xff]  }
  0x53   :  { %2252 = vmatpush1.bf16.msra.mxu0 %v3651_v22  ;;  %v3752_v22 = vld [vmem:[%s5173_s1 + $0x67c] ss:$12 sps:$4 sm:$0xff]  }
  0x54   :  { %2305 = vmatpush1.bf16.msra.mxu1 %v3654_v23  ;;  %2253 = vmatprep.subr.bf16.mxu0 %v3659_v24  ;;  %v3755_v23 = vld [vmem:[%s5173_s1 + $0x7fc] ss:$12 sps:$4 sm:$0xff]   ;;  %v3749_v24 = vld [vmem:[%s5174_s0 + $0x78] ss:$52 sps:$4 sm:$0xff]  }
  0x55   :  { %2306 = vmatprep.subr.bf16.mxu1 %v3662_v25  ;;  %v3750_v25 = vld [vmem:[%s5173_s1 + $0x678] ss:$12 sps:$4 sm:$0xff]  }
  0x57   :  { %2254 = vmatpush1.bf16.msra.mxu0 %v3657_v30  ;;  %v3759_v30 = vld [vmem:[%s5173_s1 + $0x660] ss:$12 sps:$4 sm:$0xff]  }
  0x58   :  { %2307 = vmatpush1.bf16.msra.mxu1 %v3660_v31  ;;  %2255 = vmatprep.subr.bf16.mxu0 %v3665_v32  ;;  %v3762_v31 = vld [vmem:[%s5173_s1 + $0x7e0] ss:$12 sps:$4 sm:$0xff]  }
  0x59   :  { %2308 = vmatprep.subr.bf16.mxu1 %v3668_v33  ;;  %v3767_v32 = vld [vmem:[%s5173_s1 + $0x64c] ss:$12 sps:$4 sm:$0xff]  }
  0x5a   :  { %v4481_v33 = vld [vmem:[%s5174_s0 + $0x24] ss:$52 sps:$4 sm:$0xff]  }
  0x5b   :  { %2256 = vmatpush1.bf16.msra.mxu0 %v3663_v34  ;;  %v3770_v34 = vld [vmem:[%s5173_s1 + $0x7cc] ss:$12 sps:$4 sm:$0xff]  }
  0x5c   :  { %2309 = vmatpush1.bf16.msra.mxu1 %v3666_v35  ;;  %2257 = vmatprep.subr.bf16.mxu0 %v3671_v36  ;;  %v3842_v35 = vld [vmem:[%s5174_s0 + $0x2c] ss:$52 sps:$4 sm:$0xff]   ;;  %v3765_v36 = vld [vmem:[%s5173_s1 + $0x648] ss:$12 sps:$4 sm:$0xff]  }
  0x5d   :  { %2310 = vmatprep.subr.bf16.mxu1 %v3674_v37  ;;  %v3768_v37 = vld [vmem:[%s5173_s1 + $0x7c8] ss:$12 sps:$4 sm:$0xff]  }
  0x5f   :  { %2258 = vmatpush1.bf16.msra.mxu0 %v3669_v38  ;;  %v3773_v38 = vld [vmem:[%s5173_s1 + $0x634] ss:$12 sps:$4 sm:$0xff]  }
  0x60   :  { %2311 = vmatpush1.bf16.msra.mxu1 %v3672_v39  ;;  %2259 = vmatprep.subr.bf16.mxu0 %v3677_v40  ;;  %v3776_v39 = vld [vmem:[%s5173_s1 + $0x7b4] ss:$12 sps:$4 sm:$0xff]   ;;  %v3771_v40 = vld [vmem:[%s5173_s1 + $0x630] ss:$12 sps:$4 sm:$0xff]  }
  0x61   :  { %2312 = vmatprep.subr.bf16.mxu1 %v3680_v42  ;;  %v3779_v42 = vld [vmem:[%s5173_s1 + $0x61c] ss:$12 sps:$4 sm:$0xff]  }
  0x63   :  { %2260 = vmatpush2.bf16.msra.mxu0 %v3675_v44  ;;  %v3777_v44 = vld [vmem:[%s5173_s1 + $0x618] ss:$12 sps:$4 sm:$0xff]  }
  0x64   :  { %2313 = vmatpush2.bf16.msra.mxu1 %v3678_v45  ;;  %2261 = vmatprep.subr.bf16.mxu0 %v3683_v46  ;;  %v3780_v45 = vld [vmem:[%s5173_s1 + $0x798] ss:$12 sps:$4 sm:$0xff]  }
  0x65   :  { %2314 = vmatprep.subr.bf16.mxu1 %v3686_v47  ;;  %v3785_v46 = vld [vmem:[%s5173_s1 + $0x604] ss:$12 sps:$4 sm:$0xff]  }
  0x66   :  { %v3788_v47 = vld [vmem:[%s5173_s1 + $0x784] ss:$12 sps:$4 sm:$0xff]  }
  0x67   :  { %2262 = vmatpush2.bf16.msra.mxu0 %v3681_v48  ;;  %v3783_v48 = vld [vmem:[%s5173_s1 + $0x600] ss:$12 sps:$4 sm:$0xff]  }
  0x68   :  { %2315 = vmatpush2.bf16.msra.mxu1 %v3684_v49  ;;  %2263 = vmatprep.subr.bf16.mxu0 %v3689_v50  ;;  %v3786_v49 = vld [vmem:[%s5173_s1 + $0x780] ss:$12 sps:$4 sm:$0xff]  }
  0x69   :  { %2316 = vmatprep.subr.bf16.mxu1 %v3692_v51  ;;  %v3791_v50 = vld [vmem:[%s5173_s1 + $0x76c] ss:$12 sps:$4 sm:$0xff]  }
  0x6a   :  { %v3794_v51 = vld [vmem:[%s5173_s1 + $0x8ec] ss:$12 sps:$4 sm:$0xff]  }
  0x6b   :  { %2264 = vmatpush2.bf16.msra.mxu0 %v3687_v52  ;;  %v3789_v52 = vld [vmem:[%s5173_s1 + $0x768] ss:$12 sps:$4 sm:$0xff]  }
  0x6c   :  { %2317 = vmatpush2.bf16.msra.mxu1 %v3690_v53  ;;  %2265 = vmatprep.subr.bf16.mxu0 %v3695_v54  ;;  %v3792_v53 = vld [vmem:[%s5173_s1 + $0x8e8] ss:$12 sps:$4 sm:$0xff]  }
  0x6d   :  { %2318 = vmatprep.subr.bf16.mxu1 %v3698_v55  ;;  %v3797_v54 = vld [vmem:[%s5173_s1 + $0x754] ss:$12 sps:$4 sm:$0xff]  }
  0x6e   :  { %v3800_v55 = vld [vmem:[%s5173_s1 + $0x8d4] ss:$12 sps:$4 sm:$0xff]  }
  0x6f   :  { %2266 = vmatpush2.bf16.msra.mxu0 %v3693_v56  ;;  %v3795_v56 = vld [vmem:[%s5173_s1 + $0x750] ss:$12 sps:$4 sm:$0xff]  }
  0x70   :  { %2319 = vmatpush2.bf16.msra.mxu1 %v3696_v57  ;;  %2267 = vmatprep.subr.bf16.mxu0 %v3701_v58  ;;  %v3798_v57 = vld [vmem:[%s5173_s1 + $0x8d0] ss:$12 sps:$4 sm:$0xff]  }
  0x71   :  { %2320 = vmatprep.subr.bf16.mxu1 %v3704_v59  ;;  %v3803_v58 = vld [vmem:[%s5173_s1 + $0x73c] ss:$12 sps:$4 sm:$0xff]  }
  0x72   :  { %v3806_v59 = vld [vmem:[%s5173_s1 + $0x8bc] ss:$12 sps:$4 sm:$0xff]  }
  0x73   :  { %2268 = vmatpush2.bf16.msra.mxu0 %v3699_v60  ;;  %v3801_v60 = vld [vmem:[%s5173_s1 + $0x738] ss:$12 sps:$4 sm:$0xff]  }
  0x74   :  { %2321 = vmatpush2.bf16.msra.mxu1 %v3702_v61  ;;  %2269 = vmatprep.subr.bf16.mxu0 %v3713_v62  ;;  %v3804_v61 = vld [vmem:[%s5173_s1 + $0x8b8] ss:$12 sps:$4 sm:$0xff]  }
  0x75   :  { %2322 = vmatprep.subr.bf16.mxu1 %v3716_v63  ;;  %v3809_v62 = vld [vmem:[%s5173_s1 + $0x724] ss:$12 sps:$4 sm:$0xff]  }
  0x76   :  { %v3812_v63 = vld [vmem:[%s5173_s1 + $0x8a4] ss:$12 sps:$4 sm:$0xff]  }
  0x77   :  { %2270 = vmatpush2.bf16.msra.mxu0 %v3711_v0  ;;  %v3807_v0 = vld [vmem:[%s5173_s1 + $0x720] ss:$12 sps:$4 sm:$0xff]  }
  0x78   :  { %2323 = vmatpush2.bf16.msra.mxu1 %v3714_v1  ;;  %2271 = vmatprep.subr.bf16.mxu0 %v3719_v2  ;;  %v3810_v1 = vld [vmem:[%s5173_s1 + $0x8a0] ss:$12 sps:$4 sm:$0xff]  }
  0x79   :  { %2324 = vmatprep.subr.bf16.mxu1 %v3722_v3  ;;  %v3815_v2 = vld [vmem:[%s5173_s1 + $0x70c] ss:$12 sps:$4 sm:$0xff]  }
  0x7a   :  { %v3818_v3 = vld [vmem:[%s5173_s1 + $0x88c] ss:$12 sps:$4 sm:$0xff]  }
  0x7b   :  { %2272 = vmatpush2.bf16.msra.mxu0 %v3717_v4  ;;  %v3813_v4 = vld [vmem:[%s5173_s1 + $0x708] ss:$12 sps:$4 sm:$0xff]  }
  0x7c   :  { %2325 = vmatpush2.bf16.msra.mxu1 %v3720_v5  ;;  %2273 = vmatprep.subr.bf16.mxu0 %v3725_v6  ;;  %v3816_v5 = vld [vmem:[%s5173_s1 + $0x888] ss:$12 sps:$4 sm:$0xff]  }
  0x7d   :  { %2326 = vmatprep.subr.bf16.mxu1 %v3728_v7  ;;  %v3821_v6 = vld [vmem:[%s5173_s1 + $0x6f4] ss:$12 sps:$4 sm:$0xff]  }
  0x7e   :  { %v3824_v7 = vld [vmem:[%s5173_s1 + $0x874] ss:$12 sps:$4 sm:$0xff]  }
  0x7f   :  { %2274 = vmatpush2.bf16.msra.mxu0 %v3723_v8  ;;  %v3819_v8 = vld [vmem:[%s5173_s1 + $0x6f0] ss:$12 sps:$4 sm:$0xff]  }
  0x80   :  { %2327 = vmatpush2.bf16.msra.mxu1 %v3726_v9  ;;  %2349 = vmatprep.subr.bf16.mxu0 %v3737_v10  ;;  %v3822_v9 = vld [vmem:[%s5173_s1 + $0x870] ss:$12 sps:$4 sm:$0xff]  }
  0x81   :  { %2402 = vmatprep.subr.bf16.mxu1 %v3740_v11  ;;  %v3827_v10 = vld [vmem:[%s5173_s1 + $0x6dc] ss:$12 sps:$4 sm:$0xff]  }
  0x82   :  { %2276 = vmatmul.mubr.bf16.vlgmr.msra.gmra.mxu0 %v3729_v12  ;;  %v3830_v11 = vld [vmem:[%s5173_s1 + $0x85c] ss:$12 sps:$4 sm:$0xff]   ;;  %v3825_v12 = vld [vmem:[%s5173_s1 + $0x6d8] ss:$12 sps:$4 sm:$0xff]  }
  0x83   :  { %2329 = vmatmul.mubr.bf16.vlgmr.msra.gmra.mxu1 %v3732_v13  ;;  %2350 = vmatpush1.bf16.msra.mxu0 %v3735_v14  ;;  %v3828_v13 = vld [vmem:[%s5173_s1 + $0x858] ss:$12 sps:$4 sm:$0xff]  }
  0x84   :  { %2403 = vmatpush1.bf16.msra.mxu1 %v3738_v15  ;;  %2351 = vmatprep.subr.bf16.mxu0 %v3743_v16  ;;  %v3833_v14 = vld [vmem:[%s5173_s1 + $0x6c4] ss:$12 sps:$4 sm:$0xff]   ;;  %v3831_v16 = vld [vmem:[%s5173_s1 + $0x6c0] ss:$12 sps:$4 sm:$0xff]  }
  0x85   :  { %2404 = vmatprep.subr.bf16.mxu1 %v3746_v17  ;;  %2285 = vmatprep.mubr.bf16.mxu0 %v3747_v18  ;;  %v3836_v15 = vld [vmem:[%s5173_s1 + $0x844] ss:$12 sps:$4 sm:$0xff]   ;;  %v3834_v17 = vld [vmem:[%s5173_s1 + $0x840] ss:$12 sps:$4 sm:$0xff]   ;;  %v3845_v18 = vld [vmem:[%s5173_s1 + $0x91c] ss:$12 sps:$4 sm:$0xff]  }
  0x86   :  { %2338 = vmatprep.mubr.bf16.mxu1 %v3756_v19  ;;  %v4634_v19 = vld [vmem:[%s5174_s0 + $0x20] ss:$52 sps:$4 sm:$0xff]  }
  0x87   :  { %2352 = vmatpush1.bf16.msra.mxu0 %v3741_v20  ;;  %v4639_v20 = vld [vmem:[%s5174_s0 + $0x28] ss:$52 sps:$4 sm:$0xff]  }
  0x88   :  { %2405 = vmatpush1.bf16.msra.mxu1 %v3744_v21  ;;  %2353 = vmatprep.subr.bf16.mxu0 %v3752_v22  ;;  %v3846_v21 = vld [vmem:[%s5173_s1 + $0x170] ss:$12 sps:$4 sm:$0xff]   ;;  %v3843_v22 = vld [vmem:[%s5173_s1 + $0x918] ss:$12 sps:$4 sm:$0xff]  }
  0x89   :  { %2406 = vmatprep.subr.bf16.mxu1 %v3755_v23  ;;  %v3847_v23 = vld [vmem:[%s5173_s1 + $0xb0] ss:$12 sps:$4 sm:$0xff]  }
  0x8a   :  { %2286 = vmatmul.mubr.bf16.gmra.mxu0 %v3749_v24  ;;  %v3848_v24 = vld [vmem:[%s5173_s1 + $0x158] ss:$12 sps:$4 sm:$0xff]  }
  0x8b   :  { %2339 = vmatmul.mubr.bf16.gmra.mxu1 %v3758_v27  ;;  %2354 = vmatpush1.bf16.msra.mxu0 %v3750_v25  ;;  %v4656_v25 = vld [vmem:[%s5174_s0 + $0x8c] ss:$52 sps:$4 sm:$0xff]   ;;  %v3849_v27 = vld [vmem:[%s5173_s1 + $0x98] ss:$12 sps:$4 sm:$0xff]  }
  0x8c   :  { %2407 = vmatpush1.bf16.msra.mxu1 %v3753_v26  ;;  %2355 = vmatprep.subr.bf16.mxu0 %v3761_v28  ;;  %v3855_v26 = vld [vmem:[%s5173_s1 + $0x904] ss:$12 sps:$4 sm:$0xff]   ;;  %v4667_v28 = vld [vmem:[%s5174_s0 + $0x94] ss:$52 sps:$4 sm:$0xff]  }
  0x8d   :  { %2408 = vmatprep.subr.bf16.mxu1 %v3764_v29  ;;  %2381 = vmatprep.mubr.bf16.mxu0 %v4481_v33  ;;  %v3853_v29 = vld [vmem:[%s5173_s1 + $0x900] ss:$12 sps:$4 sm:$0xff]  }
  0x8e   :  { %2434 = vmatprep.mubr.bf16.mxu1 %v3842_v35  ;;  %v3859_v35 = vld [vmem:[%s5173_s1 + $0x80] ss:$12 sps:$4 sm:$0xff]  }
  0x8f   :  { %2356 = vmatpush1.bf16.msra.mxu0 %v3759_v30  ;;  %v3856_v30 = vld [vmem:[%s5173_s1 + $0x140] ss:$12 sps:$4 sm:$0xff]  }
  0x90   :  { %2409 = vmatpush1.bf16.msra.mxu1 %v3762_v31  ;;  %2357 = vmatprep.subr.bf16.mxu0 %v3767_v32  ;;  %v3863_v31 = vld [vmem:[%s5173_s1 + $0x2f0] ss:$12 sps:$4 sm:$0xff]  }
  0x91   :  { %2410 = vmatprep.subr.bf16.mxu1 %v3770_v34  ;;  %v4684_v32 = vld [vmem:[%s5174_s0 + $0x88] ss:$52 sps:$4 sm:$0xff]   ;;  %v4690_v34 = vld [vmem:[%s5174_s0 + $0x90] ss:$52 sps:$4 sm:$0xff]  }
  0x93   :  { %2358 = vmatpush1.bf16.msra.mxu0 %v3765_v36  ;;  %v3861_v36 = vld [vmem:[%s5173_s1 + $0x128] ss:$12 sps:$4 sm:$0xff]  }
  0x94   :  { %2411 = vmatpush1.bf16.msra.mxu1 %v3768_v37  ;;  %2359 = vmatprep.subr.bf16.mxu0 %v3773_v38  ;;  %v3862_v37 = vld [vmem:[%s5173_s1 + $0x68] ss:$12 sps:$4 sm:$0xff]   ;;  %v3972_v38 = vmov 0  }
  0x95   :  { %2412 = vmatprep.subr.bf16.mxu1 %v3776_v39  ;;  %v4706_v39 = vld [vmem:[%s5174_s0 + $0x30] ss:$52 sps:$4 sm:$0xff]  }
  0x97   :  { %2360 = vmatpush1.bf16.msra.mxu0 %v3771_v40  ;;  %v3865_v40 = vld [vmem:[%s5173_s1 + $0x110] ss:$12 sps:$4 sm:$0xff]  }
  0x98   :  { %2413 = vmatpush1.bf16.msra.mxu1 %v3774_v41  ;;  %2361 = vmatprep.subr.bf16.mxu0 %v3779_v42  ;;  %v3955_v41 = vld [vmem:[%s5174_s0 + $0x4] ss:$52 sps:$4 sm:$0xff]   ;;  %v3866_v42 = vld [vmem:[%s5173_s1 + $0x230] ss:$12 sps:$4 sm:$0xff]  }
  0x99   :  { %2414 = vmatprep.subr.bf16.mxu1 %v3782_v43  ;;  %v3867_v43 = vld [vmem:[%s5173_s1 + $0x50] ss:$12 sps:$4 sm:$0xff]  }
  0x9b   :  { %2362 = vmatpush1.bf16.msra.mxu0 %v3777_v44  ;;  %v3868_v44 = vld [vmem:[%s5173_s1 + $0x2d8] ss:$12 sps:$4 sm:$0xff]  }
  0x9c   :  { %2415 = vmatpush1.bf16.msra.mxu1 %v3780_v45  ;;  %2363 = vmatprep.subr.bf16.mxu0 %v3785_v46  ;;  %v3869_v45 = vld [vmem:[%s5173_s1 + $0xf8] ss:$12 sps:$4 sm:$0xff]  }
  0x9d   :  { %2416 = vmatprep.subr.bf16.mxu1 %v3788_v47  ;;  %v3870_v46 = vld [vmem:[%s5173_s1 + $0x218] ss:$12 sps:$4 sm:$0xff]  }
  0x9e   :  { %v3871_v47 = vld [vmem:[%s5173_s1 + $0x38] ss:$12 sps:$4 sm:$0xff]  }
  0x9f   :  { %2364 = vmatpush1.bf16.msra.mxu0 %v3783_v48  ;;  %v3872_v48 = vld [vmem:[%s5173_s1 + $0x2c0] ss:$12 sps:$4 sm:$0xff]  }
  0xa0   :  { %2417 = vmatpush1.bf16.msra.mxu1 %v3786_v49  ;;  %2365 = vmatprep.subr.bf16.mxu0 %v3791_v50  ;;  %v4740_v49 = vld [vmem:[%s5174_s0 + $0x98] ss:$52 sps:$4 sm:$0xff]  }
  0xa1   :  { %2418 = vmatprep.subr.bf16.mxu1 %v3794_v51  ;;  %v3874_v50 = vld [vmem:[%s5173_s1 + $0xe0] ss:$12 sps:$4 sm:$0xff]  }
  0xa2   :  { %v3875_v51 = vld [vmem:[%s5173_s1 + $0x200] ss:$12 sps:$4 sm:$0xff]  }
  0xa3   :  { %2366 = vmatpush2.bf16.msra.mxu0 %v3789_v52  ;;  %v3876_v52 = vld [vmem:[%s5173_s1 + $0x20] ss:$12 sps:$4 sm:$0xff]  }
  0xa4   :  { %2419 = vmatpush2.bf16.msra.mxu1 %v3792_v53  ;;  %2367 = vmatprep.subr.bf16.mxu0 %v3797_v54  ;;  %v3877_v53 = vld [vmem:[%s5173_s1 + $0x2a8] ss:$12 sps:$4 sm:$0xff]  }
  0xa5   :  { %2420 = vmatprep.subr.bf16.mxu1 %v3800_v55  ;;  %v3878_v54 = vld [vmem:[%s5173_s1 + $0xc8] ss:$12 sps:$4 sm:$0xff]  }
  0xa6   :  { %v3879_v55 = vld [vmem:[%s5173_s1 + $0x1e8] ss:$12 sps:$4 sm:$0xff]  }
  0xa7   :  { %2368 = vmatpush2.bf16.msra.mxu0 %v3795_v56  ;;  %v3880_v56 = vld [vmem:[%s5173_s1 + $0x8] ss:$12 sps:$4 sm:$0xff]  }
  0xa8   :  { %2421 = vmatpush2.bf16.msra.mxu1 %v3798_v57  ;;  %2369 = vmatprep.subr.bf16.mxu0 %v3803_v58  ;;  %v3881_v57 = vld [vmem:[%s5173_s1 + $0x290] ss:$12 sps:$4 sm:$0xff]  }
  0xa9   :  { %2422 = vmatprep.subr.bf16.mxu1 %v3806_v59  ;;  %v3883_v58 = vld [vmem:[%s5173_s1 + $0x470] ss:$12 sps:$4 sm:$0xff]  }
  0xaa   :  { %v3882_v59 = vld [vmem:[%s5173_s1 + $0x1d0] ss:$12 sps:$4 sm:$0xff]  }
  0xab   :  { %2370 = vmatpush2.bf16.msra.mxu0 %v3801_v60  ;;  %v3956_v60 = vld [vmem:[%s5174_s0 + $0xc] ss:$52 sps:$4 sm:$0xff]  }
  0xac   :  { %2423 = vmatpush2.bf16.msra.mxu1 %v3804_v61  ;;  %2371 = vmatprep.subr.bf16.mxu0 %v3809_v62  ;;  %v3884_v61 = vld [vmem:[%s5173_s1 + $0x3b0] ss:$12 sps:$4 sm:$0xff]   ;;  %v3885_v62 = vld [vmem:[%s5173_s1 + $0x278] ss:$12 sps:$4 sm:$0xff]  }
  0xad   :  { %2424 = vmatprep.subr.bf16.mxu1 %v3812_v63  ;;  %v3887_v63 = vld [vmem:[%s5173_s1 + $0x458] ss:$12 sps:$4 sm:$0xff]  }
  0xaf   :  { %2372 = vmatpush2.bf16.msra.mxu0 %v3807_v0  ;;  %v3886_v0 = vld [vmem:[%s5173_s1 + $0x1b8] ss:$12 sps:$4 sm:$0xff]  }
  0xb0   :  { %2425 = vmatpush2.bf16.msra.mxu1 %v3810_v1  ;;  %2373 = vmatprep.subr.bf16.mxu0 %v3815_v2  ;;  %v3957_v1 = vld [vmem:[%s5174_s0] ss:$52 sps:$4 sm:$0xff]   ;;  %v3888_v2 = vld [vmem:[%s5173_s1 + $0x398] ss:$12 sps:$4 sm:$0xff]  }
  0xb1   :  { %2426 = vmatprep.subr.bf16.mxu1 %v3818_v3  ;;  %v3889_v3 = vld [vmem:[%s5173_s1 + $0x260] ss:$12 sps:$4 sm:$0xff]  }
  0xb3   :  { %2374 = vmatpush2.bf16.msra.mxu0 %v3813_v4  ;;  %v3891_v4 = vld [vmem:[%s5173_s1 + $0x440] ss:$12 sps:$4 sm:$0xff]  }
  0xb4   :  { %2427 = vmatpush2.bf16.msra.mxu1 %v3816_v5  ;;  %2375 = vmatprep.subr.bf16.mxu0 %v3821_v6  ;;  %v3890_v5 = vld [vmem:[%s5173_s1 + $0x1a0] ss:$12 sps:$4 sm:$0xff]  }
  0xb5   :  { %2428 = vmatprep.subr.bf16.mxu1 %v3824_v7  ;;  %v3958_v6 = vld [vmem:[%s5174_s0 + $0x6c] ss:$52 sps:$4 sm:$0xff]  }
  0xb6   :  { %v3892_v7 = vld [vmem:[%s5173_s1 + $0x380] ss:$12 sps:$4 sm:$0xff]  }
  0xb7   :  { %2376 = vmatpush2.bf16.msra.mxu0 %v3819_v8  ;;  %v3893_v8 = vld [vmem:[%s5173_s1 + $0x248] ss:$12 sps:$4 sm:$0xff]  }
  0xb8   :  { %2429 = vmatpush2.bf16.msra.mxu1 %v3822_v9  ;;  %2377 = vmatprep.subr.bf16.mxu0 %v3827_v10  ;;  %v3895_v9 = vld [vmem:[%s5173_s1 + $0x428] ss:$12 sps:$4 sm:$0xff]  }
  0xb9   :  { %2430 = vmatprep.subr.bf16.mxu1 %v3830_v11  ;;  %v3894_v10 = vld [vmem:[%s5173_s1 + $0x188] ss:$12 sps:$4 sm:$0xff]  }
  0xba   :  { %v3896_v11 = vld [vmem:[%s5173_s1 + $0x368] ss:$12 sps:$4 sm:$0xff]  }
  0xbb   :  { %2378 = vmatpush2.bf16.msra.mxu0 %v3825_v12  ;;  %v3959_v12 = vld [vmem:[%s5174_s0 + $0x68] ss:$52 sps:$4 sm:$0xff]  }
  0xbc   :  { %2431 = vmatpush2.bf16.msra.mxu1 %v3828_v13  ;;  %2379 = vmatprep.subr.bf16.mxu0 %v3833_v14  ;;  %v3897_v13 = vld [vmem:[%s5173_s1 + $0x5f0] ss:$12 sps:$4 sm:$0xff]  }
  0xbd   :  { %2432 = vmatprep.subr.bf16.mxu1 %v3836_v15  ;;  %v3898_v14 = vld [vmem:[%s5173_s1 + $0x410] ss:$12 sps:$4 sm:$0xff]  }
  0xbe   :  { %v3899_v15 = vld [vmem:[%s5173_s1 + $0x530] ss:$12 sps:$4 sm:$0xff]  }
  0xbf   :  { %2380 = vmatpush2.bf16.msra.mxu0 %v3831_v16  ;;  %v3960_v16 = vld [vmem:[%s5174_s0 + $0x14] ss:$52 sps:$4 sm:$0xff]  }
  0xc0   :  { %2433 = vmatpush2.bf16.msra.mxu1 %v3834_v17  ;;  %2467 = vmatprep.subr.bf16.mxu0 %v3845_v18  ;;  %v3900_v17 = vld [vmem:[%s5173_s1 + $0x350] ss:$12 sps:$4 sm:$0xff]   ;;  %v3901_v18 = vld [vmem:[%s5173_s1 + $0x5d8] ss:$12 sps:$4 sm:$0xff]  }
  0xc1   :  { %3337 = vmatprep.subr.bf16.mxu1 %v3846_v21  ;;  %v3902_v21 = vld [vmem:[%s5173_s1 + $0x3f8] ss:$12 sps:$4 sm:$0xff]  }
  0xc2   :  { %2382 = vmatmul.mubr.bf16.vlgmr.msra.gmra.mxu0 %v4634_v19 }
  0xc3   :  { %2435 = vmatmul.mubr.bf16.vlgmr.msra.gmra.mxu1 %v4639_v20  ;;  %2468 = vmatpush1.bf16.msra.mxu0 %v3843_v22  ;;  %v3903_v22 = vld [vmem:[%s5173_s1 + $0x518] ss:$12 sps:$4 sm:$0xff]  }
  0xc4   :  { %3338 = vmatpush3.bf16.msra.mxu1 %v3847_v23  ;;  %2391 = vmatprep.mubr.bf16.mxu0 %v4656_v25  ;;  %v3961_v23 = vld [vmem:[%s5174_s0 + $0x8] ss:$52 sps:$4 sm:$0xff]  }
  0xc5   :  { %3339 = vmatprep.subr.bf16.mxu1 %v3848_v24  ;;  %2469 = vmatprep.subr.bf16.mxu0 %v3855_v26  ;;  %v3904_v24 = vld [vmem:[%s5173_s1 + $0x338] ss:$12 sps:$4 sm:$0xff]   ;;  %v3905_v26 = vld [vmem:[%s5173_s1 + $0x5c0] ss:$12 sps:$4 sm:$0xff]  }
  0xc6   :  { %2444 = vmatprep.mubr.bf16.mxu1 %v4667_v28 }
  0xc7   :  { %2470 = vmatpush1.bf16.msra.mxu0 %v3853_v29  ;;  %v3962_v29 = vld [vmem:[%s5174_s0 + $0x74] ss:$52 sps:$4 sm:$0xff]  }
  0xc8   :  { %3340 = vmatpush3.bf16.msra.mxu1 %v3849_v27  ;;  %3365 = vmatprep.subr.bf16.mxu0 %v3863_v31  ;;  %v3906_v27 = vld [vmem:[%s5173_s1 + $0x3e0] ss:$12 sps:$4 sm:$0xff]  }
  0xc9   :  { %3341 = vmatprep.subr.bf16.mxu1 %v3856_v30  ;;  %v3907_v30 = vld [vmem:[%s5173_s1 + $0x500] ss:$12 sps:$4 sm:$0xff]  }
  0xca   :  { %2392 = vmatmul.mubr.bf16.gmra.mxu0 %v4684_v32  ;;  %v3908_v31 = vld [vmem:[%s5173_s1 + $0x320] ss:$12 sps:$4 sm:$0xff]  }
  0xcb   :  { %2445 = vmatmul.mubr.bf16.gmra.mxu1 %v4690_v34  ;;  %2487 = vmatprep.mubr.bf16.mxu0 %v3972_v38 }
  0xcc   :  { %3342 = vmatpush3.bf16.msra.mxu1 %v3859_v35  ;;  %2540 = vmatprep.mubr.bf16.mxu1 %v3955_v41  ;;  %v3909_v35 = vld [vmem:[%s5173_s1 + $0x5a8] ss:$12 sps:$4 sm:$0xff]   ;;  %v3913_v41 = vld [vmem:[%s5173_s1 + $0x590] ss:$12 sps:$4 sm:$0xff]  }
  0xcd   :  { %3343 = vmatprep.subr.bf16.mxu1 %v3861_v36  ;;  %v3910_v36 = vld [vmem:[%s5173_s1 + $0x3c8] ss:$12 sps:$4 sm:$0xff]  }
  0xd0   :  { %3344 = vmatpush3.bf16.msra.mxu1 %v3862_v37  ;;  %v3963_v37 = vld [vmem:[%s5174_s0 + $0x70] ss:$52 sps:$4 sm:$0xff]  }
  0xd1   :  { %3345 = vmatprep.subr.bf16.mxu1 %v3865_v40  ;;  %v3912_v40 = vld [vmem:[%s5173_s1 + $0x308] ss:$12 sps:$4 sm:$0xff]  }
  0xd2   :  { %3333 = vmatmul.mubr.msk.bf16.vlgmr.msra.gmra.mxu0 %vm2130_vm0, %v4706_v39 }
  0xd3   :  { %3366 = vmatpush3.bf16.msra.mxu0 %v3866_v42  ;;  %2497 = vmatprep.mubr.bf16.mxu0 %v3972_v38  ;;  %v3911_v38 = vld [vmem:[%s5173_s1 + $0x4e8] ss:$12 sps:$4 sm:$0xff]   ;;  %v3915_v42 = vld [vmem:[%s5173_s1 + $0x770] ss:$12 sps:$4 sm:$0xff]  }
  0xd4   :  { %3346 = vmatpush3.bf16.msra.mxu1 %v3867_v43  ;;  %3367 = vmatprep.subr.bf16.mxu0 %v3868_v44  ;;  %v3964_v43 = vld [vmem:[%s5174_s0 + $0x1c] ss:$52 sps:$4 sm:$0xff]  }
  0xd5   :  { %3347 = vmatprep.subr.bf16.mxu1 %v3869_v45  ;;  %v3914_v44 = vld [vmem:[%s5173_s1 + $0x4d0] ss:$12 sps:$4 sm:$0xff]  }
  0xd6   :  { %v3916_v45 = vld [vmem:[%s5173_s1 + $0x6b0] ss:$12 sps:$4 sm:$0xff]  }
  0xd7   :  { %3368 = vmatpush3.bf16.msra.mxu0 %v3870_v46  ;;  %v3917_v46 = vld [vmem:[%s5173_s1 + $0x578] ss:$12 sps:$4 sm:$0xff]  }
  0xd8   :  { %3348 = vmatpush3.bf16.msra.mxu1 %v3871_v47  ;;  %3369 = vmatprep.subr.bf16.mxu0 %v3872_v48  ;;  %v3919_v47 = vld [vmem:[%s5173_s1 + $0x758] ss:$12 sps:$4 sm:$0xff]  }
  0xd9   :  { %3349 = vmatprep.subr.bf16.mxu1 %v3874_v50  ;;  %v3965_v48 = vld [vmem:[%s5174_s0 + $0x10] ss:$52 sps:$4 sm:$0xff]  }
  0xda   :  { %3334 = vmatmul.mubr.msk.bf16.gmra.mxu0 %vm2130_vm0, %v4740_v49  ;;  %v3918_v50 = vld [vmem:[%s5173_s1 + $0x4b8] ss:$12 sps:$4 sm:$0xff]  }
  0xdb   :  { %3370 = vmatpush3.bf16.msra.mxu0 %v3875_v51  ;;  %2589 = vmatprep.mubr.bf16.mxu0 %v3956_v60  ;;  %v3920_v51 = vld [vmem:[%s5173_s1 + $0x698] ss:$12 sps:$4 sm:$0xff]   ;;  %v3926_v60 = vld [vmem:[%s5173_s1 + $0x488] ss:$12 sps:$4 sm:$0xff]  }
  0xdc   :  { %3350 = vmatpush3.bf16.msra.mxu1 %v3876_v52  ;;  %3371 = vmatprep.subr.bf16.mxu0 %v3877_v53  ;;  %v3921_v52 = vld [vmem:[%s5173_s1 + $0x560] ss:$12 sps:$4 sm:$0xff]  }
  0xdd   :  { %3351 = vmatprep.subr.bf16.mxu1 %v3878_v54  ;;  %v3923_v53 = vld [vmem:[%s5173_s1 + $0x740] ss:$12 sps:$4 sm:$0xff]   ;;  %v3966_v54 = vld [vmem:[%s5174_s0 + $0x7c] ss:$52 sps:$4 sm:$0xff]  }
  0xdf   :  { %3372 = vmatpush3.bf16.msra.mxu0 %v3879_v55  ;;  %v3922_v55 = vld [vmem:[%s5173_s1 + $0x4a0] ss:$12 sps:$4 sm:$0xff]  }
  0xe0   :  { %3352 = vmatpush3.bf16.msra.mxu1 %v3880_v56  ;;  %3373 = vmatprep.subr.bf16.mxu0 %v3881_v57  ;;  %v3924_v56 = vld [vmem:[%s5173_s1 + $0x680] ss:$12 sps:$4 sm:$0xff]   ;;  %v3925_v57 = vld [vmem:[%s5173_s1 + $0x548] ss:$12 sps:$4 sm:$0xff]  }
  0xe1   :  { %3393 = vmatprep.subr.bf16.mxu1 %v3883_v58  ;;  %v3927_v58 = vld [vmem:[%s5173_s1 + $0x728] ss:$12 sps:$4 sm:$0xff]  }
  0xe3   :  { %2541 = vmatmul.mubr.bf16.vlgmr.msra.gmra.mxu1 %v3957_v1  ;;  %3374 = vmatpush3.bf16.msra.mxu0 %v3882_v59  ;;  %v3967_v59 = vld [vmem:[%s5174_s0 + $0x78] ss:$52 sps:$4 sm:$0xff]   ;;  %v3932_v1 = vld [vmem:[%s5173_s1 + $0x650] ss:$12 sps:$4 sm:$0xff]  }
  0xe4   :  { %3394 = vmatpush3.bf16.msra.mxu1 %v3884_v61  ;;  %3375 = vmatprep.subr.bf16.mxu0 %v3885_v62  ;;  %v3928_v61 = vld [vmem:[%s5173_s1 + $0x668] ss:$12 sps:$4 sm:$0xff]   ;;  %v3929_v62 = vld [vmem:[%s5173_s1 + $0x8f0] ss:$12 sps:$4 sm:$0xff]  }
  0xe5   :  { %3395 = vmatprep.subr.bf16.mxu1 %v3887_v63  ;;  %2548 = vmatprep.mubr.bf16.mxu1 %v3958_v6  ;;  %v3930_v63 = vld [vmem:[%s5173_s1 + $0x710] ss:$12 sps:$4 sm:$0xff]   ;;  %v3937_v6 = vld [vmem:[%s5173_s1 + $0x8c0] ss:$12 sps:$4 sm:$0xff]  }
  0xe7   :  { %3376 = vmatpush3.bf16.msra.mxu0 %v3886_v0  ;;  %v3931_v0 = vld [vmem:[%s5173_s1 + $0x830] ss:$12 sps:$4 sm:$0xff]  }
  0xe8   :  { %3396 = vmatpush3.bf16.msra.mxu1 %v3888_v2  ;;  %3377 = vmatprep.subr.bf16.mxu0 %v3889_v3  ;;  %v3933_v2 = vld [vmem:[%s5173_s1 + $0x8d8] ss:$12 sps:$4 sm:$0xff]  }
  0xe9   :  { %3397 = vmatprep.subr.bf16.mxu1 %v3891_v4  ;;  %v3968_v3 = vld [vmem:[%s5174_s0 + $0x18] ss:$52 sps:$4 sm:$0xff]  }
  0xea   :  { %v3935_v4 = vld [vmem:[%s5173_s1 + $0x818] ss:$12 sps:$4 sm:$0xff]  }
  0xeb   :  { %2549 = vmatmul.mubr.bf16.gmra.mxu1 %v3959_v12  ;;  %3378 = vmatpush3.bf16.msra.mxu0 %v3890_v5  ;;  %v3936_v5 = vld [vmem:[%s5173_s1 + $0x638] ss:$12 sps:$4 sm:$0xff]   ;;  %v3942_v12 = vld [vmem:[%s5173_s1 + $0x6c8] ss:$12 sps:$4 sm:$0xff]  }
  0xec   :  { %3398 = vmatpush3.bf16.msra.mxu1 %v3892_v7  ;;  %3379 = vmatprep.subr.bf16.mxu0 %v3893_v8  ;;  %v3938_v7 = vld [vmem:[%s5173_s1 + $0x6e0] ss:$12 sps:$4 sm:$0xff]   ;;  %v3969_v8 = vld [vmem:[%s5174_s0 + $0x84] ss:$52 sps:$4 sm:$0xff]  }
  0xed   :  { %3399 = vmatprep.subr.bf16.mxu1 %v3895_v9  ;;  %2638 = vmatprep.mubr.bf16.mxu1 %v3960_v16  ;;  %v3939_v9 = vld [vmem:[%s5173_s1 + $0x800] ss:$12 sps:$4 sm:$0xff]   ;;  %v3945_v16 = vld [vmem:[%s5173_s1 + $0x890] ss:$12 sps:$4 sm:$0xff]  }
  0xef   :  { %3380 = vmatpush3.bf16.msra.mxu0 %v3894_v10  ;;  %v3940_v10 = vld [vmem:[%s5173_s1 + $0x620] ss:$12 sps:$4 sm:$0xff]  }
  0xf0   :  { %3400 = vmatpush3.bf16.msra.mxu1 %v3896_v11  ;;  %3421 = vmatprep.subr.bf16.mxu0 %v3897_v13  ;;  %v3941_v11 = vld [vmem:[%s5173_s1 + $0x8a8] ss:$12 sps:$4 sm:$0xff]  }
  0xf1   :  { %3401 = vmatprep.subr.bf16.mxu1 %v3898_v14  ;;  %v3970_v13 = vld [vmem:[%s5174_s0 + $0x80] ss:$52 sps:$4 sm:$0xff]  }
  0xf2   :  { %2590 = vmatmul.mubr.bf16.vlgmr.msra.gmra.mxu0 %v3961_v23  ;;  %v3943_v14 = vld [vmem:[%s5173_s1 + $0x7e8] ss:$12 sps:$4 sm:$0xff]  }
  0xf3   :  { %3422 = vmatpush3.bf16.msra.mxu0 %v3899_v15  ;;  %2597 = vmatprep.mubr.bf16.mxu0 %v3962_v29  ;;  %v3944_v15 = vld [vmem:[%s5173_s1 + $0x608] ss:$12 sps:$4 sm:$0xff]  }
  0xf4   :  { %3402 = vmatpush3.bf16.msra.mxu1 %v3900_v17  ;;  %3423 = vmatprep.subr.bf16.mxu0 %v3901_v18  ;;  %v3948_v17 = vld [vmem:[%s5173_s1 + $0x920] ss:$12 sps:$4 sm:$0xff]   ;;  %v3953_v23 = vld [vmem:[%s5173_s1 + $0x908] ss:$12 sps:$4 sm:$0xff]  }
  0xf5   :  { %3403 = vmatprep.subr.bf16.mxu1 %v3902_v21  ;;  %v3971_v18 = vld [vmem:[%s5174_s0 + $0x2c] ss:$52 sps:$4 sm:$0xff]   ;;  %v3946_v21 = vld [vmem:[%s5173_s1 + $0x7d0] ss:$12 sps:$4 sm:$0xff]  }
  0xf7   :  { %3424 = vmatpush3.bf16.msra.mxu0 %v3903_v22  ;;  %v3947_v22 = vld [vmem:[%s5173_s1 + $0x878] ss:$12 sps:$4 sm:$0xff]  }
  0xf8   :  { %3404 = vmatpush3.bf16.msra.mxu1 %v3904_v24  ;;  %3425 = vmatprep.subr.bf16.mxu0 %v3905_v26  ;;  %v3949_v24 = vld [vmem:[%s5173_s1 + $0x7b8] ss:$12 sps:$4 sm:$0xff]   ;;  %v3950_v26 = vld [vmem:[%s5173_s1 + $0x860] ss:$12 sps:$4 sm:$0xff]  }
  0xf9   :  { %3405 = vmatprep.subr.bf16.mxu1 %v3906_v27  ;;  %v3951_v27 = vld [vmem:[%s5173_s1 + $0x7a0] ss:$12 sps:$4 sm:$0xff]  }
  0xfa   :  { %2598 = vmatmul.mubr.bf16.gmra.mxu0 %v3963_v37 }
  0xfb   :  { %3426 = vmatpush3.bf16.msra.mxu0 %v3907_v30  ;;  %2687 = vmatprep.mubr.bf16.mxu0 %v3964_v43 }
  0xfc   :  { %3406 = vmatpush3.bf16.msra.mxu1 %v3908_v31  ;;  %3427 = vmatprep.subr.bf16.mxu0 %v3909_v35 }
  0xfd   :  { %3407 = vmatprep.subr.bf16.mxu1 %v3910_v36 }
  0xff   :  { %3428 = vmatpush3.bf16.msra.mxu0 %v3911_v38 }
 0x100   :  { %3408 = vmatpush3.bf16.msra.mxu1 %v3912_v40  ;;  %3429 = vmatprep.subr.bf16.mxu0 %v3913_v41 }
 0x101   :  { %3449 = vmatprep.subr.bf16.mxu1 %v3915_v42 }
 0x103   :  { %2639 = vmatmul.mubr.bf16.vlgmr.msra.gmra.mxu1 %v3965_v48  ;;  %3430 = vmatpush3.bf16.msra.mxu0 %v3914_v44  ;;  %v2224_v31 = vpop.f32.mrf.mxu1 }
 0x104   :  { %3450 = vmatpush3.bf16.msra.mxu1 %v3916_v45  ;;  %3431 = vmatprep.subr.bf16.mxu0 %v3917_v46 }
 0x105   :  { %3451 = vmatprep.subr.bf16.mxu1 %v3919_v47  ;;  %2646 = vmatprep.mubr.bf16.mxu1 %v3966_v54  ;;  %v2226_v36 = vpop.f32.mrf.mxu1 }
 0x107   :  { %3432 = vmatpush3.bf16.msra.mxu0 %v3918_v50 }
 0x108   :  { %3452 = vmatpush3.bf16.msra.mxu1 %v3920_v51  ;;  %3433 = vmatprep.subr.bf16.mxu0 %v3921_v52 }
 0x109   :  { %3453 = vmatprep.subr.bf16.mxu1 %v3923_v53 }
 0x10b   :  { %2647 = vmatmul.mubr.bf16.gmra.mxu1 %v3967_v59  ;;  %3434 = vmatpush3.bf16.msra.mxu0 %v3922_v55 }
 0x10c   :  { %3454 = vmatpush3.bf16.msra.mxu1 %v3924_v56  ;;  %3435 = vmatprep.subr.bf16.mxu0 %v3925_v57 }
 0x10d   :  { %3455 = vmatprep.subr.bf16.mxu1 %v3927_v58  ;;  %2736 = vmatprep.mubr.bf16.mxu1 %v4481_v33  ;;  %v3934_v33 = vld [vmem:[%s5173_s1 + $0x6f8] ss:$12 sps:$4 sm:$0xff]  }
 0x10f   :  { %3436 = vmatpush3.bf16.msra.mxu0 %v3926_v60 }
 0x110   :  { %3456 = vmatpush3.bf16.msra.mxu1 %v3928_v61  ;;  %3477 = vmatprep.subr.bf16.mxu0 %v3929_v62 }
 0x111   :  { %3457 = vmatprep.subr.bf16.mxu1 %v3930_v63 }
 0x112   :  { %2688 = vmatmul.mubr.bf16.vlgmr.msra.gmra.mxu0 %v3968_v3 }
 0x113   :  { %3478 = vmatpush3.bf16.msra.mxu0 %v3931_v0  ;;  %2695 = vmatprep.mubr.bf16.mxu0 %v3969_v8 }
 0x114   :  { %3458 = vmatpush3.bf16.msra.mxu1 %v3932_v1  ;;  %3479 = vmatprep.subr.bf16.mxu0 %v3933_v2 }
 0x115   :  { %3459 = vmatprep.subr.bf16.mxu1 %v3934_v33 }
 0x117   :  { %3480 = vmatpush3.bf16.msra.mxu0 %v3935_v4 }
 0x118   :  { %3460 = vmatpush3.bf16.msra.mxu1 %v3936_v5  ;;  %3481 = vmatprep.subr.bf16.mxu0 %v3937_v6 }
 0x119   :  { %3461 = vmatprep.subr.bf16.mxu1 %v3938_v7 }
 0x11a   :  { %2696 = vmatmul.mubr.bf16.gmra.mxu0 %v3970_v13 }
 0x11b   :  { %3482 = vmatpush3.bf16.msra.mxu0 %v3939_v9  ;;  %2785 = vmatprep.mubr.bf16.mxu0 %v3971_v18 }
 0x11c   :  { %3462 = vmatpush3.bf16.msra.mxu1 %v3940_v10  ;;  %3483 = vmatprep.subr.bf16.mxu0 %v3941_v11 }
 0x11d   :  { %3463 = vmatprep.subr.bf16.mxu1 %v3942_v12 }
 0x11f   :  { %3484 = vmatpush3.bf16.msra.mxu0 %v3943_v14 }
 0x120   :  { %3464 = vmatpush3.bf16.msra.mxu1 %v3944_v15  ;;  %3485 = vmatprep.subr.bf16.mxu0 %v3945_v16 }
 0x121   :  { %3509 = vmatprep.subr.bf16.mxu1 %v3948_v17 }
 0x123   :  { %2737 = vmatmul.mubr.bf16.vlgmr.msra.gmra.mxu1 %v4634_v19  ;;  %3486 = vmatpush3.bf16.msra.mxu0 %v3946_v21  ;;  %v3952_v19 = vld [vmem:[%s5173_s1 + $0x848] ss:$12 sps:$4 sm:$0xff]  }
 0x124   :  { %3510 = vmatpush3.bf16.msra.mxu1 %v3948_v17  ;;  %3487 = vmatprep.subr.bf16.mxu0 %v3947_v22 }
 0x125   :  { %2744 = vmatprep.mubr.bf16.mxu1 %v4656_v25  ;;  %3511 = vmatprep.subr.bf16.mxu1 %v3953_v23  ;;  %v3954_v25 = vld [vmem:[%s5173_s1 + $0x788] ss:$12 sps:$4 sm:$0xff]   ;;  %s3973_s1 = smov 80  }
 0x127   :  { %3488 = vmatpush3.bf16.msra.mxu0 %v3949_v24 }
 0x128   :  { %3512 = vmatpush3.bf16.msra.mxu1 %v3953_v23  ;;  %3489 = vmatprep.subr.bf16.mxu0 %v3950_v26 }
 0x12b   :  { %2745 = vmatmul.mubr.bf16.gmra.mxu1 %v4684_v32  ;;  %3490 = vmatpush3.bf16.msra.mxu0 %v3951_v27  ;;  %v2171_v32 = vpop.f32.mrf.mxu0 }
 0x12c   :  { %3513 = vmatprep.mubr.msk.bf16.mxu1 %vm2130_vm0, %v4706_v39  ;;  %3491 = vmatprep.subr.bf16.mxu0 %v3952_v19  ;;  %v5048_v39 = vpop.f32.mrf.mxu1  ;;  %v2225_v61 = vadd.f32 %v2224_v31, %v2171_v32 }
 0x12d   :  { %v2173_v29 = vpop.f32.mrf.mxu0 }
 0x12e   :  { %v2227_v63 = vadd.f32 %v2226_v36, %v2173_v29 }
 0x12f   :  { %3492 = vmatpush3.bf16.msra.mxu0 %v3954_v25  ;;  %v5046_v30 = vpop.f32.mrf.mxu0 }
 0x130   :  { %v2229_v31 = vadd.f32 %v5048_v39, %v5046_v30 }
 0x131   :  { %v2177_v35 = vpop.f32.mrf.mxu0 }
 0x132   :  { %2786 = vmatmul.mubr.bf16.vlgmr.msra.gmra.mxu0 %v4639_v20  ;;  %v2230_v20 = vpop.f32.mrf.mxu1 }
 0x133   :  { %3514 = vmatmul.mubr.msk.bf16.vlgmr.msra.gmra.mxu1 %vm2130_vm0, %v4740_v49  ;;  %2793 = vmatprep.mubr.bf16.mxu0 %v4667_v28  ;;  %v2181_v37 = vpop.f32.mrf.mxu0  ;;  %v2231_v5 = vadd.f32 %v2230_v20, %v2177_v35 }
 0x134   :  { %v2234_v49 = vpop.f32.mrf.mxu1 }
 0x135   :  { %v5050_v38 = vpop.f32.mrf.mxu0  ;;  %v2235_v25 = vadd.f32 %v2234_v49, %v2181_v37 }
 0x136   :  { %v2236_v28 = vpop.f32.mrf.mxu1 }
 0x137   :  { %v5052_v40 = vpop.f32.mrf.mxu0 }
 0x138   :  { %v5056_v42 = vpop.f32.mrf.mxu1 }
 0x139   :  { %v5054_v41 = vpop.f32.mrf.mxu0  ;;  %v2239_v30 = vadd.f32 %v5056_v42, %v5052_v40 }
 0x13a   :  { %2794 = vmatmul.mubr.bf16.gmra.mxu0 %v4690_v34  ;;  %v5058_v44 = vpop.f32.mrf.mxu1 }
 0x142   :  { %v2277_v34 = vpop.f32.mrf.mxu0 }
 0x143   :  { %v2330_v46 = vpop.f32.mrf.mxu1  ;;  %v2278_v0 = vadd.f32 %v2277_v34, %v2225_v61  ;;  %v2237_v34 = vadd.f32 %v2236_v28, %v5050_v38 }
 0x144   :  { %v2279_v43 = vpop.f32.mrf.mxu0 }
 0x145   :  { %v2332_v48 = vpop.f32.mrf.mxu1  ;;  %v2280_v33 = vadd.f32 %v2279_v43, %v2227_v63  ;;  %v2331_v6 = vadd.f32 %v2330_v46, %v2278_v0 }
 0x146   :  { %v2281_v45 = vpop.f32.mrf.mxu0 }
 0x147   :  { %v2334_v51 = vpop.f32.mrf.mxu1  ;;  %v2333_v8 = vadd.f32 %v2332_v48, %v2280_v33  ;;  %v2282_v43 = vadd.f32 %v2281_v45, %v2229_v31  ;;  %v2241_v45 = vadd.f32 %v5058_v44, %v5054_v41 }
 0x148   :  { %v2283_v47 = vpop.f32.mrf.mxu0 }
 0x149   :  { %v2336_v53 = vpop.f32.mrf.mxu1  ;;  %v2284_v9 = vadd.f32 %v2283_v47, %v2231_v5  ;;  %v2335_v39 = vadd.f32 %v2334_v51, %v2282_v43 }
 0x14a   :  { %v2287_v50 = vpop.f32.mrf.mxu0 }
 0x14b   :  { %v2340_v54 = vpop.f32.mrf.mxu1  ;;  %v2337_v15 = vadd.f32 %v2336_v53, %v2284_v9  ;;  %v2288_v35 = vadd.f32 %v2287_v50, %v2235_v25 }
 0x14c   :  { %v2289_v52 = vpop.f32.mrf.mxu0 }
 0x14d   :  { %v2342_v56 = vpop.f32.mrf.mxu1  ;;  %v2290_v37 = vadd.f32 %v2289_v52, %v2237_v34  ;;  %v2341_v49 = vadd.f32 %v2340_v54, %v2288_v35 }
 0x14e   :  { %v2291_v55 = vpop.f32.mrf.mxu0 }
 0x14f   :  { %v5062_v59 = vpop.f32.mrf.mxu1  ;;  %v2292_v48 = vadd.f32 %v2291_v55, %v2239_v30  ;;  %v2343_v50 = vadd.f32 %v2342_v56, %v2290_v37 }
 0x150   :  { %v5060_v57 = vpop.f32.mrf.mxu0 }
 0x151   :  { %v5064_v1 = vpop.f32.mrf.mxu1  ;;  %v2294_v40 = vadd.f32 %v5060_v57, %v2241_v45  ;;  %v2345_v42 = vadd.f32 %v5062_v59, %v2292_v48 }
 0x153   :  { %v2347_v44 = vadd.f32 %v5064_v1, %v2294_v40 }
 0x182   :  { %v2383_v58 = vpop.f32.mrf.mxu0 }
 0x183   :  { %v2436_v3 = vpop.f32.mrf.mxu1  ;;  %v2384_v10 = vadd.f32 %v2383_v58, %v2331_v6 }
 0x184   :  { %v2385_v60 = vpop.f32.mrf.mxu0 }
 0x185   :  { %v2438_v11 = vpop.f32.mrf.mxu1  ;;  %v2386_v13 = vadd.f32 %v2385_v60, %v2333_v8  ;;  %v2437_v16 = vadd.f32 %v2436_v3, %v2384_v10 }
 0x186   :  { %v2387_v62 = vpop.f32.mrf.mxu0 }
 0x187   :  { %v2440_v17 = vpop.f32.mrf.mxu1  ;;  %v2439_v21 = vadd.f32 %v2438_v11, %v2386_v13  ;;  %v2388_v53 = vadd.f32 %v2387_v62, %v2335_v39 }
 0x188   :  { %v2389_v2 = vpop.f32.mrf.mxu0 }
 0x189   :  { %v2390_v22 = vadd.f32 %v2389_v2, %v2337_v15  ;;  %v2442_v27 = vpop.f32.mrf.mxu1  ;;  %v2441_v51 = vadd.f32 %v2440_v17, %v2388_v53 }
 0x18a   :  { %v2393_v4 = vpop.f32.mrf.mxu0 }
 0x18b   :  { %v2443_v32 = vadd.f32 %v2442_v27, %v2390_v22  ;;  %v2446_v20 = vpop.f32.mrf.mxu1  ;;  %v2394_v47 = vadd.f32 %v2393_v4, %v2341_v49 }
 0x18c   :  { %v2395_v7 = vpop.f32.mrf.mxu0 }
 0x18d   :  { %v2448_v46 = vpop.f32.mrf.mxu1  ;;  %v2396_v52 = vadd.f32 %v2395_v7, %v2343_v50  ;;  %v2447_v54 = vadd.f32 %v2446_v20, %v2394_v47 }
 0x18e   :  { %v2397_v12 = vpop.f32.mrf.mxu0 }
 0x18f   :  { %v2450_v38 = vpop.f32.mrf.mxu1  ;;  %v2398_v60 = vadd.f32 %v2397_v12, %v2345_v42  ;;  %v2449_v61 = vadd.f32 %v2448_v46, %v2396_v52 }
 0x190   :  { %v5066_v14 = vpop.f32.mrf.mxu0 }
 0x191   :  { %v2452_v56 = vpop.f32.mrf.mxu1  ;;  %v2400_v63 = vadd.f32 %v5066_v14, %v2347_v44  ;;  %v2451_v0 = vadd.f32 %v2450_v38, %v2398_v60 }
 0x192   :  { %v2489_v18 = vpop.f32.mrf.mxu0 }
 0x193   :  { %v5068_v23 = vadd.f32 %v2489_v18, %v2437_v16  ;;  %v2453_v4 = vadd.f32 %v2452_v56, %v2400_v63 }
 0x194   :  { %v2491_v24 = vpop.f32.mrf.mxu0 }
 0x195   :  { %v2492_v26 = vadd.f32 %v2491_v24, %v2439_v21  ;;  %2855 = vrot.lane.b32.xlu0 %v5068_v23, %s3973_s1 }
 0x196   :  { %v2493_v19 = vpop.f32.mrf.mxu0 }
 0x197   :  { %2877 = vrot.lane.b32.xlu1 %v2492_v26, %s3974_s10  ;;  %v5092_v62 = vadd.f32 %v2493_v19, %v2441_v51 }
 0x198   :  { %v2495_v29 = vpop.f32.mrf.mxu0 }
 0x199   :  { %v2496_v36 = vadd.f32 %v2495_v29, %v2443_v32  ;;  %2875 = vrot.lane.b32.xlu0 %v5068_v23, %s3974_s10 }
 0x19a   :  { %v2499_v28 = vpop.f32.mrf.mxu0 }
 0x19b   :  { %2881 = vrot.lane.b32.xlu1 %v2496_v36, %s3974_s10  ;;  %v5089_v55 = vadd.f32 %v2499_v28, %v2447_v54 }
 0x19c   :  { %v2501_v58 = vpop.f32.mrf.mxu0 }
 0x19d   :  { %2903 = vrot.lane.b32.xlu0 %v2492_v26, %s3975_s11  ;;  %v2502_v57 = vadd.f32 %v2501_v58, %v2449_v61 }
 0x19e   :  { %v2503_v59 = vpop.f32.mrf.mxu0 }
 0x19f   :  { %2905 = vrot.lane.b32.xlu1 %v2496_v36, %s3975_s11  ;;  %v5101_v33 = vadd.f32 %v2503_v59, %v2451_v0 }
 0x1a0   :  { %v2505_v3 = vpop.f32.mrf.mxu0 }
 0x1a1   :  { %2919 = vrot.lane.b32.xlu0 %v2492_v26, %s3976_s12  ;;  %v2506_v5 = vadd.f32 %v2505_v3, %v2453_v4 }
 0x1a3   :  { %2921 = vrot.lane.b32.xlu1 %v2496_v36, %s3976_s12  ;;  %v3353_v41 = vpop.f32.mrf.mxu1 }
 0x1a5   :  { %2939 = vrot.lane.b32.xlu0 %v2492_v26, %s3977_s13  ;;  %v3354_v2 = vpop.f32.mrf.mxu1 }
 0x1a6   :  { %v3355_v50 = vadd.f32 %v3354_v2, %v3353_v41 }
 0x1a7   :  { %2859 = vrot.lane.b32.xlu1 %v5089_v55, %s3973_s1  ;;  %v3356_v1 = vpop.f32.mrf.mxu1 }
 0x1a9   :  { %2857 = vrot.lane.b32.xlu0 %v5092_v62, %s3973_s1  ;;  %v3357_v6 = vpop.f32.mrf.mxu1 }
 0x1aa   :  { %v3358_v42 = vadd.f32 %v3357_v6, %v3356_v1 }
 0x1ab   :  { %2885 = vrot.lane.b32.xlu1 %v2502_v57, %s3974_s10  ;;  %v3359_v8 = vpop.f32.mrf.mxu1 }
 0x1ad   :  { %2879 = vrot.lane.b32.xlu0 %v5092_v62, %s3974_s10  ;;  %v3360_v10 = vpop.f32.mrf.mxu1 }
 0x1ae   :  { %v3361_v60 = vadd.f32 %v3360_v10, %v3359_v8 }
 0x1af   :  { %2861 = vrot.lane.b32.xlu1 %v5101_v33, %s3973_s1  ;;  %v5115_v12 = vpop.f32.mrf.mxu1 }
 0x1b1   :  { %2943 = vrot.lane.b32.xlu0 %v2496_v36, %s3977_s13  ;;  %v5118_v14 = vpop.f32.mrf.mxu1 }
 0x1b2   :  { %v3381_v7 = vpop.f32.mrf.mxu0 }
 0x1b3   :  { %2889 = vrot.lane.b32.xlu1 %v2506_v5, %s3974_s10 }
 0x1b4   :  { %v3382_v9 = vpop.f32.mrf.mxu0 }
 0x1b5   :  { %2883 = vrot.lane.b32.xlu0 %v5089_v55, %s3974_s10  ;;  %v3383_v39 = vadd.f32 %v3382_v9, %v3381_v7 }
 0x1b6   :  { %v3384_v11 = vpop.f32.mrf.mxu0 }
 0x1b7   :  { %2909 = vrot.lane.b32.xlu1 %v2506_v5, %s3975_s11  ;;  %v2592_v28 = vadd.f32 %v3383_v39, %v3355_v50 }
 0x1b8   :  { %v3385_v13 = vpop.f32.mrf.mxu0 }
 0x1b9   :  { %2907 = vrot.lane.b32.xlu0 %v2502_v57, %s3975_s11  ;;  %v3386_v45 = vadd.f32 %v3385_v13, %v3384_v11 }
 0x1ba   :  { %v3387_v16 = vpop.f32.mrf.mxu0 }
 0x1bb   :  { %2925 = vrot.lane.b32.xlu1 %v2506_v5, %s3976_s12  ;;  %v2595_v59 = vadd.f32 %v3386_v45, %v3358_v42 }
 0x1bc   :  { %v3388_v18 = vpop.f32.mrf.mxu0 }
 0x1bd   :  { %2923 = vrot.lane.b32.xlu0 %v2502_v57, %s3976_s12  ;;  %v3389_v61 = vadd.f32 %v3388_v18, %v3387_v16 }
 0x1be   :  { %v5123_v22 = vpop.f32.mrf.mxu0 }
 0x1bf   :  { %v2600_v11 = vadd.f32 %v3389_v61, %v3361_v60 }
 0x1c0   :  { %v5125_v26 = vpop.f32.mrf.mxu0 }
 0x1c1   :  { %2947 = vrot.lane.b32.xlu0 %v2502_v57, %s3977_s13 }
 0x1c3   :  { %v3409_v15 = vpop.f32.mrf.mxu1 }
 0x1c5   :  { %2887 = vrot.lane.b32.xlu0 %v5101_v33, %s3974_s10  ;;  %v3410_v17 = vpop.f32.mrf.mxu1 }
 0x1c6   :  { %v3411_v53 = vadd.f32 %v3410_v17, %v3409_v15 }
 0x1c7   :  { %v3412_v21 = vpop.f32.mrf.mxu1 }
 0x1c8   :  { %v2641_v51 = vadd.f32 %v3411_v53, %v2592_v28 }
 0x1c9   :  { %2951 = vrot.lane.b32.xlu0 %v2506_v5, %s3977_s13  ;;  %v3413_v24 = vpop.f32.mrf.mxu1 }
 0x1ca   :  { %v3414_v56 = vadd.f32 %v3413_v24, %v3412_v21 }
 0x1cb   :  { %v3415_v27 = vpop.f32.mrf.mxu1 }
 0x1cc   :  { %v2644_v4 = vadd.f32 %v3414_v56, %v2595_v59 }
 0x1cd   :  { %v3416_v25 = vpop.f32.mrf.mxu1 }
 0x1ce   :  { %v3417_v3 = vadd.f32 %v3416_v25, %v3415_v27 }
 0x1cf   :  { %v5127_v29 = vpop.f32.mrf.mxu1 }
 0x1d0   :  { %v2649_v17 = vadd.f32 %v3417_v3, %v2600_v11 }
 0x1d1   :  { %v5129_v35 = vpop.f32.mrf.mxu1 }
 0x1d2   :  { %v3437_v19 = vpop.f32.mrf.mxu0 }
 0x1d4   :  { %v3438_v32 = vpop.f32.mrf.mxu0 }
 0x1d5   :  { %v3439_v52 = vadd.f32 %v3438_v32, %v3437_v19  ;;  %v3364_v32 = vadd.f32 %v5118_v14, %v5115_v12 }
 0x1d6   :  { %v3440_v31 = vpop.f32.mrf.mxu0 }
 0x1d7   :  { %v2690_v63 = vadd.f32 %v3439_v52, %v2641_v51 }
 0x1d8   :  { %v3441_v36 = vpop.f32.mrf.mxu0 }
 0x1d9   :  { %v3442_v0 = vadd.f32 %v3441_v36, %v3440_v31 }
 0x1da   :  { %v3443_v34 = vpop.f32.mrf.mxu0 }
 0x1db   :  { %v2693_v1 = vadd.f32 %v3442_v0, %v2644_v4 }
 0x1dc   :  { %v3444_v49 = vpop.f32.mrf.mxu0 }
 0x1dd   :  { %v3445_v6 = vadd.f32 %v3444_v49, %v3443_v34 }
 0x1de   :  { %v3446_v47 = vpop.f32.mrf.mxu0 }
 0x1df   :  { %v2698_v27 = vadd.f32 %v3445_v6, %v2649_v17 }
 0x1e0   :  { %v3447_v54 = vpop.f32.mrf.mxu0 }
 0x1e3   :  { %v3465_v20 = vpop.f32.mrf.mxu1 }
 0x1e5   :  { %v3466_v43 = vpop.f32.mrf.mxu1 }
 0x1e6   :  { %v3467_v58 = vadd.f32 %v3466_v43, %v3465_v20  ;;  %v3392_v20 = vadd.f32 %v5125_v26, %v5123_v22 }
 0x1e7   :  { %v3468_v37 = vpop.f32.mrf.mxu1 }
 0x1e8   :  { %v2739_v5 = vadd.f32 %v3467_v58, %v2690_v63  ;;  %v2603_v39 = vadd.f32 %v3392_v20, %v3364_v32 }
 0x1e9   :  { %v3469_v46 = vpop.f32.mrf.mxu1 }
 0x1ea   :  { %v3470_v7 = vadd.f32 %v3469_v46, %v3468_v37  ;;  %v3420_v46 = vadd.f32 %v5129_v35, %v5127_v29 }
 0x1eb   :  { %v3471_v30 = vpop.f32.mrf.mxu1 }
 0x1ec   :  { %v2742_v16 = vadd.f32 %v3470_v7, %v2693_v1  ;;  %v2652_v50 = vadd.f32 %v3420_v46, %v2603_v39 }
 0x1ed   :  { %v3472_v48 = vpop.f32.mrf.mxu1 }
 0x1ee   :  { %v3473_v18 = vadd.f32 %v3472_v48, %v3471_v30  ;;  %v3448_v48 = vadd.f32 %v3447_v54, %v3446_v47 }
 0x1ef   :  { %v3474_v38 = vpop.f32.mrf.mxu1 }
 0x1f0   :  { %v2747_v34 = vadd.f32 %v3473_v18, %v2698_v27  ;;  %v2701_v22 = vadd.f32 %v3448_v48, %v2652_v50 }
 0x1f1   :  { %v3475_v40 = vpop.f32.mrf.mxu1 }
 0x1f2   :  { %v3493_v44 = vpop.f32.mrf.mxu0  ;;  %v3476_v53 = vadd.f32 %v3475_v40, %v3474_v38 }
 0x1f3   :  { %v3515_v57 = vpop.f32.mrf.mxu1 }
 0x1f4   :  { %v3494_v41 = vpop.f32.mrf.mxu0  ;;  %v2750_v28 = vadd.f32 %v3476_v53, %v2701_v22 }
 0x1f5   :  { %v2836_v2 = vpop.f32.mrf.mxu1  ;;  %v3495_v9 = vadd.f32 %v3494_v41, %v3493_v44 }
 0x1f6   :  { %v3496_v13 = vpop.f32.mrf.mxu0 }
 0x1f7   :  { %v2788_v15 = vadd.f32 %v3495_v9, %v2739_v5  ;;  %v3516_v8 = vpop.f32.mrf.mxu1 }
 0x1f8   :  { %v3497_v10 = vpop.f32.mrf.mxu0 }
 0x1f9   :  { %v2837_v21 = vadd.f32 %v2836_v2, %v2788_v15  ;;  %v3498_v24 = vadd.f32 %v3497_v10, %v3496_v13  ;;  %v2839_v31 = vpop.f32.mrf.mxu1 }
 0x1fa   :  { %v3499_v19 = vpop.f32.mrf.mxu0 }
 0x1fb   :  { %v2791_v25 = vadd.f32 %v3498_v24, %v2742_v16  ;;  %2968 = vrot.lane.b32.xlu0 %v2837_v21, %s3978_s14  ;;  %2941 = vrot.lane.b32.xlu1 %v2837_v21, %s3977_s13 }
 0x1fc   :  { %v3500_v36 = vpop.f32.mrf.mxu0 }
 0x1fd   :  { %v2840_v43 = vadd.f32 %v2839_v31, %v2791_v25  ;;  %v3501_v37 = vadd.f32 %v3500_v36, %v3499_v19 }
 0x1fe   :  { %v3502_v49 = vpop.f32.mrf.mxu0 }
 0x1ff   :  { %v2796_v30 = vadd.f32 %v3501_v37, %v2747_v34  ;;  %2984 = vrot.lane.b32.xlu0 %v2837_v21, %s3979_s15  ;;  %2945 = vrot.lane.b32.xlu1 %v2840_v43, %s3977_s13 }
 0x200   :  { %v3503_v14 = vpop.f32.mrf.mxu0 }
 0x201   :  { %v2845_v12 = vadd.f32 %v3515_v57, %v2796_v30  ;;  %v3504_v26 = vadd.f32 %v3503_v14, %v3502_v49 }
 0x203   :  { %2972 = vrot.lane.b32.xlu0 %v2845_v12, %s3978_s14  ;;  %2970 = vrot.lane.b32.xlu1 %v2840_v43, %s3978_s14  ;;  %v2799_v29 = vadd.f32 %v3504_v26, %v2750_v28 }
 0x205   :  { %v2848_v35 = vadd.f32 %v3516_v8, %v2799_v29 }
 0x207   :  { %2988 = vrot.lane.b32.xlu0 %v2845_v12, %s3979_s15  ;;  %2986 = vrot.lane.b32.xlu1 %v2840_v43, %s3979_s15  ;;  %v2856_v47 = vpop.permute.xlu0 %2855 }
 0x208   :  { %v2867_v9 = vmax.f32 %v5068_v23, %v2856_v47 }
 0x209   :  { %v2878_v54 = vpop.permute.xlu1 %2877 }
 0x20b   :  { %2949 = vrot.lane.b32.xlu1 %v2845_v12, %s3977_s13  ;;  %v2876_v38 = vpop.permute.xlu0 %2875 }
 0x20c   :  { %v2891_v7 = vsel %vm2130_vm0, %v2876_v38, %v2878_v54 }
 0x20d   :  { %v2882_v42 = vpop.permute.xlu1 %2881  ;;  %v2899_v11 = vmax.f32 %v2867_v9, %v2891_v7 }
 0x20f   :  { %2953 = vrot.lane.b32.xlu1 %v2848_v35, %s3977_s13  ;;  %v2904_v45 = vpop.permute.xlu0 %2903 }
 0x210   :  { %v2915_v8 = vmax.f32 %v2899_v11, %v2904_v45 }
 0x211   :  { %v2906_v56 = vpop.permute.xlu1 %2905 }
 0x213   :  { %2974 = vrot.lane.b32.xlu1 %v2848_v35, %s3978_s14  ;;  %v2920_v52 = vpop.permute.xlu0 %2919 }
 0x214   :  { %v2931_v10 = vmax.f32 %v2915_v8, %v2920_v52 }
 0x215   :  { %v2922_v60 = vpop.permute.xlu1 %2921 }
 0x217   :  { %2990 = vrot.lane.b32.xlu1 %v2848_v35, %s3979_s15  ;;  %v2940_v40 = vpop.permute.xlu0 %2939 }
 0x219   :  { %v2860_v44 = vpop.permute.xlu1 %2859 }
 0x21a   :  { %v2869_v34 = vmax.f32 %v5089_v55, %v2860_v44 }
 0x21b   :  { %v2858_v51 = vpop.permute.xlu0 %2857 }
 0x21c   :  { %v2868_v1 = vmax.f32 %v5092_v62, %v2858_v51 }
 0x21d   :  { %v2886_v59 = vpop.permute.xlu1 %2885 }
 0x21f   :  { %v2880_v58 = vpop.permute.xlu0 %2879 }
 0x220   :  { %v2892_v13 = vsel %vm2130_vm0, %v2880_v58, %v2882_v42 }
 0x221   :  { %v2862_v0 = vpop.permute.xlu1 %2861  ;;  %v2900_v17 = vmax.f32 %v2868_v1, %v2892_v13 }
 0x222   :  { %v2870_v30 = vmax.f32 %v5101_v33, %v2862_v0 }
 0x223   :  { %v2944_v61 = vpop.permute.xlu0 %2943  ;;  %v2916_v21 = vmax.f32 %v2900_v17, %v2906_v56 }
 0x225   :  { %v2890_v41 = vpop.permute.xlu1 %2889  ;;  %v2932_v31 = vmax.f32 %v2916_v21, %v2922_v60 }
 0x227   :  { %v2884_v57 = vpop.permute.xlu0 %2883 }
 0x228   :  { %v2893_v62 = vsel %vm2130_vm0, %v2884_v57, %v2886_v59 }
 0x229   :  { %v2910_v4 = vpop.permute.xlu1 %2909  ;;  %v2901_v49 = vmax.f32 %v2869_v34, %v2893_v62 }
 0x22b   :  { %v2908_v63 = vpop.permute.xlu0 %2907 }
 0x22c   :  { %v2917_v50 = vmax.f32 %v2901_v49, %v2908_v63 }
 0x22d   :  { %v2926_v6 = vpop.permute.xlu1 %2925 }
 0x22f   :  { %v2924_v3 = vpop.permute.xlu0 %2923 }
 0x230   :  { %v2933_v55 = vmax.f32 %v2917_v50, %v2924_v3 }
 0x233   :  { %v2948_v2 = vpop.permute.xlu0 %2947 }
 0x237   :  { %v2888_v5 = vpop.permute.xlu0 %2887 }
 0x238   :  { %v2894_v46 = vsel %vm2130_vm0, %v2888_v5, %v2890_v41 }
 0x239   :  { %v2902_v12 = vmax.f32 %v2870_v30, %v2894_v46 }
 0x23b   :  { %v2952_v15 = vpop.permute.xlu0 %2951  ;;  %v2918_v28 = vmax.f32 %v2902_v12, %v2910_v4 }
 0x23d   :  { %v2934_v52 = vmax.f32 %v2918_v28, %v2926_v6 }
 0x26d   :  { %v2969_v16 = vpop.permute.xlu0 %2968  ;;  %v2942_v18 = vpop.permute.xlu1 %2941 }
 0x26e   :  { %v2956_v24 = vsel %vm2955_vm1, %v2940_v40, %v2942_v18 }
 0x26f   :  { %v2964_v19 = vmax.f32 %v2931_v10, %v2956_v24 }
 0x271   :  { %v2985_v27 = vpop.permute.xlu0 %2984  ;;  %v2980_v25 = vmax.f32 %v2964_v19, %v2969_v16  ;;  %v2946_v23 = vpop.permute.xlu1 %2945 }
 0x272   :  { %v2957_v32 = vsel %vm2955_vm1, %v2944_v61, %v2946_v23 }
 0x273   :  { %v2996_v36 = vmax.f32 %v2980_v25, %v2985_v27  ;;  %v2965_v20 = vmax.f32 %v2932_v31, %v2957_v32 }
 0x275   :  { %v3000_v43 = vand.u32 2147483647, %v2996_v36  ;;  %v2971_v37 = vpop.permute.xlu1 %2970  ;;  %v2973_v53 = vpop.permute.xlu0 %2972 }
 0x276   :  { %v2981_v39 = vmax.f32 %v2965_v20, %v2971_v37 }
 0x277   :  { %3005 = vst.msk [vmem:[%s5175_s2] sm:$0xff] %vm3004_vm2, %v3000_v43 }
 0x279   :  { %v2987_v48 = vpop.permute.xlu1 %2986  ;;  %v2989_v38 = vpop.permute.xlu0 %2988 }
 0x27a   :  { %v2997_v14 = vmax.f32 %v2981_v39, %v2987_v48 }
 0x27c   :  { %v3001_v22 = vand.u32 2147483647, %v2997_v14 }
 0x27d   :  { %v2950_v26 = vpop.permute.xlu1 %2949 }
 0x27e   :  { %3006 = vst.msk [vmem:[%s5175_s2 + $0x8] sm:$0xff] %vm3004_vm2, %v3001_v22  ;;  %v2958_v29 = vsel %vm2955_vm1, %v2948_v2, %v2950_v26 }
 0x27f   :  { %v2966_v35 = vmax.f32 %v2933_v55, %v2958_v29 }
 0x281   :  { %v2982_v47 = vmax.f32 %v2966_v35, %v2973_v53  ;;  %v2954_v33 = vpop.permute.xlu1 %2953 }
 0x282   :  { %v2959_v45 = vsel %vm2955_vm1, %v2952_v15, %v2954_v33 }
 0x283   :  { %v2998_v54 = vmax.f32 %v2982_v47, %v2989_v38  ;;  %v2967_v40 = vmax.f32 %v2934_v52, %v2959_v45 }
 0x285   :  { %v3002_v42 = vand.u32 2147483647, %v2998_v54  ;;  %v2975_v51 = vpop.permute.xlu1 %2974 }
 0x286   :  { %v2983_v56 = vmax.f32 %v2967_v40, %v2975_v51 }
 0x287   :  { %3007 = vst.msk [vmem:[%s5175_s2 + $0x10] sm:$0xff] %vm3004_vm2, %v3002_v42 }
 0x289   :  { %v2991_v58 = vpop.permute.xlu1 %2990 }
 0x28a   :  { %v2999_v60 = vmax.f32 %v2983_v56, %v2991_v58 }
 0x28c   :  { %v3003_v61 = vand.u32 2147483647, %v2999_v60 }
 0x28e   :  { %3008 = vst.msk [vmem:[%s5175_s2 + $0x18] sm:$0xff] %vm3004_vm2, %v3003_v61 }

// kernel: net_scalar_forward.7
= control target key start
LH: loop header
LB: loop body
LE: loop exit
PB: predicated region body
PF: predicated region fallthrough
CT: control target
= control target key end

     0   :  { %s661_s0 = inlined_call_operand.vmem [shape: bf16[2,48], index: 0, kind: input, shape index: {}]   ;;  %s662_s1 = inlined_call_operand.vmem [shape: bf16[48,256], index: 1, kind: input, shape index: {}]   ;;  %s663_s2 = inlined_call_operand.vmem [shape: f32[1,256], index: 2, kind: input, shape index: {}]   ;;  %s664_s3 = inlined_call_operand.vmem [shape: bf16[256,10], index: 3, kind: input, shape index: {}]   ;;  %s665_s4 = inlined_call_operand.vmem [shape: f32[1,10], index: 4, kind: input, shape index: {}]   ;;  %s666_s5 = inlined_call_operand.vmem [shape: bf16[48,1], index: 5, kind: input, shape index: {}]   ;;  %s667_s6 = inlined_call_operand.<no memory space> [shape: f32[1,1], index: 6, kind: input, shape index: {}]   ;;  %s668_s7 = inlined_call_operand.hbm [shape: f32[2,10], index: 7, kind: output, shape index: {0}]   ;;  %s669_s8 = inlined_call_operand.vmem [shape: f32[2,1], index: 8, kind: output, shape index: {1}]  }
   0x1   :  { %v14_v0 = vstv %s667_s6 }
   0x2   :  { %15 = vst [vmem:[#allocation2] sm:$0x1] %v14_v0 }
   0x3   :  { %v467_v1 = vld [vmem:[%s662_s1 + $0x24] ss:$8 sps:$4 sm:$0xff]   ;;  %v469_v2 = vld [vmem:[%s662_s1 + $0x20] ss:$8 sps:$4 sm:$0xff]   ;;  %v517_v3 = vmov 0   ;;  %v476_v8 = vld [vmem:[%s664_s3 + $0x78] sm:$0xff]  }
   0x4   :  { %117 = vmatprep.mubr.bf16.mxu0 %v517_v3  ;;  %95 = vmatprep.subr.bf16.mxu0 %v467_v1  ;;  %v470_v4 = vld [vmem:[%s662_s1 + $0x14] ss:$8 sps:$4 sm:$0xff]   ;;  %v472_v5 = vld [vmem:[%s662_s1 + $0x10] ss:$8 sps:$4 sm:$0xff]   ;;  %v473_v6 = vld [vmem:[%s662_s1 + $0x4] ss:$8 sps:$4 sm:$0xff]  }
   0x5   :  { %96 = vmatpush1.bf16.msra.mxu0 %v469_v2  ;;  %v475_v7 = vld [vmem:[%s662_s1] ss:$8 sps:$4 sm:$0xff]   ;;  %v477_v9 = vld [vmem:[%s664_s3 + $0x38] sm:$0xff]   ;;  %427 = vmatprep.subr.bf16.mxu1 %v476_v8  ;;  %v478_v10 = vld [vmem:[%s664_s3 + $0x70] sm:$0xff]   ;;  %vm81_vm0 = vcmask 392192   ;;  %v518_v15 = vmov 0.0  }
   0x6   :  { %97 = vmatprep.subr.bf16.mxu0 %v470_v4  ;;  %428 = vmatpush3.bf16.msra.mxu1 %v477_v9  ;;  %v479_v11 = vld [vmem:[%s664_s3 + $0x30] sm:$0xff]   ;;  %v480_v12 = vld [vmem:[%s664_s3 + $0x68] sm:$0xff]   ;;  %v32_v13 = vld [vmem:[%s661_s0] sm:$0x1] }
   0x7   :  { %429 = vmatprep.subr.bf16.mxu1 %v478_v10  ;;  %v481_v14 = vld [vmem:[%s664_s3 + $0x28] sm:$0xff]   ;;  %v482_v16 = vld [vmem:[%s664_s3 + $0x60] sm:$0xff]   ;;  %v486_v17 = vld [vmem:[%s666_s5 + $0x10] sm:$0xff]  }
   0x8   :  { %v483_v18 = vld [vmem:[%s664_s3 + $0x20] sm:$0xff]   ;;  %v484_v19 = vld [vmem:[%s664_s3 + $0x58] sm:$0xff]   ;;  %v489_v21 = vld [vmem:[%s666_s5 + $0x8] sm:$0xff]  }
   0x9   :  { %98 = vmatpush1.bf16.msra.mxu0 %v472_v5  ;;  %v485_v20 = vld [vmem:[%s664_s3 + $0x18] sm:$0xff]   ;;  %v487_v22 = vld [vmem:[%s664_s3 + $0x50] sm:$0xff]  }
   0xa   :  { %99 = vmatprep.subr.bf16.mxu0 %v473_v6  ;;  %430 = vmatpush3.bf16.msra.mxu1 %v479_v11 }
   0xb   :  { %431 = vmatprep.subr.bf16.mxu1 %v480_v12 }
   0xd   :  { %100 = vmatpush1.bf16.msra.mxu0 %v475_v7 }
   0xe   :  { %453 = vmatprep.subr.bf16.mxu0 %v518_v15  ;;  %432 = vmatpush3.bf16.msra.mxu1 %v481_v14 }
   0xf   :  { %433 = vmatprep.subr.bf16.mxu1 %v482_v16 }
  0x10   :  { %404 = vmatmul.mubr.msk.bf16.vlgmr.msra.gmra.mxu0 %vm81_vm0, %v32_v13 }
  0x11   :  { %454 = vmatpush3.bf16.msra.mxu0 %v486_v17 }
  0x12   :  { %455 = vmatprep.subr.bf16.mxu0 %v518_v15  ;;  %434 = vmatpush3.bf16.msra.mxu1 %v483_v18 }
  0x13   :  { %435 = vmatprep.subr.bf16.mxu1 %v484_v19 }
  0x15   :  { %456 = vmatpush3.bf16.msra.mxu0 %v489_v21 }
  0x16   :  { %457 = vmatprep.subr.bf16.mxu0 %v518_v15 }
  0x17   :  { %16 = vsyncpa [#allocation4], 0  ;;  %436 = vmatpush3.bf16.msra.mxu1 %v485_v20  ;;  %v488_v23 = vld [vmem:[%s664_s3 + $0x10] sm:$0xff]   ;;  %v490_v24 = vld [vmem:[%s664_s3 + $0x48] sm:$0xff]   ;;  %vm519_vm1 = vmmov 0   ;;  %v41_v29 = vlaneseq  ;;  %vm378_vm2 = vcmask 1024  }
  0x18   :  { %437 = vmatprep.subr.bf16.mxu1 %v487_v22  ;;  %v491_v25 = vld [vmem:[%s664_s3 + $0x8] sm:$0xff]   ;;  %v492_v26 = vld [vmem:[%s666_s5] sm:$0xff]   ;;  %459 = vmatprep.mubr.msk.bf16.mxu0 %vm519_vm1, %v518_v15  ;;  %s520_s0 = smov [#allocation3]   ;;  %vm305_vm3 = vcmask 74752  }
  0x19   :  { %458 = vmatpush3.bf16.msra.mxu0 %v492_v26  ;;  %v493_v27 = vld [vmem:[%s664_s3 + $0x40] sm:$0xff]   ;;  %v42_v30 = vshrl.u32 %v41_v29, 7  ;;  %s386_s13 = sshll.u32 %s520_s0, 4  ;;  %s387_s13 = int_to_ptr.vmem [resolvable:$true] %s386_s13 }
  0x1a   :  { %v494_v28 = vld [vmem:[%s664_s3] sm:$0xff]   ;;  %s495_s14 = scalar_lea.vmem %s387_s13, 32  ;;  %p500_p1 = scmp.lt.s32.totalorder %s387_s13, %s387_s13 }
  0x1b   :  { %438 = vmatpush3.bf16.msra.mxu1 %v488_v23  ;;  %v43_v31 = vsub.s32 0, %v42_v30  ;;  %v39_v32 = vld [vmem:[%s663_s2] sm:$0x3]  ;;  %v47_v33 = vsub.s32 1, %v42_v30  ;;  %p496_p0 = scmp.ne.s32.totalorder %s387_s13, %s495_s14  ;;  %p501_p2 = scmp.lt.s32.totalorder %s495_s14, %s495_s14 }
  0x1c   :  { %439 = vmatprep.subr.bf16.mxu1 %v490_v24  ;;  %460 = vmatmul.mubr.msk.bf16.vlgmr.msra.gmra.mxu0 %vm81_vm0, %v32_v13  ;;  %v422_v46 = vld [vmem:[#allocation2] ss:$0 sm:$0xff] }
  0x1d   :  { %v44_v34 = vrot.slane %v39_v32, %v43_v31  ;;  %v48_v35 = vrot.slane %v39_v32, %v47_v33  ;;  %v405_v53 = vld [vmem:[%s665_s4] ss:$0 sm:$0xff]  ;;  %p502_p3 = por %p501_p2, %p500_p1 }
  0x1f   :  { %440 = vmatpush3.bf16.msra.mxu1 %v491_v25  ;;  %p503_p4 = pnand %p502_p3, %p496_p0 }
  0x20   :  { %441 = vmatprep.subr.bf16.mxu1 %v493_v27 }
  0x23   :  { %442 = vmatpush3.bf16.msra.mxu1 %v494_v28 }
  0xd0   :  { %v119_v36 = vpop.f32.mrf.mxu0 }
  0xd1   :  { %v120_v37 = vadd.f32 %v119_v36, %v44_v34 }
  0xd2   :  { %v121_v38 = vpop.f32.mrf.mxu0 }
  0xd3   :  { %v122_v39 = vadd.f32 %v121_v38, %v48_v35  ;;  %v126_v40 = vmax.f32 %v120_v37, 0.0 }
  0xd4   :  { %v123_v41 = vpop.f32.mrf.mxu0 }
  0xd5   :  { %v127_v42 = vmax.f32 %v122_v39, 0.0  ;;  %v128_v45 = vpack.c.bf16 %v126_v40, %v126_v40 }
  0xd6   :  { %v124_v43 = vpop.f32.mrf.mxu0 }
  0xd7   :  { %v129_v44 = vpack.c.bf16 %v127_v42, %v127_v42 }
  0xd9   :  { %297 = vmatprep.mubr.bf16.mxu1 %v129_v44 }
  0xda   :  { %298 = vmatmul.mubr.bf16.vlgmr.msra.gmra.mxu1 %v128_v45 }
  0xdc   :  { %v372_v47 = vpop.f32.mrf.mxu0 }
  0xdd   :  { %v373_v48 = vadd.f32 %v422_v46, %v372_v47 }
  0xde   :  { %v461_v49 = vpop.f32.mrf.mxu0 }
  0xdf   :  { %379 = vst.msk [vmem:[%s669_s8] sm:$0x3] %vm378_vm2, %v373_v48 }
  0xe0   :  { %v375_v50 = vpop.f32.mrf.mxu0 }
  0xe2   :  { %v462_v51 = vpop.f32.mrf.mxu0 }
 0x19a   :  { %v443_v52 = vpop.f32.mrf.mxu1 }
 0x19c   :  { %v444_v54 = vpop.f32.mrf.mxu1 }
 0x19d   :  { %v445_v55 = vadd.f32 %v444_v54, %v443_v52 }
 0x19e   :  { %v446_v56 = vpop.f32.mrf.mxu1 }
 0x19f   :  { %v300_v57 = vadd.f32 %v445_v55, %v405_v53 }
 0x1a0   :  { %v447_v58 = vpop.f32.mrf.mxu1 }
 0x1a1   :  { %306 = vst.msk [vmem:[#allocation3] sm:$0x3] %vm305_vm3, %v300_v57 }
 0x1a2   :  { %506 = shalt.err (!%p503_p4)
}
 0x1a3   :  { %389 = dma.vmem_to_hbm [thread:$0]  %s387_s13, 32, %s668_s7, [#allocation4]  }
 0x1a4   :  { %515 = dma.done.wait [#allocation4], 32  }
 0x1a5   :  { %516 = vsyncadd [#allocation4], 4294967264 }
 0x1a6   :  { %397 = vsyncpa [#allocation4], 1 }

</bundles_post_ra>
